<compile_context>
chip_gen: v7x
topology: tpu7x:2x2x1
jax: 0.10.0
libtpu: 0.0.40
codegen_flags: <defaults>
</compile_context>

<pallas_src>
import collections
import functools

import jax
import jax.numpy as jnp
import numpy as np
from jax import lax
from jax.experimental import pallas as pl
from jax.experimental.pallas import tpu as pltpu

BN_EPS = 1e-5
SUBLANE_PACK = 16    # bf16 sublane packing: pad Cin per tap to this multiple

StageCfg = collections.namedtuple(
    "StageCfg", "H W Cin Cin_pad Cout K pad relu pool pool_type")


# ---------------------------------------------------------------------------
# In-kernel building blocks
# ---------------------------------------------------------------------------
def _pad_channels(x, c_to):
  """Zero-pad the leading (channel) axis of x up to c_to rows."""
  c = x.shape[0]
  if c_to == c:
    return x
  pad = jnp.zeros((c_to - c,) + tuple(x.shape[1:]), x.dtype)
  return jnp.concatenate([x, pad], axis=0)


def _conv_bn_relu_pool(x, w, scale, shift, *, B, st):
  """One fused conv stage on a batch block.

  x:      (Cin_pad, B, H*W)  bf16   (channels zero-padded to Cin_pad)
  w:      (Cout, K*K*Cin_pad) bf16  (rows ordered (kh, kw) outer / Cin inner)
  scale:  (Cout, 1) f32             folded conv-bias + BN scale
  shift:  (Cout, 1) f32
  returns (Cout, B, Ho*Wo) f32      Ho,Wo = H//2,W//2 if pooled else H,W
  """
  H, W, K, pad = st.H, st.W, st.K, st.pad
  Cp, Cout = st.Cin_pad, st.Cout
  HW = H * W
  L = B * HW

  # Per-image zero halo on the flattened spatial axis: every conv tap is a
  # static lane window of xbig; row validity is handled exactly by the zeros.
  S = pad * W + pad
  if S > 0:
    z = jnp.zeros((Cp, B, S), x.dtype)
    xbig = jnp.concatenate([z, x, z], axis=2)          # (Cp, B, HW + 2S)
  else:
    xbig = x

  # Column-validity masks, hoisted out of the (kh, kw) loop (K-1 distinct).
  col = lax.broadcasted_iota(jnp.int32, (1, 1, HW), 2) % W
  col_ok = {d: (col + d >= 0) & (col + d < W)
            for d in range(-pad, pad + 1) if d != 0}
  zero = jnp.zeros((), x.dtype)

  taps = []
  for kh in range(K):
    for kw in range(K):
      dh, dw = kh - pad, kw - pad
      s = dh * W + dw
      t = xbig[:, :, S + s:S + s + HW]                 # (Cp, B, HW) bf16
      if dw != 0:
        t = jnp.where(col_ok[dw], t, zero)
      taps.append(t)
  # All pieces are Cin_pad (=16k) rows -> tile-aligned bf16 concatenate.
  patches = jnp.concatenate(taps, axis=0)              # (K*K*Cp, B, HW)
  patches = patches.reshape(K * K * Cp, L)             # (K*K*Cp, B*HW)

  # Single MXU matmul, batch folded into the lane dim, f32 accumulation.
  y = jnp.dot(w, patches, preferred_element_type=jnp.float32)   # (Cout, L)
  y = y * scale + shift                                # folded bias + BN
  if st.relu:
    y = jnp.maximum(y, 0.0)

  if st.pool:
    H2, W2 = H // 2, W // 2
    comb = jnp.maximum if st.pool_type == "max" else jnp.add
    t = y.reshape(Cout, B * H2, 2 * W)
    v = comb(t[:, :, :W], t[:, :, W:])                 # vertical 2->1
    u = v.reshape(Cout, B * H2, W2, 2)
    y = comb(u[..., 0], u[..., 1])                     # horizontal 2->1
    if st.pool_type == "avg":
      y = y * 0.25
    return y.reshape(Cout, B, H2 * W2)
  return y.reshape(Cout, B, HW)


def _fused_kernel(x_ref, *refs, B, stages, mlp_relu):
  """Whole DynamicCNN forward for one batch block of B images.

  x_ref:  (1, Cin0, B, H0*W0) f32
  refs:   [w, scale, shift] per conv stage, then per classifier layer, then out
  out:    (1, B, num_classes) f32
  """
  out_ref = refs[-1]
  prm = refs[:-1]

  st0 = stages[0]
  h = x_ref[0].astype(jnp.bfloat16)                    # (Cin0, B, H0*W0)
  h = _pad_channels(h, st0.Cin_pad)

  p = 0
  for si, st in enumerate(stages):
    w = prm[p][...]
    sc = prm[p + 1][...]
    sh = prm[p + 2][...]
    p += 3
    h = _conv_bn_relu_pool(h, w, sc, sh, B=B, st=st)   # (Cout, B, Ho*Wo) f32
    if si + 1 < len(stages):
      h = _pad_channels(h.astype(jnp.bfloat16), stages[si + 1].Cin_pad)

  # PyTorch NCHW flatten order: per image the feature vector is (c, h, w).
  Cl = stages[-1].Cout
  Ll = h.shape[-1]
  if B == 1:
    feat = h.reshape(1, Cl * Ll)
  else:
    feat = jnp.transpose(h, (1, 0, 2)).reshape(B, Cl * Ll)

  # Fused classifier: (Linear + folded BN1d + optional ReLU) x n_layers.
  # TODO(synk): for B < 8 the MXU M-dim is under-filled; pad to 8 rows if the
  # classifier ever becomes the bottleneck (it is negligible at this size).
  for relu in mlp_relu:
    w = prm[p][...]
    sc = prm[p + 1][...]
    sh = prm[p + 2][...]
    p += 3
    feat = jnp.dot(feat.astype(jnp.bfloat16), w,
                   preferred_element_type=jnp.float32)
    feat = feat * sc + sh
    if relu:
      feat = jnp.maximum(feat, 0.0)
  out_ref[0] = feat


# ---------------------------------------------------------------------------
# pallas_call wrapper (single launch for the whole network)
# ---------------------------------------------------------------------------
def _pick_batch_block(n, cap=8):
  """Images per grid step: amortize step overhead but keep >=2 grid blocks
  so both v7x TensorCores get work (no-op on single-TC v5e/v6e)."""
  b = max(1, min(cap, n))
  if n >= 2:
    while b > 1 and -(-n // b) < 2:
      b //= 2
  return b


def _fused_forward(x_nchw, stages, stage_params, mlp_relu, mlp_params):
  N, Cin0, H0, W0 = x_nchw.shape
  HW0 = H0 * W0
  assert stages[0].Cin == Cin0 and stages[0].H == H0 and stages[0].W == W0
  num_classes = mlp_params[-1][0].shape[1]

  B = _pick_batch_block(N)
  nb = -(-N // B)
  n_pad = nb * B

  x = x_nchw.reshape(N, Cin0, HW0)
  if n_pad > N:
    x = jnp.concatenate(
        [x, jnp.zeros((n_pad - N, Cin0, HW0), x.dtype)], axis=0)
  # (nb, B, Cin0, HW) -> (nb, Cin0, B, HW): channels-major per block so the
  # kernel builds (Cin, B*HW) im2col operands without an in-kernel transpose.
  x = x.reshape(nb, B, Cin0, HW0).transpose(0, 2, 1, 3)

  flat_params = [p for triple in (list(stage_params) + list(mlp_params))
                 for p in triple]
  in_specs = [pl.BlockSpec((1, Cin0, B, HW0), lambda n: (n, 0, 0, 0))]
  in_specs += [pl.BlockSpec(p.shape, lambda n: (0, 0)) for p in flat_params]

  kernel = functools.partial(_fused_kernel, B=B, stages=tuple(stages),
                             mlp_relu=tuple(mlp_relu))
  # TODO(synk): for large DynamicCNN configs (big f_in / many channels) the
  # VMEM-resident weights + B*HW*K*K*Cin_pad patches would need Fin tiling and
  # an explicit vmem_limit_bytes budget (v7x 64 MiB / v5e 16 MiB scoped); the
  # asserted toy config uses well under 1 MiB per grid step.
  out = pl.pallas_call(
      kernel,
      out_shape=jax.ShapeDtypeStruct((nb, B, num_classes), jnp.float32),
      grid=(nb,),
      in_specs=in_specs,
      out_specs=pl.BlockSpec((1, B, num_classes), lambda n: (n, 0, 0)),
      compiler_params=pltpu.CompilerParams(
          dimension_semantics=("parallel",)),
  )(x, *flat_params)
  return out.reshape(n_pad, num_classes)[:N]


# ---------------------------------------------------------------------------
# Architecture builder (mirrors DynamicCNN.__init__ exactly)
# ---------------------------------------------------------------------------
def build_dynamic_cnn_plan(H, W, min_size, ch_in_0, ch_out_0, f_1, f_2,
                           c_layers_up, c_layers_down, c_size, c_stride,
                           c_padd, c_num, p_type, p_size, p_stride, p_padd,
                           classifier_layers, num_classes=10):
  state = {"stop": False}

  def size_check(H, W, padd, ksize, stride):
    dil = 1
    H_new = int((H + 2 * padd - dil * (ksize - 1) - 1) / stride + 1)
    W_new = int((W + 2 * padd - dil * (ksize - 1) - 1) / stride + 1)
    if H_new < min_size or W_new < min_size:
      state["stop"] = True
      return (H, W)
    return (H_new, W_new)

  formula_up = lambda x: eval(f_1)
  formula_down = lambda x: eval(f_2)
  if p_type not in ("max", "avg"):
    raise ValueError("p_type must be 'max' or 'avg'")

  conv_plan = []
  ch_in, ch_out = ch_in_0, ch_out_0
  ch_out_up = ch_out
  for i in range(0, c_layers_up):
    H, W = size_check(H, W, c_padd, c_size, c_stride)
    if state["stop"]:
      break
    conv_plan.append(("conv", ch_in, ch_out))
    for _ in range(1, c_num):
      H, W = size_check(H, W, c_padd, c_size, c_stride)
      if state["stop"]:
        break
      conv_plan.append(("conv", ch_out, ch_out))
    if state["stop"]:
      break
    conv_plan.append(("bn", ch_out))
    conv_plan.append(("relu",))
    H, W = size_check(H, W, p_padd, p_size, p_stride)
    if state["stop"]:
      break
    conv_plan.append(("pool",))
    ch_in = ch_out
    ch_out_up = ch_out
    ch_out = ch_out_0 * formula_up(i + 1)
  for i in range(0, c_layers_down):
    ch_out = int(ch_out_up * formula_down(-i - 1))
    H, W = size_check(H, W, c_padd, c_size, c_stride)
    if state["stop"]:
      break
    conv_plan.append(("conv", ch_in, ch_out))
    conv_plan.append(("bn", ch_out))
    conv_plan.append(("relu",))
    H, W = size_check(H, W, p_padd, p_size, p_stride)
    if state["stop"]:
      break
    conv_plan.append(("pool",))
    ch_in = ch_out

  fc_plan = []
  f_in = ch_out * W * H
  f_out = f_in
  for i in range(0, len(classifier_layers)):
    f_out, f_layers = classifier_layers[i][0], classifier_layers[i][1]
    fc_plan.append(("linear", f_in, f_out))
    fc_plan.append(("bn", f_out))
    fc_plan.append(("relu",))
    fc_plan.append(("dropout",))
    for _ in range(1, f_layers):
      fc_plan.append(("linear", f_out, f_out))
      fc_plan.append(("bn", f_out))
      fc_plan.append(("relu",))
      fc_plan.append(("dropout",))
    f_in = f_out
  fc_plan.append(("linear", f_out, num_classes))
  return conv_plan, fc_plan, (H, W)


def init_params(plan, key, k_size=3):
  params = []
  for op in plan:
    if op[0] == "conv":
      _, cin, cout = op
      key, k1, k2 = jax.random.split(key, 3)
      params.append({
          "w": 0.1 * jax.random.normal(k1, (k_size, k_size, cin, cout),
                                       jnp.float32),
          "b": 0.05 * jax.random.normal(k2, (cout,), jnp.float32),
      })
    elif op[0] == "linear":
      _, fin, fout = op
      key, k1, k2 = jax.random.split(key, 3)
      params.append({
          "w": jax.random.normal(k1, (fin, fout), jnp.float32) / np.sqrt(fin),
          "b": 0.05 * jax.random.normal(k2, (fout,), jnp.float32),
      })
    elif op[0] == "bn":
      _, c = op
      key, k1, k2, k3, k4 = jax.random.split(key, 5)
      params.append({
          "gamma": 1.0 + 0.1 * jax.random.normal(k1, (c,), jnp.float32),
          "beta": 0.1 * jax.random.normal(k2, (c,), jnp.float32),
          "mean": 0.1 * jax.random.normal(k3, (c,), jnp.float32),
          "var": jax.random.uniform(k4, (c,), jnp.float32, 0.5, 1.5),
      })
    else:
      params.append(None)
  return params, key


def _fold_bn(bias, bn):
  s = bn["gamma"] / jnp.sqrt(bn["var"] + BN_EPS)
  return s, bn["beta"] + (bias - bn["mean"]) * s


# ---------------------------------------------------------------------------
# Forward pass (Pallas) and pure-JAX reference
# ---------------------------------------------------------------------------
def forward(x_nchw, conv_plan, conv_params, fc_plan, fc_params, p_type):
  _, _, H, W = x_nchw.shape

  # Collect conv stages (conv [+bn] [+relu] [+pool] fused per stage).
  stages, stage_params = [], []
  i = 0
  while i < len(conv_plan):
    op = conv_plan[i]
    if op[0] != "conv":
      raise NotImplementedError(op)
    w, b = conv_params[i]["w"], conv_params[i]["b"]
    K, _, Cin, Cout = w.shape
    scale = jnp.ones((Cout,), jnp.float32)
    shift = b
    relu = pool = False
    j = i + 1
    if j < len(conv_plan) and conv_plan[j][0] == "bn":
      scale, shift = _fold_bn(b, conv_params[j])
      j += 1
    if j < len(conv_plan) and conv_plan[j][0] == "relu":
      relu = True
      j += 1
    if j < len(conv_plan) and conv_plan[j][0] == "pool":
      pool = True
      j += 1
    if pool:
      assert H % 2 == 0 and W % 2 == 0
    Cin_pad = -(-Cin // SUBLANE_PACK) * SUBLANE_PACK
    stages.append(StageCfg(H=H, W=W, Cin=Cin, Cin_pad=Cin_pad, Cout=Cout,
                           K=K, pad=K // 2, relu=relu, pool=pool,
                           pool_type=p_type))
    # (K,K,Cin,Cout) -> (Cout, K*K*Cin_pad) bf16, rows (kh,kw) outer / Cin inner,
    # Cin zero-padded to the bf16 sublane multiple (matches the kernel's taps).
    w_t = jnp.transpose(w, (3, 0, 1, 2))
    if Cin_pad > Cin:
      w_t = jnp.pad(w_t, ((0, 0), (0, 0), (0, 0), (0, Cin_pad - Cin)))
    w2d = w_t.reshape(Cout, K * K * Cin_pad).astype(jnp.bfloat16)
    stage_params.append((w2d,
                         scale.reshape(Cout, 1).astype(jnp.float32),
                         shift.reshape(Cout, 1).astype(jnp.float32)))
    if pool:
      H, W = H // 2, W // 2
    i = j

  # Collect classifier layers (linear [+bn] [+relu] [+dropout==identity]).
  mlp_params, mlp_relu = [], []
  i = 0
  while i < len(fc_plan):
    op = fc_plan[i]
    if op[0] != "linear":
      raise NotImplementedError(op)
    w, b = fc_params[i]["w"], fc_params[i]["b"]
    Fout = w.shape[1]
    scale = jnp.ones((Fout,), jnp.float32)
    shift = b
    relu = False
    j = i + 1
    if j < len(fc_plan) and fc_plan[j][0] == "bn":
      scale, shift = _fold_bn(b, fc_params[j])
      j += 1
    if j < len(fc_plan) and fc_plan[j][0] == "relu":
      relu = True
      j += 1
    if j < len(fc_plan) and fc_plan[j][0] == "dropout":
      j += 1    # Dropout(p=0.8) in eval mode == identity
    mlp_params.append((w.astype(jnp.bfloat16),
                       scale.reshape(1, Fout).astype(jnp.float32),
                       shift.reshape(1, Fout).astype(jnp.float32)))
    mlp_relu.append(relu)
    i = j

  return _fused_forward(x_nchw, stages, stage_params, mlp_relu, mlp_params)


def reference_forward(x_nchw, conv_plan, conv_params, fc_plan, fc_params,
                      p_type, c_padd):
  x = jnp.transpose(x_nchw, (0, 2, 3, 1))
  for op, prm in zip(conv_plan, conv_params):
    if op[0] == "conv":
      x = lax.conv_general_dilated(
          x, prm["w"], window_strides=(1, 1),
          padding=((c_padd, c_padd), (c_padd, c_padd)),
          dimension_numbers=("NHWC", "HWIO", "NHWC")) + prm["b"]
    elif op[0] == "bn":
      x = (x - prm["mean"]) / jnp.sqrt(prm["var"] + BN_EPS) * prm["gamma"] \
          + prm["beta"]
    elif op[0] == "relu":
      x = jnp.maximum(x, 0.0)
    elif op[0] == "pool":
      if p_type == "max":
        x = lax.reduce_window(x, -jnp.inf, lax.max,
                              (1, 2, 2, 1), (1, 2, 2, 1), "VALID")
      else:
        x = lax.reduce_window(x, 0.0, lax.add,
                              (1, 2, 2, 1), (1, 2, 2, 1), "VALID") / 4.0
  x = jnp.transpose(x, (0, 3, 1, 2)).reshape(x.shape[0], -1)
  for op, prm in zip(fc_plan, fc_params):
    if op[0] == "linear":
      x = x @ prm["w"] + prm["b"]
    elif op[0] == "bn":
      x = (x - prm["mean"]) / jnp.sqrt(prm["var"] + BN_EPS) * prm["gamma"] \
          + prm["beta"]
    elif op[0] == "relu":
      x = jnp.maximum(x, 0.0)
    elif op[0] == "dropout":
      pass  # eval mode
  return x


# ---------------------------------------------------------------------------
if __name__ == "__main__":
  cfg = dict(H=16, W=16, min_size=2, ch_in_0=4, ch_out_0=8,
             f_1="2**x", f_2="2**x",
             c_layers_up=2, c_layers_down=1,
             c_size=3, c_stride=1, c_padd=1, c_num=1,
             p_type="max", p_size=2, p_stride=2, p_padd=0,
             classifier_layers=[(32, 1)], num_classes=10)

  # Constraints supported by the Pallas kernel (satisfied by this config).
  assert cfg["c_stride"] == 1 and cfg["c_padd"] == cfg["c_size"] // 2
  assert cfg["p_size"] == 2 and cfg["p_stride"] == 2 and cfg["p_padd"] == 0
  # TODO(synk): general conv stride / arbitrary pool windows (incl. odd H/W
  # floor behavior of MaxPool2d) would need a strided im2col kernel; not
  # exercised by this configuration.

  conv_plan, fc_plan, _ = build_dynamic_cnn_plan(**cfg)

  key = jax.random.PRNGKey(0)
  key, kx = jax.random.split(key)
  x = jax.random.normal(kx, (2, cfg["ch_in_0"], cfg["H"], cfg["W"]),
                        jnp.float32)
  conv_params, key = init_params(conv_plan, key, cfg["c_size"])
  fc_params, key = init_params(fc_plan, key)

  fwd = jax.jit(lambda inp: forward(inp, conv_plan, conv_params, fc_plan,
                                    fc_params, cfg["p_type"]))
  out = jax.block_until_ready(fwd(x))

  ref = reference_forward(x, conv_plan, conv_params, fc_plan, fc_params,
                          cfg["p_type"], cfg["c_padd"])
  # bf16 MXU operands (f32 accumulation) -> small drift vs the f32 reference.
  np.testing.assert_allclose(np.asarray(out), np.asarray(ref),
                             rtol=5e-2, atol=5e-2)
  assert out.shape == (2, cfg["num_classes"])
  print("KERNEL_OK")
</pallas_src>

<mosaic_0001>
module attributes {stable_mosaic.version = 11 : i64} {
  func.func @_fused_kernel(%arg0: i32, %arg1: memref<1x4x1x256xf32, #tpu.memory_space<vmem>>, %arg2: memref<8x144xbf16, #tpu.memory_space<vmem>>, %arg3: memref<8x1xf32, #tpu.memory_space<vmem>>, %arg4: memref<8x1xf32, #tpu.memory_space<vmem>>, %arg5: memref<16x144xbf16, #tpu.memory_space<vmem>>, %arg6: memref<16x1xf32, #tpu.memory_space<vmem>>, %arg7: memref<16x1xf32, #tpu.memory_space<vmem>>, %arg8: memref<8x144xbf16, #tpu.memory_space<vmem>>, %arg9: memref<8x1xf32, #tpu.memory_space<vmem>>, %arg10: memref<8x1xf32, #tpu.memory_space<vmem>>, %arg11: memref<32x32xbf16, #tpu.memory_space<vmem>>, %arg12: memref<1x32xf32, #tpu.memory_space<vmem>>, %arg13: memref<1x32xf32, #tpu.memory_space<vmem>>, %arg14: memref<32x10xbf16, #tpu.memory_space<vmem>>, %arg15: memref<1x10xf32, #tpu.memory_space<vmem>>, %arg16: memref<1x10xf32, #tpu.memory_space<vmem>>, %arg17: memref<1x1x10xf32, #tpu.memory_space<vmem>>) attributes {dimension_semantics = [#tpu.dimension_semantics<parallel>], iteration_bounds = array<i64: 2>, scalar_prefetch = 0 : i64, scratch_operands = 0 : i64, tpu.core_type = #tpu.core_type<tc>, window_params = [{transform_indices = @transform_0, window_bounds = array<i64: 1, 4, 1, 256>}, {pipeline_mode = #tpu.pipeline_mode<synchronous>, transform_indices = @transform_1, window_bounds = array<i64: 8, 144>}, {pipeline_mode = #tpu.pipeline_mode<synchronous>, transform_indices = @transform_2, window_bounds = array<i64: 8, 1>}, {pipeline_mode = #tpu.pipeline_mode<synchronous>, transform_indices = @transform_3, window_bounds = array<i64: 8, 1>}, {pipeline_mode = #tpu.pipeline_mode<synchronous>, transform_indices = @transform_4, window_bounds = array<i64: 16, 144>}, {pipeline_mode = #tpu.pipeline_mode<synchronous>, transform_indices = @transform_5, window_bounds = array<i64: 16, 1>}, {pipeline_mode = #tpu.pipeline_mode<synchronous>, transform_indices = @transform_6, window_bounds = array<i64: 16, 1>}, {pipeline_mode = #tpu.pipeline_mode<synchronous>, transform_indices = @transform_7, window_bounds = array<i64: 8, 144>}, {pipeline_mode = #tpu.pipeline_mode<synchronous>, transform_indices = @transform_8, window_bounds = array<i64: 8, 1>}, {pipeline_mode = #tpu.pipeline_mode<synchronous>, transform_indices = @transform_9, window_bounds = array<i64: 8, 1>}, {pipeline_mode = #tpu.pipeline_mode<synchronous>, transform_indices = @transform_10, window_bounds = array<i64: 32, 32>}, {pipeline_mode = #tpu.pipeline_mode<synchronous>, transform_indices = @transform_11, window_bounds = array<i64: 1, 32>}, {pipeline_mode = #tpu.pipeline_mode<synchronous>, transform_indices = @transform_12, window_bounds = array<i64: 1, 32>}, {pipeline_mode = #tpu.pipeline_mode<synchronous>, transform_indices = @transform_13, window_bounds = array<i64: 32, 10>}, {pipeline_mode = #tpu.pipeline_mode<synchronous>, transform_indices = @transform_14, window_bounds = array<i64: 1, 10>}, {pipeline_mode = #tpu.pipeline_mode<synchronous>, transform_indices = @transform_15, window_bounds = array<i64: 1, 10>}, {transform_indices = @transform_16, window_bounds = array<i64: 1, 1, 10>}]} {
    %c0 = arith.constant 0 : index
    %c0_0 = arith.constant 0 : index
    %c0_1 = arith.constant 0 : index
    %c0_2 = arith.constant 0 : index
    %0 = vector.load %arg1[%c0, %c0_0, %c0_1, %c0_2] : memref<1x4x1x256xf32, #tpu.memory_space<vmem>>, vector<1x4x1x256xf32>
    %1 = vector.shape_cast %0 : vector<1x4x1x256xf32> to vector<4x1x256xf32>
    %2 = arith.truncf %1 : vector<4x1x256xf32> to vector<4x1x256xbf16>
    %cst = arith.constant 0.000000e+00 : bf16
    %3 = vector.broadcast %cst : bf16 to vector<12x1x256xbf16>
    %4 = tpu.concatenate %2, %3 in 0 : vector<4x1x256xbf16>, vector<12x1x256xbf16> -> vector<16x1x256xbf16>
    %c0_3 = arith.constant 0 : index
    %c0_4 = arith.constant 0 : index
    %5 = vector.load %arg2[%c0_3, %c0_4] : memref<8x144xbf16, #tpu.memory_space<vmem>>, vector<8x144xbf16>
    %c0_5 = arith.constant 0 : index
    %c0_6 = arith.constant 0 : index
    %6 = vector.load %arg3[%c0_5, %c0_6] : memref<8x1xf32, #tpu.memory_space<vmem>>, vector<8x1xf32>
    %c0_7 = arith.constant 0 : index
    %c0_8 = arith.constant 0 : index
    %7 = vector.load %arg4[%c0_7, %c0_8] : memref<8x1xf32, #tpu.memory_space<vmem>>, vector<8x1xf32>
    %cst_9 = arith.constant 0.000000e+00 : bf16
    %8 = vector.broadcast %cst_9 : bf16 to vector<16x1x17xbf16>
    %9 = tpu.concatenate %8, %4, %8 in 2 : vector<16x1x17xbf16>, vector<16x1x256xbf16>, vector<16x1x17xbf16> -> vector<16x1x290xbf16>
    %10 = tpu.iota {dimensions = array<i32: 2>} : vector<1x1x256xi32>
    %c16_i32 = arith.constant 16 : i32
    %c0_i32 = arith.constant 0 : i32
    %11 = arith.cmpi eq, %c16_i32, %c0_i32 : i32
    %c1_i32 = arith.constant 1 : i32
    %12 = arith.select %11, %c1_i32, %c16_i32 : i32
    %13 = vector.broadcast %12 : i32 to vector<1x1x256xi32>
    %14 = arith.remsi %10, %13 : vector<1x1x256xi32>
    %c0_i32_10 = arith.constant 0 : i32
    %15 = vector.broadcast %c0_i32_10 : i32 to vector<1x1x256xi32>
    %16 = arith.cmpi ne, %14, %15 : vector<1x1x256xi32>
    %c0_i32_11 = arith.constant 0 : i32
    %17 = vector.broadcast %c0_i32_11 : i32 to vector<1x1x256xi32>
    %18 = arith.cmpi slt, %14, %17 : vector<1x1x256xi32>
    %c0_i32_12 = arith.constant 0 : i32
    %19 = arith.cmpi slt, %12, %c0_i32_12 : i32
    %20 = vector.broadcast %19 : i1 to vector<1x1x256xi1>
    %21 = vector.broadcast %20 : vector<1x1x256xi1> to vector<1x1x256xi1>
    %22 = arith.xori %18, %21 : vector<1x1x256xi1>
    %23 = arith.andi %22, %16 : vector<1x1x256xi1>
    %24 = vector.broadcast %12 : i32 to vector<1x1x256xi32>
    %25 = arith.addi %14, %24 : vector<1x1x256xi32>
    %26 = arith.select %23, %25, %14 : vector<1x1x256xi1>, vector<1x1x256xi32>
    %c-1_i32 = arith.constant -1 : i32
    %27 = vector.broadcast %c-1_i32 : i32 to vector<1x1x256xi32>
    %28 = arith.addi %26, %27 : vector<1x1x256xi32>
    %c0_i32_13 = arith.constant 0 : i32
    %29 = vector.broadcast %c0_i32_13 : i32 to vector<1x1x256xi32>
    %30 = arith.cmpi sge, %28, %29 : vector<1x1x256xi32>
    %c-1_i32_14 = arith.constant -1 : i32
    %31 = vector.broadcast %c-1_i32_14 : i32 to vector<1x1x256xi32>
    %32 = arith.addi %26, %31 : vector<1x1x256xi32>
    %c16_i32_15 = arith.constant 16 : i32
    %33 = vector.broadcast %c16_i32_15 : i32 to vector<1x1x256xi32>
    %34 = arith.cmpi slt, %32, %33 : vector<1x1x256xi32>
    %35 = arith.andi %30, %34 : vector<1x1x256xi1>
    %c1_i32_16 = arith.constant 1 : i32
    %36 = vector.broadcast %c1_i32_16 : i32 to vector<1x1x256xi32>
    %37 = arith.addi %26, %36 : vector<1x1x256xi32>
    %c0_i32_17 = arith.constant 0 : i32
    %38 = vector.broadcast %c0_i32_17 : i32 to vector<1x1x256xi32>
    %39 = arith.cmpi sge, %37, %38 : vector<1x1x256xi32>
    %c1_i32_18 = arith.constant 1 : i32
    %40 = vector.broadcast %c1_i32_18 : i32 to vector<1x1x256xi32>
    %41 = arith.addi %26, %40 : vector<1x1x256xi32>
    %c16_i32_19 = arith.constant 16 : i32
    %42 = vector.broadcast %c16_i32_19 : i32 to vector<1x1x256xi32>
    %43 = arith.cmpi slt, %41, %42 : vector<1x1x256xi32>
    %44 = arith.andi %39, %43 : vector<1x1x256xi1>
    %45 = vector.extract_strided_slice %9 {offsets = [0, 0, 0], sizes = [16, 1, 256], strides = [1, 1, 1]} : vector<16x1x290xbf16> to vector<16x1x256xbf16>
    %cst_20 = arith.constant 0.000000e+00 : bf16
    %46 = vector.shape_cast %35 : vector<1x1x256xi1> to vector<1x1x256xi1>
    %47 = vector.broadcast %46 : vector<1x1x256xi1> to vector<16x1x256xi1>
    %48 = vector.broadcast %cst_20 : bf16 to vector<16x1x256xbf16>
    %49 = arith.select %47, %45, %48 : vector<16x1x256xi1>, vector<16x1x256xbf16>
    %50 = vector.extract_strided_slice %9 {offsets = [0, 0, 1], sizes = [16, 1, 256], strides = [1, 1, 1]} : vector<16x1x290xbf16> to vector<16x1x256xbf16>
    %51 = vector.extract_strided_slice %9 {offsets = [0, 0, 2], sizes = [16, 1, 256], strides = [1, 1, 1]} : vector<16x1x290xbf16> to vector<16x1x256xbf16>
    %cst_21 = arith.constant 0.000000e+00 : bf16
    %52 = vector.shape_cast %44 : vector<1x1x256xi1> to vector<1x1x256xi1>
    %53 = vector.broadcast %52 : vector<1x1x256xi1> to vector<16x1x256xi1>
    %54 = vector.broadcast %cst_21 : bf16 to vector<16x1x256xbf16>
    %55 = arith.select %53, %51, %54 : vector<16x1x256xi1>, vector<16x1x256xbf16>
    %56 = vector.extract_strided_slice %9 {offsets = [0, 0, 16], sizes = [16, 1, 256], strides = [1, 1, 1]} : vector<16x1x290xbf16> to vector<16x1x256xbf16>
    %cst_22 = arith.constant 0.000000e+00 : bf16
    %57 = vector.shape_cast %35 : vector<1x1x256xi1> to vector<1x1x256xi1>
    %58 = vector.broadcast %57 : vector<1x1x256xi1> to vector<16x1x256xi1>
    %59 = vector.broadcast %cst_22 : bf16 to vector<16x1x256xbf16>
    %60 = arith.select %58, %56, %59 : vector<16x1x256xi1>, vector<16x1x256xbf16>
    %61 = vector.extract_strided_slice %9 {offsets = [0, 0, 17], sizes = [16, 1, 256], strides = [1, 1, 1]} : vector<16x1x290xbf16> to vector<16x1x256xbf16>
    %62 = vector.extract_strided_slice %9 {offsets = [0, 0, 18], sizes = [16, 1, 256], strides = [1, 1, 1]} : vector<16x1x290xbf16> to vector<16x1x256xbf16>
    %cst_23 = arith.constant 0.000000e+00 : bf16
    %63 = vector.shape_cast %44 : vector<1x1x256xi1> to vector<1x1x256xi1>
    %64 = vector.broadcast %63 : vector<1x1x256xi1> to vector<16x1x256xi1>
    %65 = vector.broadcast %cst_23 : bf16 to vector<16x1x256xbf16>
    %66 = arith.select %64, %62, %65 : vector<16x1x256xi1>, vector<16x1x256xbf16>
    %67 = vector.extract_strided_slice %9 {offsets = [0, 0, 32], sizes = [16, 1, 256], strides = [1, 1, 1]} : vector<16x1x290xbf16> to vector<16x1x256xbf16>
    %cst_24 = arith.constant 0.000000e+00 : bf16
    %68 = vector.shape_cast %35 : vector<1x1x256xi1> to vector<1x1x256xi1>
    %69 = vector.broadcast %68 : vector<1x1x256xi1> to vector<16x1x256xi1>
    %70 = vector.broadcast %cst_24 : bf16 to vector<16x1x256xbf16>
    %71 = arith.select %69, %67, %70 : vector<16x1x256xi1>, vector<16x1x256xbf16>
    %72 = vector.extract_strided_slice %9 {offsets = [0, 0, 33], sizes = [16, 1, 256], strides = [1, 1, 1]} : vector<16x1x290xbf16> to vector<16x1x256xbf16>
    %73 = vector.extract_strided_slice %9 {offsets = [0, 0, 34], sizes = [16, 1, 256], strides = [1, 1, 1]} : vector<16x1x290xbf16> to vector<16x1x256xbf16>
    %cst_25 = arith.constant 0.000000e+00 : bf16
    %74 = vector.shape_cast %44 : vector<1x1x256xi1> to vector<1x1x256xi1>
    %75 = vector.broadcast %74 : vector<1x1x256xi1> to vector<16x1x256xi1>
    %76 = vector.broadcast %cst_25 : bf16 to vector<16x1x256xbf16>
    %77 = arith.select %75, %73, %76 : vector<16x1x256xi1>, vector<16x1x256xbf16>
    %78 = tpu.concatenate %49, %50, %55, %60, %61, %66, %71, %72, %77 in 0 : vector<16x1x256xbf16>, vector<16x1x256xbf16>, vector<16x1x256xbf16>, vector<16x1x256xbf16>, vector<16x1x256xbf16>, vector<16x1x256xbf16>, vector<16x1x256xbf16>, vector<16x1x256xbf16>, vector<16x1x256xbf16> -> vector<144x1x256xbf16>
    %79 = vector.shape_cast %78 : vector<144x1x256xbf16> to vector<144x256xbf16>
    %cst_26 = arith.constant dense<0.000000e+00> : vector<8x256xf32>
    %80 = tpu.matmul %5, %79, %cst_26 {dimension_numbers = #tpu.dot_dimension_numbers<[1], [0], [0], [1], [0, 0, 1, 1], [], []>} : vector<8x144xbf16>, vector<144x256xbf16>, vector<8x256xf32> -> vector<8x256xf32>
    %81 = vector.broadcast %6 : vector<8x1xf32> to vector<8x256xf32>
    %82 = arith.mulf %80, %81 : vector<8x256xf32>
    %83 = vector.broadcast %7 : vector<8x1xf32> to vector<8x256xf32>
    %84 = arith.addf %82, %83 : vector<8x256xf32>
    %cst_27 = arith.constant 0.000000e+00 : f32
    %85 = vector.broadcast %cst_27 : f32 to vector<8x256xf32>
    %86 = arith.maximumf %84, %85 : vector<8x256xf32>
    %87 = vector.shape_cast %86 : vector<8x256xf32> to vector<8x8x32xf32>
    %88 = vector.extract_strided_slice %87 {offsets = [0, 0, 0], sizes = [8, 8, 16], strides = [1, 1, 1]} : vector<8x8x32xf32> to vector<8x8x16xf32>
    %89 = vector.extract_strided_slice %87 {offsets = [0, 0, 16], sizes = [8, 8, 16], strides = [1, 1, 1]} : vector<8x8x32xf32> to vector<8x8x16xf32>
    %90 = arith.maximumf %88, %89 : vector<8x8x16xf32>
    %91 = vector.shape_cast %90 : vector<8x8x16xf32> to vector<8x8x8x2xf32>
    %92 = vector.extract_strided_slice %91 {offsets = [0, 0, 0, 0], sizes = [8, 8, 8, 1], strides = [1, 1, 1, 1]} : vector<8x8x8x2xf32> to vector<8x8x8x1xf32>
    %93 = vector.shape_cast %92 : vector<8x8x8x1xf32> to vector<8x8x8xf32>
    %94 = vector.extract_strided_slice %91 {offsets = [0, 0, 0, 1], sizes = [8, 8, 8, 1], strides = [1, 1, 1, 1]} : vector<8x8x8x2xf32> to vector<8x8x8x1xf32>
    %95 = vector.shape_cast %94 : vector<8x8x8x1xf32> to vector<8x8x8xf32>
    %96 = arith.maximumf %93, %95 : vector<8x8x8xf32>
    %97 = vector.shape_cast %96 : vector<8x8x8xf32> to vector<8x1x64xf32>
    %98 = arith.truncf %97 : vector<8x1x64xf32> to vector<8x1x64xbf16>
    %cst_28 = arith.constant 0.000000e+00 : bf16
    %99 = vector.broadcast %cst_28 : bf16 to vector<8x1x64xbf16>
    %100 = tpu.concatenate %98, %99 in 0 : vector<8x1x64xbf16>, vector<8x1x64xbf16> -> vector<16x1x64xbf16>
    %c0_29 = arith.constant 0 : index
    %c0_30 = arith.constant 0 : index
    %101 = vector.load %arg5[%c0_29, %c0_30] : memref<16x144xbf16, #tpu.memory_space<vmem>>, vector<16x144xbf16>
    %c0_31 = arith.constant 0 : index
    %c0_32 = arith.constant 0 : index
    %102 = vector.load %arg6[%c0_31, %c0_32] : memref<16x1xf32, #tpu.memory_space<vmem>>, vector<16x1xf32>
    %c0_33 = arith.constant 0 : index
    %c0_34 = arith.constant 0 : index
    %103 = vector.load %arg7[%c0_33, %c0_34] : memref<16x1xf32, #tpu.memory_space<vmem>>, vector<16x1xf32>
    %cst_35 = arith.constant 0.000000e+00 : bf16
    %104 = vector.broadcast %cst_35 : bf16 to vector<16x1x9xbf16>
    %105 = tpu.concatenate %104, %100, %104 in 2 : vector<16x1x9xbf16>, vector<16x1x64xbf16>, vector<16x1x9xbf16> -> vector<16x1x82xbf16>
    %106 = tpu.iota {dimensions = array<i32: 2>} : vector<1x1x64xi32>
    %c8_i32 = arith.constant 8 : i32
    %c0_i32_36 = arith.constant 0 : i32
    %107 = arith.cmpi eq, %c8_i32, %c0_i32_36 : i32
    %c1_i32_37 = arith.constant 1 : i32
    %108 = arith.select %107, %c1_i32_37, %c8_i32 : i32
    %109 = vector.broadcast %108 : i32 to vector<1x1x64xi32>
    %110 = arith.remsi %106, %109 : vector<1x1x64xi32>
    %c0_i32_38 = arith.constant 0 : i32
    %111 = vector.broadcast %c0_i32_38 : i32 to vector<1x1x64xi32>
    %112 = arith.cmpi ne, %110, %111 : vector<1x1x64xi32>
    %c0_i32_39 = arith.constant 0 : i32
    %113 = vector.broadcast %c0_i32_39 : i32 to vector<1x1x64xi32>
    %114 = arith.cmpi slt, %110, %113 : vector<1x1x64xi32>
    %c0_i32_40 = arith.constant 0 : i32
    %115 = arith.cmpi slt, %108, %c0_i32_40 : i32
    %116 = vector.broadcast %115 : i1 to vector<1x1x64xi1>
    %117 = vector.broadcast %116 : vector<1x1x64xi1> to vector<1x1x64xi1>
    %118 = arith.xori %114, %117 : vector<1x1x64xi1>
    %119 = arith.andi %118, %112 : vector<1x1x64xi1>
    %120 = vector.broadcast %108 : i32 to vector<1x1x64xi32>
    %121 = arith.addi %110, %120 : vector<1x1x64xi32>
    %122 = arith.select %119, %121, %110 : vector<1x1x64xi1>, vector<1x1x64xi32>
    %c-1_i32_41 = arith.constant -1 : i32
    %123 = vector.broadcast %c-1_i32_41 : i32 to vector<1x1x64xi32>
    %124 = arith.addi %122, %123 : vector<1x1x64xi32>
    %c0_i32_42 = arith.constant 0 : i32
    %125 = vector.broadcast %c0_i32_42 : i32 to vector<1x1x64xi32>
    %126 = arith.cmpi sge, %124, %125 : vector<1x1x64xi32>
    %c-1_i32_43 = arith.constant -1 : i32
    %127 = vector.broadcast %c-1_i32_43 : i32 to vector<1x1x64xi32>
    %128 = arith.addi %122, %127 : vector<1x1x64xi32>
    %c8_i32_44 = arith.constant 8 : i32
    %129 = vector.broadcast %c8_i32_44 : i32 to vector<1x1x64xi32>
    %130 = arith.cmpi slt, %128, %129 : vector<1x1x64xi32>
    %131 = arith.andi %126, %130 : vector<1x1x64xi1>
    %c1_i32_45 = arith.constant 1 : i32
    %132 = vector.broadcast %c1_i32_45 : i32 to vector<1x1x64xi32>
    %133 = arith.addi %122, %132 : vector<1x1x64xi32>
    %c0_i32_46 = arith.constant 0 : i32
    %134 = vector.broadcast %c0_i32_46 : i32 to vector<1x1x64xi32>
    %135 = arith.cmpi sge, %133, %134 : vector<1x1x64xi32>
    %c1_i32_47 = arith.constant 1 : i32
    %136 = vector.broadcast %c1_i32_47 : i32 to vector<1x1x64xi32>
    %137 = arith.addi %122, %136 : vector<1x1x64xi32>
    %c8_i32_48 = arith.constant 8 : i32
    %138 = vector.broadcast %c8_i32_48 : i32 to vector<1x1x64xi32>
    %139 = arith.cmpi slt, %137, %138 : vector<1x1x64xi32>
    %140 = arith.andi %135, %139 : vector<1x1x64xi1>
    %141 = vector.extract_strided_slice %105 {offsets = [0, 0, 0], sizes = [16, 1, 64], strides = [1, 1, 1]} : vector<16x1x82xbf16> to vector<16x1x64xbf16>
    %cst_49 = arith.constant 0.000000e+00 : bf16
    %142 = vector.shape_cast %131 : vector<1x1x64xi1> to vector<1x1x64xi1>
    %143 = vector.broadcast %142 : vector<1x1x64xi1> to vector<16x1x64xi1>
    %144 = vector.broadcast %cst_49 : bf16 to vector<16x1x64xbf16>
    %145 = arith.select %143, %141, %144 : vector<16x1x64xi1>, vector<16x1x64xbf16>
    %146 = vector.extract_strided_slice %105 {offsets = [0, 0, 1], sizes = [16, 1, 64], strides = [1, 1, 1]} : vector<16x1x82xbf16> to vector<16x1x64xbf16>
    %147 = vector.extract_strided_slice %105 {offsets = [0, 0, 2], sizes = [16, 1, 64], strides = [1, 1, 1]} : vector<16x1x82xbf16> to vector<16x1x64xbf16>
    %cst_50 = arith.constant 0.000000e+00 : bf16
    %148 = vector.shape_cast %140 : vector<1x1x64xi1> to vector<1x1x64xi1>
    %149 = vector.broadcast %148 : vector<1x1x64xi1> to vector<16x1x64xi1>
    %150 = vector.broadcast %cst_50 : bf16 to vector<16x1x64xbf16>
    %151 = arith.select %149, %147, %150 : vector<16x1x64xi1>, vector<16x1x64xbf16>
    %152 = vector.extract_strided_slice %105 {offsets = [0, 0, 8], sizes = [16, 1, 64], strides = [1, 1, 1]} : vector<16x1x82xbf16> to vector<16x1x64xbf16>
    %cst_51 = arith.constant 0.000000e+00 : bf16
    %153 = vector.shape_cast %131 : vector<1x1x64xi1> to vector<1x1x64xi1>
    %154 = vector.broadcast %153 : vector<1x1x64xi1> to vector<16x1x64xi1>
    %155 = vector.broadcast %cst_51 : bf16 to vector<16x1x64xbf16>
    %156 = arith.select %154, %152, %155 : vector<16x1x64xi1>, vector<16x1x64xbf16>
    %157 = vector.extract_strided_slice %105 {offsets = [0, 0, 9], sizes = [16, 1, 64], strides = [1, 1, 1]} : vector<16x1x82xbf16> to vector<16x1x64xbf16>
    %158 = vector.extract_strided_slice %105 {offsets = [0, 0, 10], sizes = [16, 1, 64], strides = [1, 1, 1]} : vector<16x1x82xbf16> to vector<16x1x64xbf16>
    %cst_52 = arith.constant 0.000000e+00 : bf16
    %159 = vector.shape_cast %140 : vector<1x1x64xi1> to vector<1x1x64xi1>
    %160 = vector.broadcast %159 : vector<1x1x64xi1> to vector<16x1x64xi1>
    %161 = vector.broadcast %cst_52 : bf16 to vector<16x1x64xbf16>
    %162 = arith.select %160, %158, %161 : vector<16x1x64xi1>, vector<16x1x64xbf16>
    %163 = vector.extract_strided_slice %105 {offsets = [0, 0, 16], sizes = [16, 1, 64], strides = [1, 1, 1]} : vector<16x1x82xbf16> to vector<16x1x64xbf16>
    %cst_53 = arith.constant 0.000000e+00 : bf16
    %164 = vector.shape_cast %131 : vector<1x1x64xi1> to vector<1x1x64xi1>
    %165 = vector.broadcast %164 : vector<1x1x64xi1> to vector<16x1x64xi1>
    %166 = vector.broadcast %cst_53 : bf16 to vector<16x1x64xbf16>
    %167 = arith.select %165, %163, %166 : vector<16x1x64xi1>, vector<16x1x64xbf16>
    %168 = vector.extract_strided_slice %105 {offsets = [0, 0, 17], sizes = [16, 1, 64], strides = [1, 1, 1]} : vector<16x1x82xbf16> to vector<16x1x64xbf16>
    %169 = vector.extract_strided_slice %105 {offsets = [0, 0, 18], sizes = [16, 1, 64], strides = [1, 1, 1]} : vector<16x1x82xbf16> to vector<16x1x64xbf16>
    %cst_54 = arith.constant 0.000000e+00 : bf16
    %170 = vector.shape_cast %140 : vector<1x1x64xi1> to vector<1x1x64xi1>
    %171 = vector.broadcast %170 : vector<1x1x64xi1> to vector<16x1x64xi1>
    %172 = vector.broadcast %cst_54 : bf16 to vector<16x1x64xbf16>
    %173 = arith.select %171, %169, %172 : vector<16x1x64xi1>, vector<16x1x64xbf16>
    %174 = tpu.concatenate %145, %146, %151, %156, %157, %162, %167, %168, %173 in 0 : vector<16x1x64xbf16>, vector<16x1x64xbf16>, vector<16x1x64xbf16>, vector<16x1x64xbf16>, vector<16x1x64xbf16>, vector<16x1x64xbf16>, vector<16x1x64xbf16>, vector<16x1x64xbf16>, vector<16x1x64xbf16> -> vector<144x1x64xbf16>
    %175 = vector.shape_cast %174 : vector<144x1x64xbf16> to vector<144x64xbf16>
    %cst_55 = arith.constant dense<0.000000e+00> : vector<16x64xf32>
    %176 = tpu.matmul %101, %175, %cst_55 {dimension_numbers = #tpu.dot_dimension_numbers<[1], [0], [0], [1], [0, 0, 1, 1], [], []>} : vector<16x144xbf16>, vector<144x64xbf16>, vector<16x64xf32> -> vector<16x64xf32>
    %177 = vector.broadcast %102 : vector<16x1xf32> to vector<16x64xf32>
    %178 = arith.mulf %176, %177 : vector<16x64xf32>
    %179 = vector.broadcast %103 : vector<16x1xf32> to vector<16x64xf32>
    %180 = arith.addf %178, %179 : vector<16x64xf32>
    %cst_56 = arith.constant 0.000000e+00 : f32
    %181 = vector.broadcast %cst_56 : f32 to vector<16x64xf32>
    %182 = arith.maximumf %180, %181 : vector<16x64xf32>
    %183 = vector.shape_cast %182 : vector<16x64xf32> to vector<16x4x16xf32>
    %184 = vector.extract_strided_slice %183 {offsets = [0, 0, 0], sizes = [16, 4, 8], strides = [1, 1, 1]} : vector<16x4x16xf32> to vector<16x4x8xf32>
    %185 = vector.extract_strided_slice %183 {offsets = [0, 0, 8], sizes = [16, 4, 8], strides = [1, 1, 1]} : vector<16x4x16xf32> to vector<16x4x8xf32>
    %186 = arith.maximumf %184, %185 : vector<16x4x8xf32>
    %187 = vector.shape_cast %186 : vector<16x4x8xf32> to vector<16x4x4x2xf32>
    %188 = vector.extract_strided_slice %187 {offsets = [0, 0, 0, 0], sizes = [16, 4, 4, 1], strides = [1, 1, 1, 1]} : vector<16x4x4x2xf32> to vector<16x4x4x1xf32>
    %189 = vector.shape_cast %188 : vector<16x4x4x1xf32> to vector<16x4x4xf32>
    %190 = vector.extract_strided_slice %187 {offsets = [0, 0, 0, 1], sizes = [16, 4, 4, 1], strides = [1, 1, 1, 1]} : vector<16x4x4x2xf32> to vector<16x4x4x1xf32>
    %191 = vector.shape_cast %190 : vector<16x4x4x1xf32> to vector<16x4x4xf32>
    %192 = arith.maximumf %189, %191 : vector<16x4x4xf32>
    %193 = vector.shape_cast %192 : vector<16x4x4xf32> to vector<16x1x16xf32>
    %194 = arith.truncf %193 : vector<16x1x16xf32> to vector<16x1x16xbf16>
    %c0_57 = arith.constant 0 : index
    %c0_58 = arith.constant 0 : index
    %195 = vector.load %arg8[%c0_57, %c0_58] : memref<8x144xbf16, #tpu.memory_space<vmem>>, vector<8x144xbf16>
    %c0_59 = arith.constant 0 : index
    %c0_60 = arith.constant 0 : index
    %196 = vector.load %arg9[%c0_59, %c0_60] : memref<8x1xf32, #tpu.memory_space<vmem>>, vector<8x1xf32>
    %c0_61 = arith.constant 0 : index
    %c0_62 = arith.constant 0 : index
    %197 = vector.load %arg10[%c0_61, %c0_62] : memref<8x1xf32, #tpu.memory_space<vmem>>, vector<8x1xf32>
    %cst_63 = arith.constant 0.000000e+00 : bf16
    %198 = vector.broadcast %cst_63 : bf16 to vector<16x1x5xbf16>
    %199 = tpu.concatenate %198, %194, %198 in 2 : vector<16x1x5xbf16>, vector<16x1x16xbf16>, vector<16x1x5xbf16> -> vector<16x1x26xbf16>
    %200 = tpu.iota {dimensions = array<i32: 2>} : vector<1x1x16xi32>
    %c4_i32 = arith.constant 4 : i32
    %c0_i32_64 = arith.constant 0 : i32
    %201 = arith.cmpi eq, %c4_i32, %c0_i32_64 : i32
    %c1_i32_65 = arith.constant 1 : i32
    %202 = arith.select %201, %c1_i32_65, %c4_i32 : i32
    %203 = vector.broadcast %202 : i32 to vector<1x1x16xi32>
    %204 = arith.remsi %200, %203 : vector<1x1x16xi32>
    %c0_i32_66 = arith.constant 0 : i32
    %205 = vector.broadcast %c0_i32_66 : i32 to vector<1x1x16xi32>
    %206 = arith.cmpi ne, %204, %205 : vector<1x1x16xi32>
    %c0_i32_67 = arith.constant 0 : i32
    %207 = vector.broadcast %c0_i32_67 : i32 to vector<1x1x16xi32>
    %208 = arith.cmpi slt, %204, %207 : vector<1x1x16xi32>
    %c0_i32_68 = arith.constant 0 : i32
    %209 = arith.cmpi slt, %202, %c0_i32_68 : i32
    %210 = vector.broadcast %209 : i1 to vector<1x1x16xi1>
    %211 = vector.broadcast %210 : vector<1x1x16xi1> to vector<1x1x16xi1>
    %212 = arith.xori %208, %211 : vector<1x1x16xi1>
    %213 = arith.andi %212, %206 : vector<1x1x16xi1>
    %214 = vector.broadcast %202 : i32 to vector<1x1x16xi32>
    %215 = arith.addi %204, %214 : vector<1x1x16xi32>
    %216 = arith.select %213, %215, %204 : vector<1x1x16xi1>, vector<1x1x16xi32>
    %c-1_i32_69 = arith.constant -1 : i32
    %217 = vector.broadcast %c-1_i32_69 : i32 to vector<1x1x16xi32>
    %218 = arith.addi %216, %217 : vector<1x1x16xi32>
    %c0_i32_70 = arith.constant 0 : i32
    %219 = vector.broadcast %c0_i32_70 : i32 to vector<1x1x16xi32>
    %220 = arith.cmpi sge, %218, %219 : vector<1x1x16xi32>
    %c-1_i32_71 = arith.constant -1 : i32
    %221 = vector.broadcast %c-1_i32_71 : i32 to vector<1x1x16xi32>
    %222 = arith.addi %216, %221 : vector<1x1x16xi32>
    %c4_i32_72 = arith.constant 4 : i32
    %223 = vector.broadcast %c4_i32_72 : i32 to vector<1x1x16xi32>
    %224 = arith.cmpi slt, %222, %223 : vector<1x1x16xi32>
    %225 = arith.andi %220, %224 : vector<1x1x16xi1>
    %c1_i32_73 = arith.constant 1 : i32
    %226 = vector.broadcast %c1_i32_73 : i32 to vector<1x1x16xi32>
    %227 = arith.addi %216, %226 : vector<1x1x16xi32>
    %c0_i32_74 = arith.constant 0 : i32
    %228 = vector.broadcast %c0_i32_74 : i32 to vector<1x1x16xi32>
    %229 = arith.cmpi sge, %227, %228 : vector<1x1x16xi32>
    %c1_i32_75 = arith.constant 1 : i32
    %230 = vector.broadcast %c1_i32_75 : i32 to vector<1x1x16xi32>
    %231 = arith.addi %216, %230 : vector<1x1x16xi32>
    %c4_i32_76 = arith.constant 4 : i32
    %232 = vector.broadcast %c4_i32_76 : i32 to vector<1x1x16xi32>
    %233 = arith.cmpi slt, %231, %232 : vector<1x1x16xi32>
    %234 = arith.andi %229, %233 : vector<1x1x16xi1>
    %235 = vector.extract_strided_slice %199 {offsets = [0, 0, 0], sizes = [16, 1, 16], strides = [1, 1, 1]} : vector<16x1x26xbf16> to vector<16x1x16xbf16>
    %cst_77 = arith.constant 0.000000e+00 : bf16
    %236 = vector.shape_cast %225 : vector<1x1x16xi1> to vector<1x1x16xi1>
    %237 = vector.broadcast %236 : vector<1x1x16xi1> to vector<16x1x16xi1>
    %238 = vector.broadcast %cst_77 : bf16 to vector<16x1x16xbf16>
    %239 = arith.select %237, %235, %238 : vector<16x1x16xi1>, vector<16x1x16xbf16>
    %240 = vector.extract_strided_slice %199 {offsets = [0, 0, 1], sizes = [16, 1, 16], strides = [1, 1, 1]} : vector<16x1x26xbf16> to vector<16x1x16xbf16>
    %241 = vector.extract_strided_slice %199 {offsets = [0, 0, 2], sizes = [16, 1, 16], strides = [1, 1, 1]} : vector<16x1x26xbf16> to vector<16x1x16xbf16>
    %cst_78 = arith.constant 0.000000e+00 : bf16
    %242 = vector.shape_cast %234 : vector<1x1x16xi1> to vector<1x1x16xi1>
    %243 = vector.broadcast %242 : vector<1x1x16xi1> to vector<16x1x16xi1>
    %244 = vector.broadcast %cst_78 : bf16 to vector<16x1x16xbf16>
    %245 = arith.select %243, %241, %244 : vector<16x1x16xi1>, vector<16x1x16xbf16>
    %246 = vector.extract_strided_slice %199 {offsets = [0, 0, 4], sizes = [16, 1, 16], strides = [1, 1, 1]} : vector<16x1x26xbf16> to vector<16x1x16xbf16>
    %cst_79 = arith.constant 0.000000e+00 : bf16
    %247 = vector.shape_cast %225 : vector<1x1x16xi1> to vector<1x1x16xi1>
    %248 = vector.broadcast %247 : vector<1x1x16xi1> to vector<16x1x16xi1>
    %249 = vector.broadcast %cst_79 : bf16 to vector<16x1x16xbf16>
    %250 = arith.select %248, %246, %249 : vector<16x1x16xi1>, vector<16x1x16xbf16>
    %251 = vector.extract_strided_slice %199 {offsets = [0, 0, 5], sizes = [16, 1, 16], strides = [1, 1, 1]} : vector<16x1x26xbf16> to vector<16x1x16xbf16>
    %252 = vector.extract_strided_slice %199 {offsets = [0, 0, 6], sizes = [16, 1, 16], strides = [1, 1, 1]} : vector<16x1x26xbf16> to vector<16x1x16xbf16>
    %cst_80 = arith.constant 0.000000e+00 : bf16
    %253 = vector.shape_cast %234 : vector<1x1x16xi1> to vector<1x1x16xi1>
    %254 = vector.broadcast %253 : vector<1x1x16xi1> to vector<16x1x16xi1>
    %255 = vector.broadcast %cst_80 : bf16 to vector<16x1x16xbf16>
    %256 = arith.select %254, %252, %255 : vector<16x1x16xi1>, vector<16x1x16xbf16>
    %257 = vector.extract_strided_slice %199 {offsets = [0, 0, 8], sizes = [16, 1, 16], strides = [1, 1, 1]} : vector<16x1x26xbf16> to vector<16x1x16xbf16>
    %cst_81 = arith.constant 0.000000e+00 : bf16
    %258 = vector.shape_cast %225 : vector<1x1x16xi1> to vector<1x1x16xi1>
    %259 = vector.broadcast %258 : vector<1x1x16xi1> to vector<16x1x16xi1>
    %260 = vector.broadcast %cst_81 : bf16 to vector<16x1x16xbf16>
    %261 = arith.select %259, %257, %260 : vector<16x1x16xi1>, vector<16x1x16xbf16>
    %262 = vector.extract_strided_slice %199 {offsets = [0, 0, 9], sizes = [16, 1, 16], strides = [1, 1, 1]} : vector<16x1x26xbf16> to vector<16x1x16xbf16>
    %263 = vector.extract_strided_slice %199 {offsets = [0, 0, 10], sizes = [16, 1, 16], strides = [1, 1, 1]} : vector<16x1x26xbf16> to vector<16x1x16xbf16>
    %cst_82 = arith.constant 0.000000e+00 : bf16
    %264 = vector.shape_cast %234 : vector<1x1x16xi1> to vector<1x1x16xi1>
    %265 = vector.broadcast %264 : vector<1x1x16xi1> to vector<16x1x16xi1>
    %266 = vector.broadcast %cst_82 : bf16 to vector<16x1x16xbf16>
    %267 = arith.select %265, %263, %266 : vector<16x1x16xi1>, vector<16x1x16xbf16>
    %268 = tpu.concatenate %239, %240, %245, %250, %251, %256, %261, %262, %267 in 0 : vector<16x1x16xbf16>, vector<16x1x16xbf16>, vector<16x1x16xbf16>, vector<16x1x16xbf16>, vector<16x1x16xbf16>, vector<16x1x16xbf16>, vector<16x1x16xbf16>, vector<16x1x16xbf16>, vector<16x1x16xbf16> -> vector<144x1x16xbf16>
    %269 = vector.shape_cast %268 : vector<144x1x16xbf16> to vector<144x16xbf16>
    %cst_83 = arith.constant dense<0.000000e+00> : vector<8x16xf32>
    %270 = tpu.matmul %195, %269, %cst_83 {dimension_numbers = #tpu.dot_dimension_numbers<[1], [0], [0], [1], [0, 0, 1, 1], [], []>} : vector<8x144xbf16>, vector<144x16xbf16>, vector<8x16xf32> -> vector<8x16xf32>
    %271 = vector.broadcast %196 : vector<8x1xf32> to vector<8x16xf32>
    %272 = arith.mulf %270, %271 : vector<8x16xf32>
    %273 = vector.broadcast %197 : vector<8x1xf32> to vector<8x16xf32>
    %274 = arith.addf %272, %273 : vector<8x16xf32>
    %cst_84 = arith.constant 0.000000e+00 : f32
    %275 = vector.broadcast %cst_84 : f32 to vector<8x16xf32>
    %276 = arith.maximumf %274, %275 : vector<8x16xf32>
    %277 = vector.shape_cast %276 : vector<8x16xf32> to vector<8x2x8xf32>
    %278 = vector.extract_strided_slice %277 {offsets = [0, 0, 0], sizes = [8, 2, 4], strides = [1, 1, 1]} : vector<8x2x8xf32> to vector<8x2x4xf32>
    %279 = vector.extract_strided_slice %277 {offsets = [0, 0, 4], sizes = [8, 2, 4], strides = [1, 1, 1]} : vector<8x2x8xf32> to vector<8x2x4xf32>
    %280 = arith.maximumf %278, %279 : vector<8x2x4xf32>
    %281 = vector.shape_cast %280 : vector<8x2x4xf32> to vector<8x2x2x2xf32>
    %282 = vector.extract_strided_slice %281 {offsets = [0, 0, 0, 0], sizes = [8, 2, 2, 1], strides = [1, 1, 1, 1]} : vector<8x2x2x2xf32> to vector<8x2x2x1xf32>
    %283 = vector.shape_cast %282 : vector<8x2x2x1xf32> to vector<8x2x2xf32>
    %284 = vector.extract_strided_slice %281 {offsets = [0, 0, 0, 1], sizes = [8, 2, 2, 1], strides = [1, 1, 1, 1]} : vector<8x2x2x2xf32> to vector<8x2x2x1xf32>
    %285 = vector.shape_cast %284 : vector<8x2x2x1xf32> to vector<8x2x2xf32>
    %286 = arith.maximumf %283, %285 : vector<8x2x2xf32>
    %287 = vector.shape_cast %286 : vector<8x2x2xf32> to vector<8x1x4xf32>
    %288 = vector.shape_cast %287 : vector<8x1x4xf32> to vector<1x32xf32>
    %c0_85 = arith.constant 0 : index
    %c0_86 = arith.constant 0 : index
    %289 = vector.load %arg11[%c0_85, %c0_86] : memref<32x32xbf16, #tpu.memory_space<vmem>>, vector<32x32xbf16>
    %c0_87 = arith.constant 0 : index
    %c0_88 = arith.constant 0 : index
    %290 = vector.load %arg12[%c0_87, %c0_88] : memref<1x32xf32, #tpu.memory_space<vmem>>, vector<1x32xf32>
    %c0_89 = arith.constant 0 : index
    %c0_90 = arith.constant 0 : index
    %291 = vector.load %arg13[%c0_89, %c0_90] : memref<1x32xf32, #tpu.memory_space<vmem>>, vector<1x32xf32>
    %292 = arith.truncf %288 : vector<1x32xf32> to vector<1x32xbf16>
    %cst_91 = arith.constant dense<0.000000e+00> : vector<1x32xf32>
    %293 = tpu.matmul %292, %289, %cst_91 {dimension_numbers = #tpu.dot_dimension_numbers<[1], [0], [0], [1], [0, 0, 1, 1], [], []>} : vector<1x32xbf16>, vector<32x32xbf16>, vector<1x32xf32> -> vector<1x32xf32>
    %294 = arith.mulf %293, %290 : vector<1x32xf32>
    %295 = arith.addf %294, %291 : vector<1x32xf32>
    %cst_92 = arith.constant 0.000000e+00 : f32
    %296 = vector.broadcast %cst_92 : f32 to vector<1x32xf32>
    %297 = arith.maximumf %295, %296 : vector<1x32xf32>
    %c0_93 = arith.constant 0 : index
    %c0_94 = arith.constant 0 : index
    %298 = vector.load %arg14[%c0_93, %c0_94] : memref<32x10xbf16, #tpu.memory_space<vmem>>, vector<32x10xbf16>
    %c0_95 = arith.constant 0 : index
    %c0_96 = arith.constant 0 : index
    %299 = vector.load %arg15[%c0_95, %c0_96] : memref<1x10xf32, #tpu.memory_space<vmem>>, vector<1x10xf32>
    %c0_97 = arith.constant 0 : index
    %c0_98 = arith.constant 0 : index
    %300 = vector.load %arg16[%c0_97, %c0_98] : memref<1x10xf32, #tpu.memory_space<vmem>>, vector<1x10xf32>
    %301 = arith.truncf %297 : vector<1x32xf32> to vector<1x32xbf16>
    %cst_99 = arith.constant dense<0.000000e+00> : vector<1x10xf32>
    %302 = tpu.matmul %301, %298, %cst_99 {dimension_numbers = #tpu.dot_dimension_numbers<[1], [0], [0], [1], [0, 0, 1, 1], [], []>} : vector<1x32xbf16>, vector<32x10xbf16>, vector<1x10xf32> -> vector<1x10xf32>
    %303 = arith.mulf %302, %299 : vector<1x10xf32>
    %304 = arith.addf %303, %300 : vector<1x10xf32>
    %c0_100 = arith.constant 0 : index
    %c0_101 = arith.constant 0 : index
    %c0_102 = arith.constant 0 : index
    %305 = vector.load %arg17[%c0_100, %c0_101, %c0_102] : memref<1x1x10xf32, #tpu.memory_space<vmem>>, vector<1x1x10xf32>
    %306 = vector.shape_cast %305 : vector<1x1x10xf32> to vector<1x10xf32>
    %307 = vector.shape_cast %304 : vector<1x10xf32> to vector<1x1x10xf32>
    tpu.vector_store %arg17[%c0_100, %c0_101, %c0_102], %307 {strides = array<i32>} : memref<1x1x10xf32, #tpu.memory_space<vmem>>, vector<1x1x10xf32>,
    return
  }
  func.func @transform_0(%arg0: i32) -> (i32, i32, i32, i32) {
    %c0_i32 = arith.constant 0 : i32
    %c0_i32_0 = arith.constant 0 : i32
    %c0_i32_1 = arith.constant 0 : i32
    %c0_i32_2 = arith.constant 0 : i32
    return %arg0, %c0_i32, %c0_i32_0, %c0_i32_1 : i32, i32, i32, i32
  }
  func.func @transform_1(%arg0: i32) -> (i32, i32) {
    %c0_i32 = arith.constant 0 : i32
    %c0_i32_0 = arith.constant 0 : i32
    %c0_i32_1 = arith.constant 0 : i32
    return %c0_i32, %c0_i32_0 : i32, i32
  }
  func.func @transform_2(%arg0: i32) -> (i32, i32) {
    %c0_i32 = arith.constant 0 : i32
    %c0_i32_0 = arith.constant 0 : i32
    %c0_i32_1 = arith.constant 0 : i32
    return %c0_i32, %c0_i32_0 : i32, i32
  }
  func.func @transform_3(%arg0: i32) -> (i32, i32) {
    %c0_i32 = arith.constant 0 : i32
    %c0_i32_0 = arith.constant 0 : i32
    %c0_i32_1 = arith.constant 0 : i32
    return %c0_i32, %c0_i32_0 : i32, i32
  }
  func.func @transform_4(%arg0: i32) -> (i32, i32) {
    %c0_i32 = arith.constant 0 : i32
    %c0_i32_0 = arith.constant 0 : i32
    %c0_i32_1 = arith.constant 0 : i32
    return %c0_i32, %c0_i32_0 : i32, i32
  }
  func.func @transform_5(%arg0: i32) -> (i32, i32) {
    %c0_i32 = arith.constant 0 : i32
    %c0_i32_0 = arith.constant 0 : i32
    %c0_i32_1 = arith.constant 0 : i32
    return %c0_i32, %c0_i32_0 : i32, i32
  }
  func.func @transform_6(%arg0: i32) -> (i32, i32) {
    %c0_i32 = arith.constant 0 : i32
    %c0_i32_0 = arith.constant 0 : i32
    %c0_i32_1 = arith.constant 0 : i32
    return %c0_i32, %c0_i32_0 : i32, i32
  }
  func.func @transform_7(%arg0: i32) -> (i32, i32) {
    %c0_i32 = arith.constant 0 : i32
    %c0_i32_0 = arith.constant 0 : i32
    %c0_i32_1 = arith.constant 0 : i32
    return %c0_i32, %c0_i32_0 : i32, i32
  }
  func.func @transform_8(%arg0: i32) -> (i32, i32) {
    %c0_i32 = arith.constant 0 : i32
    %c0_i32_0 = arith.constant 0 : i32
    %c0_i32_1 = arith.constant 0 : i32
    return %c0_i32, %c0_i32_0 : i32, i32
  }
  func.func @transform_9(%arg0: i32) -> (i32, i32) {
    %c0_i32 = arith.constant 0 : i32
    %c0_i32_0 = arith.constant 0 : i32
    %c0_i32_1 = arith.constant 0 : i32
    return %c0_i32, %c0_i32_0 : i32, i32
  }
  func.func @transform_10(%arg0: i32) -> (i32, i32) {
    %c0_i32 = arith.constant 0 : i32
    %c0_i32_0 = arith.constant 0 : i32
    %c0_i32_1 = arith.constant 0 : i32
    return %c0_i32, %c0_i32_0 : i32, i32
  }
  func.func @transform_11(%arg0: i32) -> (i32, i32) {
    %c0_i32 = arith.constant 0 : i32
    %c0_i32_0 = arith.constant 0 : i32
    %c0_i32_1 = arith.constant 0 : i32
    return %c0_i32, %c0_i32_0 : i32, i32
  }
  func.func @transform_12(%arg0: i32) -> (i32, i32) {
    %c0_i32 = arith.constant 0 : i32
    %c0_i32_0 = arith.constant 0 : i32
    %c0_i32_1 = arith.constant 0 : i32
    return %c0_i32, %c0_i32_0 : i32, i32
  }
  func.func @transform_13(%arg0: i32) -> (i32, i32) {
    %c0_i32 = arith.constant 0 : i32
    %c0_i32_0 = arith.constant 0 : i32
    %c0_i32_1 = arith.constant 0 : i32
    return %c0_i32, %c0_i32_0 : i32, i32
  }
  func.func @transform_14(%arg0: i32) -> (i32, i32) {
    %c0_i32 = arith.constant 0 : i32
    %c0_i32_0 = arith.constant 0 : i32
    %c0_i32_1 = arith.constant 0 : i32
    return %c0_i32, %c0_i32_0 : i32, i32
  }
  func.func @transform_15(%arg0: i32) -> (i32, i32) {
    %c0_i32 = arith.constant 0 : i32
    %c0_i32_0 = arith.constant 0 : i32
    %c0_i32_1 = arith.constant 0 : i32
    return %c0_i32, %c0_i32_0 : i32, i32
  }
  func.func @transform_16(%arg0: i32) -> (i32, i32, i32) {
    %c0_i32 = arith.constant 0 : i32
    %c0_i32_0 = arith.constant 0 : i32
    %c0_i32_1 = arith.constant 0 : i32
    return %arg0, %c0_i32, %c0_i32_0 : i32, i32, i32
  }
}

</mosaic_0001>

<bundles_post_ra>
// kernel: _lambda_.1
= control target key start
LH: loop header
LB: loop body
LE: loop exit
PB: predicated region body
PF: predicated region fallthrough
CT: control target
= control target key end

     0   :  { %s16710_s0 = inlined_call_operand.vmem [shape: f32[2,4,1,256], index: 0, kind: input, shape index: {}]   ;;  %s16711_s1 = inlined_call_operand.vmem [shape: bf16[8,144], index: 1, kind: input, shape index: {}]   ;;  %s16712_s2 = inlined_call_operand.vmem [shape: f32[8,1], index: 2, kind: input, shape index: {}]   ;;  %s16713_s3 = inlined_call_operand.vmem [shape: f32[8,1], index: 3, kind: input, shape index: {}]   ;;  %s16714_s4 = inlined_call_operand.vmem [shape: bf16[16,144], index: 4, kind: input, shape index: {}]   ;;  %s16715_s5 = inlined_call_operand.vmem [shape: f32[16,1], index: 5, kind: input, shape index: {}]   ;;  %s16716_s6 = inlined_call_operand.vmem [shape: f32[16,1], index: 6, kind: input, shape index: {}]   ;;  %s16717_s7 = inlined_call_operand.vmem [shape: bf16[8,144], index: 7, kind: input, shape index: {}]   ;;  %s16718_s8 = inlined_call_operand.vmem [shape: f32[8,1], index: 8, kind: input, shape index: {}]   ;;  %s16719_s9 = inlined_call_operand.vmem [shape: f32[8,1], index: 9, kind: input, shape index: {}]   ;;  %s16720_s10 = inlined_call_operand.vmem [shape: bf16[32,32], index: 10, kind: input, shape index: {}]   ;;  %s16721_s11 = inlined_call_operand.vmem [shape: f32[1,32], index: 11, kind: input, shape index: {}]   ;;  %s16722_s12 = inlined_call_operand.vmem [shape: f32[1,32], index: 12, kind: input, shape index: {}]   ;;  %s16723_s13 = inlined_call_operand.vmem [shape: bf16[32,10], index: 13, kind: input, shape index: {}]   ;;  %s16724_s14 = inlined_call_operand.vmem [shape: f32[1,10], index: 14, kind: input, shape index: {}]   ;;  %s16725_s15 = inlined_call_operand.vmem [shape: f32[1,10], index: 15, kind: input, shape index: {}]   ;;  %s16726_s16 = inlined_call_operand.hbm [shape: f32[2,1,10], index: 16, kind: output, shape index: {}]  }
   0x1   :  { %16865 = sst [smem:[#allocation50_spill]] %s16710_s0 }
   0x2   :  { %16866 = sst [smem:[#allocation51_spill]] %s16711_s1 }
   0x3   :  { %16867 = sst [smem:[#allocation52_spill]] %s16712_s2 }
   0x4   :  { %16868 = sst [smem:[#allocation53_spill]] %s16713_s3 }
   0x5   :  { %21 = vsyncpa [#allocation3], 0 }
   0x6   :  { %23 = vsyncpa [#allocation3 + $0x1], 0  ;;  %s10597_s21 = smov 0   ;;  %s10599_s22 = smov 0  }
   0x7   :  { %s10601_s23 = smov 0   ;;  %s10603_s24 = smov 0  }
   0x8 LB: > { %16869 = sst [smem:[#allocation5_spill]] %s10457_s21  ;;  %s10618_s25 = sadd.s32 4294967295, %s10469_s24   ;;  %s10469_s24 = sphi %s10603_s24, %s17176_s24   ;;  %s10465_s23 = sphi %s10601_s23, %s17178_s23   ;;  %s10461_s22 = sphi %s10599_s22, %s17180_s22   ;;  %s10457_s21 = sphi %s10597_s21, %s17179_s21  }
   0x9   : > { %16870 = sst [smem:[#allocation6_spill]] %s10465_s23  ;;  %s9970_s26 = sadd.s32 4294967294, %s10469_s24  }
   0xa   : > { %s10622_s27 = sadd.s32 1, %s10469_s24   ;;  %s377_s28 = sadd.s32 1, %s10465_s23 }
   0xb   : > { %16871 = sst [smem:[#allocation7_spill]] %s10622_s27  ;;  %s374_s29 = ssub.s32 %s10469_s24, %s10622_s27 }
   0xc   : > { %p387_p0 = scmp.ne.s32.totalorder %s10465_s23, %s10461_s22  ;;  %p375_p1 = scmp.eq.s32.totalorder %s374_s29, 0 }
   0xd   : > { %p388_p2 = scmp.eq.s32.totalorder %s10618_s25, 1  ;;  %p393_p3 = scmp.ne.s32.totalorder %s10461_s22, %s10457_s21 }
   0xe   : > { %p394_p4 = scmp.eq.s32.totalorder %s9970_s26, 1  ;;  %p9973_p7 = scmp.ge.s32.totalorder %s10469_s24, 1 }
   0xf   : > { %s10633_s30 = scalar_select %p375_p1, %s10465_s23, %s377_s28  }
  0x10   : > { %p10635_p5 = por %p388_p2, %p387_p0  ;;  %p10639_p6 = por %p394_p4, %p393_p3 }
  0x11   : > { %16872 = sst [smem:[#allocation8_spill]] %s10633_s30  ;;  %p464_p8 = scmp.lt.s32.totalorder %s10469_s24, 3 }
  0x12   : > { %s16874_s17 = scalar_select %p10639_p6, 1, 0 }
  0x13   : > { %p465_p9 = pnand %p9973_p7, %p464_p8 }
  0x14   : > { %16875 = sst [smem:[#allocation9_spill]] %s16874_s17 }
  0x15   : > { %468 = sbr.rel (%p465_p9) target bundleno = 5049 (0x13b9), region = 84 }
  0x1c   : > { %p512_p10 = scmp.lt.s32.totalorder %s10618_s25, 1  ;;  %v527_v0 = vlaneseq  ;;  %v16740_v1 = vmov 0   ;;  %s16727_s18 = smov 17   ;;  %vm605_vm6 = vcmask 138240   ;;  %vm1369_vm9 = vcmask 1041409  }
  0x1d   : > { %603 = vrot.lane.b32.xlu1 %v16740_v1, %s16727_s18  ;;  %10135 = vset.pattern.permute.xlu0 %v16740_v1  ;;  %s16879_s29 = sld [smem:[#allocation50_spill]]  ;;  %s16729_s26 = smov 18   ;;  %vm1372_vm10 = vcmask 1042434   ;;  %vm1375_vm11 = vcmask 1043459   ;;  %vm1378_vm12 = vcmask 1044484   ;;  %vm1381_vm13 = vcmask 1045509  }
  0x1e   : > { %s513_s19 = scalar_select %p512_p10, %s10618_s25, 1  ;;  %v10650_v2 = vshrl.u32 %v527_v0, 7  ;;  %v10652_v3 = vand.u32 127, %v527_v0  ;;  %10134 = vset.pattern.permute.xlu1 %v16740_v1  ;;  %5691 = vmatprep.subr.bf16.mxu1 %v16740_v1  ;;  %vm1384_vm14 = vcmask 1046534   ;;  %vm16821_vm15 = vcmask 1047559  }
  0x1f   : > { %s16752_s28 = smov 32   ;;  %s16884_s1 = sld [smem:[#allocation51_spill]] }
  0x20   : > { %16876 = vst [vmem:[#allocation10_spill] sm:$0xff] %v10650_v2  ;;  %16877 = vst [vmem:[#allocation11_spill] sm:$0xff] %v10652_v3  ;;  %s9974_s20 = sshll.u32 %s513_s19, 3  ;;  %v10657_v4 = vsub.s32 0, %v10650_v2  ;;  %v533_v5 = vsub.s32 1, %v10650_v2  ;;  %v648_v6 = vadd.s32 128, %v10652_v3 }
  0x21   : > { %v653_v7 = vand.u32 15, %v10652_v3  ;;  %s16880_s19 = smov 17   ;;  %v701_v37 = vsub.s32 4, %v10650_v2  ;;  %s16887_s2 = sld [smem:[#allocation52_spill]] }
  0x22   : > { %16878 = vst [vmem:[#allocation12_spill] sm:$0xff] %v10657_v4  ;;  %v660_v16 = vand.u32 15, %v648_v6  ;;  %s16888_s3 = sld [smem:[#allocation53_spill]]  ;;  %s10499_s30 = smov 24  }
  0x23   : > { %s515_s18 = scalar_lea.vmem %s16879_s29, %s9974_s20  ;;  %v681_v22 = vadd.s32 1, %v653_v7  ;;  %v673_v25 = vadd.s32 4294967295, %v653_v7  ;;  %s16732_s20 = smov 16  }
  0x24   : > { %v521_v8 = vld [vmem:[%s515_s18 + $0x4] sm:$0x3]  ;;  %v520_v9 = vld [vmem:[%s515_s18 + $0x2] sm:$0x3]  ;;  %v519_v10 = vld [vmem:[%s515_s18] sm:$0x3] }
  0x25   : > { %v546_v11 = vrot.slane %v521_v8, %v10657_v4  ;;  %v538_v12 = vrot.slane %v520_v9, %v10657_v4  ;;  %v542_v13 = vrot.slane %v520_v9, %v533_v5  ;;  %v530_v14 = vrot.slane %v519_v10, %v10657_v4  ;;  %v522_v15 = vld [vmem:[%s515_s18 + $0x6] sm:$0x3]  ;;  %s16730_s18 = smov 2   ;;  %s10477_s29 = smov 34  }
  0x26   : > { %v550_v20 = vrot.slane %v521_v8, %v533_v5  ;;  %v554_v21 = vrot.slane %v522_v15, %v10657_v4  ;;  %v682_v24 = vadd.s32 1, %v660_v16  ;;  %v674_v26 = vadd.s32 4294967295, %v660_v16  ;;  %s10500_s23 = smov 40   ;;  %s17036_s21 = smov 10  }
  0x27   : > { %v571_v17 = vpack.c.bf16 %v546_v11, %v546_v11  ;;  %v569_v18 = vpack.c.bf16 %v538_v12, %v538_v12  ;;  %v570_v19 = vpack.c.bf16 %v542_v13, %v542_v13  ;;  %v567_v23 = vpack.c.bf16 %v530_v14, %v530_v14  ;;  %s17053_s27 = smov 96  }
  0x28   : > { %vm685_vm0 = vcmp.lt.s32.totalorder %v681_v22, 16  ;;  %vm686_vm1 = vcmp.lt.s32.totalorder %v682_v24, 16  ;;  %vm675_vm3 = vcmp.ge.s32.totalorder %v673_v25, 0  ;;  %vm676_vm4 = vcmp.ge.s32.totalorder %v674_v26, 0 }
  0x29   : > { %595 = vrot.lane.b32.xlu1 %v571_v17, %s16880_s19  ;;  %591 = vrot.lane.b32.xlu0 %v569_v18, %s16880_s19  ;;  %vm719_vm2 = vmpackc.low %vm686_vm1, %vm685_vm0  ;;  %v572_v27 = vpack.c.bf16 %v550_v20, %v550_v20  ;;  %v573_v28 = vpack.c.bf16 %v554_v21, %v554_v21  ;;  %v534_v29 = vrot.slane %v519_v10, %v533_v5 }
  0x2a   : > { %v720_v30 = vsel %vm719_vm2, 65537, %v16740_v1  ;;  %vm693_vm5 = vmpackc.low %vm676_vm4, %vm675_vm3  ;;  %v558_v33 = vrot.slane %v522_v15, %v533_v5  ;;  %vm733_vm4 = vcmask 15360  }
  0x2b   : > { %v568_v31 = vpack.c.bf16 %v534_v29, %v534_v29  ;;  %v724_v32 = vrot.slane %v720_v30, %v10657_v4  ;;  %v694_v34 = vsel %vm693_vm5, 65537, %v16740_v1  ;;  %v728_v38 = vrot.slane %v720_v30, %v701_v37 }
  0x2c   : > { %v574_v35 = vpack.c.bf16 %v558_v33, %v558_v33  ;;  %v10681_v36 = vrot.slane %v694_v34, %v10657_v4  ;;  %v10689_v39 = vrot.slane %v694_v34, %v701_v37 }
  0x2d   : > { %593 = vrot.lane.b32.xlu0 %v570_v19, %s16880_s19  ;;  %587 = vrot.lane.b32.xlu1 %v567_v23, %s16880_s19 }
  0x2e   : > { %vm704_vm7 = vcmp.ne.s16.totalorder %v10689_v39, 0  ;;  %vm703_vm8 = vcmp.ne.s16.totalorder %v10681_v36, 0 }
  0x31   : > { %597 = vrot.lane.b32.xlu0 %v572_v27, %s16880_s19  ;;  %599 = vrot.lane.b32.xlu1 %v573_v28, %s16880_s19 }
  0x35   : > { %589 = vrot.lane.b32.xlu0 %v568_v31, %s16880_s19  ;;  %729 = vrot.lane.b32.xlu1 %v724_v32, %s16730_s18 }
  0x39   : > { %601 = vrot.lane.b32.xlu0 %v574_v35, %s16880_s19  ;;  %753 = vrot.lane.b32.xlu1 %v10681_v36, %s16732_s20  ;;  %s16738_s19 = smov 127  }
  0x3d   : > { %731 = vrot.lane.b32.xlu0 %v728_v38, %s16730_s18  ;;  %777 = vrot.lane.b32.xlu1 %v724_v32, %s16729_s26  ;;  %s16748_s18 = smov 112  }
  0x41   : > { %755 = vrot.lane.b32.xlu0 %v10689_v39, %s16732_s20  ;;  %801 = vrot.lane.b32.xlu1 %v10681_v36, %s16752_s28  ;;  %s16736_s20 = smov 110  }
  0x45   : > { %779 = vrot.lane.b32.xlu0 %v728_v38, %s16729_s26  ;;  %825 = vrot.lane.b32.xlu1 %v724_v32, %s10477_s29  ;;  %s16746_s26 = smov 126  }
  0x49   : > { %803 = vrot.lane.b32.xlu0 %v10689_v39, %s16752_s28 }
  0x4d   : > { %827 = vrot.lane.b32.xlu0 %v728_v38, %s10477_s29  ;;  %s16734_s29 = smov 111  }
  0x8f   : > { %v10698_v40 = vpop.permute.xlu1 %603 }
  0x90   : > { %v10702_v41 = vsel %vm605_vm6, %v10698_v40, 0  ;;  %v10713_v43 = vsel %vm605_vm6, 0, %v10698_v40  ;;  %v714_v44 = vsel %vm704_vm7, %v10698_v40, 0 }
  0x91   : > { %v10706_v42 = vpack.i.bf16 %v10702_v41, %v10698_v40  ;;  %v713_v45 = vsel %vm703_vm8, %v10713_v43, 0  ;;  %v10730_v50 = vunpack.c.l.b16 %v714_v44 }
  0x92   : > { %v10734_v51 = vunpack.c.l.b16 %v713_v45 }
  0x93   : > { %10095 = vrot.lane.b32.xlu1 %v10706_v42, %s16738_s19  ;;  %v1413_v58 = vrot.slane %v10730_v50, 7  ;;  %v1415_v6 = vrot.slane %v10730_v50, 6  ;;  %v1417_v7 = vrot.slane %v10730_v50, 5  ;;  %v1395_v26 = vrot.slane %v10730_v50, 4 }
  0x94   : > { %v1403_v61 = vrot.slane %v10734_v51, 7  ;;  %v1405_v12 = vrot.slane %v10734_v51, 6  ;;  %v1407_v27 = vrot.slane %v10734_v51, 5  ;;  %v1377_v38 = vrot.slane %v10734_v51, 4 }
  0x95   : > { %v1414_v11 = vsel %vm1369_vm9, %v1413_v58, %v10730_v50 }
  0x96   : > { %v1404_v16 = vsel %vm1369_vm9, %v1403_v61, %v10734_v51  ;;  %v1416_v22 = vsel %vm1372_vm10, %v1415_v6, %v1414_v11  ;;  %v1399_v61 = vrot.slane %v10730_v50, 2 }
  0x97   : > { %883 = vrot.lane.b32.xlu1 %v10713_v43, %s16738_s19  ;;  %v1406_v31 = vsel %vm1372_vm10, %v1405_v12, %v1404_v16  ;;  %v1418_v34 = vsel %vm1375_vm11, %v1417_v7, %v1416_v22  ;;  %v1383_v7 = vrot.slane %v10734_v51, 2  ;;  %v1401_v12 = vrot.slane %v10730_v50, 1 }
  0x9b   : > { %v596_v46 = vpop.permute.xlu1 %595  ;;  %v592_v47 = vpop.permute.xlu0 %591  ;;  %10100 = vrot.lane.b32.xlu1 %v10706_v42, %s16734_s29 }
  0x9c   : > { %v10725_v48 = vsel %vm605_vm6, 0, %v596_v46  ;;  %v10728_v49 = vsel %vm605_vm6, 0, %v592_v47 }
  0x9d   : > { %v707_v52 = vsel %vm703_vm8, %v10728_v49, 0  ;;  %v709_v55 = vsel %vm703_vm8, %v10725_v48, 0 }
  0x9e   : > { %v1280_v60 = vunpack.c.l.b16 %v707_v52  ;;  %v1282_v63 = vunpack.c.l.b16 %v709_v55 }
  0x9f   : > { %v594_v53 = vpop.permute.xlu0 %593  ;;  %v588_v54 = vpop.permute.xlu1 %587  ;;  %1036 = vrot.lane.b32.xlu1 %v10713_v43, %s16734_s29 }
  0xa0   : > { %v10743_v56 = vsel %vm605_vm6, %v594_v53, 0  ;;  %v10746_v57 = vsel %vm605_vm6, 0, %v588_v54  ;;  %v10758_v62 = vsel %vm605_vm6, %v592_v47, %v594_v53  ;;  %v1368_v15 = vrot.slane %v1280_v60, 7 }
  0xa1   : > { %869 = vrot.lane.b32.xlu0 %v10743_v56, %s16738_s19  ;;  %v705_v59 = vsel %vm703_vm8, %v10746_v57, 0  ;;  %v708_v13 = vsel %vm704_vm7, %v10758_v62, 0  ;;  %v1371_v20 = vrot.slane %v1282_v63, 6  ;;  %v1408_v47 = vsel %vm1375_vm11, %v1407_v27, %v1406_v31 }
  0xa2   : > { %v1278_v8 = vunpack.c.l.b16 %v705_v59  ;;  %v1281_v25 = vunpack.c.l.b16 %v708_v13  ;;  %v1380_v60 = vrot.slane %v10734_v51, 3  ;;  %v1409_v63 = vsel %vm1378_vm12, %v1377_v38, %v1408_v47 }
  0xa3   : > { %v598_v0 = vpop.permute.xlu0 %597  ;;  %v600_v5 = vpop.permute.xlu1 %599  ;;  %867 = vrot.lane.b32.xlu1 %v10758_v62, %s16738_s19 }
  0xa4   : > { %v10763_v9 = vsel %vm605_vm6, %v596_v46, %v598_v0  ;;  %v10766_v10 = vsel %vm605_vm6, 0, %v600_v5  ;;  %v10784_v17 = vsel %vm605_vm6, %v598_v0, 0  ;;  %v1370_v23 = vsel %vm1369_vm9, %v1368_v15, %v1278_v8 }
  0xa5   : > { %865 = vrot.lane.b32.xlu0 %v10728_v49, %s16738_s19  ;;  %v711_v14 = vsel %vm703_vm8, %v10766_v10, 0  ;;  %v710_v18 = vsel %vm704_vm7, %v10763_v9, 0  ;;  %v1373_v35 = vsel %vm1372_vm10, %v1371_v20, %v1370_v23  ;;  %v1389_v45 = vrot.slane %v1281_v25, 7 }
  0xa6   : > { %v1284_v19 = vunpack.c.l.b16 %v711_v14  ;;  %v1283_v29 = vunpack.c.l.b16 %v710_v18  ;;  %v1397_v46 = vrot.slane %v10730_v50, 3  ;;  %v1410_v13 = vsel %vm1381_vm13, %v1380_v60, %v1409_v63 }
  0xa7   : > { %v590_v21 = vpop.permute.xlu0 %589  ;;  %873 = vrot.lane.b32.xlu1 %v10763_v9, %s16738_s19  ;;  %v1411_v20 = vsel %vm1384_vm14, %v1383_v7, %v1410_v13  ;;  %v730_v27 = vpop.permute.xlu1 %729  ;;  %vm781_vm8 = vcmask 146432  }
  0xa8   : > { %v10792_v24 = vsel %vm605_vm6, %v588_v54, %v590_v21  ;;  %v1374_v30 = vrot.slane %v1284_v19, 5  ;;  %v10805_v32 = vsel %vm605_vm6, %v590_v21, 0  ;;  %v1391_v53 = vrot.slane %v1283_v29, 6 }
  0xa9   : > { %875 = vrot.lane.b32.xlu0 %v10784_v17, %s16738_s19  ;;  %v706_v28 = vsel %vm704_vm7, %v10792_v24, 0  ;;  %v1419_v54 = vsel %vm1378_vm12, %v1395_v26, %v1418_v34  ;;  %v1386_v19 = vrot.slane %v10734_v51, 1  ;;  %vm735_vm0 = vcmp.ne.s16.totalorder %v730_v27, 0 }
  0xaa   : > { %v1279_v33 = vunpack.c.l.b16 %v706_v28  ;;  %v1376_v37 = vsel %vm1375_vm11, %v1374_v30, %v1373_v35  ;;  %v750_v29 = vsel %vm735_vm0, %v10713_v43, 0  ;;  %v738_v34 = vsel %vm735_vm0, %v10746_v57, 0 }
  0xab   : > { %v602_v36 = vpop.permute.xlu0 %601  ;;  %863 = vrot.lane.b32.xlu1 %v10805_v32, %s16738_s19  ;;  %v1379_v55 = vsel %vm1378_vm12, %v1377_v38, %v1376_v37  ;;  %v754_v31 = vpop.permute.xlu1 %753  ;;  %v744_v47 = vsel %vm735_vm0, %v10725_v48, 0 }
  0xac   : > { %v10812_v44 = vsel %vm605_vm6, %v600_v5, %v602_v36  ;;  %v1390_v59 = vsel %vm1369_vm9, %v1389_v45, %v1279_v33  ;;  %v1420_v5 = vsel %vm1381_vm13, %v1397_v46, %v1419_v54  ;;  %v1382_v39 = vsel %vm1381_vm13, %v1380_v60, %v1379_v55 }
  0xad   : > { %861 = vrot.lane.b32.xlu0 %v10792_v24, %s16738_s19  ;;  %v712_v52 = vsel %vm704_vm7, %v10812_v44, 0  ;;  %v1392_v6 = vsel %vm1372_vm10, %v1391_v53, %v1390_v59  ;;  %v10838_v8 = vsel %vm605_vm6, %v602_v36, 0  ;;  %v1421_v15 = vsel %vm1384_vm14, %v1399_v61, %v1420_v5 }
  0xae   : > { %v1285_v58 = vunpack.c.l.b16 %v712_v52  ;;  %v1385_v16 = vsel %vm1384_vm14, %v1383_v7, %v1382_v39  ;;  %v1422_v22 = vsel %vm16821_vm15, %v1401_v12, %v1421_v15  ;;  %vm759_vm2 = vcmp.ne.s16.totalorder %v754_v31, 0 }
  0xaf   : > { %879 = vrot.lane.b32.xlu1 %v10812_v44, %s16738_s19  ;;  %v1388_v23 = vsel %vm16821_vm15, %v1386_v19, %v1385_v16  ;;  %v732_v28 = vpop.permute.xlu0 %731  ;;  %v741_v36 = vsel %vm735_vm0, %v10728_v49, 0  ;;  %v774_v37 = vsel %vm759_vm2, %v10713_v43, 0  ;;  %v762_v52 = vsel %vm759_vm2, %v10746_v57, 0 }
  0xb0   : > { %v1393_v0 = vrot.slane %v1285_v58, 5  ;;  %vm737_vm1 = vcmp.ne.s16.totalorder %v732_v28, 0  ;;  %v747_v60 = vsel %vm735_vm0, %v10766_v10, 0  ;;  %vm757_vm6 = vcmask 130048  }
  0xb1   : > { %871 = vrot.lane.b32.xlu0 %v10725_v48, %s16738_s19  ;;  %v740_v30 = vsel %vm737_vm1, %v10805_v32, 0  ;;  %v743_v33 = vsel %vm737_vm1, %v10743_v56, 0  ;;  %v746_v38 = vsel %vm737_vm1, %v10784_v17, 0  ;;  %v749_v53 = vsel %vm737_vm1, %v10838_v8, 0 }
  0xb2   : > { %v1394_v11 = vsel %vm1375_vm11, %v1393_v0, %v1392_v6  ;;  %v752_v58 = vsel %vm737_vm1, %v10702_v41, 0  ;;  %v765_v5 = vsel %vm759_vm2, %v10728_v49, 0 }
  0xb3   : > { %v1396_v14 = vsel %vm1378_vm12, %v1395_v26, %v1394_v11  ;;  %859 = vrot.lane.b32.xlu1 %v10746_v57, %s16738_s19  ;;  %v1412_v26 = vsel %vm16821_vm15, %v1386_v19, %v1411_v20  ;;  %v756_v35 = vpop.permute.xlu0 %755 }
  0xb4   : > { %v1398_v18 = vsel %vm1381_vm13, %v1397_v46, %v1396_v14  ;;  %v1807_v51 = vpack.c.b16 %v1412_v26, %v1388_v23  ;;  %vm761_vm3 = vcmp.ne.s16.totalorder %v756_v35, 0  ;;  %v734_v46 = vsel %vm733_vm4, %v730_v27, %v732_v28 }
  0xb5   : > { %881 = vrot.lane.b32.xlu0 %v10838_v8, %s16738_s19  ;;  %v1400_v50 = vsel %vm1384_vm14, %v1399_v61, %v1398_v18  ;;  %v764_v45 = vsel %vm761_vm3, %v10805_v32, 0  ;;  %vm736_vm5 = vcmp.ne.s16.totalorder %v734_v46, 0  ;;  %v767_v61 = vsel %vm761_vm3, %v10743_v56, 0 }
  0xb6   : > { %v1402_v21 = vsel %vm16821_vm15, %v1401_v12, %v1400_v50  ;;  %v742_v54 = vsel %vm736_vm5, %v10758_v62, 0  ;;  %v751_v55 = vsel %vm736_vm5, %v10698_v40, 0  ;;  %v745_v63 = vsel %vm736_vm5, %v10763_v9, 0  ;;  %v10953_v50 = vpop.permute.xlu1 %777 }
  0xb7   : > { %v1808_v25 = vpack.c.b16 %v1422_v22, %v1402_v21  ;;  %1020 = vrot.lane.b32.xlu1 %v10758_v62, %s16734_s29  ;;  %v10104_v59 = vpack.i.bf16 %v752_v58, %v751_v55  ;;  %v758_v0 = vsel %vm757_vm6, %v754_v31, %v756_v35  ;;  %v748_v39 = vsel %vm736_vm5, %v10812_v44, 0  ;;  %v10960_v21 = vpop.permute.xlu0 %779 }
  0xb8   : > { %vm760_vm7 = vcmp.ne.s16.totalorder %v758_v0, 0  ;;  %v770_v6 = vsel %vm761_vm3, %v10784_v17, 0  ;;  %v776_v12 = vsel %vm761_vm3, %v10702_v41, 0  ;;  %v768_v14 = vsel %vm759_vm2, %v10725_v48, 0 }
  0xb9   : > { %877 = vrot.lane.b32.xlu0 %v10766_v10, %s16738_s19  ;;  %1847 = vmatprep.subr.bf16.mxu0 %v1808_v25  ;;  %v766_v7 = vsel %vm760_vm7, %v10758_v62, 0  ;;  %v775_v11 = vsel %vm760_vm7, %v10698_v40, 0  ;;  %v773_v15 = vsel %vm761_vm3, %v10838_v8, 0  ;;  %v769_v16 = vsel %vm760_vm7, %v10763_v9, 0  ;;  %s10485_s19 = smov 94  }
  0xba   : > { %1848 = vmatpush1.bf16.msra.mxu0 %v1807_v51  ;;  %v10109_v13 = vpack.i.bf16 %v776_v12, %v775_v11  ;;  %v771_v18 = vsel %vm759_vm2, %v10766_v10, 0  ;;  %v772_v19 = vsel %vm760_vm7, %v10812_v44, 0  ;;  %v739_v20 = vsel %vm736_vm5, %v10792_v24, 0  ;;  %v10964_v23 = vpop.permute.xlu1 %801 }
  0xbb   : > { %1026 = vrot.lane.b32.xlu1 %v10763_v9, %s16734_s29  ;;  %v763_v22 = vsel %vm760_vm7, %v10792_v24, 0  ;;  %v782_v25 = vsel %vm781_vm8, %v10953_v50, %v10960_v21  ;;  %vm785_vm1 = vcmp.ne.s16.totalorder %v10960_v21, 0  ;;  %v10988_v31 = vpop.permute.xlu0 %803  ;;  %vm783_vm2 = vcmp.ne.s16.totalorder %v10953_v50, 0 }
  0xbc   : > { %vm784_vm0 = vcmp.ne.s16.totalorder %v782_v25, 0  ;;  %v800_v28 = vsel %vm785_vm1, %v10702_v41, 0  ;;  %vm889_vm3 = vcmask 1039360   ;;  %v788_v55 = vsel %vm785_vm1, %v10805_v32, 0 }
  0xbd   : > { %1022 = vrot.lane.b32.xlu0 %v10743_v56, %s16734_s29  ;;  %v790_v51 = vsel %vm784_vm0, %v10758_v62, 0  ;;  %v799_v27 = vsel %vm784_vm0, %v10698_v40, 0  ;;  %vm805_vm4 = vcmask 261120   ;;  %v796_v0 = vsel %vm784_vm0, %v10812_v44, 0 }
  0xbe   : > { %v10976_v26 = vpop.permute.xlu1 %825  ;;  %v786_v12 = vsel %vm783_vm2, %v10746_v57, 0  ;;  %vm809_vm7 = vcmp.ne.s16.totalorder %v10988_v31, 0  ;;  %vm807_vm8 = vcmp.ne.s16.totalorder %v10964_v23, 0 }
  0xbf   : > { %939 = vrot.lane.b32.xlu1 %v750_v29, %s16746_s26  ;;  %v10999_v35 = vpop.permute.xlu0 %827 }
  0xc1   : > { %1018 = vrot.lane.b32.xlu0 %v10728_v49, %s16734_s29 }
  0xc3   : > { %919 = vrot.lane.b32.xlu1 %v740_v30, %s16746_s26  ;;  %v10114_v30 = vpack.i.bf16 %v800_v28, %v799_v27  ;;  %v824_v27 = vsel %vm809_vm7, %v10702_v41, 0 }
  0xc5   : > { %1028 = vrot.lane.b32.xlu0 %v10784_v17, %s16734_s29 }
  0xc7   : > { %915 = vrot.lane.b32.xlu1 %v738_v34, %s16746_s26  ;;  %v793_v34 = vsel %vm784_vm0, %v10763_v9, 0 }
  0xc9   : > { %925 = vrot.lane.b32.xlu0 %v743_v33, %s16746_s26 }
  0xcb   : > { %995 = vrot.lane.b32.xlu1 %v774_v37, %s16748_s18 }
  0xcd   : > { %921 = vrot.lane.b32.xlu0 %v741_v36, %s16746_s26 }
  0xcf   : > { %975 = vrot.lane.b32.xlu1 %v764_v45, %s16748_s18  ;;  %v798_v45 = vsel %vm783_vm2, %v10713_v43, 0 }
  0xd1   : > { %931 = vrot.lane.b32.xlu0 %v746_v38, %s16746_s26  ;;  %v791_v38 = vsel %vm785_vm1, %v10743_v56, 0 }
  0xd3   : > { %971 = vrot.lane.b32.xlu1 %v762_v52, %s16748_s18 }
  0xd5   : > { %927 = vrot.lane.b32.xlu0 %v744_v47, %s16746_s26 }
  0xd7   : > { %923 = vrot.lane.b32.xlu1 %v742_v54, %s16746_s26  ;;  %v789_v54 = vsel %vm783_vm2, %v10728_v49, 0 }
  0xd9   : > { %937 = vrot.lane.b32.xlu0 %v749_v53, %s16746_s26 }
  0xdb   : > { %10105 = vrot.lane.b32.xlu1 %v10104_v59, %s16746_s26 }
  0xdd   : > { %933 = vrot.lane.b32.xlu0 %v747_v60, %s16746_s26 }
  0xdf   : > { %929 = vrot.lane.b32.xlu1 %v745_v63, %s16746_s26  ;;  %v794_v63 = vsel %vm785_vm1, %v10784_v17, 0 }
  0xe1   : > { %981 = vrot.lane.b32.xlu0 %v767_v61, %s16748_s18 }
  0xe3   : > { %935 = vrot.lane.b32.xlu1 %v748_v39, %s16746_s26 }
  0xe5   : > { %977 = vrot.lane.b32.xlu0 %v765_v5, %s16748_s18  ;;  %v11035_v5 = vsel %vm805_vm4, %v10964_v23, %v10988_v31  ;;  %v819_v31 = vsel %vm807_vm8, %v10766_v10, 0 }
  0xe6   : > { %vm808_vm5 = vcmp.ne.s16.totalorder %v11035_v5, 0 }
  0xe7   : > { %979 = vrot.lane.b32.xlu1 %v766_v7, %s16748_s18  ;;  %v814_v25 = vsel %vm808_vm5, %v10758_v62, 0  ;;  %v817_v21 = vsel %vm808_vm5, %v10763_v9, 0 }
  0xe9   : > { %987 = vrot.lane.b32.xlu0 %v770_v6, %s16748_s18 }
  0xeb   : > { %10110 = vrot.lane.b32.xlu1 %v10109_v13, %s16748_s18  ;;  %v787_v13 = vsel %vm784_vm0, %v10792_v24, 0  ;;  %vm829_vm0 = vcmask 277504  }
  0xed   : > { %983 = vrot.lane.b32.xlu0 %v768_v14, %s16748_s18 }
  0xef   : > { %985 = vrot.lane.b32.xlu1 %v769_v16, %s16748_s18 }
  0xf1   : > { %993 = vrot.lane.b32.xlu0 %v773_v15, %s16748_s18 }
  0xf3   : > { %991 = vrot.lane.b32.xlu1 %v772_v19, %s16748_s18 }
  0xf5   : > { %989 = vrot.lane.b32.xlu0 %v771_v18, %s16748_s18  ;;  %v792_v18 = vsel %vm783_vm2, %v10725_v48, 0 }
  0xf7   : > { %1016 = vrot.lane.b32.xlu1 %v10805_v32, %s16734_s29 }
  0xf9   : > { %917 = vrot.lane.b32.xlu0 %v739_v20, %s16746_s26  ;;  %s16897_s26 = smov 112  }
  0xfb   : > { %1032 = vrot.lane.b32.xlu1 %v10812_v44, %s16734_s29 }
  0xfd   : > { %973 = vrot.lane.b32.xlu0 %v763_v22, %s16748_s18  ;;  %s10486_s18 = smov 64  }
  0xff   : > { %1012 = vrot.lane.b32.xlu1 %v10746_v57, %s16734_s29 }
 0x101   : > { %1014 = vrot.lane.b32.xlu0 %v10792_v24, %s16734_s29 }
 0x103   : > { %1076 = vrot.lane.b32.xlu1 %v790_v51, %s16736_s20  ;;  %v823_v51 = vsel %vm808_vm5, %v10698_v40, 0 }
 0x105   : > { %1024 = vrot.lane.b32.xlu0 %v10725_v48, %s16734_s29  ;;  %v10096_v29 = vpop.permute.xlu1 %10095 }
 0x106   : > { %v10098_v37 = vunpack.i.h.bf16 %v10096_v29  ;;  %v10097_v46 = vunpack.i.l.bf16 %v10096_v29 }
 0x107   : > { %10115 = vrot.lane.b32.xlu1 %v10114_v30, %s16736_s20 }
 0x108   : > { %v899_v53 = vsel %vm889_vm3, %v10097_v46, %v10098_v37 }
 0x109   : > { %1034 = vrot.lane.b32.xlu0 %v10838_v8, %s16734_s29  ;;  %v884_v33 = vpop.permute.xlu1 %883  ;;  %v11022_v58 = vunpack.c.l.b16 %v899_v53 }
 0x10a   : > { %v898_v61 = vsel %vm889_vm3, %v884_v33, %v10097_v46  ;;  %v10119_v46 = vpack.i.bf16 %v824_v27, %v823_v51 }
 0x10b   : > { %1082 = vrot.lane.b32.xlu1 %v793_v34, %s16736_s20  ;;  %v11037_v39 = vunpack.c.l.b16 %v898_v61  ;;  %v1461_v11 = vrot.slane %v11022_v58, 7  ;;  %v1463_v14 = vrot.slane %v11022_v58, 6  ;;  %v1465_v28 = vrot.slane %v11022_v58, 5 }
 0x10d   : > { %1030 = vrot.lane.b32.xlu0 %v10766_v10, %s16734_s29  ;;  %v11001_v36 = vpop.permute.xlu1 %10100  ;;  %v1462_v19 = vsel %vm1369_vm9, %v1461_v11, %v11022_v58  ;;  %v1451_v20 = vrot.slane %v11037_v39, 7  ;;  %s16750_s29 = smov 96   ;;  %v1453_v33 = vrot.slane %v11037_v39, 6  ;;  %v1429_v50 = vrot.slane %v11037_v39, 4 }
 0x10e   : > { %v1464_v30 = vsel %vm1372_vm10, %v1463_v14, %v1462_v19 }
 0x10f   : > { %1092 = vrot.lane.b32.xlu1 %v798_v45, %s16736_s20 }
 0x111   : > { %1078 = vrot.lane.b32.xlu0 %v791_v38, %s16736_s20  ;;  %v11011_v52 = vpop.permute.xlu1 %1036 }
 0x113   : > { %v870_v47 = vpop.permute.xlu0 %869  ;;  %1072 = vrot.lane.b32.xlu1 %v788_v55, %s16736_s20  ;;  %v1443_v55 = vrot.slane %v11022_v58, 4 }
 0x115   : > { %1074 = vrot.lane.b32.xlu0 %v789_v54, %s16736_s20  ;;  %v868_v60 = vpop.permute.xlu1 %867  ;;  %v797_v54 = vsel %vm785_vm1, %v10838_v8, 0  ;;  %vm1042_vm1 = vcmask 908288  }
 0x116   : > { %v893_v22 = vsel %vm889_vm3, %v868_v60, %v870_v47  ;;  %v1452_v47 = vsel %vm1369_vm9, %v1451_v20, %v11037_v39 }
 0x117   : > { %v866_v59 = vpop.permute.xlu0 %865  ;;  %1088 = vrot.lane.b32.xlu1 %v796_v0, %s16736_s20  ;;  %v1291_v34 = vunpack.c.l.b16 %v893_v22  ;;  %v1455_v0 = vrot.slane %v11037_v39, 5 }
 0x118   : > { %v892_v53 = vsel %vm889_vm3, %v866_v59, %v868_v60  ;;  %v795_v59 = vsel %vm783_vm2, %v10766_v10, 0  ;;  %v1454_v60 = vsel %vm1372_vm10, %v1453_v33, %v1452_v47  ;;  %v1431_v47 = vrot.slane %v11037_v39, 3 }
 0x119   : > { %1084 = vrot.lane.b32.xlu0 %v794_v63, %s16736_s20  ;;  %v874_v7 = vpop.permute.xlu1 %873  ;;  %v1466_v63 = vsel %vm1375_vm11, %v1465_v28, %v1464_v30  ;;  %v1290_v11 = vunpack.c.l.b16 %v892_v53  ;;  %v1447_v30 = vrot.slane %v11022_v58, 2 }
 0x11a   : > { %v1467_v22 = vsel %vm1378_vm12, %v1443_v55, %v1466_v63 }
 0x11b   : > { %v876_v6 = vpop.permute.xlu0 %875  ;;  %1068 = vrot.lane.b32.xlu1 %v786_v12, %s16736_s20  ;;  %v1437_v12 = vrot.slane %v1291_v34, 7  ;;  %v1423_v33 = vrot.slane %v1290_v11, 7 }
 0x11c   : > { %v895_v37 = vsel %vm889_vm3, %v874_v7, %v876_v6 }
 0x11d   : > { %1070 = vrot.lane.b32.xlu0 %v787_v13, %s16736_s20  ;;  %v864_v16 = vpop.permute.xlu1 %863  ;;  %v1293_v6 = vunpack.c.l.b16 %v895_v37 }
 0x11f   : > { %v862_v15 = vpop.permute.xlu0 %861  ;;  %1132 = vrot.lane.b32.xlu1 %v814_v25, %s16750_s29  ;;  %v1439_v28 = vrot.slane %v1293_v6, 6 }
 0x120   : > { %v891_v29 = vsel %vm889_vm3, %v862_v15, %v864_v16 }
 0x121   : > { %1080 = vrot.lane.b32.xlu0 %v792_v18, %s16736_s20  ;;  %v880_v45 = vpop.permute.xlu1 %879  ;;  %v1289_v61 = vunpack.c.l.b16 %v891_v29  ;;  %v1445_v18 = vrot.slane %v11022_v58, 3 }
 0x123   : > { %v872_v38 = vpop.permute.xlu0 %871  ;;  %10120 = vrot.lane.b32.xlu1 %v10119_v46, %s16750_s29  ;;  %v1438_v25 = vsel %vm1369_vm9, %v1437_v12, %v1289_v61  ;;  %v1468_v46 = vsel %vm1381_vm13, %v1445_v18, %v1467_v22  ;;  %v822_v61 = vsel %vm807_vm8, %v10713_v43, 0  ;;  %v1433_v12 = vrot.slane %v11037_v39, 2 }
 0x124   : > { %v894_v13 = vsel %vm889_vm3, %v872_v38, %v874_v7  ;;  %v1456_v7 = vsel %vm1375_vm11, %v1455_v0, %v1454_v60  ;;  %v1440_v53 = vsel %vm1372_vm10, %v1439_v28, %v1438_v25  ;;  %v1469_v11 = vsel %vm1384_vm14, %v1447_v30, %v1468_v46 }
 0x125   : > { %1090 = vrot.lane.b32.xlu0 %v797_v54, %s16736_s20  ;;  %v860_v16 = vpop.permute.xlu1 %859  ;;  %v1292_v29 = vunpack.c.l.b16 %v894_v13  ;;  %v1457_v63 = vsel %vm1378_vm12, %v1429_v50, %v1456_v7  ;;  %v1435_v7 = vrot.slane %v11037_v39, 1  ;;  %v820_v39 = vsel %vm808_vm5, %v10812_v44, 0 }
 0x126   : > { %v890_v20 = vsel %vm889_vm3, %v860_v16, %v862_v15  ;;  %v815_v15 = vsel %vm809_vm7, %v10743_v56, 0 }
 0x127   : > { %v882_v14 = vpop.permute.xlu0 %881  ;;  %v1288_v27 = vunpack.c.l.b16 %v890_v20  ;;  %1138 = vrot.lane.b32.xlu1 %v817_v21, %s16750_s29  ;;  %v1449_v21 = vrot.slane %v11022_v58, 1  ;;  %v1425_v60 = vrot.slane %v1292_v29, 6  ;;  %v1458_v20 = vsel %vm1381_vm13, %v1431_v47, %v1457_v63 }
 0x128   : > { %v897_v19 = vsel %vm889_vm3, %v880_v45, %v882_v14  ;;  %v813_v58 = vsel %vm807_vm8, %v10728_v49, 0  ;;  %v810_v63 = vsel %vm807_vm8, %v10746_v57, 0 }
 0x129   : > { %v1295_v51 = vunpack.c.l.b16 %v897_v19  ;;  %1086 = vrot.lane.b32.xlu0 %v795_v59, %s16736_s20  ;;  %v11106_v38 = vpop.permute.xlu1 %1020  ;;  %v1424_v6 = vsel %vm1369_vm9, %v1423_v33, %v1288_v27  ;;  %v1470_v27 = vsel %vm16821_vm15, %v1449_v21, %v1469_v11  ;;  %s10484_s20 = smov 95   ;;  %v10103_v11 = vunpack.i.h.bf16 %v11001_v36 }
 0x12a   : > { %v1426_v22 = vsel %vm1372_vm10, %v1425_v60, %v1424_v6 }
 0x12b   : > { %v1441_v34 = vrot.slane %v1295_v51, 5  ;;  %v878_v37 = vpop.permute.xlu0 %877  ;;  %1148 = vrot.lane.b32.xlu1 %v822_v61, %s16750_s29 }
 0x12c   : > { %v896_v54 = vsel %vm889_vm3, %v878_v37, %v880_v45  ;;  %v818_v37 = vsel %vm809_vm7, %v10784_v17, 0  ;;  %vm833_vm3 = vcmp.ne.s16.totalorder %v10999_v35, 0 }
 0x12d   : > { %v1442_v0 = vsel %vm1375_vm11, %v1441_v34, %v1440_v53  ;;  %v1294_v59 = vunpack.c.l.b16 %v896_v54  ;;  %1134 = vrot.lane.b32.xlu0 %v815_v15, %s16750_s29  ;;  %v11126_v16 = vpop.permute.xlu1 %1026  ;;  %v1459_v15 = vsel %vm1384_vm14, %v1433_v12, %v1458_v20  ;;  %v830_v20 = vsel %vm829_vm0, %v10976_v26, %v10999_v35 }
 0x12e   : > { %v1444_v45 = vsel %vm1378_vm12, %v1443_v55, %v1442_v0  ;;  %v812_v55 = vsel %vm809_vm7, %v10805_v32, 0  ;;  %v1460_v53 = vsel %vm16821_vm15, %v1435_v7, %v1459_v15  ;;  %v811_v0 = vsel %vm808_vm5, %v10792_v24, 0 }
 0x12f   : > { %v1427_v13 = vrot.slane %v1294_v59, 5  ;;  %v11124_v14 = vpop.permute.xlu0 %1022  ;;  %v1446_v19 = vsel %vm1381_vm13, %v1445_v18, %v1444_v45  ;;  %1128 = vrot.lane.b32.xlu1 %v812_v55, %s16750_s29  ;;  %v821_v45 = vsel %vm809_vm7, %v10838_v8, 0  ;;  %vm832_vm2 = vcmp.ne.s16.totalorder %v830_v20, 0 }
 0x130   : > { %v1448_v25 = vsel %vm1384_vm14, %v1447_v30, %v1446_v19  ;;  %vm831_vm5 = vcmp.ne.s16.totalorder %v10976_v26, 0  ;;  %v11254_v15 = vsel %vm833_vm3, %v10743_v56, 0  ;;  %vm945_vm7 = vcmask 1031168  }
 0x131   : > { %v1428_v51 = vsel %vm1375_vm11, %v1427_v13, %v1426_v22  ;;  %1130 = vrot.lane.b32.xlu0 %v813_v58, %s16750_s29  ;;  %v1450_v18 = vsel %vm16821_vm15, %v1449_v21, %v1448_v25  ;;  %v11148_v30 = vpop.permute.xlu1 %939  ;;  %v816_v21 = vsel %vm807_vm8, %v10725_v48, 0  ;;  %vm1001_vm8 = vcmask 916480  }
 0x132   : > { %v1430_v28 = vsel %vm1378_vm12, %v1429_v50, %v1428_v51  ;;  %v1810_v29 = vpack.c.b16 %v1470_v27, %v1450_v18  ;;  %v11226_v51 = vsel %vm832_vm2, %v10698_v40, 0  ;;  %v11231_v18 = vsel %vm833_vm3, %v10702_v41, 0 }
 0x133   : > { %v11146_v33 = vpop.permute.xlu0 %1018  ;;  %v1432_v34 = vsel %vm1381_vm13, %v1431_v47, %v1430_v28  ;;  %1144 = vrot.lane.b32.xlu1 %v820_v39, %s16750_s29  ;;  %v838_v40 = vsel %vm832_vm2, %v10758_v62, 0  ;;  %v11247_v41 = vsel %vm832_vm2, %v10763_v9, 0  ;;  %vm1098_vm0 = vcmask 900096  }
 0x134   : > { %1849 = vmatprep.subr.bf16.mxu0 %v1810_v29  ;;  %v1434_v50 = vsel %vm1384_vm14, %v1433_v12, %v1432_v34  ;;  %v10102_v12 = vunpack.i.l.bf16 %v11001_v36  ;;  %v11259_v34 = vsel %vm831_vm5, %v10713_v43, 0 }
 0x135   : > { %1140 = vrot.lane.b32.xlu0 %v818_v37, %s16750_s29  ;;  %v1436_v46 = vsel %vm16821_vm15, %v1435_v7, %v1434_v50  ;;  %v11164_v61 = vpop.permute.xlu1 %919  ;;  %v10129_v7 = vpack.i.bf16 %v11231_v18, %v11226_v51 }
 0x136   : > { %v1809_v47 = vpack.c.b16 %v1460_v53, %v1436_v46  ;;  %v1051_v23 = vsel %vm1042_vm1, %v11011_v52, %v10102_v12  ;;  %v11291_v53 = vsel %vm832_vm2, %v10792_v24, 0 }
 0x137   : > { %v11162_v54 = vpop.permute.xlu0 %1028  ;;  %1124 = vrot.lane.b32.xlu1 %v810_v63, %s16750_s29  ;;  %v11234_v27 = vunpack.c.l.b16 %v1051_v23 }
 0x138   : > { %1850 = vmatpush1.bf16.msra.mxu0 %v1809_v47  ;;  %v11296_v47 = vsel %vm831_vm5, %v10746_v57, 0 }
 0x139   : > { %1126 = vrot.lane.b32.xlu0 %v811_v0, %s16750_s29  ;;  %v11176_v59 = vpop.permute.xlu1 %915  ;;  %v1595_v50 = vrot.slane %v11234_v27, 7  ;;  %v1597_v20 = vrot.slane %v11234_v27, 6 }
 0x13b   : > { %v11174_v6 = vpop.permute.xlu0 %925  ;;  %1173 = vrot.lane.b32.xlu1 %v10758_v62, %s10484_s20  ;;  %v11264_v62 = vsel %vm831_vm5, %v10728_v49, 0  ;;  %v1596_v26 = vsel %vm1369_vm9, %v1595_v50, %v11234_v27  ;;  %v1599_v50 = vrot.slane %v11234_v27, 5 }
 0x13d   : > { %1136 = vrot.lane.b32.xlu0 %v816_v21, %s16750_s29  ;;  %v11186_v60 = vpop.permute.xlu1 %995 }
 0x13f   : > { %v11184_v5 = vpop.permute.xlu0 %921  ;;  %10125 = vrot.lane.b32.xlu1 %v10706_v42, %s10484_s20  ;;  %v1052_v42 = vsel %vm1042_vm1, %v10102_v12, %v10103_v11  ;;  %v1046_v12 = vsel %vm1042_vm1, %v11106_v38, %v11124_v14 }
 0x140   : > { %v11214_v58 = vunpack.c.l.b16 %v1052_v42 }
 0x141   : > { %1146 = vrot.lane.b32.xlu0 %v821_v45, %s16750_s29  ;;  %v11198_v19 = vpop.permute.xlu1 %975  ;;  %v11312_v45 = vsel %vm833_vm3, %v10838_v8, 0 }
 0x142   : > { %v1605_v52 = vrot.slane %v11214_v58, 7  ;;  %v1609_v11 = vrot.slane %v11214_v58, 5  ;;  %v16742_v14 = vrot.slane %v11214_v58, 4 }
 0x143   : > { %v11196_v13 = vpop.permute.xlu0 %931  ;;  %1179 = vrot.lane.b32.xlu1 %v10763_v9, %s10484_s20  ;;  %v11269_v9 = vsel %vm833_vm3, %v10805_v32, 0 }
 0x145   : > { %1142 = vrot.lane.b32.xlu0 %v819_v31, %s16750_s29  ;;  %v11211_v22 = vpop.permute.xlu1 %971 }
 0x147   : > { %v11209_v36 = vpop.permute.xlu0 %927  ;;  %1189 = vrot.lane.b32.xlu1 %v10713_v43, %s10484_s20  ;;  %v1607_v43 = vrot.slane %v11214_v58, 6 }
 0x149   : > { %1175 = vrot.lane.b32.xlu0 %v10743_v56, %s10484_s20  ;;  %v924_v25 = vpop.permute.xlu1 %923  ;;  %v11274_v56 = vsel %vm833_vm3, %v10784_v17, 0  ;;  %vm1251_vm3 = vcmask 769024  }
 0x14a   : > { %v948_v35 = vsel %vm945_vm7, %v11184_v5, %v924_v25  ;;  %v949_v42 = vsel %vm945_vm7, %v924_v25, %v11174_v6  ;;  %v1598_v25 = vsel %vm1372_vm10, %v1597_v20, %v1596_v26 }
 0x14b   : > { %v11222_v55 = vpop.permute.xlu0 %937  ;;  %1169 = vrot.lane.b32.xlu1 %v10805_v32, %s10484_s20  ;;  %v1606_v32 = vsel %vm1369_vm9, %v1605_v52, %v11214_v58 }
 0x14c   : > { %v1608_v31 = vsel %vm1372_vm10, %v1607_v43, %v1606_v32 }
 0x14d   : > { %1171 = vrot.lane.b32.xlu0 %v10728_v49, %s10484_s20  ;;  %v10106_v29 = vpop.permute.xlu1 %10105  ;;  %v11283_v49 = vsel %vm832_vm2, %v10812_v44, 0  ;;  %v1610_v43 = vsel %vm1375_vm11, %v1609_v11, %v1608_v31  ;;  %vm1195_vm2 = vcmask 777216  }
 0x14e   : > { %v10108_v37 = vunpack.i.h.bf16 %v10106_v29  ;;  %v10107_v39 = vunpack.i.l.bf16 %v10106_v29  ;;  %v1321_v29 = vunpack.c.l.b16 %v1046_v12 }
 0x14f   : > { %v11249_v28 = vpop.permute.xlu0 %933  ;;  %1185 = vrot.lane.b32.xlu1 %v10812_v44, %s10484_s20 }
 0x150   : > { %v955_v46 = vsel %vm945_vm7, %v10107_v39, %v10108_v37  ;;  %v954_v44 = vsel %vm945_vm7, %v11148_v30, %v10107_v39  ;;  %v11321_v30 = vsel %vm831_vm5, %v10766_v10, 0 }
 0x151   : > { %1181 = vrot.lane.b32.xlu0 %v10784_v17, %s10484_s20  ;;  %v11301_v17 = vsel %vm831_vm5, %v10725_v48, 0  ;;  %v11305_v63 = vunpack.c.l.b16 %v955_v46  ;;  %v930_v21 = vpop.permute.xlu1 %929  ;;  %v11336_v23 = vunpack.c.l.b16 %v954_v44  ;;  %v1300_v46 = vunpack.c.l.b16 %v948_v35 }
 0x152   : > { %v1301_v44 = vunpack.c.l.b16 %v949_v42  ;;  %v950_v31 = vsel %vm945_vm7, %v11209_v36, %v930_v21  ;;  %v11360_v35 = vsel %vm1378_vm12, %v16742_v14, %v1610_v43 }
 0x153   : > { %v11307_v0 = vpop.permute.xlu0 %981  ;;  %1165 = vrot.lane.b32.xlu1 %v10746_v57, %s10484_s20  ;;  %v1509_v52 = vrot.slane %v11305_v63, 7  ;;  %v1511_v5 = vrot.slane %v11305_v63, 6  ;;  %v1513_v11 = vrot.slane %v11305_v63, 5  ;;  %v1501_v20 = vrot.slane %v11336_v23, 6 }
 0x154   : > { %v1491_v43 = vrot.slane %v11305_v63, 4  ;;  %v1503_v1 = vrot.slane %v11336_v23, 5  ;;  %v11379_v39 = vrot.slane %v1300_v46, 7  ;;  %v1302_v14 = vunpack.c.l.b16 %v950_v31 }
 0x155   : > { %1167 = vrot.lane.b32.xlu0 %v10792_v24, %s10484_s20  ;;  %v936_v37 = vpop.permute.xlu1 %935  ;;  %v1510_v32 = vsel %vm1369_vm9, %v1509_v52, %v11305_v63  ;;  %v1499_v52 = vrot.slane %v11336_v23, 7  ;;  %v1493_v18 = vrot.slane %v11305_v63, 3 }
 0x156   : > { %v1512_v12 = vsel %vm1372_vm10, %v1511_v5, %v1510_v32  ;;  %v11371_v5 = vsel %vm1375_vm11, %v1599_v50, %v1598_v25  ;;  %v951_v32 = vsel %vm945_vm7, %v930_v21, %v11196_v13  ;;  %v952_v21 = vsel %vm945_vm7, %v11249_v28, %v936_v37 }
 0x157   : > { %v978_v24 = vpop.permute.xlu0 %977  ;;  %1229 = vrot.lane.b32.xlu1 %v838_v40, %s10485_s19  ;;  %v11367_v40 = vsel %vm1042_vm1, %v11126_v16, %v11162_v54  ;;  %v1514_v36 = vsel %vm1375_vm11, %v1513_v11, %v1512_v12  ;;  %v11381_v54 = vrot.slane %v1301_v44, 7  ;;  %v1477_v50 = vrot.slane %v11336_v23, 4 }
 0x158   : > { %v1515_v25 = vsel %vm1378_vm12, %v1491_v43, %v1514_v36  ;;  %v1303_v44 = vunpack.c.l.b16 %v951_v32  ;;  %v16744_v32 = vrot.slane %v11305_v63, 1 }
 0x159   : > { %1177 = vrot.lane.b32.xlu0 %v10725_v48, %s10484_s20  ;;  %v11362_v48 = vrot.slane %v1321_v29, 7  ;;  %v980_v42 = vpop.permute.xlu1 %979  ;;  %v1500_v29 = vsel %vm1369_vm9, %v1499_v52, %v11336_v23 }
 0x15a   : > { %v1502_v13 = vsel %vm1372_vm10, %v1501_v20, %v1500_v29  ;;  %v1004_v28 = vsel %vm1001_vm8, %v978_v24, %v980_v42  ;;  %v1304_v20 = vunpack.c.l.b16 %v952_v21  ;;  %v1479_v24 = vrot.slane %v11336_v23, 3 }
 0x15b   : > { %v988_v26 = vpop.permute.xlu0 %987  ;;  %10130 = vrot.lane.b32.xlu1 %v10129_v7, %s10485_s19  ;;  %v1504_v46 = vsel %vm1375_vm11, %v1503_v1, %v1502_v13  ;;  %v1495_v7 = vrot.slane %v11305_v63, 2  ;;  %v1005_v1 = vsel %vm1001_vm8, %v980_v42, %v11307_v0  ;;  %v16745_v29 = vrot.slane %v11336_v23, 2 }
 0x15c   : > { %v1505_v52 = vsel %vm1378_vm12, %v1477_v50, %v1504_v46  ;;  %v1310_v0 = vunpack.c.l.b16 %v1004_v28  ;;  %v1473_v28 = vrot.slane %v1302_v14, 6 }
 0x15d   : > { %1187 = vrot.lane.b32.xlu0 %v10838_v8, %s10484_s20  ;;  %v953_v8 = vsel %vm945_vm7, %v936_v37, %v11222_v55  ;;  %v10111_v51 = vpop.permute.xlu1 %10110  ;;  %v1516_v55 = vsel %vm1381_vm13, %v1493_v18, %v1515_v25  ;;  %v1506_v21 = vsel %vm1381_vm13, %v1479_v24, %v1505_v52  ;;  %v1311_v25 = vunpack.c.l.b16 %v1005_v1 }
 0x15e   : > { %v10113_v11 = vunpack.i.h.bf16 %v10111_v51  ;;  %v10112_v31 = vunpack.i.l.bf16 %v10111_v51  ;;  %v1305_v37 = vunpack.c.l.b16 %v953_v8  ;;  %v1517_v51 = vsel %vm1384_vm14, %v1495_v7, %v1516_v55 }
 0x15f   : > { %v984_v12 = vpop.permute.xlu0 %983  ;;  %1235 = vrot.lane.b32.xlu1 %v11247_v41, %s10485_s19 }
 0x160   : > { %v1011_v36 = vsel %vm1001_vm8, %v10112_v31, %v10113_v11  ;;  %v1487_v11 = vrot.slane %v1303_v44, 6  ;;  %v1489_v44 = vrot.slane %v1305_v37, 5 }
 0x161   : > { %1183 = vrot.lane.b32.xlu0 %v10766_v10, %s10484_s20  ;;  %v1010_v10 = vsel %vm1001_vm8, %v11186_v60, %v10112_v31  ;;  %v11420_v42 = vunpack.c.l.b16 %v1011_v36  ;;  %v986_v13 = vpop.permute.xlu1 %985  ;;  %v1475_v60 = vrot.slane %v1304_v20, 5  ;;  %v16743_v31 = vrot.slane %v11336_v23, 1  ;;  %s16898_s20 = smov 126  }
 0x162   : > { %v1006_v46 = vsel %vm1001_vm8, %v984_v12, %v986_v13  ;;  %v1007_v8 = vsel %vm1001_vm8, %v986_v13, %v988_v26  ;;  %v11435_v52 = vunpack.c.l.b16 %v1010_v10  ;;  %v1507_v26 = vsel %vm1384_vm14, %v16745_v29, %v1506_v21 }
 0x163   : > { %v994_v41 = vpop.permute.xlu0 %993  ;;  %1245 = vrot.lane.b32.xlu1 %v11259_v34, %s10485_s19  ;;  %v1557_v12 = vrot.slane %v11420_v42, 7  ;;  %v1559_v14 = vrot.slane %v11420_v42, 6  ;;  %v1312_v20 = vunpack.c.l.b16 %v1006_v46  ;;  %v1313_v1 = vunpack.c.l.b16 %v1007_v8 }
 0x164   : > { %v11445_v34 = vsel %vm16821_vm15, %v16744_v32, %v1517_v51  ;;  %v1519_v36 = vrot.slane %v1310_v0, 7  ;;  %v1533_v10 = vrot.slane %v1311_v25, 7  ;;  %v11457_v37 = vsel %vm16821_vm15, %v16743_v31, %v1507_v26 }
 0x165   : > { %1231 = vrot.lane.b32.xlu0 %v11254_v15, %s10485_s19  ;;  %v992_v15 = vpop.permute.xlu1 %991  ;;  %v1558_v21 = vsel %vm1369_vm9, %v1557_v12, %v11420_v42  ;;  %v1539_v46 = vrot.slane %v11420_v42, 4  ;;  %v1541_v0 = vrot.slane %v11420_v42, 3  ;;  %v1561_v51 = vrot.slane %v11420_v42, 5 }
 0x166   : > { %v1560_v25 = vsel %vm1372_vm10, %v1559_v14, %v1558_v21  ;;  %v1547_v12 = vrot.slane %v11435_v52, 7  ;;  %v1009_v6 = vsel %vm1001_vm8, %v992_v15, %v994_v41  ;;  %v1543_v31 = vrot.slane %v11420_v42, 2 }
 0x167   : > { %v990_v55 = vpop.permute.xlu0 %989  ;;  %1225 = vrot.lane.b32.xlu1 %v11269_v9, %s10485_s19  ;;  %v1535_v9 = vrot.slane %v1313_v1, 6  ;;  %v1315_v1 = vunpack.c.l.b16 %v1009_v6 }
 0x168   : > { %v1008_v13 = vsel %vm1001_vm8, %v990_v55, %v992_v15  ;;  %v1521_v55 = vrot.slane %v1312_v20, 6  ;;  %v1548_v21 = vsel %vm1369_vm9, %v1547_v12, %v11435_v52 }
 0x169   : > { %1227 = vrot.lane.b32.xlu0 %v11264_v62, %s10485_s19  ;;  %v1314_v8 = vunpack.c.l.b16 %v1008_v13  ;;  %v1549_v62 = vrot.slane %v11435_v52, 6  ;;  %v1017_v26 = vpop.permute.xlu1 %1016  ;;  %v1562_v13 = vsel %vm1375_vm11, %v1561_v51, %v1560_v25 }
 0x16b   : > { %v918_v57 = vpop.permute.xlu0 %917  ;;  %1241 = vrot.lane.b32.xlu1 %v11283_v49, %s10485_s19  ;;  %v1550_v41 = vsel %vm1372_vm10, %v1549_v62, %v1548_v21  ;;  %v1523_v15 = vrot.slane %v1314_v8, 5  ;;  %v1563_v49 = vsel %vm1378_vm12, %v1539_v46, %v1562_v13 }
 0x16c   : > { %v946_v32 = vsel %vm945_vm7, %v11176_v59, %v918_v57  ;;  %v947_v14 = vsel %vm945_vm7, %v918_v57, %v11164_v61  ;;  %v1551_v59 = vrot.slane %v11435_v52, 5  ;;  %v1525_v61 = vrot.slane %v11435_v52, 4 }
 0x16d   : > { %v1298_v29 = vunpack.c.l.b16 %v946_v32  ;;  %v1299_v20 = vunpack.c.l.b16 %v947_v14  ;;  %1237 = vrot.lane.b32.xlu0 %v11274_v56, %s10485_s19  ;;  %v1527_v57 = vrot.slane %v11435_v52, 3  ;;  %v11486_v51 = vpop.permute.xlu1 %1032 }
 0x16e   : > { %v1552_v6 = vsel %vm1375_vm11, %v1551_v59, %v1550_v41  ;;  %v1545_v41 = vrot.slane %v11420_v42, 1 }
 0x16f   : > { %v1472_v32 = vsel %vm1369_vm9, %v11379_v39, %v1298_v29  ;;  %v1486_v25 = vsel %vm1369_vm9, %v11381_v54, %v1299_v20  ;;  %v974_v56 = vpop.permute.xlu0 %973  ;;  %1221 = vrot.lane.b32.xlu1 %v11296_v47, %s10485_s19 }
 0x170   : > { %v1474_v8 = vsel %vm1372_vm10, %v1473_v28, %v1472_v32  ;;  %v1488_v12 = vsel %vm1372_vm10, %v1487_v11, %v1486_v25  ;;  %v1002_v62 = vsel %vm1001_vm8, %v11211_v22, %v974_v56  ;;  %v1003_v39 = vsel %vm1001_vm8, %v974_v56, %v11198_v19 }
 0x171   : > { %v1476_v54 = vsel %vm1375_vm11, %v1475_v60, %v1474_v8  ;;  %v1490_v29 = vsel %vm1375_vm11, %v1489_v44, %v1488_v12  ;;  %v1308_v14 = vunpack.c.l.b16 %v1002_v62  ;;  %v1309_v21 = vunpack.c.l.b16 %v1003_v39  ;;  %1223 = vrot.lane.b32.xlu0 %v11291_v53, %s10485_s19  ;;  %v1013_v53 = vpop.permute.xlu1 %1012 }
 0x172   : > { %v1537_v28 = vrot.slane %v1315_v1, 5  ;;  %v1492_v22 = vsel %vm1378_vm12, %v1491_v43, %v1490_v29  ;;  %v1478_v19 = vsel %vm1378_vm12, %v1477_v50, %v1476_v54  ;;  %v1553_v11 = vsel %vm1378_vm12, %v1525_v61, %v1552_v6 }
 0x173   : > { %v1520_v60 = vsel %vm1369_vm9, %v1519_v36, %v1308_v14  ;;  %v1534_v44 = vsel %vm1369_vm9, %v1533_v10, %v1309_v21  ;;  %v1015_v13 = vpop.permute.xlu0 %1014  ;;  %v1494_v47 = vsel %vm1381_vm13, %v1493_v18, %v1492_v22  ;;  %v1480_v43 = vsel %vm1381_vm13, %v1479_v24, %v1478_v19  ;;  %v11583_v21 = vld [vmem:[%s16884_s1] sm:$0xff]  ;;  %s16805_s1 = smov 118  }
 0x174   : > { %v1522_v20 = vsel %vm1372_vm10, %v1521_v55, %v1520_v60  ;;  %v1536_v50 = vsel %vm1372_vm10, %v1535_v9, %v1534_v44  ;;  %v1564_v36 = vsel %vm1381_vm13, %v1541_v0, %v1563_v49  ;;  %v1044_v18 = vsel %vm1042_vm1, %v1015_v13, %v1017_v26 }
 0x175   : > { %v1524_v10 = vsel %vm1375_vm11, %v1523_v15, %v1522_v20  ;;  %v1538_v59 = vsel %vm1375_vm11, %v1537_v28, %v1536_v50  ;;  %1233 = vrot.lane.b32.xlu0 %v11301_v17, %s10485_s19  ;;  %v1554_v24 = vsel %vm1381_vm13, %v1527_v57, %v1553_v11  ;;  %v1496_v55 = vsel %vm1384_vm14, %v1495_v7, %v1494_v47  ;;  %v11541_v25 = vpop.permute.xlu1 %1076 }
 0x176   : > { %v16881_v9 = vrot.slane %v11336_v23, 2  ;;  %v1540_v15 = vsel %vm1378_vm12, %v1539_v46, %v1538_v59  ;;  %v1526_v32 = vsel %vm1378_vm12, %v1525_v61, %v1524_v10  ;;  %v16882_v17 = vrot.slane %v11305_v63, 1  ;;  %v577_v10 = vld [vmem:[%s16888_s3] sm:$0xff]  ;;  %s16814_s3 = smov 10  }
 0x177   : > { %v1025_v26 = vpop.permute.xlu0 %1024  ;;  %v16883_v49 = vrot.slane %v11336_v23, 1  ;;  %v1529_v6 = vrot.slane %v11435_v52, 2  ;;  %v1531_v8 = vrot.slane %v11435_v52, 1  ;;  %v1319_v12 = vunpack.c.l.b16 %v1044_v18 }
 0x178   : > { %v1482_v1 = vsel %vm1384_vm14, %v16881_v9, %v1480_v43  ;;  %v1498_v56 = vsel %vm16821_vm15, %v16882_v17, %v1496_v55  ;;  %v1565_v63 = vsel %vm1384_vm14, %v1543_v31, %v1564_v36  ;;  %v1047_v62 = vsel %vm1042_vm1, %v1025_v26, %v11126_v16 }
 0x179   : > { %v1484_v7 = vsel %vm16821_vm15, %v16883_v49, %v1482_v1  ;;  %v1812_v46 = vpack.c.b16 %v11445_v34, %v1498_v56  ;;  %1243 = vrot.lane.b32.xlu0 %v11312_v45, %s10485_s19  ;;  %v1542_v23 = vsel %vm1381_vm13, %v1541_v0, %v1540_v15  ;;  %v1528_v52 = vsel %vm1381_vm13, %v1527_v57, %v1526_v32  ;;  %v10116_v57 = vpop.permute.xlu1 %10115 }
 0x17a   : > { %v1811_v61 = vpack.c.b16 %v11457_v37, %v1484_v7  ;;  %v1555_v34 = vsel %vm1384_vm14, %v1529_v6, %v1554_v24  ;;  %v1045_v37 = vsel %vm1042_vm1, %v11146_v33, %v11106_v38  ;;  %v1323_v39 = vunpack.c.l.b16 %v11367_v40 }
 0x17b   : > { %1851 = vmatprep.subr.bf16.mxu0 %v1812_v46  ;;  %v1544_v16 = vsel %vm1384_vm14, %v1543_v31, %v1542_v23  ;;  %v1530_v45 = vsel %vm1384_vm14, %v1529_v6, %v1528_v52  ;;  %v1043_v54 = vsel %vm1042_vm1, %v1013_v53, %v1015_v13  ;;  %v1035_v0 = vpop.permute.xlu0 %1034  ;;  %v1566_v14 = vsel %vm16821_vm15, %v1545_v41, %v1565_v63 }
 0x17c   : > { %1852 = vmatpush1.bf16.msra.mxu0 %v1811_v61  ;;  %v1546_v29 = vsel %vm16821_vm15, %v1545_v41, %v1544_v16  ;;  %v1532_v38 = vsel %vm16821_vm15, %v1531_v8, %v1530_v45  ;;  %v1322_v33 = vunpack.c.l.b16 %v1047_v62  ;;  %v1050_v40 = vsel %vm1042_vm1, %v11486_v51, %v1035_v0 }
 0x17d   : > { %v1814_v42 = vpack.c.b16 %v1566_v14, %v1546_v29  ;;  %v1556_v31 = vsel %vm16821_vm15, %v1531_v8, %v1555_v34  ;;  %v1320_v28 = vunpack.c.l.b16 %v1045_v37  ;;  %v1582_v22 = vsel %vm1369_vm9, %v11362_v48, %v1319_v12  ;;  %1239 = vrot.lane.b32.xlu0 %v11321_v30, %s10485_s19  ;;  %v11599_v36 = vpop.permute.xlu1 %1082  ;;  %s16754_s19 = smov 124  }
 0x17e   : > { %v1325_v19 = vunpack.c.l.b16 %v1050_v40  ;;  %v1813_v11 = vpack.c.b16 %v1556_v31, %v1532_v38  ;;  %v1583_v60 = vrot.slane %v1323_v39, 6  ;;  %v16885_v44 = vrot.slane %v11214_v58, 3 }
 0x17f   : > { %1853 = vmatprep.subr.bf16.mxu0 %v1814_v42  ;;  %v16886_v53 = vrot.slane %v11234_v27, 4  ;;  %v9976_v48 = vcombine.high %v11583_v21, %v11583_v21  ;;  %v1318_v43 = vunpack.c.l.b16 %v1043_v54  ;;  %v10118_v50 = vunpack.i.h.bf16 %v10116_v57  ;;  %v1031_v41 = vpop.permute.xlu0 %1030 }
 0x180   : > { %v1612_v13 = vsel %vm1381_vm13, %v16885_v44, %v11360_v35  ;;  %v1585_v20 = vrot.slane %v1325_v19, 5  ;;  %v10117_v30 = vunpack.i.l.bf16 %v10116_v57  ;;  %1854 = vmatpush1.bf16.msra.mxu0 %v1813_v11  ;;  %v576_v35 = vld [vmem:[%s16887_s2] sm:$0xff]  ;;  %v1584_v59 = vsel %vm1372_vm10, %v1583_v60, %v1582_v22  ;;  %s16901_s2 = smov 116  }
 0x181   : > { %v1601_v47 = vsel %vm1378_vm12, %v16886_v53, %v11371_v5  ;;  %v1569_v5 = vrot.slane %v1322_v33, 6  ;;  %v1049_v18 = vsel %vm1042_vm1, %v1031_v41, %v11486_v51  ;;  %v1575_v24 = vrot.slane %v11234_v27, 3  ;;  %9977 = vmatprep.mubr.msk.bf16.mxu0 %vm757_vm6, %v9976_v48  ;;  %1890 = vperm.xlu1 %10134, %v576_v35   ;;  %v1093_v46 = vpop.permute.xlu1 %1092 }
 0x182   : > { %v1567_v55 = vrot.slane %v1320_v28, 7  ;;  %v1586_v9 = vsel %vm1375_vm11, %v1585_v20, %v1584_v59  ;;  %v1324_v1 = vunpack.c.l.b16 %v1049_v18  ;;  %v1593_v15 = vrot.slane %v11214_v58, 1  ;;  %1897 = vperm.xlu0 %10135, %v577_v10  }
 0x183   : > { %v16889_v32 = vrot.slane %v11214_v58, 4  ;;  %v16890_v17 = vrot.slane %v11214_v58, 2  ;;  %v1577_v56 = vrot.slane %v11234_v27, 2  ;;  %v1602_v49 = vsel %vm1381_vm13, %v1575_v24, %v1601_v47  ;;  %v1079_v12 = vpop.permute.xlu0 %1078 }
 0x184   : > { %v1568_v7 = vsel %vm1369_vm9, %v1567_v55, %v1318_v43  ;;  %v1108_v6 = vsel %vm1098_vm0, %v10117_v30, %v10118_v50  ;;  %v1571_v8 = vrot.slane %v1324_v1, 5  ;;  %v16891_v61 = vmov %v16885_v44 }
 0x185   : > { %v1588_v26 = vsel %vm1378_vm12, %v16889_v32, %v1586_v9  ;;  %v1613_v51 = vsel %vm1384_vm14, %v16890_v17, %v1612_v13  ;;  %v1570_v62 = vsel %vm1372_vm10, %v1569_v5, %v1568_v7  ;;  %v16892_v23 = vmov %v16890_v17  ;;  %v1073_v14 = vpop.permute.xlu1 %1072 }
 0x186   : > { %v1590_v63 = vsel %vm1381_vm13, %v16891_v61, %v1588_v26  ;;  %v1572_v34 = vsel %vm1375_vm11, %v1571_v8, %v1570_v62  ;;  %v1614_v39 = vsel %vm16821_vm15, %v1593_v15, %v1613_v51  ;;  %v1603_v16 = vsel %vm1384_vm14, %v1577_v56, %v1602_v49 }
 0x187   : > { %v1592_v52 = vsel %vm1384_vm14, %v16892_v23, %v1590_v63  ;;  %v11635_v45 = vunpack.c.l.b16 %v1108_v6  ;;  %v16893_v54 = vmov %v16886_v53  ;;  %v1107_v57 = vsel %vm1098_vm0, %v1093_v46, %v10117_v30  ;;  %v1075_v58 = vpop.permute.xlu0 %1074 }
 0x188   : > { %v1594_v37 = vsel %vm16821_vm15, %v1593_v15, %v1592_v52  ;;  %v1574_v0 = vsel %vm1378_vm12, %v16893_v54, %v1572_v34  ;;  %v1579_v33 = vrot.slane %v11234_v27, 1  ;;  %v11644_v42 = vunpack.c.l.b16 %v1107_v57 }
 0x189   : > { %v1816_v29 = vpack.c.b16 %v1614_v39, %v1594_v37  ;;  %v1576_v38 = vsel %vm1381_vm13, %v1575_v24, %v1574_v0  ;;  %v1653_v19 = vrot.slane %v11635_v45, 7  ;;  %v1089_v60 = vpop.permute.xlu1 %1088  ;;  %v1655_v44 = vrot.slane %v11635_v45, 6 }
 0x18a   : > { %v1578_v40 = vsel %vm1384_vm14, %v1577_v56, %v1576_v38  ;;  %v1604_v28 = vsel %vm16821_vm15, %v1579_v33, %v1603_v16  ;;  %v1643_v13 = vrot.slane %v11644_v42, 7  ;;  %v1102_v48 = vsel %vm1098_vm0, %v11541_v25, %v1079_v12 }
 0x18b   : > { %1855 = vmatprep.subr.bf16.mxu0 %v1816_v29  ;;  %v1580_v31 = vsel %vm16821_vm15, %v1579_v33, %v1578_v40  ;;  %v1085_v11 = vpop.permute.xlu0 %1084  ;;  %v1654_v27 = vsel %vm1369_vm9, %v1653_v19, %v11635_v45  ;;  %v1645_v43 = vrot.slane %v11644_v42, 6  ;;  %v1657_v41 = vrot.slane %v11635_v45, 5 }
 0x18c   : > { %v1815_v22 = vpack.c.b16 %v1604_v28, %v1580_v31  ;;  %v1656_v20 = vsel %vm1372_vm10, %v1655_v44, %v1654_v27  ;;  %v1644_v50 = vsel %vm1369_vm9, %v1643_v13, %v11644_v42  ;;  %v1331_v35 = vunpack.c.l.b16 %v1102_v48 }
 0x18d   : > { %v1069_v47 = vpop.permute.xlu1 %1068  ;;  %v1104_v10 = vsel %vm1098_vm0, %v11599_v36, %v1085_v11  ;;  %v1658_v18 = vsel %vm1375_vm11, %v1657_v41, %v1656_v20  ;;  %v1646_v24 = vsel %vm1372_vm10, %v1645_v43, %v1644_v50  ;;  %v1635_v1 = vrot.slane %v11635_v45, 4 }
 0x18e   : > { %1856 = vmatpush1.bf16.msra.mxu0 %v1815_v22  ;;  %v1647_v15 = vrot.slane %v11644_v42, 5  ;;  %v1101_v32 = vsel %vm1098_vm0, %v1075_v58, %v11541_v25  ;;  %v1333_v26 = vunpack.c.l.b16 %v1104_v10  ;;  %v1629_v17 = vrot.slane %v1331_v35, 7 }
 0x18f   : > { %v1071_v53 = vpop.permute.xlu0 %1070  ;;  %v1637_v49 = vrot.slane %v11635_v45, 3  ;;  %v1659_v7 = vsel %vm1378_vm12, %v1635_v1, %v1658_v18  ;;  %v1621_v46 = vrot.slane %v11644_v42, 4  ;;  %v1330_v61 = vunpack.c.l.b16 %v1101_v32 }
 0x190   : > { %v1100_v30 = vsel %vm1098_vm0, %v1071_v53, %v1073_v14  ;;  %v1648_v6 = vsel %vm1375_vm11, %v1647_v15, %v1646_v24  ;;  %v1099_v8 = vsel %vm1098_vm0, %v1069_v47, %v1071_v53  ;;  %vm1154_vm1 = vcmask 785408  }
 0x191   : > { %v11663_v59 = vpop.permute.xlu1 %1132  ;;  %v1329_v55 = vunpack.c.l.b16 %v1100_v30  ;;  %v1631_v62 = vrot.slane %v1333_v26, 6  ;;  %v1639_v23 = vrot.slane %v11635_v45, 2  ;;  %v1660_v52 = vsel %vm1381_vm13, %v1637_v49, %v1659_v7 }
 0x192   : > { %v1649_v34 = vsel %vm1378_vm12, %v1621_v46, %v1648_v6  ;;  %v1328_v37 = vunpack.c.l.b16 %v1099_v8  ;;  %v1623_v38 = vrot.slane %v11644_v42, 3  ;;  %v1615_v33 = vrot.slane %v1330_v61, 7 }
 0x193   : > { %v1081_v5 = vpop.permute.xlu0 %1080  ;;  %v1630_v25 = vsel %vm1369_vm9, %v1629_v17, %v1329_v55  ;;  %v1641_v28 = vrot.slane %v11635_v45, 1  ;;  %v1661_v19 = vsel %vm1384_vm14, %v1639_v23, %v1660_v52  ;;  %v1625_v11 = vrot.slane %v11644_v42, 2 }
 0x194   : > { %v1103_v9 = vsel %vm1098_vm0, %v1081_v5, %v11599_v36  ;;  %v1632_v58 = vsel %vm1372_vm10, %v1631_v62, %v1630_v25  ;;  %v1650_v44 = vsel %vm1381_vm13, %v1623_v38, %v1649_v34  ;;  %v1616_v13 = vsel %vm1369_vm9, %v1615_v33, %v1328_v37 }
 0x195   : > { %v10121_v56 = vpop.permute.xlu1 %10120  ;;  %v1332_v36 = vunpack.c.l.b16 %v1103_v9  ;;  %v1662_v30 = vsel %vm16821_vm15, %v1641_v28, %v1661_v19  ;;  %v1651_v41 = vsel %vm1384_vm14, %v1625_v11, %v1650_v44 }
 0x196   : > { %v10123_v16 = vunpack.i.h.bf16 %v10121_v56  ;;  %v10122_v54 = vunpack.i.l.bf16 %v10121_v56 }
 0x197   : > { %v1091_v51 = vpop.permute.xlu0 %1090  ;;  %v1617_v29 = vrot.slane %v1332_v36, 6 }
 0x198   : > { %v1106_v12 = vsel %vm1098_vm0, %v1089_v60, %v1091_v51 }
 0x199   : > { %v1335_v63 = vunpack.c.l.b16 %v1106_v12  ;;  %v1139_v57 = vpop.permute.xlu1 %1138  ;;  %v1618_v43 = vsel %vm1372_vm10, %v1617_v29, %v1616_v13 }
 0x19b   : > { %v1633_v39 = vrot.slane %v1335_v63, 5  ;;  %v1087_v0 = vpop.permute.xlu0 %1086 }
 0x19c   : > { %v1105_v14 = vsel %vm1098_vm0, %v1087_v0, %v1089_v60  ;;  %v1164_v60 = vsel %vm1154_vm1, %v10122_v54, %v10123_v16 }
 0x19d   : > { %v1634_v40 = vsel %vm1375_vm11, %v1633_v39, %v1632_v58  ;;  %v1334_v31 = vunpack.c.l.b16 %v1105_v14  ;;  %v1149_v47 = vpop.permute.xlu1 %1148  ;;  %v11701_v35 = vunpack.c.l.b16 %v1164_v60 }
 0x19e   : > { %v1636_v22 = vsel %vm1378_vm12, %v1635_v1, %v1634_v40  ;;  %v1163_v5 = vsel %vm1154_vm1, %v1149_v47, %v10122_v54  ;;  %v1627_v1 = vrot.slane %v11644_v42, 1 }
 0x19f   : > { %v1619_v27 = vrot.slane %v1334_v31, 5  ;;  %v1135_v53 = vpop.permute.xlu0 %1134  ;;  %v1638_v48 = vsel %vm1381_vm13, %v1637_v49, %v1636_v22  ;;  %v11708_v32 = vunpack.c.l.b16 %v1163_v5  ;;  %v1701_v56 = vrot.slane %v11701_v35, 7 }
 0x1a0   : > { %v1640_v45 = vsel %vm1384_vm14, %v1639_v23, %v1638_v48  ;;  %v1652_v17 = vsel %vm16821_vm15, %v1627_v1, %v1651_v41  ;;  %v1703_v6 = vrot.slane %v11701_v35, 6  ;;  %v1705_v23 = vrot.slane %v11701_v35, 5 }
 0x1a1   : > { %v1620_v20 = vsel %vm1375_vm11, %v1619_v27, %v1618_v43  ;;  %v1642_v50 = vsel %vm16821_vm15, %v1641_v28, %v1640_v45  ;;  %v1129_v55 = vpop.permute.xlu1 %1128  ;;  %v1691_v8 = vrot.slane %v11708_v32, 7  ;;  %v1702_v42 = vsel %vm1369_vm9, %v1701_v56, %v11701_v35 }
 0x1a2   : > { %v1622_v10 = vsel %vm1378_vm12, %v1621_v46, %v1620_v20  ;;  %v1818_v18 = vpack.c.b16 %v1662_v30, %v1642_v50  ;;  %v1158_v46 = vsel %vm1154_vm1, %v11663_v59, %v1135_v53  ;;  %v1693_v61 = vrot.slane %v11708_v32, 6 }
 0x1a3   : > { %v1131_v24 = vpop.permute.xlu0 %1130  ;;  %v1624_v9 = vsel %vm1381_vm13, %v1623_v38, %v1622_v10  ;;  %v1704_v25 = vsel %vm1372_vm10, %v1703_v6, %v1702_v42  ;;  %v1692_v63 = vsel %vm1369_vm9, %v1691_v8, %v11708_v32  ;;  %v1341_v52 = vunpack.c.l.b16 %v1158_v46 }
 0x1a4   : > { %1857 = vmatprep.subr.bf16.mxu0 %v1818_v18  ;;  %v1626_v15 = vsel %vm1384_vm14, %v1625_v11, %v1624_v9  ;;  %v1706_v16 = vsel %vm1375_vm11, %v1705_v23, %v1704_v25  ;;  %v1694_v54 = vsel %vm1372_vm10, %v1693_v61, %v1692_v63  ;;  %v1683_v58 = vrot.slane %v11701_v35, 4 }
 0x1a5   : > { %v1628_v26 = vsel %vm16821_vm15, %v1627_v1, %v1626_v15  ;;  %v1145_v7 = vpop.permute.xlu1 %1144  ;;  %v1695_v14 = vrot.slane %v11708_v32, 5  ;;  %v1157_v38 = vsel %vm1154_vm1, %v1131_v24, %v11663_v59  ;;  %v1677_v40 = vrot.slane %v1341_v52, 7 }
 0x1a6   : > { %v1817_v51 = vpack.c.b16 %v1652_v17, %v1628_v26  ;;  %v1685_v22 = vrot.slane %v11701_v35, 3  ;;  %v1707_v19 = vsel %vm1378_vm12, %v1683_v58, %v1706_v16  ;;  %v1669_v60 = vrot.slane %v11708_v32, 4 }
 0x1a7   : > { %v1141_v49 = vpop.permute.xlu0 %1140  ;;  %v1696_v11 = vsel %vm1375_vm11, %v1695_v14, %v1694_v54  ;;  %v1340_v27 = vunpack.c.l.b16 %v1157_v38  ;;  %v1687_v48 = vrot.slane %v11701_v35, 2  ;;  %v1671_v9 = vrot.slane %v11708_v32, 3 }
 0x1a8   : > { %1858 = vmatpush1.bf16.msra.mxu0 %v1817_v51  ;;  %v1160_v34 = vsel %vm1154_vm1, %v1139_v57, %v1141_v49  ;;  %v1708_v43 = vsel %vm1381_vm13, %v1685_v22, %v1707_v19  ;;  %v1697_v45 = vsel %vm1378_vm12, %v1669_v60, %v1696_v11  ;;  %v1689_v17 = vrot.slane %v11701_v35, 1 }
 0x1a9   : > { %v1125_v12 = vpop.permute.xlu1 %1124  ;;  %v1343_v33 = vunpack.c.l.b16 %v1160_v34  ;;  %v1663_v1 = vrot.slane %v1340_v27, 7  ;;  %v1709_v56 = vsel %vm1384_vm14, %v1687_v48, %v1708_v43  ;;  %v1673_v49 = vrot.slane %v11708_v32, 2 }
 0x1aa   : > { %v1698_v6 = vsel %vm1381_vm13, %v1671_v9, %v1697_v45 }
 0x1ab   : > { %v1127_v36 = vpop.permute.xlu0 %1126  ;;  %v1679_v47 = vrot.slane %v1343_v33, 6  ;;  %v1699_v23 = vsel %vm1384_vm14, %v1673_v49, %v1698_v6 }
 0x1ac   : > { %v1156_v62 = vsel %vm1154_vm1, %v1127_v36, %v1129_v55  ;;  %v1155_v44 = vsel %vm1154_vm1, %v1125_v12, %v1127_v36 }
 0x1ad   : > { %v11726_v39 = vpop.permute.xlu1 %1173  ;;  %v1339_v0 = vunpack.c.l.b16 %v1156_v62  ;;  %v1338_v20 = vunpack.c.l.b16 %v1155_v44  ;;  %v1710_v62 = vsel %vm16821_vm15, %v1689_v17, %v1709_v56 }
 0x1af   : > { %v1137_v37 = vpop.permute.xlu0 %1136  ;;  %v1678_v59 = vsel %vm1369_vm9, %v1677_v40, %v1339_v0  ;;  %v1664_v8 = vsel %vm1369_vm9, %v1663_v1, %v1338_v20 }
 0x1b0   : > { %v1159_v29 = vsel %vm1154_vm1, %v1137_v37, %v1139_v57  ;;  %v1680_v24 = vsel %vm1372_vm10, %v1679_v47, %v1678_v59 }
 0x1b1   : > { %v10126_v28 = vpop.permute.xlu1 %10125  ;;  %v1342_v57 = vunpack.c.l.b16 %v1159_v29 }
 0x1b2   : > { %v10128_v30 = vunpack.i.h.bf16 %v10126_v28  ;;  %v10127_v41 = vunpack.i.l.bf16 %v10126_v28 }
 0x1b3   : > { %v1147_v31 = vpop.permute.xlu0 %1146  ;;  %v1665_v18 = vrot.slane %v1342_v57, 6 }
 0x1b4   : > { %v1162_v13 = vsel %vm1154_vm1, %v1145_v7, %v1147_v31 }
 0x1b5   : > { %v1345_v53 = vunpack.c.l.b16 %v1162_v13  ;;  %v11745_v5 = vpop.permute.xlu1 %1179  ;;  %v1666_v61 = vsel %vm1372_vm10, %v1665_v18, %v1664_v8 }
 0x1b7   : > { %v1681_v50 = vrot.slane %v1345_v53, 5  ;;  %v1143_v10 = vpop.permute.xlu0 %1142 }
 0x1b8   : > { %v1161_v55 = vsel %vm1154_vm1, %v1143_v10, %v1145_v7  ;;  %v1205_v7 = vsel %vm1195_vm2, %v10127_v41, %v10128_v30  ;;  %vm4978_vm1 = vcmask 72704  }
 0x1b9   : > { %v1682_v15 = vsel %vm1375_vm11, %v1681_v50, %v1680_v24  ;;  %v1344_v26 = vunpack.c.l.b16 %v1161_v55  ;;  %v1190_v12 = vpop.permute.xlu1 %1189  ;;  %v11765_v52 = vunpack.c.l.b16 %v1205_v7 }
 0x1ba   : > { %v1684_v51 = vsel %vm1378_vm12, %v1683_v58, %v1682_v15  ;;  %v1204_v37 = vsel %vm1195_vm2, %v1190_v12, %v10127_v41  ;;  %v1675_v58 = vrot.slane %v11708_v32, 1 }
 0x1bb   : > { %v1667_v42 = vrot.slane %v1344_v26, 5  ;;  %v1176_v36 = vpop.permute.xlu0 %1175  ;;  %v1686_v46 = vsel %vm1381_vm13, %v1685_v22, %v1684_v51  ;;  %v11772_v38 = vunpack.c.l.b16 %v1204_v37  ;;  %v1749_v28 = vrot.slane %v11765_v52, 7 }
 0x1bc   : > { %v1688_v35 = vsel %vm1384_vm14, %v1687_v48, %v1686_v46  ;;  %v1700_v40 = vsel %vm16821_vm15, %v1675_v58, %v1699_v23  ;;  %v1751_v11 = vrot.slane %v11765_v52, 6  ;;  %v1199_v57 = vsel %vm1195_vm2, %v11726_v39, %v1176_v36 }
 0x1bd   : > { %v1668_v25 = vsel %vm1375_vm11, %v1667_v42, %v1666_v61  ;;  %v1690_v63 = vsel %vm16821_vm15, %v1689_v17, %v1688_v35  ;;  %v1170_v0 = vpop.permute.xlu1 %1169  ;;  %v1739_v44 = vrot.slane %v11772_v38, 7  ;;  %v1750_v32 = vsel %vm1369_vm9, %v1749_v28, %v11765_v52 }
 0x1be   : > { %v1670_v34 = vsel %vm1378_vm12, %v1669_v60, %v1668_v25  ;;  %v1820_v16 = vpack.c.b16 %v1710_v62, %v1690_v63  ;;  %v1741_v27 = vrot.slane %v11772_v38, 6  ;;  %v1752_v53 = vsel %vm1372_vm10, %v1751_v11, %v1750_v32 }
 0x1bf   : > { %v1172_v54 = vpop.permute.xlu0 %1171  ;;  %v1672_v29 = vsel %vm1381_vm13, %v1671_v9, %v1670_v34  ;;  %v1740_v47 = vsel %vm1369_vm9, %v1739_v44, %v11772_v38  ;;  %v1351_v48 = vunpack.c.l.b16 %v1199_v57  ;;  %v1753_v45 = vrot.slane %v11765_v52, 5 }
 0x1c0   : > { %1859 = vmatprep.subr.bf16.mxu0 %v1820_v16  ;;  %v1674_v14 = vsel %vm1384_vm14, %v1673_v49, %v1672_v29  ;;  %v1742_v10 = vsel %vm1372_vm10, %v1741_v27, %v1740_v47  ;;  %v1731_v55 = vrot.slane %v11765_v52, 4  ;;  %v1743_v9 = vrot.slane %v11772_v38, 5 }
 0x1c1   : > { %v1676_v33 = vsel %vm16821_vm15, %v1675_v58, %v1674_v14  ;;  %v1186_v19 = vpop.permute.xlu1 %1185  ;;  %v1754_v41 = vsel %vm1375_vm11, %v1753_v45, %v1752_v53  ;;  %v1725_v1 = vrot.slane %v1351_v48, 7  ;;  %v1198_v15 = vsel %vm1195_vm2, %v1172_v54, %v11726_v39 }
 0x1c2   : > { %v1819_v31 = vpack.c.b16 %v1700_v40, %v1676_v33  ;;  %v1733_v51 = vrot.slane %v11765_v52, 3  ;;  %v1755_v56 = vsel %vm1378_vm12, %v1731_v55, %v1754_v41  ;;  %v1744_v49 = vsel %vm1375_vm11, %v1743_v9, %v1742_v10 }
 0x1c3   : > { %v1182_v22 = vpop.permute.xlu0 %1181  ;;  %v1350_v42 = vunpack.c.l.b16 %v1198_v15  ;;  %v1717_v39 = vrot.slane %v11772_v38, 4  ;;  %v1735_v46 = vrot.slane %v11765_v52, 2  ;;  %v1719_v33 = vrot.slane %v11772_v38, 3 }
 0x1c4   : > { %1860 = vmatpush1.bf16.msra.mxu0 %v1819_v31  ;;  %v1201_v43 = vsel %vm1195_vm2, %v11745_v5, %v1182_v22  ;;  %v1756_v61 = vsel %vm1381_vm13, %v1733_v51, %v1755_v56  ;;  %v1737_v31 = vrot.slane %v11765_v52, 1  ;;  %v1723_v10 = vrot.slane %v11772_v38, 1 }
 0x1c5   : > { %v1166_v60 = vpop.permute.xlu1 %1165  ;;  %v1353_v18 = vunpack.c.l.b16 %v1201_v43  ;;  %v1745_v34 = vsel %vm1378_vm12, %v1717_v39, %v1744_v49  ;;  %v1711_v29 = vrot.slane %v1350_v42, 7  ;;  %v1757_v28 = vsel %vm1384_vm14, %v1735_v46, %v1756_v61 }
 0x1c6   : > { %v1758_v47 = vsel %vm16821_vm15, %v1737_v31, %v1757_v28 }
 0x1c7   : > { %v1168_v13 = vpop.permute.xlu0 %1167  ;;  %v1727_v36 = vrot.slane %v1353_v18, 6 }
 0x1c8   : > { %v1197_v59 = vsel %vm1195_vm2, %v1168_v13, %v1170_v0 }
 0x1c9   : > { %v11791_v50 = vpop.permute.xlu1 %1229  ;;  %v1349_v30 = vunpack.c.l.b16 %v1197_v59  ;;  %v1721_v59 = vrot.slane %v11772_v38, 2 }
 0x1cb   : > { %v1178_v20 = vpop.permute.xlu0 %1177  ;;  %v1726_v6 = vsel %vm1369_vm9, %v1725_v1, %v1349_v30 }
 0x1cc   : > { %v1200_v24 = vsel %vm1195_vm2, %v1178_v20, %v11745_v5  ;;  %v1196_v5 = vsel %vm1195_vm2, %v1166_v60, %v1168_v13  ;;  %v1728_v25 = vsel %vm1372_vm10, %v1727_v36, %v1726_v6 }
 0x1cd   : > { %v10131_v17 = vpop.permute.xlu1 %10130  ;;  %v1352_v8 = vunpack.c.l.b16 %v1200_v24  ;;  %v1348_v35 = vunpack.c.l.b16 %v1196_v5 }
 0x1ce   : > { %v10133_v16 = vunpack.i.h.bf16 %v10131_v17  ;;  %v10132_v54 = vunpack.i.l.bf16 %v10131_v17 }
 0x1cf   : > { %v1188_v26 = vpop.permute.xlu0 %1187  ;;  %v1713_v37 = vrot.slane %v1352_v8, 6  ;;  %v1712_v22 = vsel %vm1369_vm9, %v1711_v29, %v1348_v35 }
 0x1d0   : > { %v1203_v7 = vsel %vm1195_vm2, %v1186_v19, %v1188_v26  ;;  %v1261_v60 = vsel %vm1251_vm3, %v10132_v54, %v10133_v16 }
 0x1d1   : > { %v1355_v12 = vunpack.c.l.b16 %v1203_v7  ;;  %v1236_v23 = vpop.permute.xlu1 %1235  ;;  %v1714_v13 = vsel %vm1372_vm10, %v1713_v37, %v1712_v22  ;;  %v11830_v20 = vunpack.c.l.b16 %v1261_v60 }
 0x1d3   : > { %v1729_v63 = vrot.slane %v1355_v12, 5  ;;  %v1184_v62 = vpop.permute.xlu0 %1183  ;;  %v1799_v56 = vrot.slane %v11830_v20, 6  ;;  %v1801_v61 = vrot.slane %v11830_v20, 5 }
 0x1d4   : > { %v1202_v0 = vsel %vm1195_vm2, %v1184_v62, %v1186_v19  ;;  %v1746_v19 = vsel %vm1381_vm13, %v1719_v33, %v1745_v34  ;;  %vm4997_vm2 = vcmask 596992  }
 0x1d5   : > { %v1730_v58 = vsel %vm1375_vm11, %v1729_v63, %v1728_v25  ;;  %v1354_v14 = vunpack.c.l.b16 %v1202_v0  ;;  %v1246_v32 = vpop.permute.xlu1 %1245  ;;  %v1747_v45 = vsel %vm1384_vm14, %v1721_v59, %v1746_v19 }
 0x1d6   : > { %v1732_v40 = vsel %vm1378_vm12, %v1731_v55, %v1730_v58  ;;  %v1260_v18 = vsel %vm1251_vm3, %v1246_v32, %v10132_v54  ;;  %v1748_v1 = vsel %vm16821_vm15, %v1723_v10, %v1747_v45  ;;  %v1779_v54 = vrot.slane %v11830_v20, 4 }
 0x1d7   : > { %v1715_v11 = vrot.slane %v1354_v14, 5  ;;  %v1232_v44 = vpop.permute.xlu0 %1231  ;;  %v1734_v57 = vsel %vm1381_vm13, %v1733_v51, %v1732_v40  ;;  %v11838_v26 = vunpack.c.l.b16 %v1260_v18  ;;  %v1797_v51 = vrot.slane %v11830_v20, 7 }
 0x1d8   : > { %v1736_v27 = vsel %vm1384_vm14, %v1735_v46, %v1734_v57  ;;  %v1255_v8 = vsel %vm1251_vm3, %v11791_v50, %v1232_v44  ;;  %v1781_v14 = vrot.slane %v11830_v20, 3  ;;  %v1785_v18 = vrot.slane %v11830_v20, 1 }
 0x1d9   : > { %v1716_v52 = vsel %vm1375_vm11, %v1715_v11, %v1714_v13  ;;  %v1738_v53 = vsel %vm16821_vm15, %v1737_v31, %v1736_v27  ;;  %v1226_v55 = vpop.permute.xlu1 %1225  ;;  %v1798_v6 = vsel %vm1369_vm9, %v1797_v51, %v11830_v20  ;;  %v1787_v5 = vrot.slane %v11838_v26, 7 }
 0x1da   : > { %v1718_v48 = vsel %vm1378_vm12, %v1717_v39, %v1716_v52  ;;  %v1822_v43 = vpack.c.b16 %v1758_v47, %v1738_v53  ;;  %v1800_v42 = vsel %vm1372_vm10, %v1799_v56, %v1798_v6  ;;  %v1789_v36 = vrot.slane %v11838_v26, 6 }
 0x1db   : > { %v1228_v30 = vpop.permute.xlu0 %1227  ;;  %v1720_v41 = vsel %vm1381_vm13, %v1719_v33, %v1718_v48  ;;  %v1361_v12 = vunpack.c.l.b16 %v1255_v8  ;;  %v1788_v35 = vsel %vm1369_vm9, %v1787_v5, %v11838_v26  ;;  %v1802_v34 = vsel %vm1375_vm11, %v1801_v61, %v1800_v42 }
 0x1dc   : > { %1861 = vmatprep.subr.bf16.mxu0 %v1822_v43  ;;  %v1722_v24 = vsel %vm1384_vm14, %v1721_v59, %v1720_v41  ;;  %v1254_v37 = vsel %vm1251_vm3, %v1228_v30, %v11791_v50  ;;  %v1790_v0 = vsel %vm1372_vm10, %v1789_v36, %v1788_v35  ;;  %v1791_v33 = vrot.slane %v11838_v26, 5 }
 0x1dd   : > { %v1724_v9 = vsel %vm16821_vm15, %v1723_v10, %v1722_v24  ;;  %v1242_v38 = vpop.permute.xlu1 %1241  ;;  %v1773_v29 = vrot.slane %v1361_v12, 7  ;;  %v1803_v28 = vsel %vm1378_vm12, %v1779_v54, %v1802_v34  ;;  %v1360_v22 = vunpack.c.l.b16 %v1254_v37 }
 0x1de   : > { %v1821_v15 = vpack.c.b16 %v1748_v1, %v1724_v9  ;;  %v1792_v44 = vsel %vm1375_vm11, %v1791_v33, %v1790_v0  ;;  %v1765_v57 = vrot.slane %v11838_v26, 4  ;;  %v1783_v27 = vrot.slane %v11830_v20, 2 }
 0x1df   : > { %v1238_v17 = vpop.permute.xlu0 %1237  ;;  %v1804_v59 = vsel %vm1381_vm13, %v1781_v14, %v1803_v28  ;;  %v1759_v43 = vrot.slane %v1360_v22, 7  ;;  %v1767_v41 = vrot.slane %v11838_v26, 3  ;;  %v1769_v56 = vrot.slane %v11838_v26, 2 }
 0x1e0   : > { %1862 = vmatpush1.bf16.msra.mxu0 %v1821_v15  ;;  %v1257_v39 = vsel %vm1251_vm3, %v1236_v23, %v1238_v17  ;;  %v1793_v48 = vsel %vm1378_vm12, %v1765_v57, %v1792_v44  ;;  %v1805_v24 = vsel %vm1384_vm14, %v1783_v27, %v1804_v59  ;;  %v1771_v42 = vrot.slane %v11838_v26, 1 }
 0x1e1   : > { %v1222_v63 = vpop.permute.xlu1 %1221  ;;  %v1363_v16 = vunpack.c.l.b16 %v1257_v39  ;;  %v1794_v15 = vsel %vm1381_vm13, %v1767_v41, %v1793_v48  ;;  %v1806_v20 = vsel %vm16821_vm15, %v1785_v18, %v1805_v24  ;;  %v9975_v61 = vcombine.low %v11583_v21, %v11583_v21 }
 0x1e2   : > { %v1795_v8 = vsel %vm1384_vm14, %v1769_v56, %v1794_v15  ;;  %v16894_v35 = vmov 0   ;;  %v10487_v33 = vmov 1983009808   ;;  %v10488_v22 = vmov 1934713408  }
 0x1e3   : > { %v1224_v49 = vpop.permute.xlu0 %1223  ;;  %v1775_v32 = vrot.slane %v1363_v16, 6  ;;  %v1796_v39 = vsel %vm16821_vm15, %v1771_v42, %v1795_v8 }
 0x1e4   : > { %v1253_v7 = vsel %vm1251_vm3, %v1224_v49, %v1226_v55  ;;  %v1252_v40 = vsel %vm1251_vm3, %v1222_v63, %v1224_v49 }
 0x1e5   : > { %v1359_v25 = vunpack.c.l.b16 %v1253_v7  ;;  %v1358_v19 = vunpack.c.l.b16 %v1252_v40  ;;  %v1927_v40 = vunpack.c.l.s4 %v10487_v33 }
 0x1e7   : > { %v1234_v46 = vpop.permute.xlu0 %1233  ;;  %v1774_v50 = vsel %vm1369_vm9, %v1773_v29, %v1359_v25  ;;  %v1760_v55 = vsel %vm1369_vm9, %v1759_v43, %v1358_v19  ;;  %v1928_v28 = vunpack.c.0.s8 %v1927_v40 }
 0x1e8   : > { %v1256_v62 = vsel %vm1251_vm3, %v1234_v46, %v1236_v23  ;;  %v1776_v53 = vsel %vm1372_vm10, %v1775_v32, %v1774_v50  ;;  %v1991_v50 = vunpack.c.l.s4 %v10488_v22 }
 0x1e9   : > { %v1362_v31 = vunpack.c.l.b16 %v1256_v62 }
 0x1eb   : > { %v1244_v58 = vpop.permute.xlu0 %1243  ;;  %v1761_v52 = vrot.slane %v1362_v31, 6 }
 0x1ec   : > { %v1259_v23 = vsel %vm1251_vm3, %v1242_v38, %v1244_v58 }
 0x1ed   : > { %v1365_v11 = vunpack.c.l.b16 %v1259_v23  ;;  %v1762_v17 = vsel %vm1372_vm10, %v1761_v52, %v1760_v55 }
 0x1ef   : > { %v1777_v13 = vrot.slane %v1365_v11, 5  ;;  %v1240_v60 = vpop.permute.xlu0 %1239 }
 0x1f0   : > { %v1258_v47 = vsel %vm1251_vm3, %v1240_v60, %v1242_v38 }
 0x1f1   : > { %v1778_v45 = vsel %vm1375_vm11, %v1777_v13, %v1776_v53  ;;  %v1364_v30 = vunpack.c.l.b16 %v1258_v47  ;;  %v1992_v13 = vunpack.c.0.s8 %v1991_v50 }
 0x1f2   : > { %v1780_v10 = vsel %vm1378_vm12, %v1779_v54, %v1778_v45 }
 0x1f3   : > { %v1763_v9 = vrot.slane %v1364_v30, 5  ;;  %v1782_v1 = vsel %vm1381_vm13, %v1781_v14, %v1780_v10  ;;  %v11907_v48 = vsub.s32 %v1992_v13, %v10650_v2 }
 0x1f4   : > { %v1784_v51 = vsel %vm1384_vm14, %v1783_v27, %v1782_v1 }
 0x1f5   : > { %v1764_v38 = vsel %vm1375_vm11, %v1763_v9, %v1762_v17  ;;  %v1786_v49 = vsel %vm16821_vm15, %v1785_v18, %v1784_v51  ;;  %16896 = vst [vmem:[#allocation14_spill] sm:$0xff] %v11907_v48 }
 0x1f6   : > { %v1766_v6 = vsel %vm1378_vm12, %v1765_v57, %v1764_v38  ;;  %v1824_v5 = vpack.c.b16 %v1806_v20, %v1786_v49  ;;  %v11902_v57 = vsub.s32 %v1928_v28, %v10650_v2 }
 0x1f7   : > { %v1768_v7 = vsel %vm1381_vm13, %v1767_v41, %v1766_v6 }
 0x1f8   : > { %1863 = vmatprep.subr.bf16.mxu0 %v1824_v5  ;;  %v1770_v36 = vsel %vm1384_vm14, %v1769_v56, %v1768_v7  ;;  %16895 = vst [vmem:[#allocation13_spill] sm:$0xff] %v11902_v57 }
 0x1f9   : > { %v1772_v12 = vsel %vm16821_vm15, %v1771_v42, %v1770_v36 }
 0x1fa   : > { %v1823_v46 = vpack.c.b16 %v1796_v39, %v1772_v12 }
 0x1fc   : > { %1864 = vmatpush1.bf16.msra.mxu0 %v1823_v46 }
 0x1fd   : > { %9291 = vmatprep.subr.bf16.mxu0 %v16894_v35 }
 0x1ff   : > { %1880 = vmatmul.mubr.bf16.vlgmr.msra.gmra.mrb[0].mxu0 %v9975_v61 }
 0x200   : > { %v1891_v25 = vpop.permute.xlu1 %1890 }
 0x201   : > { %v1898_v62 = vpop.permute.xlu0 %1897 }
 0x2d2   : > { %v1881_v63 = vpop.f32.mrb[0].mxu0 }
 0x2d3   : > { %v1893_v34 = vmul.f32 %v1891_v25, %v1881_v63  ;;  %v1883_v26 = vpop.f32.mrb[1].mxu0 }
 0x2d4   : > { %v1894_v37 = vmul.f32 %v1891_v25, %v1883_v26  ;;  %v1885_v16 = vpop.f32.mrb[2].mxu0 }
 0x2d5   : > { %v1900_v54 = vadd.f32 %v1898_v62, %v1893_v34  ;;  %v1886_v0 = vpop.f32.mrb[3].mxu0 }
 0x2d6   : > { %v1901_v29 = vadd.f32 %v1898_v62, %v1894_v37 }
 0x2d7   : > { %v1902_v58 = vmax.f32 %v1900_v54, 0.0 }
 0x2d8   : > { %v1903_v21 = vmax.f32 %v1901_v29, 0.0 }
 0x2d9   : > { %1911 = vrot.lane.b32.xlu0 %v1902_v58, %s16752_s28  ;;  %1905 = vrot.lane.b32.xlu1 %v1902_v58, %s16750_s29 }
 0x2dd   : > { %1908 = vrot.lane.b32.xlu1 %v1902_v58, %s10486_s18  ;;  %1918 = vrot.lane.b32.xlu0 %v1903_v21, %s10486_s18  ;;  %s16756_s18 = smov 120  }
 0x2e1   : > { %1915 = vrot.lane.b32.xlu1 %v1903_v21, %s16750_s29  ;;  %s16803_s29 = smov 122  }
 0x2e5   : > { %1921 = vrot.lane.b32.xlu1 %v1903_v21, %s16752_s28  ;;  %s16758_s28 = smov 116  }
 0x34b   : > { %v1906_v14 = vpop.permute.xlu1 %1905  ;;  %v1912_v31 = vpop.permute.xlu0 %1911 }
 0x34c   : > { %v1940_v19 = vcombine.low %v1906_v14, %v1912_v31  ;;  %v1941_v24 = vcombine.high %v1906_v14, %v1912_v31 }
 0x34e   : > { %v1948_v52 = vrot.slane %v1940_v19, %v11902_v57  ;;  %v1955_v20 = vrot.slane %v1941_v24, %v11902_v57 }
 0x34f   : > { %v1909_v23 = vpop.permute.xlu1 %1908  ;;  %v1919_v44 = vpop.permute.xlu0 %1918 }
 0x350   : > { %v1924_v11 = vcombine.low %v1902_v58, %v1909_v23  ;;  %v1956_v27 = vcombine.low %v1903_v21, %v1919_v44  ;;  %v1925_v43 = vcombine.high %v1902_v58, %v1909_v23  ;;  %v1957_v45 = vcombine.high %v1903_v21, %v1919_v44 }
 0x352   : > { %v1932_v60 = vrot.slane %v1924_v11, %v11902_v57  ;;  %v1964_v10 = vrot.slane %v1956_v27, %v11902_v57  ;;  %v1939_v15 = vrot.slane %v1925_v43, %v11902_v57  ;;  %v1971_v17 = vrot.slane %v1957_v45, %v11902_v57 }
 0x353   : > { %v1916_v32 = vpop.permute.xlu1 %1915 }
 0x354   : > { %v1988_v30 = vcombine.low %v1932_v60, %v1948_v52  ;;  %v1989_v41 = vcombine.high %v1932_v60, %v1948_v52  ;;  %v2004_v7 = vcombine.low %v1939_v15, %v1955_v20  ;;  %v2005_v46 = vcombine.high %v1939_v15, %v1955_v20 }
 0x356   : > { %v2003_v51 = vrot.slane %v1989_v41, %v11907_v48  ;;  %v1996_v38 = vrot.slane %v1988_v30, %v11907_v48  ;;  %v2012_v61 = vrot.slane %v2004_v7, %v11907_v48  ;;  %v2019_v34 = vrot.slane %v2005_v46, %v11907_v48 }
 0x357   : > { %v1922_v59 = vpop.permute.xlu1 %1921 }
 0x358   : > { %v1972_v53 = vcombine.low %v1916_v32, %v1922_v59  ;;  %v1973_v47 = vcombine.high %v1916_v32, %v1922_v59 }
 0x35a   : > { %v1980_v18 = vrot.slane %v1972_v53, %v11902_v57  ;;  %v1987_v55 = vrot.slane %v1973_v47, %v11902_v57 }
 0x35c   : > { %v2020_v9 = vcombine.low %v1964_v10, %v1980_v18  ;;  %v2021_v1 = vcombine.high %v1964_v10, %v1980_v18  ;;  %v2036_v6 = vcombine.low %v1971_v17, %v1987_v55  ;;  %v2037_v42 = vcombine.high %v1971_v17, %v1987_v55 }
 0x35e   : > { %v2035_v56 = vrot.slane %v2021_v1, %v11907_v48  ;;  %v2028_v49 = vrot.slane %v2020_v9, %v11907_v48  ;;  %v2044_v39 = vrot.slane %v2036_v6, %v11907_v48  ;;  %v2051_v62 = vrot.slane %v2037_v42, %v11907_v48 }
 0x360   : > { %v2054_v5 = vcombine.low %v2003_v51, %v2035_v56  ;;  %v2053_v8 = vcombine.high %v1996_v38, %v2028_v49  ;;  %v2055_v36 = vcombine.high %v2003_v51, %v2035_v56  ;;  %v2052_v12 = vcombine.low %v1996_v38, %v2028_v49 }
 0x361   : > { %v2057_v25 = vcombine.high %v2012_v61, %v2044_v39  ;;  %v2056_v63 = vcombine.low %v2012_v61, %v2044_v39  ;;  %v11929_v26 = vcombine.high %v2019_v34, %v2051_v62  ;;  %v11931_v37 = vcombine.low %v2019_v34, %v2051_v62 }
 0x362   : > { %2072 = vrot.lane.b32.xlu1 %v2054_v5, %s16897_s26  ;;  %2070 = vrot.lane.b32.xlu0 %v2053_v8, %s16897_s26 }
 0x366   : > { %2074 = vrot.lane.b32.xlu1 %v2055_v36, %s16897_s26  ;;  %2068 = vrot.lane.b32.xlu0 %v2052_v12, %s16897_s26 }
 0x36a   : > { %2078 = vrot.lane.b32.xlu1 %v2057_v25, %s16897_s26  ;;  %2076 = vrot.lane.b32.xlu0 %v2056_v63, %s16897_s26 }
 0x36e   : > { %2082 = vrot.lane.b32.xlu1 %v11929_v26, %s16897_s26  ;;  %2080 = vrot.lane.b32.xlu0 %v11931_v37, %s16897_s26 }
 0x3d4   : > { %v2071_v16 = vpop.permute.xlu0 %2070  ;;  %v2073_v0 = vpop.permute.xlu1 %2072 }
 0x3d5   : > { %v11937_v54 = vmax.f32 %v2053_v8, %v2071_v16  ;;  %v11951_v29 = vmax.f32 %v2054_v5, %v2073_v0 }
 0x3d7   : > { %2134 = vrot.lane.b32.xlu1 %v11937_v54, %s16754_s19  ;;  %2110 = vrot.lane.b32.xlu0 %v11937_v54, %s16898_s20  ;;  %s10494_s19 = smov 114  }
 0x3d8   : > { %v2075_v58 = vpop.permute.xlu1 %2074  ;;  %v2069_v21 = vpop.permute.xlu0 %2068 }
 0x3d9   : > { %v11969_v14 = vmax.f32 %v2055_v36, %v2075_v58  ;;  %v11971_v33 = vmax.f32 %v2052_v12, %v2069_v21 }
 0x3db   : > { %2182 = vrot.lane.b32.xlu1 %v11937_v54, %s16756_s18  ;;  %2158 = vrot.lane.b32.xlu0 %v11937_v54, %s16803_s29  ;;  %s16899_s18 = smov 124  }
 0x3dc   : > { %v2077_v40 = vpop.permute.xlu0 %2076  ;;  %v2079_v23 = vpop.permute.xlu1 %2078 }
 0x3dd   : > { %v12001_v31 = vmax.f32 %v2056_v63, %v2077_v40  ;;  %v12015_v28 = vmax.f32 %v2057_v25, %v2079_v23 }
 0x3df   : > { %2230 = vrot.lane.b32.xlu1 %v11937_v54, %s16758_s28  ;;  %2206 = vrot.lane.b32.xlu0 %v11937_v54, %s16805_s1  ;;  %s16900_s28 = smov 120   ;;  %16902 = vst [vmem:[#allocation15_spill] sm:$0xff] %v12015_v28 }
 0x3e0   : > { %v2081_v22 = vpop.permute.xlu0 %2080  ;;  %v2083_v11 = vpop.permute.xlu1 %2082 }
 0x3e1   : > { %v12034_v50 = vmax.f32 %v11931_v37, %v2081_v22  ;;  %v12049_v44 = vmax.f32 %v11929_v26, %v2083_v11 }
 0x3e3   : > { %2112 = vrot.lane.b32.xlu1 %v11951_v29, %s16898_s20  ;;  %2254 = vrot.lane.b32.xlu0 %v11937_v54, %s10494_s19  ;;  %16903 = vst [vmem:[#allocation16_spill] sm:$0xff] %v12034_v50  ;;  %16904 = vst [vmem:[#allocation17_spill] sm:$0xff] %v12049_v44 }
 0x3e7   : > { %2160 = vrot.lane.b32.xlu1 %v11951_v29, %s16803_s29  ;;  %2136 = vrot.lane.b32.xlu0 %v11951_v29, %s16899_s18 }
 0x3eb   : > { %2208 = vrot.lane.b32.xlu1 %v11951_v29, %s16805_s1  ;;  %2184 = vrot.lane.b32.xlu0 %v11951_v29, %s16900_s28 }
 0x3ef   : > { %2256 = vrot.lane.b32.xlu1 %v11951_v29, %s10494_s19  ;;  %2232 = vrot.lane.b32.xlu0 %v11951_v29, %s16901_s2 }
 0x3f3   : > { %2114 = vrot.lane.b32.xlu1 %v11969_v14, %s16898_s20  ;;  %2108 = vrot.lane.b32.xlu0 %v11971_v33, %s16898_s20 }
 0x3f7   : > { %2138 = vrot.lane.b32.xlu1 %v11969_v14, %s16899_s18  ;;  %2132 = vrot.lane.b32.xlu0 %v11971_v33, %s16899_s18 }
 0x3fb   : > { %2162 = vrot.lane.b32.xlu1 %v11969_v14, %s16803_s29  ;;  %2156 = vrot.lane.b32.xlu0 %v11971_v33, %s16803_s29 }
 0x3ff   : > { %2186 = vrot.lane.b32.xlu1 %v11969_v14, %s16900_s28  ;;  %2180 = vrot.lane.b32.xlu0 %v11971_v33, %s16900_s28 }
 0x403   : > { %2210 = vrot.lane.b32.xlu1 %v11969_v14, %s16805_s1  ;;  %2204 = vrot.lane.b32.xlu0 %v11971_v33, %s16805_s1 }
 0x407   : > { %2234 = vrot.lane.b32.xlu1 %v11969_v14, %s16901_s2  ;;  %2228 = vrot.lane.b32.xlu0 %v11971_v33, %s16901_s2 }
 0x40b   : > { %2258 = vrot.lane.b32.xlu1 %v11969_v14, %s10494_s19  ;;  %2252 = vrot.lane.b32.xlu0 %v11971_v33, %s10494_s19 }
 0x40f   : > { %2140 = vrot.lane.b32.xlu1 %v12001_v31, %s16899_s18  ;;  %2116 = vrot.lane.b32.xlu0 %v12001_v31, %s16898_s20 }
 0x413   : > { %2188 = vrot.lane.b32.xlu1 %v12001_v31, %s16900_s28  ;;  %2164 = vrot.lane.b32.xlu0 %v12001_v31, %s16803_s29 }
 0x417   : > { %2236 = vrot.lane.b32.xlu1 %v12001_v31, %s16901_s2  ;;  %2212 = vrot.lane.b32.xlu0 %v12001_v31, %s16805_s1 }
 0x41b   : > { %2118 = vrot.lane.b32.xlu1 %v12015_v28, %s16898_s20  ;;  %2260 = vrot.lane.b32.xlu0 %v12001_v31, %s10494_s19 }
 0x41f   : > { %2166 = vrot.lane.b32.xlu1 %v12015_v28, %s16803_s29  ;;  %2142 = vrot.lane.b32.xlu0 %v12015_v28, %s16899_s18 }
 0x423   : > { %2214 = vrot.lane.b32.xlu1 %v12015_v28, %s16805_s1  ;;  %2190 = vrot.lane.b32.xlu0 %v12015_v28, %s16900_s28 }
 0x427   : > { %2262 = vrot.lane.b32.xlu1 %v12015_v28, %s10494_s19  ;;  %2238 = vrot.lane.b32.xlu0 %v12015_v28, %s16901_s2 }
 0x42b   : > { %2144 = vrot.lane.b32.xlu1 %v12034_v50, %s16899_s18  ;;  %2120 = vrot.lane.b32.xlu0 %v12034_v50, %s16898_s20 }
 0x42f   : > { %2192 = vrot.lane.b32.xlu1 %v12034_v50, %s16900_s28  ;;  %2168 = vrot.lane.b32.xlu0 %v12034_v50, %s16803_s29 }
 0x433   : > { %2240 = vrot.lane.b32.xlu1 %v12034_v50, %s16901_s2  ;;  %2216 = vrot.lane.b32.xlu0 %v12034_v50, %s16805_s1 }
 0x437   : > { %2122 = vrot.lane.b32.xlu1 %v12049_v44, %s16898_s20  ;;  %2264 = vrot.lane.b32.xlu0 %v12034_v50, %s10494_s19 }
 0x43b   : > { %2170 = vrot.lane.b32.xlu1 %v12049_v44, %s16803_s29  ;;  %2146 = vrot.lane.b32.xlu0 %v12049_v44, %s16899_s18  ;;  %s16980_s29 = smov 16  }
 0x43f   : > { %2218 = vrot.lane.b32.xlu1 %v12049_v44, %s16805_s1  ;;  %2194 = vrot.lane.b32.xlu0 %v12049_v44, %s16900_s28  ;;  %s16809_s1 = smov 9  }
 0x443   : > { %2266 = vrot.lane.b32.xlu1 %v12049_v44, %s10494_s19  ;;  %2242 = vrot.lane.b32.xlu0 %v12049_v44, %s16901_s2  ;;  %s16907_s2 = smov 127   ;;  %s16807_s19 = smov 8  }
 0x449   : > { %v12067_v32 = vpop.permute.xlu1 %2134  ;;  %v12069_v19 = vpop.permute.xlu0 %2110 }
 0x44a   : > { %v2412_v53 = vcombine.low %v11937_v54, %v12067_v32 }
 0x44c   : > { %v2420_v41 = vrot.slane %v2412_v53, %v11902_v57 }
 0x44d   : > { %v12071_v13 = vpop.permute.xlu1 %2182  ;;  %v12073_v60 = vpop.permute.xlu0 %2158 }
 0x44e   : > { %v2428_v27 = vcombine.low %v12069_v19, %v12073_v60 }
 0x450   : > { %v2436_v47 = vrot.slane %v2428_v27, %v11902_v57 }
 0x451   : > { %v12077_v59 = vpop.permute.xlu1 %2230  ;;  %v12079_v52 = vpop.permute.xlu0 %2206 }
 0x452   : > { %v2444_v43 = vcombine.low %v12071_v13, %v12077_v59  ;;  %v2476_v18 = vcombine.low %v2420_v41, %v2436_v47  ;;  %v2477_v51 = vcombine.high %v2420_v41, %v2436_v47 }
 0x454   : > { %v2452_v24 = vrot.slane %v2444_v43, %v11902_v57  ;;  %v2484_v56 = vrot.slane %v2476_v18, %v11907_v48  ;;  %v12121_v36 = vrot.slane %v2477_v51, %v11907_v48 }
 0x455   : > { %v12086_v45 = vpop.permute.xlu1 %2112  ;;  %v12088_v30 = vpop.permute.xlu0 %2254 }
 0x456   : > { %v2460_v10 = vcombine.low %v12079_v52, %v12088_v30  ;;  %v2461_v4 = vcombine.high %v12079_v52, %v12088_v30 }
 0x458   : > { %v2468_v55 = vrot.slane %v2460_v10, %v11902_v57 }
 0x459   : > { %v12095_v9 = vpop.permute.xlu1 %2160  ;;  %v12097_v1 = vpop.permute.xlu0 %2136 }
 0x45a   : > { %v2508_v15 = vcombine.low %v2452_v24, %v2468_v55  ;;  %v2509_v17 = vcombine.high %v2452_v24, %v2468_v55  ;;  %v2564_v49 = vcombine.low %v12086_v45, %v12095_v9  ;;  %v2548_v20 = vcombine.low %v11951_v29, %v12097_v1 }
 0x45c   : > { %v2516_v38 = vrot.slane %v2508_v15, %v11907_v48  ;;  %v12114_v42 = vrot.slane %v2509_v17, %v11907_v48  ;;  %v12124_v12 = vrot.slane %v2564_v49, %v11902_v57  ;;  %v12127_v39 = vrot.slane %v2548_v20, %v11902_v57 }
 0x45d   : > { %v12105_v6 = vpop.permute.xlu1 %2208  ;;  %v12107_v5 = vpop.permute.xlu0 %2184 }
 0x45e   : > { %v12109_v8 = vcombine.high %v2484_v56, %v2516_v38  ;;  %v12111_v7 = vcombine.low %v2484_v56, %v2516_v38  ;;  %v12139_v62 = vcombine.low %v12121_v36, %v12114_v42  ;;  %v2612_v37 = vcombine.low %v12127_v39, %v12124_v12 }
 0x460   : > { %16905 = vst [vmem:[#allocation18_spill] sm:$0xff] %v12109_v8  ;;  %16906 = vst [vmem:[#allocation19_spill] sm:$0xff] %v12111_v7  ;;  %3446 = vrot.lane.b32.xlu1 %v12109_v8, %s16907_s2  ;;  %3444 = vrot.lane.b32.xlu0 %v12111_v7, %s16907_s2  ;;  %v2620_v22 = vrot.slane %v2612_v37, %v11907_v48  ;;  %v2613_v8 = vcombine.high %v12127_v39, %v12124_v12 }
 0x461   : > { %v12129_v46 = vpop.permute.xlu1 %2256  ;;  %v12131_v61 = vpop.permute.xlu0 %2232  ;;  %16908 = vst [vmem:[#allocation20_spill] sm:$0xff] %v12139_v62 }
 0x462   : > { %v2596_v25 = vcombine.low %v12105_v6, %v12129_v46  ;;  %v2580_v63 = vcombine.low %v12107_v5, %v12131_v61 }
 0x464   : > { %v2604_v34 = vrot.slane %v2596_v25, %v11902_v57  ;;  %v2588_v26 = vrot.slane %v2580_v63, %v11902_v57  ;;  %3448 = vrot.lane.b32.xlu0 %v12139_v62, %s16907_s2 }
 0x465   : > { %v12147_v16 = vpop.permute.xlu1 %2114  ;;  %v12149_v0 = vpop.permute.xlu0 %2108 }
 0x466   : > { %v2644_v58 = vcombine.low %v2588_v26, %v2604_v34  ;;  %v2645_v35 = vcombine.high %v2588_v26, %v2604_v34 }
 0x468   : > { %v2652_v21 = vrot.slane %v2644_v58, %v11907_v48 }
 0x469   : > { %v12152_v40 = vpop.permute.xlu1 %2138  ;;  %v12154_v23 = vpop.permute.xlu0 %2132 }
 0x46a   : > { %v12157_v11 = vcombine.high %v2620_v22, %v2652_v21  ;;  %v12159_v27 = vcombine.low %v2620_v22, %v2652_v21  ;;  %v2276_v17 = vcombine.low %v11971_v33, %v12154_v23 }
 0x46c   : > { %16909 = vst [vmem:[#allocation21_spill] sm:$0xff] %v12157_v11  ;;  %16910 = vst [vmem:[#allocation22_spill] sm:$0xff] %v12159_v27  ;;  %3462 = vrot.lane.b32.xlu0 %v12157_v11, %s16907_s2  ;;  %3460 = vrot.lane.b32.xlu1 %v12159_v27, %s16907_s2  ;;  %v12197_v25 = vrot.slane %v2276_v17, %v11902_v57  ;;  %v2429_v11 = vcombine.high %v12069_v19, %v12073_v60 }
 0x46d   : > { %v12165_v53 = vpop.permute.xlu1 %2162  ;;  %v12167_v47 = vpop.permute.xlu0 %2156  ;;  %v2413_v19 = vcombine.high %v11937_v54, %v12067_v32  ;;  %v12240_v60 = vrot.slane %v2645_v35, %v11907_v48  ;;  %v2627_v32 = vrot.slane %v2613_v8, %v11907_v48 }
 0x46e   : > { %v2292_v24 = vcombine.low %v12149_v0, %v12167_v47  ;;  %v2700_v58 = vcombine.low %v12147_v16, %v12165_v53 }
 0x470   : > { %v12186_v51 = vrot.slane %v2292_v24, %v11902_v57  ;;  %v12225_v62 = vrot.slane %v2700_v58, %v11902_v57 }
 0x471   : > { %v12169_v43 = vpop.permute.xlu1 %2186  ;;  %v12171_v41 = vpop.permute.xlu0 %2180 }
 0x472   : > { %v2340_v21 = vcombine.low %v12197_v25, %v12186_v51 }
 0x474   : > { %v2348_v26 = vrot.slane %v2340_v21, %v11907_v48  ;;  %v12248_v21 = vrot.slane %v2429_v11, %v11902_v57  ;;  %v12264_v11 = vrot.slane %v2413_v19, %v11902_v57 }
 0x475   : > { %v12173_v10 = vpop.permute.xlu1 %2210  ;;  %v12175_v18 = vpop.permute.xlu0 %2204 }
 0x479   : > { %v12179_v55 = vpop.permute.xlu1 %2234  ;;  %v12181_v15 = vpop.permute.xlu0 %2228 }
 0x47a   : > { %v2308_v56 = vcombine.low %v12171_v41, %v12181_v15  ;;  %v2716_v22 = vcombine.low %v12169_v43, %v12179_v55 }
 0x47c   : > { %v2316_v24 = vrot.slane %v2308_v56, %v11902_v57  ;;  %v2445_v56 = vcombine.high %v12071_v13, %v12077_v59  ;;  %v2724_v52 = vrot.slane %v2716_v22, %v11902_v57  ;;  %v12237_v13 = vrot.slane %v2461_v4, %v11902_v57 }
 0x47d   : > { %v12190_v38 = vpop.permute.xlu1 %2258  ;;  %v12192_v49 = vpop.permute.xlu0 %2252 }
 0x47e   : > { %v2324_v20 = vcombine.low %v12175_v18, %v12192_v49  ;;  %v2732_v63 = vcombine.low %v12173_v10, %v12190_v38 }
 0x480   : > { %v2332_v37 = vrot.slane %v2324_v20, %v11902_v57  ;;  %v2684_v20 = vcombine.low %v11969_v14, %v12152_v40  ;;  %v2740_v3 = vrot.slane %v2732_v63, %v11902_v57 }
 0x481   : > { %v12209_v2 = vpop.permute.xlu1 %2140  ;;  %v12211_v17 = vpop.permute.xlu0 %2116 }
 0x482   : > { %v2372_v27 = vcombine.low %v2316_v24, %v2332_v37  ;;  %v2692_v59 = vrot.slane %v2684_v20, %v11902_v57  ;;  %v2780_v12 = vcombine.low %v2724_v52, %v2740_v3  ;;  %v12269_v20 = vcombine.low %v2627_v32, %v12240_v60 }
 0x483   : > { %v2781_v7 = vcombine.high %v2724_v52, %v2740_v3 }
 0x484   : > { %v2380_v63 = vrot.slane %v2372_v27, %v11907_v48  ;;  %v12251_v27 = vrot.slane %v2445_v56, %v11902_v57  ;;  %v2748_v54 = vcombine.low %v2692_v59, %v12225_v62  ;;  %16914 = vst [vmem:[#allocation26_spill] sm:$0xff] %v12269_v20  ;;  %v12273_v56 = vcombine.high %v12121_v36, %v12114_v42 }
 0x485   : > { %v12228_v30 = vpop.permute.xlu1 %2188  ;;  %v12230_v34 = vpop.permute.xlu0 %2164 }
 0x486   : > { %16911 = vst [vmem:[#allocation23_spill] sm:$0xff] %v12228_v30  ;;  %v12243_v39 = vcombine.high %v2348_v26, %v2380_v63  ;;  %v12245_v58 = vcombine.low %v2348_v26, %v2380_v63  ;;  %v2524_v22 = vcombine.low %v12251_v27, %v12237_v13  ;;  %16915 = vst [vmem:[#allocation27_spill] sm:$0xff] %v12273_v56 }
 0x487   : > { %v2788_v26 = vrot.slane %v2780_v12, %v11907_v48  ;;  %v2492_v63 = vcombine.low %v12264_v11, %v12248_v21  ;;  %v2836_v8 = vcombine.low %v12211_v17, %v12230_v34  ;;  %v2756_v12 = vrot.slane %v2748_v54, %v11907_v48 }
 0x488   : > { %16912 = vst [vmem:[#allocation24_spill] sm:$0xff] %v12243_v39  ;;  %16913 = vst [vmem:[#allocation25_spill] sm:$0xff] %v12245_v58  ;;  %3430 = vrot.lane.b32.xlu0 %v12243_v39, %s16907_s2  ;;  %3428 = vrot.lane.b32.xlu1 %v12245_v58, %s16907_s2  ;;  %v2373_v58 = vcombine.high %v2316_v24, %v2332_v37  ;;  %v2341_v37 = vcombine.high %v12197_v25, %v12186_v51 }
 0x489   : > { %v12258_v4 = vpop.permute.xlu1 %2236  ;;  %v12260_v35 = vpop.permute.xlu0 %2212  ;;  %v12296_v39 = vrot.slane %v2524_v22, %v11907_v48  ;;  %v12302_v44 = vcombine.low %v2756_v12, %v2788_v26  ;;  %v2500_v54 = vrot.slane %v2492_v63, %v11907_v48  ;;  %v2749_v25 = vcombine.high %v2692_v59, %v12225_v62 }
 0x48a   : > { %v2852_v19 = vcombine.low %v12228_v30, %v12258_v4  ;;  %v2387_v51 = vrot.slane %v2373_v58, %v11907_v48  ;;  %v12311_v22 = vrot.slane %v2836_v8, %v11902_v57  ;;  %v2355_v58 = vrot.slane %v2341_v37, %v11907_v48 }
 0x48b   : > { %16917 = vst [vmem:[#allocation29_spill] sm:$0xff] %v12302_v44  ;;  %v12331_v63 = vcombine.low %v2500_v54, %v12296_v39  ;;  %v2795_v8 = vrot.slane %v2781_v7, %v11907_v48  ;;  %v2763_v7 = vrot.slane %v2749_v25, %v11907_v48  ;;  %v12365_v25 = vcombine.high %v2627_v32, %v12240_v60 }
 0x48c   : > { %3464 = vrot.lane.b32.xlu0 %v12269_v20, %s16907_s2  ;;  %3450 = vrot.lane.b32.xlu1 %v12273_v56, %s16907_s2  ;;  %v2820_v20 = vcombine.low %v12001_v31, %v12209_v2  ;;  %v12300_v56 = vcombine.high %v2756_v12, %v2788_v26  ;;  %v12314_v3 = vrot.slane %v2852_v19, %v11902_v57 }
 0x48d   : > { %v12286_v42 = vpop.permute.xlu1 %2118  ;;  %v12288_v36 = vpop.permute.xlu0 %2260  ;;  %16919 = vst [vmem:[#allocation31_spill] sm:$0xff] %v12331_v63  ;;  %v2597_v19 = vcombine.high %v12105_v6, %v12129_v46  ;;  %v2581_v12 = vcombine.high %v12107_v5, %v12131_v61  ;;  %v2565_v6 = vcombine.high %v12086_v45, %v12095_v9  ;;  %v2549_v5 = vcombine.high %v11951_v29, %v12097_v1 }
 0x48e   : > { %v2868_v24 = vcombine.low %v12260_v35, %v12288_v36  ;;  %16916 = vst [vmem:[#allocation28_spill] sm:$0xff] %v12300_v56  ;;  %v12326_v62 = vrot.slane %v2820_v20, %v11902_v57  ;;  %v12355_v46 = vcombine.low %v2763_v7, %v2795_v8  ;;  %16922 = vst [vmem:[#allocation34_spill] sm:$0xff] %v12365_v25 }
 0x48f   : > { %v12382_v60 = vrot.slane %v2549_v5, %v11902_v57 }
 0x490   : > { %v12305_v30 = vrot.slane %v2868_v24, %v11902_v57  ;;  %3478 = vrot.lane.b32.xlu0 %v12300_v56, %s16907_s2  ;;  %3476 = vrot.lane.b32.xlu1 %v12302_v44, %s16907_s2  ;;  %v12338_v24 = vcombine.low %v2355_v58, %v2387_v51  ;;  %v2884_v20 = vcombine.low %v12326_v62, %v12311_v22 }
 0x491   : > { %v12320_v52 = vpop.permute.xlu1 %2166  ;;  %v12322_v26 = vpop.permute.xlu0 %2142  ;;  %16921 = vst [vmem:[#allocation33_spill] sm:$0xff] %v12355_v46  ;;  %v12362_v56 = vrot.slane %v2581_v12, %v11902_v57 }
 0x492   : > { %16918 = vst [vmem:[#allocation30_spill] sm:$0xff] %v12322_v26  ;;  %v2916_v59 = vcombine.low %v12314_v3, %v12305_v30  ;;  %16920 = vst [vmem:[#allocation32_spill] sm:$0xff] %v12338_v24  ;;  %v2972_v45 = vcombine.low %v12286_v42, %v12320_v52  ;;  %v2956_v29 = vcombine.low %v12015_v28, %v12322_v26 }
 0x493   : > { %v2293_v28 = vcombine.high %v12149_v0, %v12167_v47  ;;  %v2309_v26 = vcombine.high %v12171_v41, %v12181_v15  ;;  %v2277_v0 = vcombine.high %v11971_v33, %v12154_v23  ;;  %v12432_v15 = vcombine.high %v2500_v54, %v12296_v39 }
 0x494   : > { %3452 = vrot.lane.b32.xlu0 %v12331_v63, %s16907_s2  ;;  %3432 = vrot.lane.b32.xlu1 %v12338_v24, %s16907_s2  ;;  %v2924_v61 = vrot.slane %v2916_v59, %v11907_v48  ;;  %v12359_v63 = vrot.slane %v2597_v19, %v11902_v57  ;;  %v2892_v59 = vrot.slane %v2884_v20, %v11907_v48 }
 0x495   : > { %v12344_v37 = vpop.permute.xlu1 %2214  ;;  %v12346_v44 = vpop.permute.xlu0 %2190  ;;  %v12379_v19 = vrot.slane %v2565_v6, %v11902_v57  ;;  %16925 = vst [vmem:[#allocation37_spill] sm:$0xff] %v12432_v15  ;;  %v12443_v33 = vrot.slane %v2309_v26, %v11902_v57  ;;  %v12463_v26 = vcombine.high %v2763_v7, %v2795_v8  ;;  %v2701_v7 = vcombine.high %v12147_v16, %v12165_v53 }
 0x496   : > { %v12392_v24 = vcombine.high %v2892_v59, %v2924_v61  ;;  %v2660_v20 = vcombine.low %v12362_v56, %v12359_v63 }
 0x497   : > { %16927 = vst [vmem:[#allocation39_spill] sm:$0xff] %v12463_v26 }
 0x498   : > { %3480 = vrot.lane.b32.xlu0 %v12355_v46, %s16907_s2  ;;  %3466 = vrot.lane.b32.xlu1 %v12365_v25, %s16907_s2  ;;  %v2325_v46 = vcombine.high %v12175_v18, %v12192_v49  ;;  %16923 = vst [vmem:[#allocation35_spill] sm:$0xff] %v12392_v24  ;;  %v12402_v25 = vcombine.low %v2892_v59, %v2924_v61 }
 0x499   : > { %v12373_v9 = vpop.permute.xlu1 %2262  ;;  %v12375_v1 = vpop.permute.xlu0 %2238  ;;  %v12409_v18 = vrot.slane %v2972_v45, %v11902_v57  ;;  %v12412_v49 = vrot.slane %v2956_v29, %v11902_v57  ;;  %v2628_v61 = vcombine.low %v12382_v60, %v12379_v19  ;;  %v2917_v45 = vcombine.high %v12314_v3, %v12305_v30 }
 0x49a   : > { %v3004_v32 = vcombine.low %v12344_v37, %v12373_v9  ;;  %v2988_v12 = vcombine.low %v12346_v44, %v12375_v1  ;;  %16924 = vst [vmem:[#allocation36_spill] sm:$0xff] %v12402_v25  ;;  %v12427_v47 = vrot.slane %v2325_v46, %v11902_v57  ;;  %v12436_v29 = vcombine.high %v2355_v58, %v2387_v51 }
 0x49b   : > { %v2668_v59 = vrot.slane %v2660_v20, %v11907_v48  ;;  %v3020_v23 = vcombine.low %v12412_v49, %v12409_v18  ;;  %v2885_v30 = vcombine.high %v12326_v62, %v12311_v22  ;;  %v12459_v51 = vrot.slane %v2277_v0, %v11902_v57 }
 0x49c   : > { %v12397_v6 = vrot.slane %v3004_v32, %v11902_v57  ;;  %v12400_v5 = vrot.slane %v2988_v12, %v11902_v57  ;;  %3494 = vrot.lane.b32.xlu0 %v12392_v24, %s16907_s2  ;;  %3492 = vrot.lane.b32.xlu1 %v12402_v25, %s16907_s2  ;;  %16926 = vst [vmem:[#allocation38_spill] sm:$0xff] %v12436_v29 }
 0x49d   : > { %v12416_v32 = vpop.permute.xlu1 %2144  ;;  %v12418_v12 = vpop.permute.xlu0 %2120  ;;  %v12440_v25 = vrot.slane %v2293_v28, %v11902_v57  ;;  %v2636_v28 = vrot.slane %v2628_v61, %v11907_v48  ;;  %v2388_v3 = vcombine.low %v12443_v33, %v12427_v47  ;;  %v2733_v46 = vcombine.high %v12173_v10, %v12190_v38 }
 0x49e   : > { %v3052_v41 = vcombine.low %v12400_v5, %v12397_v6  ;;  %v2931_v22 = vrot.slane %v2917_v45, %v11907_v48  ;;  %v3028_v8 = vrot.slane %v3020_v23, %v11907_v48  ;;  %v2717_v10 = vcombine.high %v12169_v43, %v12179_v55 }
 0x49f   : > { %v12468_v20 = vcombine.low %v2636_v28, %v2668_v59  ;;  %v2356_v62 = vcombine.low %v12459_v51, %v12440_v25  ;;  %v2899_v38 = vrot.slane %v2885_v30, %v11907_v48  ;;  %v2685_v23 = vcombine.high %v11969_v14, %v12152_v40 }
 0x4a0   : > { %3454 = vrot.lane.b32.xlu0 %v12432_v15, %s16907_s2  ;;  %3434 = vrot.lane.b32.xlu1 %v12436_v29, %s16907_s2  ;;  %v3060_v58 = vrot.slane %v3052_v41, %v11907_v48  ;;  %v2525_v41 = vcombine.high %v12251_v27, %v12237_v13  ;;  %v12497_v16 = vrot.slane %v2733_v46, %v11902_v57 }
 0x4a1   : > { %v12449_v39 = vpop.permute.xlu1 %2192  ;;  %v12451_v54 = vpop.permute.xlu0 %2168  ;;  %16928 = vst [vmem:[#allocation40_spill] sm:$0xff] %v12468_v20  ;;  %v12499_v53 = vcombine.low %v2899_v38, %v2931_v22  ;;  %v2364_v14 = vrot.slane %v2356_v62, %v11907_v48  ;;  %v2493_v40 = vcombine.high %v12264_v11, %v12248_v21  ;;  %v12515_v30 = vrot.slane %v2701_v7, %v11902_v57 }
 0x4a2   : > { %v12489_v45 = vcombine.low %v3028_v8, %v3060_v58  ;;  %v3108_v43 = vcombine.low %v12418_v12, %v12451_v54  ;;  %v12530_v21 = vrot.slane %v2525_v41, %v11907_v48  ;;  %v12533_v11 = vrot.slane %v2685_v23, %v11902_v57 }
 0x4a3   : > { %16930 = vst [vmem:[#allocation42_spill] sm:$0xff] %v12499_v53 }
 0x4a4   : > { %3482 = vrot.lane.b32.xlu0 %v12463_v26, %s16907_s2  ;;  %3468 = vrot.lane.b32.xlu1 %v12468_v20, %s16907_s2  ;;  %16929 = vst [vmem:[#allocation41_spill] sm:$0xff] %v12489_v45  ;;  %v12492_v26 = vrot.slane %v2388_v3, %v11907_v48  ;;  %v12518_v3 = vrot.slane %v2717_v10, %v11902_v57 }
 0x4a5   : > { %v12475_v61 = vpop.permute.xlu1 %2240  ;;  %v12477_v0 = vpop.permute.xlu0 %2216  ;;  %v12543_v20 = vrot.slane %v3108_v43, %v11902_v57  ;;  %v2764_v15 = vcombine.low %v12533_v11, %v12515_v30 }
 0x4a6   : > { %v3124_v55 = vcombine.low %v12449_v39, %v12475_v61  ;;  %v12527_v62 = vcombine.low %v2364_v14, %v12492_v26  ;;  %v2796_v7 = vcombine.low %v12518_v3, %v12497_v16 }
 0x4a8   : > { %3508 = vrot.lane.b32.xlu0 %v12489_v45, %s16907_s2  ;;  %3496 = vrot.lane.b32.xlu1 %v12499_v53, %s16907_s2  ;;  %v3092_v45 = vcombine.low %v12034_v50, %v12416_v32  ;;  %16931 = vst [vmem:[#allocation43_spill] sm:$0xff] %v12527_v62  ;;  %v12540_v53 = vcombine.high %v3028_v8, %v3060_v58 }
 0x4a9   : > { %v12507_v13 = vpop.permute.xlu1 %2122  ;;  %v12509_v27 = vpop.permute.xlu0 %2264  ;;  %v12546_v29 = vrot.slane %v3124_v55, %v11902_v57  ;;  %v2507_v58 = vrot.slane %v2493_v40, %v11907_v48  ;;  %v12564_v55 = vcombine.high %v2636_v28, %v2668_v59  ;;  %v2804_v24 = vrot.slane %v2796_v7, %v11907_v48 }
 0x4aa   : > { %v3140_v46 = vcombine.low %v12477_v0, %v12509_v27  ;;  %16932 = vst [vmem:[#allocation44_spill] sm:$0xff] %v12540_v53  ;;  %v12560_v8 = vrot.slane %v3092_v45, %v11902_v57  ;;  %v3021_v45 = vcombine.high %v12412_v49, %v12409_v18  ;;  %v2869_v28 = vcombine.high %v12260_v35, %v12288_v36 }
 0x4ab   : > { %16933 = vst [vmem:[#allocation45_spill] sm:$0xff] %v12564_v55  ;;  %v12587_v40 = vcombine.high %v2899_v38, %v2931_v22  ;;  %v2837_v49 = vcombine.high %v12211_v17, %v12230_v34  ;;  %v2661_v35 = vcombine.high %v12362_v56, %v12359_v63  ;;  %v2821_v36 = vcombine.high %v12001_v31, %v12209_v2 }
 0x4ac   : > { %v12538_v10 = vrot.slane %v3140_v46, %v11902_v57  ;;  %3436 = vrot.lane.b32.xlu0 %v12527_v62, %s16907_s2  ;;  %3510 = vrot.lane.b32.xlu1 %v12540_v53, %s16907_s2  ;;  %v3053_v46 = vcombine.high %v12400_v5, %v12397_v6  ;;  %v12569_v62 = vcombine.low %v2507_v58, %v12530_v21 }
 0x4ad   : > { %v12550_v41 = vpop.permute.xlu1 %2170  ;;  %v12552_v23 = vpop.permute.xlu0 %2146  ;;  %v3156_v53 = vcombine.low %v12560_v8, %v12543_v20  ;;  %v2772_v5 = vrot.slane %v2764_v15, %v11907_v48  ;;  %v3035_v22 = vrot.slane %v3021_v45, %v11907_v48  ;;  %v12608_v17 = vrot.slane %v2869_v28, %v11902_v57 }
 0x4ae   : > { %v3188_v43 = vcombine.low %v12546_v29, %v12538_v10  ;;  %16934 = vst [vmem:[#allocation46_spill] sm:$0xff] %v12569_v62  ;;  %v3067_v18 = vrot.slane %v3053_v46, %v11907_v48  ;;  %v12621_v2 = vrot.slane %v2837_v49, %v11902_v57  ;;  %v12629_v63 = vrot.slane %v2821_v36, %v11902_v57 }
 0x4af   : > { %v3164_v15 = vrot.slane %v3156_v53, %v11907_v48  ;;  %v3244_v49 = vcombine.low %v12507_v13, %v12550_v41 }
 0x4b0   : > { %3470 = vrot.lane.b32.xlu0 %v12564_v55, %s16907_s2  ;;  %3456 = vrot.lane.b32.xlu1 %v12569_v62, %s16907_s2  ;;  %v3196_v7 = vrot.slane %v3188_v43, %v11907_v48  ;;  %v12590_v55 = vcombine.low %v2772_v5, %v2804_v24  ;;  %v16935_v62 = vld [vmem:[#allocation23_spill] sm:$0xff]  ;;  %v12618_v56 = vcombine.low %v3035_v22, %v3067_v18 }
 0x4b1   : > { %v12580_v59 = vpop.permute.xlu1 %2218  ;;  %v12582_v6 = vpop.permute.xlu0 %2194  ;;  %v2853_v50 = vcombine.high %v16935_v62, %v12258_v4  ;;  %v2629_v4 = vcombine.high %v12382_v60, %v12379_v19  ;;  %v2675_v19 = vrot.slane %v2661_v35, %v11907_v48  ;;  %v12641_v43 = vcombine.high %v2364_v14, %v12492_v26  ;;  %v16940_v35 = vld [vmem:[#allocation17_spill] sm:$0xff] }
 0x4b2   : > { %v12610_v34 = vcombine.low %v3164_v15, %v3196_v7  ;;  %16937 = vst [vmem:[#allocation47_spill] sm:$0xff] %v12618_v56  ;;  %v12643_v46 = vcombine.high %v3164_v15, %v3196_v7  ;;  %v2900_v28 = vcombine.low %v12629_v63, %v12621_v2  ;;  %v3228_v36 = vcombine.low %v16940_v35, %v12552_v23 }
 0x4b3   : > { %v12624_v31 = vrot.slane %v2853_v50, %v11902_v57  ;;  %16938 = vst [vmem:[#allocation48_spill] sm:$0xff] %v12641_v43  ;;  %v2643_v45 = vrot.slane %v2629_v4, %v11907_v48  ;;  %v3189_v14 = vcombine.high %v12546_v29, %v12538_v10 }
 0x4b4   : > { %3498 = vrot.lane.b32.xlu0 %v12587_v40, %s16907_s2  ;;  %3484 = vrot.lane.b32.xlu1 %v12590_v55, %s16907_s2  ;;  %16936 = vst [vmem:[#allocation23_spill] sm:$0xff] %v12610_v34  ;;  %16939 = vst [vmem:[#allocation49_spill] sm:$0xff] %v12643_v46  ;;  %v2908_v29 = vrot.slane %v2900_v28, %v11907_v48  ;;  %v2389_v28 = vcombine.high %v12443_v33, %v12427_v47  ;;  %v16941_v47 = vld [vmem:[#allocation30_spill] sm:$0xff]  ;;  %v16942_v33 = vld [vmem:[#allocation15_spill] sm:$0xff] }
 0x4b5   : > { %v12614_v38 = vpop.permute.xlu1 %2266  ;;  %v12616_v53 = vpop.permute.xlu0 %2242  ;;  %v2932_v60 = vcombine.low %v12624_v31, %v12608_v17  ;;  %v12656_v26 = vcombine.low %v2643_v45, %v2675_v19 }
 0x4b6   : > { %v3276_v62 = vcombine.low %v12580_v59, %v12614_v38  ;;  %v3260_v50 = vcombine.low %v12582_v6, %v12616_v53 }
 0x4b7   : > { %v2940_v4 = vrot.slane %v2932_v60, %v11907_v48 }
 0x4b8   : > { %3524 = vrot.lane.b32.xlu0 %v12610_v34, %s16907_s2  ;;  %3512 = vrot.lane.b32.xlu1 %v12618_v56, %s16907_s2  ;;  %v12661_v7 = vrot.slane %v3276_v62, %v11902_v57  ;;  %v12664_v15 = vrot.slane %v3260_v50, %v11902_v57  ;;  %v12668_v56 = vcombine.high %v2507_v58, %v12530_v21 }
 0x4b9   : > { %v12676_v34 = vrot.slane %v3228_v36, %v11902_v57  ;;  %v12685_v10 = vcombine.low %v2908_v29, %v2940_v4  ;;  %v12688_v58 = vcombine.high %v2772_v5, %v2804_v24  ;;  %v3005_v24 = vcombine.high %v12344_v37, %v12373_v9 }
 0x4ba   : > { %v3324_v21 = vcombine.low %v12664_v15, %v12661_v7  ;;  %v2989_v5 = vcombine.high %v12346_v44, %v12375_v1  ;;  %v2357_v36 = vcombine.high %v12459_v51, %v12440_v25  ;;  %v2797_v44 = vcombine.high %v12518_v3, %v12497_v16 }
 0x4bb   : > { %v12724_v9 = vrot.slane %v3005_v24, %v11902_v57 }
 0x4bc   : > { %3438 = vrot.lane.b32.xlu0 %v12641_v43, %s16907_s2  ;;  %3526 = vrot.lane.b32.xlu1 %v12643_v46, %s16907_s2  ;;  %v3157_v43 = vcombine.high %v12560_v8, %v12543_v20  ;;  %v12673_v46 = vrot.slane %v3244_v49, %v11902_v57  ;;  %v3203_v20 = vrot.slane %v3189_v14, %v11907_v48 }
 0x4bd   : > { %v3332_v50 = vrot.slane %v3324_v21, %v11907_v48  ;;  %v12706_v49 = vcombine.high %v3035_v22, %v3067_v18  ;;  %v2973_v14 = vcombine.high %v12286_v42, %v12320_v52  ;;  %v2957_v21 = vcombine.high %v16942_v33, %v16941_v47 }
 0x4be   : > { %v3292_v8 = vcombine.low %v12676_v34, %v12673_v46  ;;  %v3171_v60 = vrot.slane %v3157_v43, %v11907_v48  ;;  %v12727_v1 = vrot.slane %v2989_v5, %v11902_v57  ;;  %v2403_v42 = vrot.slane %v2389_v28, %v11907_v48 }
 0x4bf   : > { %v2765_v52 = vcombine.high %v12533_v11, %v12515_v30  ;;  %v12737_v51 = vrot.slane %v2973_v14, %v11902_v57  ;;  %v12740_v16 = vrot.slane %v2957_v21, %v11902_v57  ;;  %v2371_v3 = vrot.slane %v2357_v36, %v11907_v48 }
 0x4c0   : > { %3472 = vrot.lane.b32.xlu0 %v12656_v26, %s16907_s2  ;;  %3458 = vrot.lane.b32.xlu1 %v12668_v56, %s16907_s2  ;;  %v12697_v62 = vcombine.low %v3171_v60, %v3203_v20  ;;  %v3300_v43 = vrot.slane %v3292_v8, %v11907_v48  ;;  %v12745_v18 = vcombine.high %v2643_v45, %v2675_v19 }
 0x4c1   : > { %v3068_v22 = vcombine.low %v12727_v1, %v12724_v9  ;;  %v12749_v8 = vcombine.low %v2371_v3, %v2403_v42  ;;  %v2811_v30 = vrot.slane %v2797_v44, %v11907_v48  ;;  %v3036_v11 = vcombine.low %v12740_v16, %v12737_v51 }
 0x4c2   : > { %v12721_v37 = vcombine.high %v3300_v43, %v3332_v50  ;;  %v12729_v25 = vcombine.low %v3300_v43, %v3332_v50  ;;  %v2779_v50 = vrot.slane %v2765_v52, %v11907_v48  ;;  %v3141_v19 = vcombine.high %v12477_v0, %v12509_v27 }
 0x4c3   : > { %v12761_v45 = vcombine.high %v2908_v29, %v2940_v4  ;;  %v3325_v28 = vcombine.high %v12664_v15, %v12661_v7  ;;  %v3076_v5 = vrot.slane %v3068_v22, %v11907_v48  ;;  %v3109_v43 = vcombine.high %v12418_v12, %v12451_v54  ;;  %v16943_v15 = vld [vmem:[#allocation16_spill] sm:$0xff] }
 0x4c4   : > { %3500 = vrot.lane.b32.xlu0 %v12685_v10, %s16907_s2  ;;  %3486 = vrot.lane.b32.xlu1 %v12688_v58, %s16907_s2  ;;  %v12765_v24 = vcombine.low %v2779_v50, %v2811_v30  ;;  %v3125_v36 = vcombine.high %v12449_v39, %v12475_v61  ;;  %v3293_v0 = vcombine.high %v12676_v34, %v12673_v46 }
 0x4c5   : > { %v3044_v27 = vrot.slane %v3036_v11, %v11907_v48  ;;  %v2933_v7 = vcombine.high %v12624_v31, %v12608_v17  ;;  %v3093_v12 = vcombine.high %v16943_v15, %v12416_v32  ;;  %v3155_v54 = vrot.slane %v3141_v19, %v11902_v57 }
 0x4c6   : > { %v12784_v39 = vcombine.high %v3171_v60, %v3203_v20  ;;  %v3339_v4 = vrot.slane %v3325_v28, %v11907_v48  ;;  %v2901_v34 = vcombine.high %v12629_v63, %v12621_v2  ;;  %v3123_v46 = vrot.slane %v3109_v43, %v11902_v57 }
 0x4c7   : > { %v12786_v61 = vcombine.low %v3044_v27, %v3076_v5  ;;  %v3139_v29 = vrot.slane %v3125_v36, %v11902_v57  ;;  %v3307_v32 = vrot.slane %v3293_v0, %v11907_v48  ;;  %v3107_v17 = vrot.slane %v3093_v12, %v11902_v57 }
 0x4c8   : > { %3528 = vrot.lane.b32.xlu0 %v12697_v62, %s16907_s2  ;;  %3514 = vrot.lane.b32.xlu1 %v12706_v49, %s16907_s2  ;;  %v12799_v20 = vcombine.high %v2371_v3, %v2403_v42  ;;  %v2947_v60 = vrot.slane %v2933_v7, %v11907_v48  ;;  %v2915_v14 = vrot.slane %v2901_v34, %v11907_v48 }
 0x4c9   : > { %v3204_v31 = vcombine.low %v3139_v29, %v3155_v54  ;;  %v12802_v2 = vcombine.low %v3307_v32, %v3339_v4  ;;  %v3172_v63 = vcombine.low %v3107_v17, %v3123_v46  ;;  %v3277_v21 = vcombine.high %v12580_v59, %v12614_v38 }
 0x4ca   : > { %v12809_v47 = vcombine.low %v2915_v14, %v2947_v60  ;;  %v3261_v44 = vcombine.high %v12582_v6, %v12616_v53  ;;  %v12816_v42 = vcombine.high %v2779_v50, %v2811_v30  ;;  %v3245_v3 = vcombine.high %v12507_v13, %v12550_v41 }
 0x4cb   : > { %v3212_v33 = vrot.slane %v3204_v31, %v11907_v48  ;;  %v3180_v52 = vrot.slane %v3172_v63, %v11907_v48  ;;  %v3229_v22 = vcombine.high %v16940_v35, %v12552_v23  ;;  %v3069_v6 = vcombine.high %v12727_v1, %v12724_v9 }
 0x4cc   : > { %3542 = vrot.lane.b32.xlu0 %v12721_v37, %s16907_s2  ;;  %3540 = vrot.lane.b32.xlu1 %v12729_v25, %s16907_s2  ;;  %v3291_v38 = vrot.slane %v3277_v21, %v11902_v57  ;;  %v3275_v53 = vrot.slane %v3261_v44, %v11902_v57  ;;  %v12833_v30 = vcombine.high %v3044_v27, %v3076_v5  ;;  %v16944_v21 = vld [vmem:[#allocation19_spill] sm:$0xff] }
 0x4cd   : > { %v12827_v59 = vcombine.low %v3180_v52, %v3212_v33  ;;  %v3037_v13 = vcombine.high %v12740_v16, %v12737_v51  ;;  %v3259_v41 = vrot.slane %v3245_v3, %v11902_v57  ;;  %v3243_v23 = vrot.slane %v3229_v22, %v11902_v57 }
 0x4ce   : > { %v12843_v35 = vcombine.high %v2915_v14, %v2947_v60  ;;  %v3340_v9 = vcombine.low %v3275_v53, %v3291_v38  ;;  %v12845_v1 = vcombine.high %v3307_v32, %v3339_v4  ;;  %v3083_v11 = vrot.slane %v3069_v6, %v11907_v48  ;;  %v16945_v6 = vld [vmem:[#allocation20_spill] sm:$0xff] }
 0x4cf   : > { %v3308_v50 = vcombine.low %v3243_v23, %v3259_v41  ;;  %v3051_v51 = vrot.slane %v3037_v13, %v11907_v48  ;;  %v12853_v16 = vcombine.high %v3180_v52, %v3212_v33  ;;  %v3205_v19 = vcombine.high %v3139_v29, %v3155_v54 }
 0x4d0   : > { %3474 = vrot.lane.b32.xlu0 %v12745_v18, %s16907_s2  ;;  %3440 = vrot.lane.b32.xlu1 %v12749_v8, %s16907_s2  ;;  %v3348_v5 = vrot.slane %v3340_v9, %v11907_v48  ;;  %v3173_v36 = vcombine.high %v3107_v17, %v3123_v46  ;;  %v3341_v27 = vcombine.high %v3275_v53, %v3291_v38  ;;  %v16947_v9 = vld [vmem:[#allocation21_spill] sm:$0xff] }
 0x4d1   : > { %v12855_v28 = vcombine.low %v3051_v51, %v3083_v11  ;;  %v3316_v0 = vrot.slane %v3308_v50, %v11907_v48  ;;  %v12863_v7 = vcombine.high %v3051_v51, %v3083_v11  ;;  %v3219_v12 = vrot.slane %v3205_v19, %v11907_v48  ;;  %v16948_v19 = vld [vmem:[#allocation22_spill] sm:$0xff] }
 0x4d2   : > { %v3445_v43 = vpop.permute.xlu0 %3444  ;;  %v3309_v54 = vcombine.high %v3243_v23, %v3259_v41  ;;  %v3187_v4 = vrot.slane %v3173_v36, %v11907_v48  ;;  %v3447_v34 = vpop.permute.xlu1 %3446  ;;  %v3355_v32 = vrot.slane %v3341_v27, %v11907_v48  ;;  %v16946_v41 = vld [vmem:[#allocation18_spill] sm:$0xff]  ;;  %v16950_v27 = vld [vmem:[#allocation25_spill] sm:$0xff] }
 0x4d3   : > { %v12865_v15 = vcombine.low %v3316_v0, %v3348_v5  ;;  %v12873_v29 = vcombine.high %v3316_v0, %v3348_v5  ;;  %v3628_v44 = vmax.f32 %v16944_v21, %v3445_v43  ;;  %v3629_v23 = vmax.f32 %v16946_v41, %v3447_v34  ;;  %v16949_v43 = vld [vmem:[#allocation24_spill] sm:$0xff] }
 0x4d4   : > { %3502 = vrot.lane.b32.xlu0 %v12761_v45, %s16907_s2  ;;  %3488 = vrot.lane.b32.xlu1 %v12765_v24, %s16907_s2  ;;  %v12876_v17 = vcombine.low %v3187_v4, %v3219_v12  ;;  %v3323_v31 = vrot.slane %v3309_v54, %v11907_v48  ;;  %v12885_v33 = vcombine.high %v3187_v4, %v3219_v12  ;;  %v16951_v4 = vld [vmem:[#allocation26_spill] sm:$0xff]  ;;  %v16953_v21 = vld [vmem:[#allocation28_spill] sm:$0xff] }
 0x4d6   : > { %v3449_v46 = vpop.permute.xlu0 %3448  ;;  %v12883_v14 = vcombine.low %v3323_v31, %v3355_v32  ;;  %v12892_v22 = vcombine.high %v3323_v31, %v3355_v32  ;;  %v16952_v32 = vld [vmem:[#allocation27_spill] sm:$0xff] }
 0x4d7   : > { %v3630_v38 = vmax.f32 %v16945_v6, %v3449_v46  ;;  %v16954_v6 = vld [vmem:[#allocation29_spill] sm:$0xff] }
 0x4d8   : > { %3530 = vrot.lane.b32.xlu0 %v12784_v39, %s16907_s2  ;;  %3516 = vrot.lane.b32.xlu1 %v12786_v61, %s16907_s2 }
 0x4dc   : > { %3442 = vrot.lane.b32.xlu0 %v12799_v20, %s16907_s2  ;;  %3544 = vrot.lane.b32.xlu1 %v12802_v2, %s16907_s2 }
 0x4de   : > { %v3461_v60 = vpop.permute.xlu1 %3460  ;;  %v3463_v63 = vpop.permute.xlu0 %3462 }
 0x4df   : > { %v3637_v11 = vmax.f32 %v16947_v9, %v3463_v63  ;;  %v3636_v5 = vmax.f32 %v16948_v19, %v3461_v60  ;;  %v16956_v9 = vld [vmem:[#allocation32_spill] sm:$0xff] }
 0x4e0   : > { %3504 = vrot.lane.b32.xlu0 %v12809_v47, %s16907_s2  ;;  %3490 = vrot.lane.b32.xlu1 %v12816_v42, %s16907_s2 }
 0x4e4   : > { %3532 = vrot.lane.b32.xlu0 %v12827_v59, %s16907_s2  ;;  %3518 = vrot.lane.b32.xlu1 %v12833_v30, %s16907_s2 }
 0x4e8   : > { %3506 = vrot.lane.b32.xlu0 %v12843_v35, %s16907_s2  ;;  %3546 = vrot.lane.b32.xlu1 %v12845_v1, %s16907_s2 }
 0x4ec   : > { %3534 = vrot.lane.b32.xlu0 %v12853_v16, %s16907_s2  ;;  %3520 = vrot.lane.b32.xlu1 %v12855_v28, %s16907_s2 }
 0x4f0   : > { %3522 = vrot.lane.b32.xlu0 %v12863_v7, %s16907_s2  ;;  %3548 = vrot.lane.b32.xlu1 %v12865_v15, %s16907_s2 }
 0x4f4   : > { %3550 = vrot.lane.b32.xlu0 %v12873_v29, %s16907_s2  ;;  %3536 = vrot.lane.b32.xlu1 %v12876_v17, %s16907_s2 }
 0x4f8   : > { %3552 = vrot.lane.b32.xlu0 %v12883_v14, %s16907_s2  ;;  %3538 = vrot.lane.b32.xlu1 %v12885_v33, %s16907_s2 }
 0x4fa   : > { %v3429_v52 = vpop.permute.xlu1 %3428  ;;  %v3431_v3 = vpop.permute.xlu0 %3430 }
 0x4fb   : > { %v3621_v36 = vmax.f32 %v16949_v43, %v3431_v3  ;;  %v3620_v12 = vmax.f32 %v16950_v27, %v3429_v52  ;;  %v16955_v52 = vld [vmem:[#allocation31_spill] sm:$0xff]  ;;  %v16958_v43 = vld [vmem:[#allocation34_spill] sm:$0xff] }
 0x4fc   : > { %3773 = vperm.xlu0 %10135, %v3628_v44   ;;  %3554 = vrot.lane.b32.xlu1 %v12892_v22, %s16907_s2 }
 0x4fe   : > { %v3451_v53 = vpop.permute.xlu1 %3450  ;;  %v3465_v13 = vpop.permute.xlu0 %3464 }
 0x4ff   : > { %v3638_v34 = vmax.f32 %v16951_v4, %v3465_v13  ;;  %v3631_v31 = vmax.f32 %v16952_v32, %v3451_v53  ;;  %v16957_v53 = vld [vmem:[#allocation33_spill] sm:$0xff]  ;;  %v16960_v4 = vld [vmem:[#allocation36_spill] sm:$0xff] }
 0x500   : > { %3779 = vperm.xlu0 %10135, %v3630_v38   ;;  %3776 = vperm.xlu1 %10134, %v3629_v23  }
 0x502   : > { %v3477_v50 = vpop.permute.xlu1 %3476  ;;  %v3479_v51 = vpop.permute.xlu0 %3478 }
 0x503   : > { %v3645_v60 = vmax.f32 %v16953_v21, %v3479_v51  ;;  %v3644_v38 = vmax.f32 %v16954_v6, %v3477_v50  ;;  %v16959_v50 = vld [vmem:[#allocation35_spill] sm:$0xff]  ;;  %v16962_v21 = vld [vmem:[#allocation38_spill] sm:$0xff] }
 0x504   : > { %3800 = vperm.xlu0 %10135, %v3637_v11   ;;  %3797 = vperm.xlu1 %10134, %v3636_v5  }
 0x506   : > { %v3453_v0 = vpop.permute.xlu0 %3452  ;;  %v3433_v54 = vpop.permute.xlu1 %3432 }
 0x507   : > { %v3632_v41 = vmax.f32 %v16955_v52, %v3453_v0  ;;  %v3622_v11 = vmax.f32 %v16956_v9, %v3433_v54  ;;  %v16961_v54 = vld [vmem:[#allocation37_spill] sm:$0xff]  ;;  %v16964_v52 = vld [vmem:[#allocation40_spill] sm:$0xff] }
 0x508   : > { %3752 = vperm.xlu0 %10135, %v3621_v36   ;;  %3749 = vperm.xlu1 %10134, %v3620_v12  }
 0x50a   : > { %v3481_v46 = vpop.permute.xlu0 %3480  ;;  %v3467_v63 = vpop.permute.xlu1 %3466 }
 0x50b   : > { %v3646_v19 = vmax.f32 %v16957_v53, %v3481_v46  ;;  %v3639_v36 = vmax.f32 %v16958_v43, %v3467_v63  ;;  %v16963_v63 = vld [vmem:[#allocation39_spill] sm:$0xff]  ;;  %v16966_v53 = vld [vmem:[#allocation42_spill] sm:$0xff] }
 0x50c   : > { %3803 = vperm.xlu0 %10135, %v3638_v34   ;;  %3782 = vperm.xlu1 %10134, %v3631_v31  }
 0x50e   : > { %v3495_v44 = vpop.permute.xlu0 %3494  ;;  %v3493_v3 = vpop.permute.xlu1 %3492 }
 0x50f   : > { %v3653_v27 = vmax.f32 %v16959_v50, %v3495_v44  ;;  %v3652_v34 = vmax.f32 %v16960_v4, %v3493_v3  ;;  %v16965_v3 = vld [vmem:[#allocation41_spill] sm:$0xff]  ;;  %v16968_v50 = vld [vmem:[#allocation44_spill] sm:$0xff] }
 0x510   : > { %3824 = vperm.xlu0 %10135, %v3645_v60   ;;  %3821 = vperm.xlu1 %10134, %v3644_v38  }
 0x512   : > { %v3455_v23 = vpop.permute.xlu0 %3454  ;;  %v3435_v13 = vpop.permute.xlu1 %3434 }
 0x513   : > { %v3633_v32 = vmax.f32 %v16961_v54, %v3455_v23  ;;  %v3623_v60 = vmax.f32 %v16962_v21, %v3435_v13  ;;  %v16967_v13 = vld [vmem:[#allocation43_spill] sm:$0xff]  ;;  %v16970_v54 = vld [vmem:[#allocation46_spill] sm:$0xff] }
 0x514   : > { %3785 = vperm.xlu0 %10135, %v3632_v41   ;;  %3755 = vperm.xlu1 %10134, %v3622_v11  }
 0x516   : > { %v3483_v5 = vpop.permute.xlu0 %3482  ;;  %v3469_v51 = vpop.permute.xlu1 %3468 }
 0x517   : > { %v3647_v6 = vmax.f32 %v16963_v63, %v3483_v5  ;;  %v3640_v41 = vmax.f32 %v16964_v52, %v3469_v51  ;;  %v16969_v51 = vld [vmem:[#allocation45_spill] sm:$0xff]  ;;  %v16972_v52 = vld [vmem:[#allocation47_spill] sm:$0xff] }
 0x518   : > { %3827 = vperm.xlu0 %10135, %v3646_v19   ;;  %3806 = vperm.xlu1 %10134, %v3639_v36  }
 0x51a   : > { %v3509_v12 = vpop.permute.xlu0 %3508  ;;  %v3497_v0 = vpop.permute.xlu1 %3496 }
 0x51b   : > { %v3660_v9 = vmax.f32 %v16965_v3, %v3509_v12  ;;  %v3654_v19 = vmax.f32 %v16966_v53, %v3497_v0  ;;  %v16974_v53 = vld [vmem:[#allocation49_spill] sm:$0xff] }
 0x51c   : > { %3848 = vperm.xlu0 %10135, %v3653_v27   ;;  %3845 = vperm.xlu1 %10134, %v3652_v34  }
 0x51e   : > { %v3437_v31 = vpop.permute.xlu0 %3436  ;;  %v3511_v46 = vpop.permute.xlu1 %3510 }
 0x51f   : > { %v3624_v43 = vmax.f32 %v16967_v13, %v3437_v31  ;;  %v3661_v27 = vmax.f32 %v16968_v50, %v3511_v46  ;;  %v16971_v46 = vld [vmem:[#allocation23_spill] sm:$0xff] }
 0x520   : > { %3788 = vperm.xlu0 %10135, %v3633_v32   ;;  %3758 = vperm.xlu1 %10134, %v3623_v60  }
 0x522   : > { %v3471_v38 = vpop.permute.xlu0 %3470  ;;  %v3457_v44 = vpop.permute.xlu1 %3456 }
 0x523   : > { %v3641_v4 = vmax.f32 %v16969_v51, %v3471_v38  ;;  %v3634_v32 = vmax.f32 %v16970_v54, %v3457_v44  ;;  %v16973_v44 = vld [vmem:[#allocation48_spill] sm:$0xff] }
 0x524   : > { %3830 = vperm.xlu0 %10135, %v3647_v6   ;;  %3809 = vperm.xlu1 %10134, %v3640_v41  }
 0x526   : > { %v3499_v11 = vpop.permute.xlu0 %3498  ;;  %v3485_v23 = vpop.permute.xlu1 %3484 }
 0x527   : > { %v3655_v0 = vmax.f32 %v12587_v40, %v3499_v11  ;;  %v3648_v60 = vmax.f32 %v12590_v55, %v3485_v23 }
 0x528   : > { %3869 = vperm.xlu0 %10135, %v3660_v9   ;;  %3851 = vperm.xlu1 %10134, %v3654_v19  }
 0x52a   : > { %v3525_v36 = vpop.permute.xlu0 %3524  ;;  %v3513_v5 = vpop.permute.xlu1 %3512 }
 0x52b   : > { %v3668_v63 = vmax.f32 %v16971_v46, %v3525_v36  ;;  %v3662_v41 = vmax.f32 %v16972_v52, %v3513_v5 }
 0x52c   : > { %3761 = vperm.xlu0 %10135, %v3624_v43   ;;  %3872 = vperm.xlu1 %10134, %v3661_v27  }
 0x52e   : > { %v3439_v34 = vpop.permute.xlu0 %3438  ;;  %v3527_v12 = vpop.permute.xlu1 %3526 }
 0x52f   : > { %v3625_v3 = vmax.f32 %v16973_v44, %v3439_v34  ;;  %v3669_v19 = vmax.f32 %v16974_v53, %v3527_v12 }
 0x530   : > { %3812 = vperm.xlu0 %10135, %v3641_v4   ;;  %3791 = vperm.xlu1 %10134, %v3634_v32  }
 0x532   : > { %v3473_v21 = vpop.permute.xlu0 %3472  ;;  %v3459_v31 = vpop.permute.xlu1 %3458 }
 0x533   : > { %v3642_v55 = vmax.f32 %v12656_v26, %v3473_v21  ;;  %v3635_v23 = vmax.f32 %v12668_v56, %v3459_v31 }
 0x534   : > { %3854 = vperm.xlu0 %10135, %v3655_v0   ;;  %3833 = vperm.xlu1 %10134, %v3648_v60  }
 0x536   : > { %v3501_v6 = vpop.permute.xlu0 %3500  ;;  %v3487_v38 = vpop.permute.xlu1 %3486 }
 0x537   : > { %v3656_v43 = vmax.f32 %v12685_v10, %v3501_v6  ;;  %v3649_v50 = vmax.f32 %v12688_v58, %v3487_v38 }
 0x538   : > { %3893 = vperm.xlu0 %10135, %v3668_v63   ;;  %3875 = vperm.xlu1 %10134, %v3662_v41  }
 0x53a   : > { %v3529_v9 = vpop.permute.xlu0 %3528  ;;  %v3515_v40 = vpop.permute.xlu1 %3514 }
 0x53b   : > { %v3670_v5 = vmax.f32 %v12697_v62, %v3529_v9  ;;  %v3663_v4 = vmax.f32 %v12706_v49, %v3515_v40 }
 0x53c   : > { %3764 = vperm.xlu0 %10135, %v3625_v3   ;;  %3896 = vperm.xlu1 %10134, %v3669_v19   ;;  %v16975_v3 = vld [vmem:[#allocation11_spill] sm:$0xff] }
 0x53e   : > { %v3543_v11 = vpop.permute.xlu0 %3542  ;;  %v3541_v13 = vpop.permute.xlu1 %3540 }
 0x53f   : > { %v3677_v56 = vmax.f32 %v12721_v37, %v3543_v11  ;;  %v3676_v54 = vmax.f32 %v12729_v25, %v3541_v13 }
 0x540   : > { %3815 = vperm.xlu0 %10135, %v3642_v55   ;;  %3794 = vperm.xlu1 %10134, %v3635_v23   ;;  %v16978_v23 = vmov 0  }
 0x542   : > { %v3475_v36 = vpop.permute.xlu0 %3474  ;;  %v3441_v27 = vpop.permute.xlu1 %3440 }
 0x543   : > { %v3643_v58 = vmax.f32 %v12745_v18, %v3475_v36  ;;  %v3626_v12 = vmax.f32 %v12749_v8, %v3441_v27 }
 0x544   : > { %3857 = vperm.xlu0 %10135, %v3656_v43   ;;  %3836 = vperm.xlu1 %10134, %v3649_v50   ;;  %v16979_v43 = vld [vmem:[#allocation12_spill] sm:$0xff] }
 0x546   : > { %v3503_v51 = vpop.permute.xlu0 %3502  ;;  %v3489_v26 = vpop.permute.xlu1 %3488 }
 0x547   : > { %v3657_v49 = vmax.f32 %v12761_v45, %v3503_v51  ;;  %v3650_v21 = vmax.f32 %v12765_v24, %v3489_v26 }
 0x548   : > { %3899 = vperm.xlu0 %10135, %v3670_v5   ;;  %3878 = vperm.xlu1 %10134, %v3663_v4  }
 0x54a   : > { %v3531_v34 = vpop.permute.xlu0 %3530  ;;  %v3517_v10 = vpop.permute.xlu1 %3516 }
 0x54b   : > { %v3671_v25 = vmax.f32 %v12784_v39, %v3531_v34  ;;  %v3664_v31 = vmax.f32 %v12786_v61, %v3517_v10 }
 0x54c   : > { %3920 = vperm.xlu0 %10135, %v3677_v56   ;;  %3917 = vperm.xlu1 %10134, %v3676_v54  }
 0x54e   : > { %v3443_v32 = vpop.permute.xlu0 %3442  ;;  %v3545_v62 = vpop.permute.xlu1 %3544 }
 0x54f   : > { %v3627_v8 = vmax.f32 %v12799_v20, %v3443_v32  ;;  %v3678_v46 = vmax.f32 %v12802_v2, %v3545_v62 }
 0x550   : > { %3818 = vperm.xlu0 %10135, %v3643_v58   ;;  %3767 = vperm.xlu1 %10134, %v3626_v12  }
 0x552   : > { %v3505_v0 = vpop.permute.xlu0 %3504  ;;  %v3491_v37 = vpop.permute.xlu1 %3490 }
 0x553   : > { %v3658_v24 = vmax.f32 %v12809_v47, %v3505_v0  ;;  %v3651_v6 = vmax.f32 %v12816_v42, %v3491_v37  ;;  %v5020_v47 = vand.u32 7, %v16975_v3 }
 0x554   : > { %3860 = vperm.xlu0 %10135, %v3657_v49   ;;  %3839 = vperm.xlu1 %10134, %v3650_v21  }
 0x555   : > { %v5028_v53 = vadd.s32 4294967295, %v5020_v47  ;;  %v5032_v11 = vadd.s32 1, %v5020_v47 }
 0x556   : > { %v3533_v60 = vpop.permute.xlu0 %3532  ;;  %v3519_v18 = vpop.permute.xlu1 %3518 }
 0x557   : > { %v3672_v61 = vmax.f32 %v12827_v59, %v3533_v60  ;;  %v3665_v41 = vmax.f32 %v12833_v30, %v3519_v18  ;;  %vm5029_vm5 = vcmp.ge.s32.totalorder %v5028_v53, 0  ;;  %vm5034_vm8 = vcmp.lt.s32.totalorder %v5032_v11, 8 }
 0x558   : > { %3902 = vperm.xlu0 %10135, %v3671_v25   ;;  %3881 = vperm.xlu1 %10134, %v3664_v31   ;;  %vm12956_vm7 = vmpackc.low %vm5029_vm5, %vm5029_vm5 }
 0x559   : > { %vm5050_vm0 = vmpackc.low %vm5034_vm8, %vm5034_vm8 }
 0x55a   : > { %v3547_v63 = vpop.permute.xlu1 %3546  ;;  %v3507_v45 = vpop.permute.xlu0 %3506  ;;  %v5051_v27 = vsel %vm5050_vm0, 65537, %v16978_v23 }
 0x55b   : > { %v3659_v20 = vmax.f32 %v12843_v35, %v3507_v45  ;;  %v3679_v38 = vmax.f32 %v12845_v1, %v3547_v63 }
 0x55c   : > { %3770 = vperm.xlu0 %10135, %v3627_v8   ;;  %3923 = vperm.xlu1 %10134, %v3678_v46  }
 0x55e   : > { %v3521_v52 = vpop.permute.xlu1 %3520  ;;  %v3535_v39 = vpop.permute.xlu0 %3534 }
 0x55f   : > { %v3673_v42 = vmax.f32 %v12853_v16, %v3535_v39  ;;  %v3666_v9 = vmax.f32 %v12855_v28, %v3521_v52 }
 0x560   : > { %3863 = vperm.xlu0 %10135, %v3658_v24   ;;  %3842 = vperm.xlu1 %10134, %v3651_v6  }
 0x562   : > { %v3549_v2 = vpop.permute.xlu1 %3548  ;;  %v3523_v44 = vpop.permute.xlu0 %3522 }
 0x563   : > { %v3667_v19 = vmax.f32 %v12863_v7, %v3523_v44  ;;  %v3680_v35 = vmax.f32 %v12865_v15, %v3549_v2  ;;  %v5068_v7 = vsel %vm12956_vm7, 65537, %v16978_v23 }
 0x564   : > { %3905 = vperm.xlu0 %10135, %v3672_v61   ;;  %3884 = vperm.xlu1 %10134, %v3665_v41   ;;  %v5072_v36 = vrot.slane %v5068_v7, %v16979_v43 }
 0x566   : > { %v3537_v59 = vpop.permute.xlu1 %3536  ;;  %v3551_v30 = vpop.permute.xlu0 %3550 }
 0x567   : > { %v3681_v1 = vmax.f32 %v12873_v29, %v3551_v30  ;;  %v3674_v16 = vmax.f32 %v12876_v17, %v3537_v59 }
 0x568   : > { %3866 = vperm.xlu0 %10135, %v3659_v20   ;;  %3926 = vperm.xlu1 %10134, %v3679_v38  }
 0x56a   : > { %v3539_v40 = vpop.permute.xlu1 %3538  ;;  %v3553_v28 = vpop.permute.xlu0 %3552 }
 0x56b   : > { %v3682_v15 = vmax.f32 %v12883_v14, %v3553_v28  ;;  %v3675_v13 = vmax.f32 %v12885_v33, %v3539_v40  ;;  %v16983_v28 = vld [vmem:[#allocation10_spill] sm:$0xff] }
 0x56c   : > { %3908 = vperm.xlu0 %10135, %v3673_v42   ;;  %3887 = vperm.xlu1 %10134, %v3666_v9   ;;  %v13073_v11 = vsub.s32 %v16975_v3, %v16983_v28 }
 0x56e   : > { %v3555_v29 = vpop.permute.xlu1 %3554  ;;  %16984 = vst [vmem:[#allocation17_spill] sm:$0xff] %v13073_v11 }
 0x56f   : > { %v3683_v17 = vmax.f32 %v12892_v22, %v3555_v29  ;;  %v5055_v22 = vrot.slane %v5051_v27, %v16979_v43 }
 0x570   : > { %3890 = vperm.xlu0 %10135, %v3667_v19   ;;  %3929 = vperm.xlu1 %10134, %v3680_v35  }
 0x574   : > { %3932 = vperm.xlu0 %10135, %v3681_v1   ;;  %3911 = vperm.xlu1 %10134, %v3674_v16  }
 0x578   : > { %3935 = vperm.xlu0 %10135, %v3682_v15   ;;  %3914 = vperm.xlu1 %10134, %v3675_v13  }
 0x57b   : > { %v12968_v50 = vpop.permute.xlu0 %3773 }
 0x57c   : > { %5073 = vrot.lane.b32.xlu0 %v5072_v36, %s16807_s19  ;;  %3938 = vperm.xlu1 %10134, %v3683_v17   ;;  %s16981_s19 = smov 2   ;;  %v3975_v29 = vrot.slane %v12968_v50, %v13073_v11 }
 0x57f   : > { %v12972_v14 = vpop.permute.xlu0 %3779  ;;  %v12974_v33 = vpop.permute.xlu1 %3776 }
 0x580   : > { %5097 = vrot.lane.b32.xlu0 %v5072_v36, %s16980_s29  ;;  %4976 = vrot.lane.b32.xlu1 %v16978_v23, %s16809_s1  ;;  %s16982_s1 = smov 18   ;;  %v3979_v15 = vrot.slane %v12974_v33, %v13073_v11  ;;  %v3983_v17 = vrot.slane %v12972_v14, %v13073_v11 }
 0x582   : > { %v4203_v28 = vsel %vm1369_vm9, %v3979_v15, %v3975_v29 }
 0x583   : > { %v12980_v5 = vpop.permute.xlu0 %3800  ;;  %v12982_v51 = vpop.permute.xlu1 %3797  ;;  %v4204_v15 = vsel %vm1372_vm10, %v3983_v17, %v4203_v28 }
 0x584   : > { %5056 = vrot.lane.b32.xlu1 %v5055_v22, %s16981_s19  ;;  %v4007_v27 = vrot.slane %v12982_v51, %v13073_v11 }
 0x587   : > { %v12985_v4 = vpop.permute.xlu0 %3752  ;;  %v12987_v26 = vpop.permute.xlu1 %3749 }
 0x588   : > { %5085 = vrot.lane.b32.xlu1 %v5055_v22, %s16814_s3  ;;  %v3943_v33 = vrot.slane %v12987_v26, %v13073_v11  ;;  %v3947_v43 = vrot.slane %v12985_v4, %v13073_v11  ;;  %s16986_s3 = smov 32  }
 0x58a   : > { %v4196_v29 = vsel %vm1369_vm9, %v3947_v43, %v3943_v33 }
 0x58b   : > { %v12990_v56 = vpop.permute.xlu0 %3803  ;;  %v12992_v34 = vpop.permute.xlu1 %3782 }
 0x58c   : > { %5109 = vrot.lane.b32.xlu1 %v5055_v22, %s16982_s1  ;;  %v4011_v22 = vrot.slane %v12980_v5, %v13073_v11  ;;  %v3987_v50 = vrot.slane %v12992_v34, %v13073_v11  ;;  %v4015_v14 = vrot.slane %v12990_v56, %v13073_v11  ;;  %s16985_s1 = smov 8  }
 0x58e   : > { %v4210_v26 = vsel %vm1369_vm9, %v4011_v22, %v4007_v27  ;;  %v4205_v23 = vsel %vm1375_vm11, %v3987_v50, %v4204_v15 }
 0x58f   : > { %v12995_v54 = vpop.permute.xlu0 %3824  ;;  %v12997_v10 = vpop.permute.xlu1 %3821  ;;  %v4211_v28 = vsel %vm1372_vm10, %v4015_v14, %v4210_v26 }
 0x590   : > { %v4039_v34 = vrot.slane %v12997_v10, %v13073_v11  ;;  %v4043_v56 = vrot.slane %v12995_v54, %v13073_v11 }
 0x593   : > { %v12999_v58 = vpop.permute.xlu0 %3785  ;;  %v13001_v32 = vpop.permute.xlu1 %3755 }
 0x594   : > { %v3991_v51 = vrot.slane %v12999_v58, %v13073_v11  ;;  %v3951_v43 = vrot.slane %v13001_v32, %v13073_v11 }
 0x596   : > { %v4206_v10 = vsel %vm1378_vm12, %v3991_v51, %v4205_v23  ;;  %v4217_v23 = vsel %vm1369_vm9, %v4043_v56, %v4039_v34  ;;  %v4197_v51 = vsel %vm1372_vm10, %v3951_v43, %v4196_v29 }
 0x597   : > { %v13003_v12 = vpop.permute.xlu0 %3827  ;;  %v13005_v62 = vpop.permute.xlu1 %3806 }
 0x598   : > { %v4019_v17 = vrot.slane %v13005_v62, %v13073_v11  ;;  %v4047_v54 = vrot.slane %v13003_v12, %v13073_v11 }
 0x59b   : > { %v13007_v49 = vpop.permute.xlu0 %3848  ;;  %v13009_v0 = vpop.permute.xlu1 %3845 }
 0x59c   : > { %v4071_v62 = vrot.slane %v13009_v0, %v13073_v11  ;;  %v4212_v0 = vsel %vm1375_vm11, %v4019_v17, %v4211_v28 }
 0x59f   : > { %v13011_v21 = vpop.permute.xlu0 %3788  ;;  %v13013_v37 = vpop.permute.xlu1 %3758 }
 0x5a0   : > { %v3995_v4 = vrot.slane %v13011_v21, %v13073_v11  ;;  %v3955_v12 = vrot.slane %v13013_v37, %v13073_v11 }
 0x5a2   : > { %v4207_v33 = vsel %vm1381_vm13, %v3995_v4, %v4206_v10  ;;  %v4198_v56 = vsel %vm1375_vm11, %v3955_v12, %v4197_v51 }
 0x5a3   : > { %v13015_v25 = vpop.permute.xlu0 %3830  ;;  %v13017_v60 = vpop.permute.xlu1 %3809 }
 0x5a7   : > { %v13019_v31 = vpop.permute.xlu0 %3869  ;;  %v13021_v18 = vpop.permute.xlu1 %3851 }
 0x5a8   : > { %v4079_v15 = vrot.slane %v13021_v18, %v13073_v11  ;;  %v4103_v17 = vrot.slane %v13019_v31, %v13073_v11 }
 0x5ab   : > { %v13023_v8 = vpop.permute.xlu0 %3761  ;;  %v13025_v46 = vpop.permute.xlu1 %3872 }
 0x5af   : > { %v13027_v63 = vpop.permute.xlu0 %3812  ;;  %v13029_v45 = vpop.permute.xlu1 %3791 }
 0x5b0   : > { %v3999_v58 = vrot.slane %v13029_v45, %v13073_v11  ;;  %v4023_v45 = vrot.slane %v13017_v60, %v13073_v11  ;;  %v4027_v32 = vrot.slane %v13027_v63, %v13073_v11 }
 0x5b2   : > { %v4208_v60 = vsel %vm1384_vm14, %v3999_v58, %v4207_v33  ;;  %v4213_v37 = vsel %vm1378_vm12, %v4023_v45, %v4212_v0 }
 0x5b3   : > { %v13031_v24 = vpop.permute.xlu0 %3854  ;;  %v13033_v6 = vpop.permute.xlu1 %3833  ;;  %v4214_v29 = vsel %vm1381_vm13, %v4027_v32, %v4213_v37  ;;  %v16858_v32 = vmov 0.0  }
 0x5b4   : > { %v4083_v18 = vrot.slane %v13031_v24, %v13073_v11 }
 0x5b7   : > { %v13035_v52 = vpop.permute.xlu0 %3893  ;;  %v13037_v39 = vpop.permute.xlu1 %3875 }
 0x5b8   : > { %v4111_v24 = vrot.slane %v13037_v39, %v13073_v11 }
 0x5bb   : > { %v13039_v61 = vpop.permute.xlu0 %3764  ;;  %v13041_v41 = vpop.permute.xlu1 %3896 }
 0x5bc   : > { %v4139_v31 = vrot.slane %v13041_v41, %v13073_v11  ;;  %v4135_v41 = vrot.slane %v13035_v52, %v13073_v11 }
 0x5be   : > { %v4238_v52 = vsel %vm1369_vm9, %v4139_v31, %v4135_v41 }
 0x5bf   : > { %v13043_v20 = vpop.permute.xlu0 %3815  ;;  %v3795_v2 = vpop.permute.xlu1 %3794 }
 0x5c0   : > { %v4003_v21 = vrot.slane %v3795_v2, %v13073_v11  ;;  %v4075_v2 = vrot.slane %v13007_v49, %v13073_v11  ;;  %v4031_v50 = vrot.slane %v13043_v20, %v13073_v11  ;;  %v4051_v49 = vrot.slane %v13015_v25, %v13073_v11 }
 0x5c1   : > { %v3959_v20 = vrot.slane %v13023_v8, %v13073_v11  ;;  %v4218_v25 = vsel %vm1372_vm10, %v4047_v54, %v4217_v23  ;;  %v3963_v54 = vrot.slane %v13039_v61, %v13073_v11 }
 0x5c2   : > { %v13150_v14 = vsel %vm16821_vm15, %v4003_v21, %v4208_v60  ;;  %v4224_v34 = vsel %vm1369_vm9, %v4075_v2, %v4071_v62  ;;  %v4215_v58 = vsel %vm1384_vm14, %v4031_v50, %v4214_v29  ;;  %v4219_v28 = vsel %vm1375_vm11, %v4051_v49, %v4218_v25 }
 0x5c3   : > { %v13045_v38 = vpop.permute.xlu0 %3857  ;;  %v13047_v44 = vpop.permute.xlu1 %3836  ;;  %v4316_v8 = vrot.slane %v13150_v14, %v11902_v57  ;;  %v4225_v43 = vsel %vm1372_vm10, %v4079_v15, %v4224_v34  ;;  %v4199_v10 = vsel %vm1378_vm12, %v3959_v20, %v4198_v56 }
 0x5c4   : > { %v4087_v2 = vrot.slane %v13045_v38, %v13073_v11  ;;  %v4226_v33 = vsel %vm1375_vm11, %v4083_v18, %v4225_v43  ;;  %v4200_v0 = vsel %vm1381_vm13, %v3963_v54, %v4199_v10 }
 0x5c5   : > { %v4324_v39 = vcombine.high %v4316_v8, %v16858_v32  ;;  %v13199_v61 = vrot.slane %v4316_v8, %v11907_v48 }
 0x5c7   : > { %v13049_v47 = vpop.permute.xlu0 %3899  ;;  %v13051_v42 = vpop.permute.xlu1 %3878 }
 0x5c8   : > { %v4115_v15 = vrot.slane %v13051_v42, %v13073_v11 }
 0x5cb   : > { %v13053_v9 = vpop.permute.xlu0 %3920  ;;  %v13055_v53 = vpop.permute.xlu1 %3917 }
 0x5cc   : > { %v4171_v34 = vrot.slane %v13053_v9, %v13073_v11 }
 0x5cf   : > { %v13057_v59 = vpop.permute.xlu0 %3818  ;;  %v13059_v30 = vpop.permute.xlu1 %3767 }
 0x5d0   : > { %v4035_v63 = vrot.slane %v13057_v59, %v13073_v11  ;;  %v4107_v59 = vrot.slane %v13025_v46, %v13073_v11  ;;  %v4055_v46 = vrot.slane %v13033_v6, %v13073_v11  ;;  %v4059_v6 = vrot.slane %v13047_v44, %v13073_v11 }
 0x5d1   : > { %v4143_v44 = vrot.slane %v13049_v47, %v13073_v11  ;;  %v3967_v38 = vrot.slane %v13059_v30, %v13073_v11  ;;  %v4227_v47 = vsel %vm1378_vm12, %v4087_v2, %v4226_v33 }
 0x5d2   : > { %v4216_v21 = vsel %vm16821_vm15, %v4035_v63, %v4215_v58  ;;  %v4231_v62 = vsel %vm1369_vm9, %v4107_v59, %v4103_v17  ;;  %v4220_v60 = vsel %vm1378_vm12, %v4055_v46, %v4219_v28  ;;  %v4167_v59 = vrot.slane %v13055_v53, %v13073_v11 }
 0x5d3   : > { %v13061_v19 = vpop.permute.xlu0 %3860  ;;  %v13063_v35 = vpop.permute.xlu1 %3839  ;;  %v4365_v23 = vrot.slane %v4216_v21, %v11902_v57  ;;  %v4232_v50 = vsel %vm1372_vm10, %v4111_v24, %v4231_v62  ;;  %v4221_v37 = vsel %vm1381_vm13, %v4059_v6, %v4220_v60  ;;  %v4239_v25 = vsel %vm1372_vm10, %v4143_v44, %v4238_v52 }
 0x5d4   : > { %v4063_v49 = vrot.slane %v13063_v35, %v13073_v11  ;;  %v13226_v35 = vrot.slane %v4324_v39, %v11907_v48  ;;  %v4233_v17 = vsel %vm1375_vm11, %v4115_v15, %v4232_v50  ;;  %v4245_v54 = vsel %vm1369_vm9, %v4171_v34, %v4167_v59 }
 0x5d5   : > { %v4373_v20 = vcombine.high %v4365_v23, %v16858_v32  ;;  %v13249_v9 = vrot.slane %v4365_v23, %v11907_v48  ;;  %v13279_v2 = vcombine.high %v4216_v21, %v16858_v32 }
 0x5d6   : > { %v4222_v29 = vsel %vm1384_vm14, %v4063_v49, %v4221_v37 }
 0x5d7   : > { %v13065_v1 = vpop.permute.xlu0 %3902  ;;  %v13067_v40 = vpop.permute.xlu1 %3881  ;;  %v13263_v43 = vrot.slane %v4373_v20, %v11907_v48 }
 0x5d8   : > { %v4119_v42 = vrot.slane %v13067_v40, %v13073_v11  ;;  %v4091_v40 = vrot.slane %v13061_v19, %v13073_v11 }
 0x5da   : > { %v4234_v10 = vsel %vm1378_vm12, %v4119_v42, %v4233_v17 }
 0x5db   : > { %v13069_v16 = vpop.permute.xlu0 %3770  ;;  %v13075_v7 = vpop.permute.xlu1 %3923 }
 0x5dc   : > { %v3971_v63 = vrot.slane %v13069_v16, %v13073_v11  ;;  %v13230_v16 = vcombine.high %v13199_v61, %v16858_v32  ;;  %v4175_v19 = vrot.slane %v13075_v7, %v13073_v11  ;;  %v4228_v7 = vsel %vm1381_vm13, %v4091_v40, %v4227_v47 }
 0x5de   : > { %v4246_v21 = vsel %vm1372_vm10, %v4175_v19, %v4245_v54 }
 0x5df   : > { %v13079_v13 = vpop.permute.xlu0 %3863  ;;  %v13083_v36 = vpop.permute.xlu1 %3842 }
 0x5e0   : > { %v4067_v30 = vrot.slane %v13083_v36, %v13073_v11  ;;  %v4201_v36 = vsel %vm1384_vm14, %v3967_v38, %v4200_v0 }
 0x5e1   : > { %v13242_v56 = vsel %vm16821_vm15, %v3971_v63, %v4201_v36 }
 0x5e2   : > { %v13254_v28 = vsel %vm16821_vm15, %v4067_v30, %v4222_v29  ;;  %v4267_v24 = vrot.slane %v13242_v56, %v11902_v57 }
 0x5e3   : > { %v13100_v3 = vpop.permute.xlu0 %3905  ;;  %v13104_v5 = vpop.permute.xlu1 %3884 }
 0x5e4   : > { %v4123_v18 = vrot.slane %v13104_v5, %v13073_v11  ;;  %v4147_v5 = vrot.slane %v13065_v1, %v13073_v11  ;;  %v4414_v1 = vrot.slane %v13254_v28, %v11902_v57  ;;  %v4275_v41 = vcombine.high %v4267_v24, %v16858_v32 }
 0x5e5   : > { %v13302_v52 = vrot.slane %v4267_v24, %v11907_v48 }
 0x5e6   : > { %v4235_v62 = vsel %vm1381_vm13, %v4123_v18, %v4234_v10  ;;  %v4240_v39 = vsel %vm1375_vm11, %v4147_v5, %v4239_v25  ;;  %v4422_v50 = vcombine.high %v4414_v1, %v16858_v32  ;;  %v13315_v25 = vrot.slane %v4414_v1, %v11907_v48 }
 0x5e7   : > { %v13122_v27 = vpop.permute.xlu0 %3866  ;;  %v13131_v22 = vpop.permute.xlu1 %3926 }
 0x5e8   : > { %v4099_v31 = vrot.slane %v13122_v27, %v13073_v11  ;;  %v4179_v23 = vrot.slane %v13131_v22, %v13073_v11  ;;  %v10141_v27 = vpack.i.bf16 %v13263_v43, %v13226_v35  ;;  %v4151_v22 = vrot.slane %v13100_v3, %v13073_v11 }
 0x5eb   : > { %v13160_v26 = vpop.permute.xlu1 %3887  ;;  %v13162_v4 = vpop.permute.xlu0 %3908 }
 0x5ec   : > { %v4127_v53 = vrot.slane %v13160_v26, %v13073_v11  ;;  %v4095_v26 = vrot.slane %v13079_v13, %v13073_v11  ;;  %v4403_v13 = vcombine.high %v13249_v9, %v16858_v32  ;;  %v4155_v15 = vrot.slane %v13162_v4, %v13073_v11 }
 0x5ed   : > { %v4241_v4 = vsel %vm1378_vm12, %v4151_v22, %v4240_v39  ;;  %v4309_v39 = vcombine.high %v13150_v14, %v16858_v32  ;;  %v4372_v14 = vrot.slane %v13279_v2, %v11902_v57 }
 0x5ee   : > { %v4236_v33 = vsel %vm1384_vm14, %v4127_v53, %v4235_v62  ;;  %v4229_v44 = vsel %vm1384_vm14, %v4095_v26, %v4228_v7  ;;  %v4242_v17 = vsel %vm1381_vm13, %v4155_v15, %v4241_v4  ;;  %v10136_v1 = vpack.i.bf16 %v4403_v13, %v13230_v16 }
 0x5ef   : > { %v13187_v45 = vpop.permute.xlu1 %3929  ;;  %v3891_v12 = vpop.permute.xlu0 %3890  ;;  %v4230_v0 = vsel %vm16821_vm15, %v4099_v31, %v4229_v44  ;;  %v4452_v62 = vcombine.high %v13315_v25, %v16858_v32  ;;  %v4305_v16 = vcombine.high %v13302_v52, %v16858_v32  ;;  %v4323_v22 = vrot.slane %v4309_v39, %v11902_v57 }
 0x5f0   : > { %v4131_v46 = vrot.slane %v3891_v12, %v13073_v11  ;;  %v4183_v38 = vrot.slane %v13187_v45, %v13073_v11  ;;  %v4247_v45 = vsel %vm1375_vm11, %v4179_v23, %v4246_v21  ;;  %v4463_v34 = vrot.slane %v4230_v0, %v11902_v57 }
 0x5f1   : > { %v4456_v10 = vcombine.high %v4230_v0, %v16858_v32  ;;  %v4404_v4 = vcombine.high %v13263_v43, %v16858_v32  ;;  %v4355_v43 = vcombine.high %v13226_v35, %v16858_v32  ;;  %v4388_v35 = vcombine.high %v4372_v14, %v16858_v32 }
 0x5f2   : > { %v4237_v12 = vsel %vm16821_vm15, %v4131_v46, %v4236_v33  ;;  %v4248_v36 = vsel %vm1378_vm12, %v4183_v38, %v4247_v45  ;;  %v13342_v46 = vrot.slane %v4275_v41, %v11907_v48  ;;  %v4471_v19 = vcombine.high %v4463_v34, %v16858_v32 }
 0x5f3   : > { %v13215_v51 = vpop.permute.xlu1 %3911  ;;  %v3933_v8 = vpop.permute.xlu0 %3932  ;;  %v4512_v37 = vrot.slane %v4237_v12, %v11902_v57  ;;  %v4505_v40 = vcombine.high %v4237_v12, %v16858_v32  ;;  %v13366_v23 = vrot.slane %v4463_v34, %v11907_v48  ;;  %v13371_v13 = vrot.slane %v4456_v10, %v11902_v57 }
 0x5f4   : > { %v4187_v49 = vrot.slane %v3933_v8, %v13073_v11  ;;  %v4159_v42 = vrot.slane %v13215_v51, %v13073_v11  ;;  %v13330_v8 = vrot.slane %v4422_v50, %v11907_v48  ;;  %v4346_v34 = vrot.slane %v4323_v22, %v11907_v48 }
 0x5f5   : > { %v4520_v53 = vcombine.high %v4512_v37, %v16858_v32  ;;  %v13350_v26 = vrot.slane %v4512_v37, %v11907_v48  ;;  %v13357_v31 = vrot.slane %v4505_v40, %v11902_v57  ;;  %v4501_v0 = vcombine.high %v13366_v23, %v16858_v32 }
 0x5f6   : > { %v4249_v59 = vsel %vm1381_vm13, %v4187_v49, %v4248_v36  ;;  %v4243_v24 = vsel %vm1384_vm14, %v4159_v42, %v4242_v17  ;;  %v10156_v7 = vpack.i.bf16 %v13330_v8, %v13342_v46  ;;  %v4407_v37 = vcombine.high %v13254_v28, %v16858_v32 }
 0x5f7   : > { %v13246_v58 = vpop.permute.xlu1 %3914  ;;  %v3936_v60 = vpop.permute.xlu0 %3935  ;;  %v4534_v33 = vrot.slane %v4520_v53, %v11907_v48  ;;  %v4550_v21 = vcombine.high %v13350_v26, %v16858_v32  ;;  %v13387_v50 = vrot.slane %v13357_v31, %v11907_v48  ;;  %v4260_v36 = vcombine.high %v13242_v56, %v16858_v32 }
 0x5f8   : > { %v4191_v47 = vrot.slane %v3936_v60, %v13073_v11  ;;  %v4163_v29 = vrot.slane %v13246_v58, %v13073_v11  ;;  %v4485_v60 = vrot.slane %v4471_v19, %v11907_v48  ;;  %v10196_v10 = vpack.i.bf16 %v4404_v4, %v4355_v43 }
 0x5f9   : > { %v10151_v45 = vpack.i.bf16 %v4550_v21, %v4501_v0  ;;  %v4274_v53 = vrot.slane %v4260_v36, %v11902_v57  ;;  %v4551_v39 = vcombine.high %v4534_v33, %v16858_v32  ;;  %v4535_v36 = vcombine.high %v13357_v31, %v16858_v32 }
 0x5fa   : > { %v4250_v51 = vsel %vm1384_vm14, %v4191_v47, %v4249_v59  ;;  %v4244_v54 = vsel %vm16821_vm15, %v4163_v29, %v4243_v24  ;;  %v10166_v38 = vpack.i.bf16 %v4534_v33, %v4485_v60  ;;  %v4395_v47 = vrot.slane %v4372_v14, %v11907_v48 }
 0x5fb   : > { %v3939_v6 = vpop.permute.xlu1 %3938  ;;  %v4554_v12 = vcombine.high %v4244_v54, %v16858_v32  ;;  %v4561_v2 = vrot.slane %v4244_v54, %v11902_v57  ;;  %v4421_v59 = vrot.slane %v4407_v37, %v11902_v57  ;;  %v4297_v54 = vrot.slane %v4274_v53, %v11907_v48 }
 0x5fc   : > { %v4195_v3 = vrot.slane %v3939_v6, %v13073_v11  ;;  %v10161_v29 = vpack.i.bf16 %v4395_v47, %v4346_v34  ;;  %v4405_v17 = vcombine.high %v4395_v47, %v16858_v32  ;;  %v4453_v14 = vcombine.high %v13330_v8, %v16858_v32 }
 0x5fd   : > { %v13394_v49 = vrot.slane %v4554_v12, %v11902_v57  ;;  %v13418_v28 = vrot.slane %v4561_v2, %v11907_v48  ;;  %v4444_v19 = vrot.slane %v4421_v59, %v11907_v48  ;;  %v4569_v24 = vcombine.high %v4561_v2, %v16858_v32 }
 0x5fe   : > { %v4251_v5 = vsel %vm16821_vm15, %v4195_v3, %v4250_v51  ;;  %v4306_v33 = vcombine.high %v13342_v46, %v16858_v32  ;;  %v4437_v0 = vcombine.high %v4421_v59, %v16858_v32  ;;  %v4552_v8 = vcombine.high %v13387_v50, %v16858_v32 }
 0x5ff   : > { %v4977_v63 = vpop.permute.xlu1 %4976  ;;  %v4603_v6 = vcombine.high %v4251_v5, %v16858_v32  ;;  %v4610_v41 = vrot.slane %v4251_v5, %v11902_v57  ;;  %v13424_v42 = vrot.slane %v13394_v49, %v11907_v48  ;;  %v4599_v51 = vcombine.high %v13418_v28, %v16858_v32 }
 0x600   : > { %v4996_v30 = vsel %vm4978_vm1, 0, %v4977_v63  ;;  %v13400_v63 = vrot.slane %v13371_v13, %v11907_v48  ;;  %v4583_v12 = vrot.slane %v4569_v24, %v11907_v48  ;;  %v10201_v2 = vpack.i.bf16 %v4453_v14, %v4306_v33 }
 0x601   : > { %v13312_v20 = vsel %vm4997_vm2, %v4996_v30, 0  ;;  %v13383_v44 = vrot.slane %v4603_v6, %v11902_v57  ;;  %v13406_v30 = vrot.slane %v4610_v41, %v11907_v48  ;;  %v4618_v5 = vcombine.high %v4610_v41, %v16858_v32 }
 0x602   : > { %5146 = vrot.lane.b32.xlu1 %v13312_v20, %s16907_s2  ;;  %v10186_v15 = vpack.i.bf16 %v13387_v50, %v13400_v63  ;;  %v4454_v37 = vcombine.high %v4444_v19, %v16858_v32  ;;  %v4290_v47 = vcombine.high %v4274_v53, %v16858_v32  ;;  %v4307_v46 = vcombine.high %v4297_v54, %v16858_v32 }
 0x603   : > { %v13327_v18 = vpop.permute.xlu1 %5056  ;;  %v13412_v3 = vrot.slane %v13383_v44, %v11907_v48  ;;  %v4648_v40 = vcombine.high %v13406_v30, %v16858_v32  ;;  %v4633_v31 = vcombine.high %v13383_v44, %v16858_v32  ;;  %vm4929_vm15 = vcmask 457728  }
 0x604   : > { %vm16820_vm3 = vcmp.ne.s16.totalorder %v13327_v18, 0  ;;  %v10221_v50 = vpack.i.bf16 %v4454_v37, %v4307_v46 }
 0x605   : > { %v5067_v58 = vsel %vm16820_vm3, %v13312_v20, 0  ;;  %v10191_v56 = vpack.i.bf16 %v13412_v3, %v13424_v42  ;;  %v4647_v24 = vrot.slane %v4633_v31, %v11907_v48  ;;  %vm4920_vm3 = vcmask 392192  }
 0x606   : > { %5173 = vrot.lane.b32.xlu0 %v5067_v58, %s16898_s20  ;;  %10142 = vrot.lane.b32.xlu1 %v10141_v27, %s16980_s29  ;;  %v10146_v27 = vpack.i.bf16 %v4452_v62, %v4305_v16  ;;  %v10171_v58 = vpack.i.bf16 %v4648_v40, %v4599_v51  ;;  %v10176_v62 = vpack.i.bf16 %v4444_v19, %v4297_v54 }
 0x607   : > { %v4339_v16 = vcombine.high %v4323_v22, %v16858_v32  ;;  %v4304_v40 = vrot.slane %v4290_v47, %v11907_v48 }
 0x609   : > { %v4353_v22 = vrot.slane %v4339_v16, %v11907_v48 }
 0x60a   : > { %10137 = vrot.lane.b32.xlu0 %v10136_v1, %s16985_s1  ;;  %10157 = vrot.lane.b32.xlu1 %v10156_v7, %s16980_s29  ;;  %v4356_v1 = vcombine.high %v4346_v34, %v16858_v32  ;;  %v4632_v7 = vrot.slane %v4618_v5, %v11907_v48  ;;  %v4451_v34 = vrot.slane %v4437_v0, %v11907_v48 }
 0x60b   : > { %v4308_v5 = vcombine.high %v4304_v40, %v16858_v32 }
 0x60c   : > { %v10206_v6 = vpack.i.bf16 %v4405_v17, %v4356_v1  ;;  %v10181_v21 = vpack.i.bf16 %v4632_v7, %v4583_v12  ;;  %v4649_v59 = vcombine.high %v4632_v7, %v16858_v32  ;;  %v4455_v43 = vcombine.high %v4451_v34, %v16858_v32 }
 0x60d   : > { %v4549_v17 = vrot.slane %v4535_v36, %v11907_v48  ;;  %v4601_v7 = vcombine.high %v13424_v42, %v16858_v32 }
 0x60e   : > { %10147 = vrot.lane.b32.xlu0 %v10146_v27, %s16985_s1  ;;  %10167 = vrot.lane.b32.xlu1 %v10166_v38, %s16980_s29  ;;  %v4502_v27 = vcombine.high %v4485_v60, %v16858_v32  ;;  %v4402_v38 = vrot.slane %v4388_v35, %v11907_v48  ;;  %v10261_v19 = vpack.i.bf16 %v4455_v43, %v4308_v5 }
 0x60f   : > { %v4553_v44 = vcombine.high %v4549_v17, %v16858_v32 }
 0x610   : > { %v10211_v41 = vpack.i.bf16 %v4551_v39, %v4502_v27  ;;  %v10216_v60 = vpack.i.bf16 %v4402_v38, %v4353_v22  ;;  %v13507_v27 = vpop.permute.xlu0 %5073 }
 0x611   : > { %vm16816_vm5 = vcmp.ne.s16.totalorder %v13507_v27, 0 }
 0x612   : > { %10152 = vrot.lane.b32.xlu0 %v10151_v45, %s16985_s1  ;;  %10187 = vrot.lane.b32.xlu1 %v10186_v15, %s16986_s3  ;;  %v4503_v45 = vcombine.high %v13400_v63, %v16858_v32  ;;  %v4406_v15 = vcombine.high %v4402_v38, %v16858_v32  ;;  %v4600_v63 = vcombine.high %v4583_v12, %v16858_v32 }
 0x614   : > { %v10231_v4 = vpack.i.bf16 %v4552_v8, %v4503_v45  ;;  %v10226_v51 = vpack.i.bf16 %v4649_v59, %v4600_v63  ;;  %v13519_v42 = vpop.permute.xlu0 %5097 }
 0x615   : > { %vm16818_vm0 = vcmp.ne.s16.totalorder %v13519_v42, 0 }
 0x616   : > { %10162 = vrot.lane.b32.xlu0 %v10161_v29, %s16986_s3  ;;  %10192 = vrot.lane.b32.xlu1 %v10191_v56, %s16986_s3  ;;  %v4357_v29 = vcombine.high %v4353_v22, %v16858_v32  ;;  %v4486_v56 = vcombine.high %v13371_v13, %v16858_v32  ;;  %v4584_v13 = vcombine.high %v13394_v49, %v16858_v32  ;;  %v5108_v33 = vsel %vm16818_vm0, %v13312_v20, 0 }
 0x617   : > { %vm4893_vm0 = vcmask 195584  }
 0x618   : > { %v10256_v53 = vpack.i.bf16 %v4406_v15, %v4357_v29  ;;  %v4598_v49 = vrot.slane %v4584_v13, %v11907_v48 }
 0x61a   : > { %10172 = vrot.lane.b32.xlu0 %v10171_v58, %s16985_s1  ;;  %10197 = vrot.lane.b32.xlu1 %v10196_v10, %s10499_s30  ;;  %v4500_v58 = vrot.slane %v4486_v56, %v11907_v48  ;;  %v10236_v10 = vpack.i.bf16 %v4451_v34, %v4304_v40  ;;  %v4602_v39 = vcombine.high %v4598_v49, %v16858_v32 }
 0x61c   : > { %v4504_v54 = vcombine.high %v4500_v58, %v16858_v32  ;;  %v10241_v1 = vpack.i.bf16 %v4549_v17, %v4500_v58 }
 0x61e   : > { %10177 = vrot.lane.b32.xlu0 %v10176_v62, %s16986_s3  ;;  %10207 = vrot.lane.b32.xlu1 %v10206_v6, %s10500_s23  ;;  %s10501_s3 = smov 48   ;;  %v10266_v35 = vpack.i.bf16 %v4553_v44, %v4504_v54  ;;  %v4650_v62 = vcombine.high %v13412_v3, %v16858_v32  ;;  %v4651_v6 = vcombine.high %v4647_v24, %v16858_v32  ;;  %v13511_v3 = vpop.permute.xlu1 %5085 }
 0x61f   : > { %vm16819_vm8 = vcmp.ne.s16.totalorder %v13511_v3, 0 }
 0x620   : > { %v10246_v16 = vpack.i.bf16 %v4650_v62, %v4601_v7  ;;  %v10271_v12 = vpack.i.bf16 %v4651_v6, %v4602_v39  ;;  %v5096_v14 = vsel %vm16819_vm8, %v13312_v20, 0  ;;  %vm4911_vm8 = vcmask 326656  }
 0x622   : > { %10182 = vrot.lane.b32.xlu0 %v10181_v21, %s16980_s29  ;;  %10212 = vrot.lane.b32.xlu1 %v10211_v41, %s10499_s30  ;;  %s10502_s29 = smov 56   ;;  %v10251_v21 = vpack.i.bf16 %v4647_v24, %v4598_v49  ;;  %v5084_v41 = vsel %vm16816_vm5, %v13312_v20, 0  ;;  %v13528_v38 = vpop.permute.xlu1 %5109 }
 0x623   : > { %vm16817_vm5 = vcmp.ne.s16.totalorder %v13528_v38, 0 }
 0x624   : > { %v5120_v22 = vsel %vm16817_vm5, %v13312_v20, 0  ;;  %vm4876_vm5 = vcmask 64512  }
 0x626   : > { %10202 = vrot.lane.b32.xlu0 %v10201_v2, %s10499_s30  ;;  %10217 = vrot.lane.b32.xlu1 %v10216_v60, %s10501_s3 }
 0x62a   : > { %10222 = vrot.lane.b32.xlu0 %v10221_v50, %s10500_s23  ;;  %10232 = vrot.lane.b32.xlu1 %v10231_v4, %s10500_s23 }
 0x62e   : > { %10227 = vrot.lane.b32.xlu0 %v10226_v51, %s10499_s30  ;;  %10257 = vrot.lane.b32.xlu1 %v10256_v53, %s10502_s29  ;;  %s16987_s30 = smov 118  }
 0x632   : > { %10237 = vrot.lane.b32.xlu0 %v10236_v10, %s10501_s3  ;;  %10262 = vrot.lane.b32.xlu1 %v10261_v19, %s10502_s29 }
 0x636   : > { %10242 = vrot.lane.b32.xlu0 %v10241_v1, %s10501_s3  ;;  %10267 = vrot.lane.b32.xlu1 %v10266_v35, %s10502_s29 }
 0x63a   : > { %10247 = vrot.lane.b32.xlu0 %v10246_v16, %s10500_s23  ;;  %10272 = vrot.lane.b32.xlu1 %v10271_v12, %s10502_s29  ;;  %s16822_s23 = smov 119   ;;  %s16989_s29 = smov 110  }
 0x63e   : > { %10252 = vrot.lane.b32.xlu0 %v10251_v21, %s10501_s3  ;;  %5200 = vrot.lane.b32.xlu1 %v5084_v41, %s16900_s28  ;;  %s16988_s3 = smov 111  }
 0x642   : > { %5218 = vrot.lane.b32.xlu0 %v13312_v20, %s16822_s23  ;;  %5245 = vrot.lane.b32.xlu1 %v5096_v14, %s16987_s30  ;;  %s16990_s23 = smov 9  }
 0x646   : > { %5290 = vrot.lane.b32.xlu1 %v13312_v20, %s16988_s3  ;;  %5272 = vrot.lane.b32.xlu0 %v5108_v33, %s16897_s26 }
 0x64a   : > { %5317 = vrot.lane.b32.xlu0 %v5120_v22, %s16989_s29 }
 0x674   : > { %v13541_v0 = vpop.permute.xlu1 %5146 }
 0x678   : > { %v10143_v2 = vpop.permute.xlu1 %10142  ;;  %v13543_v60 = vpop.permute.xlu0 %5173 }
 0x679   : > { %v10145_v17 = vunpack.i.h.bf16 %v10143_v2  ;;  %v10144_v13 = vunpack.i.l.bf16 %v10143_v2 }
 0x67c   : > { %v10158_v37 = vpop.permute.xlu1 %10157  ;;  %v10138_v8 = vpop.permute.xlu0 %10137 }
 0x67d   : > { %v10140_v56 = vunpack.i.h.bf16 %v10138_v8  ;;  %v10139_v63 = vunpack.i.l.bf16 %v10138_v8  ;;  %v10160_v49 = vunpack.i.h.bf16 %v10158_v37  ;;  %v10159_v1 = vunpack.i.l.bf16 %v10158_v37 }
 0x67f   : > { %v4879_v5 = vsel %vm4876_vm5, %v13249_v9, %v10140_v56  ;;  %v4878_v58 = vsel %vm4876_vm5, %v13199_v61, %v10139_v63 }
 0x680   : > { %v10168_v47 = vpop.permute.xlu1 %10167  ;;  %v10148_v46 = vpop.permute.xlu0 %10147  ;;  %v4886_v7 = vsel %vm757_vm6, %v4878_v58, %v10144_v13 }
 0x681   : > { %v10150_v40 = vunpack.i.h.bf16 %v10148_v46  ;;  %v10149_v53 = vunpack.i.l.bf16 %v10148_v46  ;;  %v10170_v6 = vunpack.i.h.bf16 %v10168_v47  ;;  %v10169_v61 = vunpack.i.l.bf16 %v10168_v47 }
 0x683   : > { %v4880_v19 = vsel %vm4876_vm5, %v13315_v25, %v10150_v40  ;;  %v4877_v44 = vsel %vm4876_vm5, %v13302_v52, %v10149_v53  ;;  %v4887_v25 = vsel %vm757_vm6, %v4879_v5, %v10145_v17 }
 0x684   : > { %v13545_v45 = vpop.permute.xlu1 %10187  ;;  %v10153_v15 = vpop.permute.xlu0 %10152  ;;  %v4885_v16 = vsel %vm757_vm6, %v4877_v44, %v10159_v1  ;;  %v4888_v12 = vsel %vm757_vm6, %v4880_v19, %v10160_v49 }
 0x685   : > { %v10154_v31 = vunpack.i.l.bf16 %v10153_v15  ;;  %v10155_v10 = vunpack.i.h.bf16 %v10153_v15  ;;  %v10190_v39 = vunpack.i.h.bf16 %v13545_v45 }
 0x687   : > { %v4881_v35 = vsel %vm4876_vm5, %v13366_v23, %v10154_v31  ;;  %v4882_v52 = vsel %vm4876_vm5, %v13350_v26, %v10155_v10  ;;  %v10189_v23 = vunpack.i.l.bf16 %v13545_v45 }
 0x688   : > { %v13547_v34 = vpop.permute.xlu1 %10192  ;;  %v10163_v36 = vpop.permute.xlu0 %10162  ;;  %v4889_v14 = vsel %vm757_vm6, %v4881_v35, %v10169_v61  ;;  %v4890_v46 = vsel %vm757_vm6, %v4882_v52, %v10170_v6 }
 0x689   : > { %v10165_v33 = vunpack.i.h.bf16 %v10163_v36  ;;  %v10164_v22 = vunpack.i.l.bf16 %v10163_v36 }
 0x68c   : > { %v10198_v50 = vpop.permute.xlu1 %10197  ;;  %v13549_v4 = vpop.permute.xlu0 %10172 }
 0x68d   : > { %v10200_v24 = vunpack.i.h.bf16 %v10198_v50  ;;  %v10199_v54 = vunpack.i.l.bf16 %v10198_v50  ;;  %v10175_v26 = vunpack.i.h.bf16 %v13549_v4  ;;  %v10174_v45 = vunpack.i.l.bf16 %v13549_v4 }
 0x68f   : > { %v4895_v21 = vsel %vm4893_vm0, %v4886_v7, %v10199_v54  ;;  %v4896_v41 = vsel %vm4893_vm0, %v4887_v25, %v10200_v24 }
 0x690   : > { %v10208_v59 = vpop.permute.xlu1 %10207  ;;  %v13551_v29 = vpop.permute.xlu0 %10177  ;;  %v4904_v56 = vsel %vm805_vm4, %v4895_v21, %v10164_v22  ;;  %v4905_v63 = vsel %vm805_vm4, %v4896_v41, %v10165_v33 }
 0x691   : > { %v10210_v2 = vunpack.i.h.bf16 %v10208_v59  ;;  %v10209_v37 = vunpack.i.l.bf16 %v10208_v59  ;;  %v10180_v36 = vunpack.i.h.bf16 %v13551_v29  ;;  %v10179_v5 = vunpack.i.l.bf16 %v13551_v29 }
 0x693   : > { %v4913_v17 = vsel %vm4911_vm8, %v4904_v56, %v10209_v37  ;;  %v4914_v13 = vsel %vm4911_vm8, %v4905_v63, %v10210_v2 }
 0x694   : > { %v13553_v51 = vpop.permute.xlu1 %10212  ;;  %v13555_v43 = vpop.permute.xlu0 %10182 }
 0x695   : > { %v10215_v59 = vunpack.i.h.bf16 %v13553_v51  ;;  %v10214_v53 = vunpack.i.l.bf16 %v13553_v51  ;;  %v10185_v58 = vunpack.i.h.bf16 %v13555_v43  ;;  %v10184_v1 = vunpack.i.l.bf16 %v13555_v43 }
 0x697   : > { %v4899_v29 = vsel %vm4893_vm0, %v4890_v46, %v10215_v59 }
 0x698   : > { %v10218_v62 = vpop.permute.xlu1 %10217  ;;  %v10203_v9 = vpop.permute.xlu0 %10202 }
 0x699   : > { %v10205_v15 = vunpack.i.h.bf16 %v10203_v9  ;;  %v10204_v50 = vunpack.i.l.bf16 %v10203_v9  ;;  %v10219_v40 = vunpack.i.l.bf16 %v10218_v62  ;;  %v10220_v31 = vunpack.i.h.bf16 %v10218_v62 }
 0x69a   : > { %v4898_v9 = vsel %vm4893_vm0, %v4889_v14, %v10214_v53 }
 0x69b   : > { %v4894_v44 = vsel %vm4893_vm0, %v4885_v16, %v10204_v50  ;;  %v4897_v24 = vsel %vm4893_vm0, %v4888_v12, %v10205_v15  ;;  %v4922_v51 = vsel %vm4920_vm3, %v4913_v17, %v10219_v40  ;;  %v4923_v6 = vsel %vm4920_vm3, %v4914_v13, %v10220_v31 }
 0x69c   : > { %v13578_v8 = vpop.permute.xlu1 %10232  ;;  %v10223_v47 = vpop.permute.xlu0 %10222  ;;  %v4903_v7 = vsel %vm805_vm4, %v4894_v44, %v10179_v5  ;;  %v4906_v25 = vsel %vm805_vm4, %v4897_v24, %v10180_v36  ;;  %v4907_v46 = vsel %vm805_vm4, %v4898_v9, %v10189_v23  ;;  %v4908_v15 = vsel %vm805_vm4, %v4899_v29, %v10190_v39 }
 0x69d   : > { %v10225_v35 = vunpack.i.h.bf16 %v10223_v47  ;;  %v10224_v62 = vunpack.i.l.bf16 %v10223_v47  ;;  %v10235_v14 = vunpack.i.h.bf16 %v13578_v8  ;;  %v10234_v2 = vunpack.i.l.bf16 %v13578_v8 }
 0x69e   : > { %v4883_v24 = vsel %vm4876_vm5, %v13418_v28, %v10174_v45 }
 0x69f   : > { %v4912_v37 = vsel %vm4911_vm8, %v4903_v7, %v10224_v62  ;;  %v4915_v47 = vsel %vm4911_vm8, %v4906_v25, %v10225_v35  ;;  %v4916_v23 = vsel %vm4911_vm8, %v4907_v46, %v10234_v2  ;;  %v4917_v39 = vsel %vm4911_vm8, %v4908_v15, %v10235_v14 }
 0x6a0   : > { %v10258_v10 = vpop.permute.xlu1 %10257  ;;  %v10228_v19 = vpop.permute.xlu0 %10227  ;;  %v4891_v35 = vsel %vm757_vm6, %v4883_v24, %v10184_v1  ;;  %v10194_v1 = vunpack.i.l.bf16 %v13547_v34 }
 0x6a1   : > { %v10260_v54 = vunpack.i.h.bf16 %v10258_v10  ;;  %v10259_v49 = vunpack.i.l.bf16 %v10258_v10  ;;  %v10229_v63 = vunpack.i.l.bf16 %v10228_v19  ;;  %v10230_v10 = vunpack.i.h.bf16 %v10228_v19 }
 0x6a3   : > { %v4931_v61 = vsel %vm4929_vm15, %v4922_v51, %v10259_v49  ;;  %v4932_v43 = vsel %vm4929_vm15, %v4923_v6, %v10260_v54  ;;  %v4884_v51 = vsel %vm4876_vm5, %v13406_v30, %v10175_v26  ;;  %v4900_v28 = vsel %vm4893_vm0, %v4891_v35, %v10229_v63 }
 0x6a4   : > { %v10263_v52 = vpop.permute.xlu1 %10262  ;;  %v10238_v16 = vpop.permute.xlu0 %10237  ;;  %v4939_v12 = vpack.c.bf16 %v4931_v61, %v4931_v61  ;;  %v4940_v59 = vpack.c.bf16 %v4932_v43, %v4932_v43  ;;  %v4892_v29 = vsel %vm757_vm6, %v4884_v51, %v10185_v58  ;;  %v10195_v26 = vunpack.i.h.bf16 %v13547_v34 }
 0x6a5   : > { %v10265_v21 = vunpack.i.h.bf16 %v10263_v52  ;;  %v10264_v41 = vunpack.i.l.bf16 %v10263_v52  ;;  %v10240_v33 = vunpack.i.h.bf16 %v10238_v16  ;;  %v10239_v22 = vunpack.i.l.bf16 %v10238_v16 }
 0x6a6   : > { %4962 = vrot.lane.b32.xlu0 %v4939_v12, %s16990_s23  ;;  %v4901_v6 = vsel %vm4893_vm0, %v4892_v29, %v10230_v10  ;;  %v4909_v52 = vsel %vm805_vm4, %v4900_v28, %v10194_v1  ;;  %v5047_v63 = vsel %vm12956_vm7, %v13312_v20, 0  ;;  %vm16999_vm0 = vcmp.ne.s16.totalorder %v13507_v27, 0 }
 0x6a7   : > { %v4921_v50 = vsel %vm4920_vm3, %v4912_v37, %v10239_v22  ;;  %v4924_v56 = vsel %vm4920_vm3, %v4915_v47, %v10240_v33  ;;  %v4910_v16 = vsel %vm805_vm4, %v4901_v6, %v10195_v26 }
 0x6a8   : > { %v10268_v40 = vpop.permute.xlu1 %10267  ;;  %v10243_v36 = vpop.permute.xlu0 %10242  ;;  %v4930_v8 = vsel %vm4929_vm15, %v4921_v50, %v10264_v41  ;;  %v4933_v53 = vsel %vm4929_vm15, %v4924_v56, %v10265_v21 }
 0x6a9   : > { %v10270_v31 = vunpack.i.h.bf16 %v10268_v40  ;;  %v10269_v17 = vunpack.i.l.bf16 %v10268_v40  ;;  %v10245_v13 = vunpack.i.h.bf16 %v10243_v36  ;;  %v10244_v5 = vunpack.i.l.bf16 %v10243_v36 }
 0x6aa   : > { %4964 = vrot.lane.b32.xlu0 %v4940_v59, %s16990_s23  ;;  %v4938_v44 = vpack.c.bf16 %v4930_v8, %v4930_v8  ;;  %v4941_v62 = vpack.c.bf16 %v4933_v53, %v4933_v53  ;;  %v13660_v59 = vunpack.c.l.b16 %v5047_v63 }
 0x6ab   : > { %v4925_v54 = vsel %vm4920_vm3, %v4916_v23, %v10244_v5  ;;  %v4926_v49 = vsel %vm4920_vm3, %v4917_v39, %v10245_v13 }
 0x6ac   : > { %4960 = vrot.lane.b32.xlu1 %v4938_v44, %s16990_s23  ;;  %v10248_v19 = vpop.permute.xlu0 %10247  ;;  %v4934_v9 = vsel %vm4929_vm15, %v4925_v54, %v10269_v17  ;;  %v4935_v45 = vsel %vm4929_vm15, %v4926_v49, %v10270_v31  ;;  %v10273_v7 = vpop.permute.xlu1 %10272  ;;  %v5432_v13 = vrot.slane %v13660_v59, 7  ;;  %v5434_v23 = vrot.slane %v13660_v59, 6 }
 0x6ad   : > { %v10250_v4 = vunpack.i.h.bf16 %v10248_v19  ;;  %v10249_v61 = vunpack.i.l.bf16 %v10248_v19  ;;  %v4942_v30 = vpack.c.bf16 %v4934_v9, %v4934_v9  ;;  %v4943_v58 = vpack.c.bf16 %v4935_v45, %v4935_v45 }
 0x6ae   : > { %4966 = vrot.lane.b32.xlu0 %v4941_v62, %s16990_s23  ;;  %v10275_v21 = vunpack.i.h.bf16 %v10273_v7  ;;  %v10274_v41 = vunpack.i.l.bf16 %v10273_v7  ;;  %v5433_v44 = vsel %vm1369_vm9, %v5432_v13, %v13660_v59  ;;  %v5436_v6 = vrot.slane %v13660_v59, 5 }
 0x6af   : > { %v4918_v33 = vsel %vm4911_vm8, %v4909_v52, %v10249_v61  ;;  %v4919_v22 = vsel %vm4911_vm8, %v4910_v16, %v10250_v4  ;;  %v5435_v9 = vsel %vm1372_vm10, %v5434_v23, %v5433_v44 }
 0x6b0   : > { %4968 = vrot.lane.b32.xlu1 %v4942_v30, %s16990_s23  ;;  %v10253_v25 = vpop.permute.xlu0 %10252  ;;  %v13649_v50 = vpop.permute.xlu1 %5200 }
 0x6b1   : > { %v10255_v12 = vunpack.i.h.bf16 %v10253_v25  ;;  %v10254_v43 = vunpack.i.l.bf16 %v10253_v25 }
 0x6b2   : > { %4970 = vrot.lane.b32.xlu0 %v4943_v58, %s16990_s23  ;;  %v5437_v58 = vsel %vm1375_vm11, %v5436_v6, %v5435_v9 }
 0x6b3   : > { %v4927_v34 = vsel %vm4920_vm3, %v4918_v33, %v10254_v43  ;;  %v4928_v14 = vsel %vm4920_vm3, %v4919_v22, %v10255_v12  ;;  %v5438_v12 = vrot.slane %v13660_v59, 4 }
 0x6b4   : > { %v4937_v2 = vsel %vm4929_vm15, %v4928_v14, %v10275_v21  ;;  %v4936_v37 = vsel %vm4929_vm15, %v4927_v34, %v10274_v41  ;;  %v13647_v15 = vpop.permute.xlu0 %5218  ;;  %v13656_v40 = vpop.permute.xlu1 %5245  ;;  %vm16992_vm15 = vcmask 1047559  }
 0x6b5   : > { %v4945_v47 = vpack.c.bf16 %v4937_v2, %v4937_v2  ;;  %v4944_v46 = vpack.c.bf16 %v4936_v37, %v4936_v37  ;;  %v5439_v34 = vsel %vm1378_vm12, %v5438_v12, %v5437_v58 }
 0x6b7   : > { %4974 = vrot.lane.b32.xlu1 %v4945_v47, %s16990_s23  ;;  %4972 = vrot.lane.b32.xlu0 %v4944_v46, %s16990_s23  ;;  %v5440_v47 = vrot.slane %v13660_v59, 3  ;;  %s16991_s23 = smov 119  }
 0x6b8   : > { %v13651_v56 = vpop.permute.xlu0 %5272  ;;  %v13663_v31 = vpop.permute.xlu1 %5290 }
 0x6b9   : > { %v5441_v13 = vsel %vm1381_vm13, %v5440_v47, %v5439_v34 }
 0x6bc   : > { %v13658_v36 = vpop.permute.xlu0 %5317 }
 0x718   : > { %v4963_v8 = vpop.permute.xlu0 %4962 }
 0x719   : > { %v4982_v53 = vsel %vm4978_vm1, 0, %v4963_v8 }
 0x71a   : > { %v13666_v17 = vsel %vm4997_vm2, %v4982_v53, 0 }
 0x71b   : > { %5132 = vrot.lane.b32.xlu0 %v13666_v17, %s16907_s2  ;;  %v5040_v54 = vsel %vm12956_vm7, %v13666_v17, 0  ;;  %v5077_v12 = vsel %vm16999_vm0, %v13666_v17, 0 }
 0x71c   : > { %v4965_v20 = vpop.permute.xlu0 %4964  ;;  %v5338_v45 = vunpack.c.l.b16 %v5040_v54 }
 0x71d   : > { %v4984_v5 = vsel %vm4978_vm1, 0, %v4965_v20 }
 0x71e   : > { %v13674_v39 = vsel %vm4997_vm2, %v4984_v5, 0  ;;  %v4961_v10 = vpop.permute.xlu1 %4960  ;;  %v5418_v21 = vrot.slane %v5338_v45, 7 }
 0x71f   : > { %v4980_v24 = vsel %vm4978_vm1, 0, %v4961_v10  ;;  %5134 = vrot.lane.b32.xlu0 %v13674_v39, %s16907_s2  ;;  %v5041_v35 = vsel %vm12956_vm7, %v13674_v39, 0 }
 0x720   : > { %v13685_v49 = vsel %vm4997_vm2, %v4980_v24, 0  ;;  %v4967_v51 = vpop.permute.xlu0 %4966  ;;  %v5339_v30 = vunpack.c.l.b16 %v5041_v35 }
 0x721   : > { %5130 = vrot.lane.b32.xlu1 %v13685_v49, %s16907_s2  ;;  %v4986_v19 = vsel %vm4978_vm1, 0, %v4967_v51  ;;  %v5039_v62 = vsel %vm12956_vm7, %v13685_v49, 0 }
 0x722   : > { %v13698_v29 = vsel %vm4997_vm2, %v4986_v19, 0  ;;  %v4969_v28 = vpop.permute.xlu1 %4968  ;;  %v5337_v7 = vunpack.c.l.b16 %v5039_v62  ;;  %v5420_v22 = vrot.slane %v5339_v30, 6  ;;  %v5442_v62 = vrot.slane %v13660_v59, 2 }
 0x723   : > { %v4988_v4 = vsel %vm4978_vm1, 0, %v4969_v28  ;;  %5136 = vrot.lane.b32.xlu0 %v13698_v29, %s16907_s2  ;;  %v5042_v61 = vsel %vm12956_vm7, %v13698_v29, 0 }
 0x724   : > { %v13708_v26 = vsel %vm4997_vm2, %v4988_v4, 0  ;;  %v4971_v1 = vpop.permute.xlu0 %4970  ;;  %v5340_v25 = vunpack.c.l.b16 %v5042_v61  ;;  %v5419_v2 = vsel %vm1369_vm9, %v5418_v21, %v5337_v7  ;;  %v5443_v6 = vsel %vm1384_vm14, %v5442_v62, %v5441_v13 }
 0x725   : > { %5138 = vrot.lane.b32.xlu1 %v13708_v26, %s16907_s2  ;;  %v4990_v52 = vsel %vm4978_vm1, 0, %v4971_v1  ;;  %v5043_v16 = vsel %vm12956_vm7, %v13708_v26, 0  ;;  %v5421_v23 = vsel %vm1372_vm10, %v5420_v22, %v5419_v2  ;;  %v5444_v4 = vrot.slane %v13660_v59, 1 }
 0x726   : > { %v13719_v43 = vsel %vm4997_vm2, %v4990_v52, 0  ;;  %v5341_v33 = vunpack.c.l.b16 %v5043_v16  ;;  %v5422_v37 = vrot.slane %v5340_v25, 5  ;;  %v16994_v25 = vmov 0  }
 0x727   : > { %5140 = vrot.lane.b32.xlu0 %v13719_v43, %s16907_s2  ;;  %v5044_v41 = vsel %vm12956_vm7, %v13719_v43, 0  ;;  %v5076_v2 = vsel %vm16999_vm0, %v13685_v49, 0 }
 0x728   : > { %v5342_v14 = vunpack.c.l.b16 %v5044_v41  ;;  %v5424_v10 = vrot.slane %v5341_v33, 4  ;;  %v5423_v54 = vsel %vm1375_vm11, %v5422_v37, %v5421_v23 }
 0x729   : > { %v4975_v46 = vpop.permute.xlu1 %4974  ;;  %v4973_v63 = vpop.permute.xlu0 %4972 }
 0x72a   : > { %v4994_v8 = vsel %vm4978_vm1, 0, %v4975_v46  ;;  %v4992_v53 = vsel %vm4978_vm1, 0, %v4973_v63  ;;  %v5426_v51 = vrot.slane %v5342_v14, 3  ;;  %v5425_v9 = vsel %vm1378_vm12, %v5424_v10, %v5423_v54 }
 0x72b   : > { %v13733_v20 = vsel %vm4997_vm2, %v4994_v8, 0  ;;  %v13736_v5 = vsel %vm4997_vm2, %v4992_v53, 0  ;;  %5206 = vrot.lane.b32.xlu0 %v13674_v39, %s16991_s23  ;;  %vm16995_vm1 = vcmp.ne.s16.totalorder %v13327_v18, 0 }
 0x72c   : > { %5142 = vrot.lane.b32.xlu1 %v13736_v5, %s16907_s2  ;;  %v5045_v44 = vsel %vm12956_vm7, %v13736_v5, 0  ;;  %v5046_v24 = vsel %vm12956_vm7, %v13733_v20, 0  ;;  %v5427_v55 = vsel %vm1381_vm13, %v5426_v51, %v5425_v9  ;;  %vm16993_vm7 = vmmov %vm16992_vm15  ;;  %v5061_v59 = vsel %vm16995_vm1, %v13674_v39, 0 }
 0x72d   : > { %v5343_v35 = vunpack.c.l.b16 %v5045_v44  ;;  %v5344_v19 = vunpack.c.l.b16 %v5046_v24  ;;  %v5445_v1 = vsel %vm16993_vm7, %v5444_v4, %v5443_v6  ;;  %vm16996_vm2 = vmmov %vm16995_vm1  ;;  %v5064_v33 = vsel %vm16995_vm1, %v13719_v43, 0 }
 0x72e   : > { %v5059_v58 = vsel %vm16996_vm2, %v13685_v49, 0  ;;  %vm16997_vm3 = vmmov %vm16995_vm1 }
 0x72f   : > { %5202 = vrot.lane.b32.xlu0 %v13685_v49, %s16991_s23  ;;  %v5428_v28 = vrot.slane %v5343_v35, 2  ;;  %v5430_v45 = vrot.slane %v5344_v19, 1  ;;  %v5063_v52 = vsel %vm16997_vm3, %v13708_v26, 0  ;;  %vm16998_vm8 = vmmov %vm16995_vm1 }
 0x730   : > { %5144 = vrot.lane.b32.xlu1 %v13733_v20, %s16907_s2  ;;  %v5060_v16 = vsel %vm16998_vm8, %v13666_v17, 0  ;;  %vm17001_vm7 = vmmov %vm16995_vm1 }
 0x731   : > { %v5429_v61 = vsel %vm1384_vm14, %v5428_v28, %v5427_v55  ;;  %v5065_v41 = vsel %vm17001_vm7, %v13736_v5, 0  ;;  %vm17002_vm2 = vmmov %vm16995_vm1 }
 0x732   : > { %v5431_v30 = vsel %vm16992_vm15, %v5430_v45, %v5429_v61  ;;  %vm17000_vm15 = vmmov %vm16995_vm1  ;;  %v5066_v22 = vsel %vm17002_vm2, %v13733_v20, 0  ;;  %vm17007_vm1 = vcmp.ne.s16.totalorder %v13511_v3, 0  ;;  %v13920_v45 = vunpack.c.l.b16 %v13541_v0 }
 0x733   : > { %5210 = vrot.lane.b32.xlu0 %v13708_v26, %s16991_s23  ;;  %v5670_v7 = vpack.c.b16 %v5445_v1, %v5431_v30  ;;  %v5062_v21 = vsel %vm17000_vm15, %v13698_v29, 0  ;;  %vm17003_vm3 = vmmov %vm16999_vm0  ;;  %v5089_v47 = vsel %vm17007_vm1, %v13666_v17, 0 }
 0x734   : > { %5204 = vrot.lane.b32.xlu1 %v13666_v17, %s16991_s23  ;;  %v5078_v34 = vsel %vm17003_vm3, %v13674_v39, 0  ;;  %vm17004_vm8 = vmmov %vm16999_vm0  ;;  %v5460_v4 = vrot.slane %v13920_v45, 7 }
 0x735   : > { %5692 = vmatpush1.bf16.msra.mxu1 %v5670_v7  ;;  %v5079_v14 = vsel %vm17004_vm8, %v13698_v29, 0  ;;  %vm17005_vm15 = vmmov %vm16999_vm0 }
 0x736   : > { %5693 = vmatprep.subr.bf16.mxu1 %v16994_v25  ;;  %v5081_v18 = vsel %vm17005_vm15, %v13719_v43, 0  ;;  %vm17006_vm7 = vmmov %vm16999_vm0  ;;  %v5461_v1 = vsel %vm1369_vm9, %v5460_v4, %v13920_v45  ;;  %v4951_v4 = vld [vmem:[%s16716_s6 + $0x8] sm:$0xff] }
 0x737   : > { %5214 = vrot.lane.b32.xlu0 %v13736_v5, %s16991_s23  ;;  %v5080_v37 = vsel %vm17006_vm7, %v13708_v26, 0  ;;  %vm17008_vm2 = vmmov %vm16999_vm0  ;;  %vm17013_vm7 = vcmp.ne.s16.totalorder %v13519_v42, 0  ;;  %v5462_v42 = vrot.slane %v13920_v45, 6 }
 0x738   : > { %5208 = vrot.lane.b32.xlu1 %v13698_v29, %s16991_s23  ;;  %v5082_v46 = vsel %vm17008_vm2, %v13736_v5, 0  ;;  %vm17009_vm3 = vmmov %vm17007_vm1  ;;  %v5102_v23 = vsel %vm17013_vm7, %v13674_v39, 0 }
 0x739   : > { %v5091_v63 = vsel %vm17009_vm3, %v13698_v29, 0  ;;  %vm17010_vm8 = vmmov %vm16999_vm0 }
 0x73a   : > { %v5083_v8 = vsel %vm17010_vm8, %v13733_v20, 0  ;;  %vm17011_vm0 = vmmov %vm17007_vm1 }
 0x73b   : > { %5216 = vrot.lane.b32.xlu0 %v13733_v20, %s16991_s23  ;;  %v5093_v53 = vsel %vm17011_vm0, %v13719_v43, 0  ;;  %vm17012_vm15 = vmmov %vm17011_vm0 }
 0x73c   : > { %5212 = vrot.lane.b32.xlu1 %v13719_v43, %s16991_s23  ;;  %v5090_v13 = vsel %vm17012_vm15, %v13674_v39, 0  ;;  %vm17014_vm1 = vmmov %vm17011_vm0 }
 0x73d   : > { %v5088_v27 = vsel %vm17014_vm1, %v13685_v49, 0  ;;  %vm17015_vm2 = vmmov %vm17013_vm7 }
 0x73e   : > { %v5100_v10 = vsel %vm17015_vm2, %v13685_v49, 0  ;;  %vm17016_vm3 = vmmov %vm17011_vm0 }
 0x73f   : > { %5276 = vrot.lane.b32.xlu0 %v13666_v17, %s16988_s3  ;;  %v5092_v44 = vsel %vm17016_vm3, %v13708_v26, 0  ;;  %vm17017_vm8 = vmmov %vm17015_vm2 }
 0x740   : > { %5278 = vrot.lane.b32.xlu1 %v13674_v39, %s16988_s3  ;;  %v5104_v24 = vsel %vm17017_vm8, %v13708_v26, 0  ;;  %vm17018_vm0 = vmmov %vm17015_vm2 }
 0x741   : > { %v5101_v54 = vsel %vm17018_vm0, %v13666_v17, 0  ;;  %vm17019_vm15 = vmmov %vm17018_vm0 }
 0x742   : > { %v5106_v51 = vsel %vm17019_vm15, %v13736_v5, 0  ;;  %vm17020_vm7 = vmmov %vm17014_vm1 }
 0x743   : > { %5280 = vrot.lane.b32.xlu0 %v13698_v29, %s16988_s3  ;;  %v5094_v35 = vsel %vm17020_vm7, %v13736_v5, 0  ;;  %vm17021_vm1 = vmmov %vm17018_vm0 }
 0x744   : > { %5274 = vrot.lane.b32.xlu1 %v13685_v49, %s16988_s3  ;;  %v5107_v19 = vsel %vm17021_vm1, %v13733_v20, 0  ;;  %vm17022_vm2 = vmmov %vm17016_vm3  ;;  %vm17023_vm3 = vcmp.ne.s16.totalorder %v13528_v38, 0 }
 0x745   : > { %v5095_v62 = vsel %vm17022_vm2, %v13733_v20, 0  ;;  %v5114_v9 = vsel %vm17023_vm3, %v13674_v39, 0  ;;  %vm17024_vm8 = vmmov %vm17018_vm0 }
 0x746   : > { %v5103_v28 = vsel %vm17024_vm8, %v13698_v29, 0  ;;  %vm17025_vm0 = vmmov %vm17023_vm3 }
 0x747   : > { %5284 = vrot.lane.b32.xlu0 %v13719_v43, %s16988_s3  ;;  %v5112_v3 = vsel %vm17025_vm0, %v13685_v49, 0  ;;  %vm17026_vm15 = vmmov %vm17021_vm1 }
 0x748   : > { %5282 = vrot.lane.b32.xlu1 %v13708_v26, %s16988_s3  ;;  %v5105_v39 = vsel %vm17026_vm15, %v13719_v43, 0  ;;  %vm17027_vm7 = vmmov %vm17025_vm0  ;;  %vm17032_vm15 = vcmask 1047559  }
 0x749   : > { %v5116_v0 = vsel %vm17027_vm7, %v13708_v26, 0  ;;  %vm17028_vm1 = vmmov %vm17025_vm0 }
 0x74a   : > { %v5113_v49 = vsel %vm17028_vm1, %v13666_v17, 0  ;;  %vm17029_vm2 = vmmov %vm17025_vm0 }
 0x74b   : > { %5161 = vrot.lane.b32.xlu0 %v5061_v59, %s16898_s20  ;;  %v5118_v7 = vsel %vm17029_vm2, %v13736_v5, 0  ;;  %vm17030_vm3 = vmmov %vm17025_vm0 }
 0x74c   : > { %5286 = vrot.lane.b32.xlu1 %v13736_v5, %s16988_s3  ;;  %v5115_v59 = vsel %vm17030_vm3, %v13698_v29, 0  ;;  %vm17031_vm8 = vmmov %vm17025_vm0 }
 0x74d   : > { %vm17033_vm7 = vmmov %vm17032_vm15 }
 0x74e   : > { %vm17037_vm3 = vmmov %vm17033_vm7 }
 0x74f   : > { %5157 = vrot.lane.b32.xlu0 %v5059_v58, %s16898_s20  ;;  %v4948_v58 = vld [vmem:[%s16715_s5] sm:$0xff] }
 0x750   : > { %5288 = vrot.lane.b32.xlu1 %v13733_v20, %s16988_s3  ;;  %s10504_s3 = smov 6  }
 0x753   : > { %5165 = vrot.lane.b32.xlu0 %v5063_v52, %s16898_s20  ;;  %v5463_v52 = vsel %vm1372_vm10, %v5462_v42, %v5461_v1  ;;  %v17034_v1 = vld [vmem:[#allocation11_spill] sm:$0xff] }
 0x754   : > { %5159 = vrot.lane.b32.xlu1 %v5060_v16, %s16898_s20 }
 0x757   : > { %5186 = vrot.lane.b32.xlu0 %v5077_v12, %s16900_s28 }
 0x758   : > { %5163 = vrot.lane.b32.xlu1 %v5062_v21, %s16898_s20 }
 0x75b   : > { %5169 = vrot.lane.b32.xlu0 %v5065_v41, %s16898_s20  ;;  %v5464_v41 = vrot.slane %v13920_v45, 5 }
 0x75c   : > { %5167 = vrot.lane.b32.xlu1 %v5064_v33, %s16898_s20  ;;  %v10400_v33 = vld [vmem:[%s16714_s4 + $0x4] ss:$8 sps:$4 sm:$0xff]  }
 0x75d   : > { %9980 = vmatprep.mubr.msk.bf16.mxu1 %vm757_vm6, %v10400_v33 }
 0x75f   : > { %5171 = vrot.lane.b32.xlu0 %v5066_v22, %s16898_s20  ;;  %v5117_v22 = vsel %vm17031_vm8, %v13719_v43, 0  ;;  %vm17038_vm8 = vmmov %vm17037_vm3 }
 0x760   : > { %5188 = vrot.lane.b32.xlu1 %v5078_v34, %s16900_s28  ;;  %v5465_v34 = vsel %vm1375_vm11, %v5464_v41, %v5463_v52 }
 0x763   : > { %5190 = vrot.lane.b32.xlu0 %v5079_v14, %s16900_s28 }
 0x764   : > { %5184 = vrot.lane.b32.xlu1 %v5076_v2, %s16900_s28 }
 0x767   : > { %5194 = vrot.lane.b32.xlu0 %v5081_v18, %s16900_s28  ;;  %v4950_v18 = vld [vmem:[%s16716_s6] sm:$0xff] }
 0x768   : > { %5192 = vrot.lane.b32.xlu1 %v5080_v37, %s16900_s28  ;;  %v5466_v37 = vrot.slane %v13920_v45, 4 }
 0x76b   : > { %5231 = vrot.lane.b32.xlu0 %v5089_v47, %s16987_s30 }
 0x76c   : > { %5196 = vrot.lane.b32.xlu1 %v5082_v46, %s16900_s28 }
 0x76f   : > { %5235 = vrot.lane.b32.xlu0 %v5091_v63, %s16987_s30 }
 0x770   : > { %5198 = vrot.lane.b32.xlu1 %v5083_v8, %s16900_s28 }
 0x773   : > { %5239 = vrot.lane.b32.xlu0 %v5093_v53, %s16987_s30  ;;  %v5467_v53 = vsel %vm1378_vm12, %v5466_v37, %v5465_v34  ;;  %v5363_v34 = vunpack.c.l.b16 %v13543_v60 }
 0x774   : > { %5233 = vrot.lane.b32.xlu1 %v5090_v13, %s16987_s30 }
 0x775   : > { %v5488_v37 = vrot.slane %v5363_v34, 7 }
 0x777   : > { %5260 = vrot.lane.b32.xlu0 %v5102_v23, %s16897_s26  ;;  %v5119_v23 = vsel %vm17025_vm0, %v13733_v20, 0  ;;  %vm17039_vm0 = vmmov %vm17037_vm3 }
 0x778   : > { %5229 = vrot.lane.b32.xlu1 %v5088_v27, %s16987_s30  ;;  %v5468_v27 = vrot.slane %v13920_v45, 3 }
 0x77b   : > { %5256 = vrot.lane.b32.xlu0 %v5100_v10, %s16897_s26 }
 0x77c   : > { %5237 = vrot.lane.b32.xlu1 %v5092_v44, %s16987_s30 }
 0x77f   : > { %5264 = vrot.lane.b32.xlu0 %v5104_v24, %s16897_s26 }
 0x780   : > { %5258 = vrot.lane.b32.xlu1 %v5101_v54, %s16897_s26 }
 0x783   : > { %5268 = vrot.lane.b32.xlu0 %v5106_v51, %s16897_s26 }
 0x784   : > { %5241 = vrot.lane.b32.xlu1 %v5094_v35, %s16987_s30  ;;  %v4949_v35 = vld [vmem:[%s16715_s5 + $0x8] sm:$0xff] }
 0x787   : > { %5270 = vrot.lane.b32.xlu0 %v5107_v19, %s16897_s26  ;;  %v5469_v19 = vsel %vm1381_vm13, %v5468_v27, %v5467_v53  ;;  %v5492_v27 = vrot.slane %v5363_v34, 5 }
 0x788   : > { %5243 = vrot.lane.b32.xlu1 %v5095_v62, %s16987_s30  ;;  %v5470_v62 = vrot.slane %v13920_v45, 2 }
 0x78b   : > { %5305 = vrot.lane.b32.xlu0 %v5114_v9, %s16989_s29 }
 0x78c   : > { %5262 = vrot.lane.b32.xlu1 %v5103_v28, %s16897_s26 }
 0x78d   : > { %v5133_v6 = vpop.permute.xlu0 %5132 }
 0x78e   : > { %v5347_v26 = vunpack.c.l.b16 %v5133_v6  ;;  %v5471_v6 = vsel %vm1384_vm14, %v5470_v62, %v5469_v19  ;;  %v5494_v19 = vrot.slane %v5363_v34, 4 }
 0x78f   : > { %5301 = vrot.lane.b32.xlu0 %v5112_v3, %s16989_s29 }
 0x790   : > { %5266 = vrot.lane.b32.xlu1 %v5105_v39, %s16897_s26  ;;  %v5446_v29 = vrot.slane %v5347_v26, 7 }
 0x791   : > { %v5135_v55 = vpop.permute.xlu0 %5134 }
 0x792   : > { %v5348_v17 = vunpack.c.l.b16 %v5135_v55 }
 0x793   : > { %v5131_v61 = vpop.permute.xlu1 %5130  ;;  %5309 = vrot.lane.b32.xlu0 %v5116_v0, %s16989_s29  ;;  %v5472_v0 = vrot.slane %v13920_v45, 1 }
 0x794   : > { %5303 = vrot.lane.b32.xlu1 %v5113_v49, %s16989_s29  ;;  %v5346_v16 = vunpack.c.l.b16 %v5131_v61  ;;  %v5448_v14 = vrot.slane %v5348_v17, 6 }
 0x795   : > { %v5137_v30 = vpop.permute.xlu0 %5136 }
 0x796   : > { %v5349_v12 = vunpack.c.l.b16 %v5137_v30  ;;  %v5447_v47 = vsel %vm1369_vm9, %v5446_v29, %v5346_v16  ;;  %v5473_v30 = vsel %vm17033_vm7, %v5472_v0, %v5471_v6  ;;  %vm17041_vm7 = vmmov %vm17039_vm0 }
 0x797   : > { %5313 = vrot.lane.b32.xlu0 %v5118_v7, %s16989_s29  ;;  %v5139_v21 = vpop.permute.xlu1 %5138  ;;  %v5449_v10 = vsel %vm1372_vm10, %v5448_v14, %v5447_v47  ;;  %v8357_v7 = vand.u32 3, %v17034_v1 }
 0x798   : > { %5307 = vrot.lane.b32.xlu1 %v5115_v59, %s16989_s29  ;;  %v5350_v2 = vunpack.c.l.b16 %v5139_v21  ;;  %v5450_v46 = vrot.slane %v5349_v12, 5  ;;  %v17035_v12 = vld [vmem:[#allocation12_spill] sm:$0xff] }
 0x799   : > { %v5141_v5 = vpop.permute.xlu0 %5140  ;;  %v8369_v17 = vadd.s32 1, %v8357_v7 }
 0x79a   : > { %v5351_v63 = vunpack.c.l.b16 %v5141_v5  ;;  %v5452_v44 = vrot.slane %v5350_v2, 4  ;;  %v5451_v24 = vsel %vm1375_vm11, %v5450_v46, %v5449_v10  ;;  %v5490_v46 = vrot.slane %v5363_v34, 6 }
 0x79b   : > { %5734 = vperm.xlu0 %10135, %v4948_v58   ;;  %vm8371_vm1 = vcmp.lt.s32.totalorder %v8369_v17, 4  ;;  %v5498_v17 = vrot.slane %v5363_v34, 2 }
 0x79c   : > { %5311 = vrot.lane.b32.xlu1 %v5117_v22, %s16989_s29  ;;  %v5454_v54 = vrot.slane %v5351_v63, 3  ;;  %v5453_v28 = vsel %vm1378_vm12, %v5452_v44, %v5451_v24  ;;  %vm8394_vm2 = vmpackc.low %vm8371_vm1, %vm8371_vm1 }
 0x79d   : > { %v13969_v8 = vpop.permute.xlu0 %5206  ;;  %v8395_v16 = vsel %vm8394_vm2, 65537, %v16994_v25  ;;  %vm17042_vm1 = vmmov %vm17039_vm0 }
 0x79e   : > { %v5143_v43 = vpop.permute.xlu1 %5142  ;;  %v5455_v3 = vsel %vm1381_vm13, %v5454_v54, %v5453_v28  ;;  %v8399_v21 = vrot.slane %v8395_v16, %v17035_v12  ;;  %vm17043_vm2 = vmmov %vm17039_vm0 }
 0x79f   : > { %v5352_v13 = vunpack.c.l.b16 %v5143_v43  ;;  %5746 = vperm.xlu0 %10135, %v4950_v18   ;;  %v5489_v43 = vsel %vm1369_vm9, %v5488_v37, %v5363_v34 }
 0x7a0   : > { %5315 = vrot.lane.b32.xlu1 %v5119_v23, %s16989_s29  ;;  %s10505_s29 = smov 4  }
 0x7a1   : > { %v13979_v51 = vpop.permute.xlu0 %5202  ;;  %v5456_v38 = vrot.slane %v5352_v13, 2  ;;  %v5491_v13 = vsel %vm1372_vm10, %v5490_v46, %v5489_v43 }
 0x7a2   : > { %v5145_v20 = vpop.permute.xlu1 %5144  ;;  %v5493_v60 = vsel %vm1375_vm11, %v5492_v27, %v5491_v13 }
 0x7a3   : > { %v5353_v9 = vunpack.c.l.b16 %v5145_v20  ;;  %v5457_v61 = vsel %vm1384_vm14, %v5456_v38, %v5455_v3  ;;  %8400 = vrot.lane.b32.xlu0 %v8399_v21, %s16981_s19  ;;  %v14037_v20 = vunpack.c.l.b16 %v13649_v50  ;;  %v5495_v28 = vsel %vm1378_vm12, %v5494_v19, %v5493_v60  ;;  %s10509_s19 = smov 123  }
 0x7a4   : > { %5739 = vperm.xlu1 %10134, %v4949_v35   ;;  %v14044_v50 = vunpack.c.l.b16 %v13647_v15  ;;  %v5500_v60 = vrot.slane %v5363_v34, 1 }
 0x7a5   : > { %v5458_v39 = vrot.slane %v5353_v9, 1  ;;  %v13989_v55 = vpop.permute.xlu0 %5210 }
 0x7a6   : > { %v13996_v49 = vpop.permute.xlu1 %5204 }
 0x7a7   : > { %v5459_v42 = vsel %vm17032_vm15, %v5458_v39, %v5457_v61  ;;  %8443 = vrot.lane.b32.xlu0 %v8399_v21, %s10504_s3  ;;  %v5496_v39 = vrot.slane %v5363_v34, 3  ;;  %v5374_v13 = vunpack.c.l.b16 %v13996_v49  ;;  %v5546_v34 = vrot.slane %v14044_v50, 6  ;;  %vm17040_vm15 = vmmov %vm17039_vm0  ;;  %s10506_s3 = smov 80  }
 0x7a8   : > { %5751 = vperm.xlu1 %10134, %v4951_v4   ;;  %v5671_v26 = vpack.c.b16 %v5473_v30, %v5459_v42 }
 0x7a9   : > { %v14001_v59 = vpop.permute.xlu0 %5214 }
 0x7aa   : > { %v14005_v58 = vpop.permute.xlu1 %5208  ;;  %5694 = vmatpush1.bf16.msra.mxu1 %v5671_v26  ;;  %v5497_v26 = vsel %vm1381_vm13, %v5496_v39, %v5495_v28  ;;  %v5530_v28 = vrot.slane %v5374_v13, 7 }
 0x7ab   : > { %5695 = vmatprep.subr.bf16.mxu1 %v16994_v25  ;;  %8481 = vrot.lane.b32.xlu0 %v8399_v21, %s17036_s21  ;;  %v5499_v43 = vsel %vm1384_vm14, %v5498_v17, %v5497_v26  ;;  %v5520_v17 = vrot.slane %v14037_v20, 5  ;;  %s10507_s21 = smov 12  }
 0x7ac   : > { %v5501_v49 = vsel %vm17037_vm3, %v5500_v60, %v5499_v43  ;;  %vm17044_vm3 = vmmov %vm17039_vm0 }
 0x7ad   : > { %v14008_v45 = vpop.permute.xlu0 %5216 }
 0x7ae   : > { %v14010_v52 = vpop.permute.xlu1 %5212 }
 0x7b1   : > { %v14014_v5 = vpop.permute.xlu0 %5276 }
 0x7b2   : > { %v14017_v41 = vpop.permute.xlu1 %5278 }
 0x7b5   : > { %v14019_v33 = vpop.permute.xlu0 %5280 }
 0x7b6   : > { %v14021_v29 = vpop.permute.xlu1 %5274 }
 0x7b9   : > { %v14023_v22 = vpop.permute.xlu0 %5284 }
 0x7ba   : > { %v14027_v14 = vpop.permute.xlu1 %5282 }
 0x7bd   : > { %v5162_v2 = vpop.permute.xlu0 %5161 }
 0x7be   : > { %v14029_v18 = vpop.permute.xlu1 %5286  ;;  %v5357_v44 = vunpack.c.l.b16 %v5162_v2  ;;  %v5516_v2 = vrot.slane %v14037_v20, 7 }
 0x7c0   : > { %v5476_v6 = vrot.slane %v5357_v44, 6 }
 0x7c1   : > { %v5158_v47 = vpop.permute.xlu0 %5157 }
 0x7c2   : > { %v14031_v63 = vpop.permute.xlu1 %5288  ;;  %v5355_v24 = vunpack.c.l.b16 %v5158_v47 }
 0x7c5   : > { %v5166_v53 = vpop.permute.xlu0 %5165 }
 0x7c6   : > { %v5160_v23 = vpop.permute.xlu1 %5159  ;;  %v5359_v3 = vunpack.c.l.b16 %v5166_v53  ;;  %v5518_v53 = vrot.slane %v14037_v20, 6 }
 0x7c7   : > { %v5356_v10 = vunpack.c.l.b16 %v5160_v23 }
 0x7c8   : > { %v5480_v37 = vrot.slane %v5359_v3, 4 }
 0x7c9   : > { %v5474_v54 = vrot.slane %v5356_v10, 7  ;;  %v5187_v35 = vpop.permute.xlu0 %5186 }
 0x7ca   : > { %v5164_v38 = vpop.permute.xlu1 %5163 }
 0x7cb   : > { %v5475_v62 = vsel %vm1369_vm9, %v5474_v54, %v5355_v24  ;;  %v5358_v9 = vunpack.c.l.b16 %v5164_v38  ;;  %v5517_v24 = vsel %vm1369_vm9, %v5516_v2, %v14037_v20  ;;  %v5544_v54 = vrot.slane %v14044_v50, 7 }
 0x7cc   : > { %v5477_v61 = vsel %vm1372_vm10, %v5476_v6, %v5475_v62  ;;  %v5365_v62 = vunpack.c.l.b16 %v5187_v35  ;;  %v5519_v39 = vsel %vm1372_vm10, %v5518_v53, %v5517_v24  ;;  %v5375_v35 = vunpack.c.l.b16 %v13969_v8 }
 0x7cd   : > { %v5478_v4 = vrot.slane %v5358_v9, 5  ;;  %v5170_v0 = vpop.permute.xlu0 %5169 }
 0x7ce   : > { %v5361_v42 = vunpack.c.l.b16 %v5170_v0  ;;  %v5168_v30 = vpop.permute.xlu1 %5167 }
 0x7cf   : > { %v5479_v16 = vsel %vm1375_vm11, %v5478_v4, %v5477_v61  ;;  %v5360_v21 = vunpack.c.l.b16 %v5168_v30  ;;  %v5376_v4 = vunpack.c.l.b16 %v14005_v58  ;;  %v5373_v30 = vunpack.c.l.b16 %v13979_v51 }
 0x7d0   : > { %v5484_v23 = vrot.slane %v5361_v42, 2  ;;  %v5481_v27 = vsel %vm1378_vm12, %v5480_v37, %v5479_v16  ;;  %v5545_v42 = vsel %vm1369_vm9, %v5544_v54, %v14044_v50  ;;  %v5502_v16 = vrot.slane %v5365_v62, 7 }
 0x7d1   : > { %v5482_v47 = vrot.slane %v5360_v21, 3  ;;  %v5172_v46 = vpop.permute.xlu0 %5171  ;;  %v5531_v37 = vsel %vm1369_vm9, %v5530_v28, %v5373_v30  ;;  %v5521_v58 = vsel %vm1375_vm11, %v5520_v17, %v5519_v39  ;;  %v5547_v8 = vsel %vm1372_vm10, %v5546_v34, %v5545_v42 }
 0x7d2   : > { %v5362_v10 = vunpack.c.l.b16 %v5172_v46  ;;  %v5189_v15 = vpop.permute.xlu1 %5188  ;;  %v5522_v46 = vrot.slane %v14037_v20, 4  ;;  %v5534_v43 = vrot.slane %v5376_v4, 5  ;;  %v5378_v51 = vunpack.c.l.b16 %v14010_v52 }
 0x7d3   : > { %v5483_v44 = vsel %vm1381_vm13, %v5482_v47, %v5481_v27  ;;  %v5366_v26 = vunpack.c.l.b16 %v5189_v15  ;;  %v5377_v27 = vunpack.c.l.b16 %v13989_v55  ;;  %v5548_v15 = vrot.slane %v14044_v50, 5 }
 0x7d4   : > { %v5486_v19 = vrot.slane %v5362_v10, 1  ;;  %v5485_v38 = vsel %vm1384_vm14, %v5484_v23, %v5483_v44  ;;  %v5532_v23 = vrot.slane %v5375_v35, 6  ;;  %v14077_v44 = vunpack.c.l.b16 %v13656_v40 }
 0x7d5   : > { %v5191_v9 = vpop.permute.xlu0 %5190  ;;  %v5504_v10 = vrot.slane %v5366_v26, 6  ;;  %v5523_v54 = vsel %vm1378_vm12, %v5522_v46, %v5521_v58  ;;  %v5549_v55 = vsel %vm1375_vm11, %v5548_v15, %v5547_v8  ;;  %v5538_v28 = vrot.slane %v5378_v51, 3 }
 0x7d6   : > { %v5185_v6 = vpop.permute.xlu1 %5184  ;;  %v5487_v3 = vsel %vm17038_vm8, %v5486_v19, %v5485_v38  ;;  %v5367_v21 = vunpack.c.l.b16 %v5191_v9  ;;  %v5524_v19 = vrot.slane %v14037_v20, 3  ;;  %v5533_v52 = vsel %vm1372_vm10, %v5532_v23, %v5531_v37  ;;  %vm17045_vm8 = vmmov %vm17039_vm0 }
 0x7d7   : > { %v5364_v0 = vunpack.c.l.b16 %v5185_v6  ;;  %v5672_v61 = vpack.c.b16 %v5501_v49, %v5487_v3  ;;  %v5535_v49 = vsel %vm1375_vm11, %v5534_v43, %v5533_v52  ;;  %v5536_v3 = vrot.slane %v5377_v27, 4 }
 0x7d8   : > { %v5506_v60 = vrot.slane %v5367_v21, 5  ;;  %v5379_v39 = vunpack.c.l.b16 %v14001_v59  ;;  %v5526_v34 = vrot.slane %v14037_v20, 2  ;;  %v5550_v4 = vrot.slane %v14044_v50, 4 }
 0x7d9   : > { %5696 = vmatpush1.bf16.msra.mxu1 %v5672_v61  ;;  %v5195_v2 = vpop.permute.xlu0 %5194  ;;  %v5503_v53 = vsel %vm1369_vm9, %v5502_v16, %v5364_v0  ;;  %v5525_v42 = vsel %vm1381_vm13, %v5524_v19, %v5523_v54  ;;  %v5552_v35 = vrot.slane %v14044_v50, 3  ;;  %v5572_v30 = vrot.slane %v14077_v44, 7 }
 0x7da   : > { %v5193_v47 = vpop.permute.xlu1 %5192  ;;  %5697 = vmatprep.subr.bf16.mxu1 %v16994_v25  ;;  %v5505_v38 = vsel %vm1372_vm10, %v5504_v10, %v5503_v53  ;;  %v5369_v40 = vunpack.c.l.b16 %v5195_v2  ;;  %v5537_v26 = vsel %vm1378_vm12, %v5536_v3, %v5535_v49  ;;  %v5551_v21 = vsel %vm1378_vm12, %v5550_v4, %v5549_v55 }
 0x7db   : > { %v5368_v13 = vunpack.c.l.b16 %v5193_v47  ;;  %v5507_v0 = vsel %vm1375_vm11, %v5506_v60, %v5505_v38  ;;  %v5380_v2 = vunpack.c.l.b16 %v14008_v45  ;;  %v5539_v37 = vsel %vm1381_vm13, %v5538_v28, %v5537_v26 }
 0x7dc   : > { %v5510_v47 = vrot.slane %v5369_v40, 3  ;;  %v14102_v46 = vunpack.c.l.b16 %v13651_v56  ;;  %v5540_v8 = vrot.slane %v5379_v39, 2  ;;  %v5527_v43 = vsel %vm1384_vm14, %v5526_v34, %v5525_v42 }
 0x7dd   : > { %v14079_v24 = vpop.permute.xlu0 %5231  ;;  %v5508_v62 = vrot.slane %v5368_v13, 4  ;;  %v5528_v51 = vrot.slane %v14037_v20, 1  ;;  %v5553_v27 = vsel %vm1381_vm13, %v5552_v35, %v5551_v21  ;;  %v5574_v45 = vrot.slane %v14077_v44, 6 }
 0x7de   : > { %v5197_v9 = vpop.permute.xlu1 %5196  ;;  %v5541_v56 = vsel %vm1384_vm14, %v5540_v8, %v5539_v37  ;;  %v5554_v60 = vrot.slane %v14044_v50, 2  ;;  %v5573_v54 = vsel %vm1369_vm9, %v5572_v30, %v14077_v44  ;;  %v5542_v20 = vrot.slane %v5380_v2, 1 }
 0x7df   : > { %v5370_v6 = vunpack.c.l.b16 %v5197_v9  ;;  %v5509_v17 = vsel %vm1378_vm12, %v5508_v62, %v5507_v0  ;;  %v5529_v52 = vsel %vm17040_vm15, %v5528_v51, %v5527_v43  ;;  %v5556_v49 = vrot.slane %v14044_v50, 1  ;;  %vm17046_vm15 = vmmov %vm17039_vm0 }
 0x7e0   : > { %v5511_v53 = vsel %vm1381_vm13, %v5510_v47, %v5509_v17  ;;  %v5555_v62 = vsel %vm1384_vm14, %v5554_v60, %v5553_v27  ;;  %v5543_v55 = vsel %vm17041_vm7, %v5542_v20, %v5541_v56  ;;  %v5575_v28 = vsel %vm1372_vm10, %v5574_v45, %v5573_v54  ;;  %vm17047_vm7 = vmmov %vm17039_vm0 }
 0x7e1   : > { %v14091_v61 = vpop.permute.xlu0 %5235  ;;  %v5512_v16 = vrot.slane %v5370_v6, 2  ;;  %v5600_v40 = vrot.slane %v14102_v46, 7  ;;  %v5576_v3 = vrot.slane %v14077_v44, 5  ;;  %v5557_v39 = vsel %vm17042_vm1, %v5556_v49, %v5555_v62  ;;  %vm17048_vm1 = vmmov %vm17039_vm0 }
 0x7e2   : > { %v5199_v59 = vpop.permute.xlu1 %5198  ;;  %v5674_v34 = vpack.c.b16 %v5557_v39, %v5543_v55  ;;  %v5602_v0 = vrot.slane %v14102_v46, 6  ;;  %v5383_v42 = vunpack.c.l.b16 %v14079_v24  ;;  %v5578_v35 = vrot.slane %v14077_v44, 4 }
 0x7e3   : > { %v5371_v58 = vunpack.c.l.b16 %v5199_v59  ;;  %v5513_v10 = vsel %vm1384_vm14, %v5512_v16, %v5511_v53  ;;  %v5577_v4 = vsel %vm1375_vm11, %v5576_v3, %v5575_v28  ;;  %v5601_v30 = vsel %vm1369_vm9, %v5600_v40, %v14102_v46 }
 0x7e4   : > { %v14137_v26 = vunpack.c.l.b16 %v13663_v31  ;;  %v5579_v59 = vsel %vm1378_vm12, %v5578_v35, %v5577_v4  ;;  %v5580_v24 = vrot.slane %v14077_v44, 3  ;;  %v5603_v2 = vsel %vm1372_vm10, %v5602_v0, %v5601_v30 }
 0x7e5   : > { %v5514_v13 = vrot.slane %v5371_v58, 1  ;;  %v14107_v23 = vpop.permute.xlu0 %5239  ;;  %v5558_v37 = vrot.slane %v5383_v42, 7  ;;  %v5604_v58 = vrot.slane %v14102_v46, 5  ;;  %v14147_v31 = vunpack.c.l.b16 %v13658_v36 }
 0x7e6   : > { %v5234_v15 = vpop.permute.xlu1 %5233  ;;  %v5581_v51 = vsel %vm1381_vm13, %v5580_v24, %v5579_v59  ;;  %v5628_v53 = vrot.slane %v14137_v26, 7  ;;  %v5582_v45 = vrot.slane %v14077_v44, 2  ;;  %v5584_v56 = vrot.slane %v14077_v44, 1 }
 0x7e7   : > { %v5515_v19 = vsel %vm17039_vm0, %v5514_v13, %v5513_v10  ;;  %v5384_v21 = vunpack.c.l.b16 %v5234_v15  ;;  %v5385_v13 = vunpack.c.l.b16 %v14091_v61  ;;  %v5605_v10 = vsel %vm1375_vm11, %v5604_v58, %v5603_v2 }
 0x7e8   : > { %v5673_v38 = vpack.c.b16 %v5529_v52, %v5515_v19  ;;  %v5606_v36 = vrot.slane %v14102_v46, 4  ;;  %v5608_v60 = vrot.slane %v14102_v46, 3  ;;  %v5583_v20 = vsel %vm1384_vm14, %v5582_v45, %v5581_v51 }
 0x7e9   : > { %v14119_v9 = vpop.permute.xlu0 %5260  ;;  %v5560_v15 = vrot.slane %v5384_v21, 6  ;;  %v5610_v19 = vrot.slane %v14102_v46, 2  ;;  %v5612_v61 = vrot.slane %v14102_v46, 1  ;;  %v5630_v52 = vrot.slane %v14137_v26, 6 }
 0x7ea   : > { %v5230_v6 = vpop.permute.xlu1 %5229  ;;  %5698 = vmatpush1.bf16.msra.mxu1 %v5673_v38  ;;  %v5607_v44 = vsel %vm1378_vm12, %v5606_v36, %v5605_v10  ;;  %v5629_v49 = vsel %vm1369_vm9, %v5628_v53, %v14137_v26  ;;  %v5562_v28 = vrot.slane %v5385_v13, 5  ;;  %v5387_v40 = vunpack.c.l.b16 %v14107_v23 }
 0x7eb   : > { %5699 = vmatprep.subr.bf16.mxu1 %v16994_v25  ;;  %v5382_v16 = vunpack.c.l.b16 %v5230_v6  ;;  %v5401_v39 = vunpack.c.l.b16 %v14014_v5  ;;  %v5632_v4 = vrot.slane %v14137_v26, 5  ;;  %v5634_v0 = vrot.slane %v14137_v26, 4 }
 0x7ec   : > { %v5631_v30 = vsel %vm1372_vm10, %v5630_v52, %v5629_v49  ;;  %v5638_v23 = vrot.slane %v14137_v26, 2  ;;  %v5609_v24 = vsel %vm1381_vm13, %v5608_v60, %v5607_v44  ;;  %v5402_v2 = vunpack.c.l.b16 %v14017_v41 }
 0x7ed   : > { %v14131_v50 = vpop.permute.xlu0 %5256  ;;  %v5559_v27 = vsel %vm1369_vm9, %v5558_v37, %v5382_v16  ;;  %v5400_v16 = vunpack.c.l.b16 %v14021_v29  ;;  %v5566_v37 = vrot.slane %v5387_v40, 3  ;;  %v5393_v51 = vunpack.c.l.b16 %v14119_v9 }
 0x7ee   : > { %v5238_v17 = vpop.permute.xlu1 %5237  ;;  %5700 = vmatpush1.bf16.msra.mxu1 %v5674_v34  ;;  %v5561_v38 = vsel %vm1372_vm10, %v5560_v15, %v5559_v27  ;;  %v5585_v34 = vsel %vm17043_vm2, %v5584_v56, %v5583_v20  ;;  %v5633_v53 = vsel %vm1375_vm11, %v5632_v4, %v5631_v30  ;;  %v5656_v13 = vrot.slane %v14147_v31, 7  ;;  %vm17049_vm2 = vmmov %vm17039_vm0 }
 0x7ef   : > { %5701 = vmatprep.subr.bf16.mxu1 %v16994_v25  ;;  %v5386_v8 = vunpack.c.l.b16 %v5238_v17  ;;  %v5563_v42 = vsel %vm1375_vm11, %v5562_v28, %v5561_v38  ;;  %v5636_v17 = vrot.slane %v14137_v26, 3  ;;  %v5403_v29 = vunpack.c.l.b16 %v14019_v33 }
 0x7f0   : > { %v5391_v27 = vunpack.c.l.b16 %v14131_v50  ;;  %v5404_v56 = vunpack.c.l.b16 %v14027_v14  ;;  %v5658_v60 = vrot.slane %v14147_v31, 6  ;;  %v5616_v20 = vrot.slane %v5402_v2, 6 }
 0x7f1   : > { %v14143_v47 = vpop.permute.xlu0 %5264  ;;  %v5564_v62 = vrot.slane %v5386_v8, 4  ;;  %v5588_v38 = vrot.slane %v5393_v51, 6  ;;  %v5635_v44 = vsel %vm1378_vm12, %v5634_v0, %v5633_v53  ;;  %v5618_v49 = vrot.slane %v5403_v29, 5 }
 0x7f2   : > { %v5259_v43 = vpop.permute.xlu1 %5258  ;;  %v5405_v28 = vunpack.c.l.b16 %v14023_v22  ;;  %v5640_v46 = vrot.slane %v14137_v26, 1 }
 0x7f3   : > { %v5392_v6 = vunpack.c.l.b16 %v5259_v43  ;;  %v5565_v5 = vsel %vm1378_vm12, %v5564_v62, %v5563_v42  ;;  %v5614_v43 = vrot.slane %v5401_v39, 7  ;;  %v5395_v62 = vunpack.c.l.b16 %v14143_v47 }
 0x7f4   : > { %v5567_v45 = vsel %vm1381_vm13, %v5566_v37, %v5565_v5  ;;  %v5406_v39 = vunpack.c.l.b16 %v14029_v18  ;;  %v5407_v47 = vunpack.c.l.b16 %v14031_v63  ;;  %v5611_v18 = vsel %vm1384_vm14, %v5610_v19, %v5609_v24 }
 0x7f5   : > { %v14158_v54 = vpop.permute.xlu0 %5268  ;;  %v5586_v58 = vrot.slane %v5392_v6, 7  ;;  %v5615_v41 = vsel %vm1369_vm9, %v5614_v43, %v5400_v16  ;;  %v5592_v22 = vrot.slane %v5395_v62, 4  ;;  %v5660_v5 = vrot.slane %v14147_v31, 5 }
 0x7f6   : > { %v5242_v55 = vpop.permute.xlu1 %5241  ;;  %v5617_v14 = vsel %vm1372_vm10, %v5616_v20, %v5615_v41  ;;  %v5397_v4 = vunpack.c.l.b16 %v14158_v54  ;;  %v5657_v54 = vsel %vm1369_vm9, %v5656_v13, %v14147_v31  ;;  %v5624_v37 = vrot.slane %v5406_v39, 2 }
 0x7f7   : > { %v5388_v3 = vunpack.c.l.b16 %v5242_v55  ;;  %v5587_v52 = vsel %vm1369_vm9, %v5586_v58, %v5391_v27  ;;  %v5619_v63 = vsel %vm1375_vm11, %v5618_v49, %v5617_v14  ;;  %v5626_v51 = vrot.slane %v5407_v47, 1 }
 0x7f8   : > { %v5589_v42 = vsel %vm1372_vm10, %v5588_v38, %v5587_v52  ;;  %v5596_v58 = vrot.slane %v5397_v4, 2  ;;  %v5664_v39 = vrot.slane %v14147_v31, 3 }
 0x7f9   : > { %v14174_v35 = vpop.permute.xlu0 %5270  ;;  %v5568_v59 = vrot.slane %v5388_v3, 2  ;;  %v5620_v3 = vrot.slane %v5404_v56, 4 }
 0x7fa   : > { %v5244_v21 = vpop.permute.xlu1 %5243 }
 0x7fb   : > { %v5389_v8 = vunpack.c.l.b16 %v5244_v21  ;;  %v5569_v36 = vsel %vm1384_vm14, %v5568_v59, %v5567_v45  ;;  %v5622_v59 = vrot.slane %v5405_v28, 3  ;;  %v5621_v2 = vsel %vm1378_vm12, %v5620_v3, %v5619_v63 }
 0x7fc   : > { %v5659_v45 = vsel %vm1372_vm10, %v5658_v60, %v5657_v54  ;;  %v5668_v63 = vrot.slane %v14147_v31, 1 }
 0x7fd   : > { %v5570_v10 = vrot.slane %v5389_v8, 1  ;;  %v14189_v15 = vpop.permute.xlu0 %5305 }
 0x7fe   : > { %v5263_v9 = vpop.permute.xlu1 %5262  ;;  %v5411_v29 = vunpack.c.l.b16 %v14189_v15 }
 0x7ff   : > { %v5394_v33 = vunpack.c.l.b16 %v5263_v9  ;;  %v5571_v50 = vsel %vm17044_vm3, %v5570_v10, %v5569_v36  ;;  %v5623_v10 = vsel %vm1381_vm13, %v5622_v59, %v5621_v2 }
 0x800   : > { %v5675_v55 = vpack.c.b16 %v5585_v34, %v5571_v50  ;;  %v5398_v34 = vunpack.c.l.b16 %v14174_v35  ;;  %v5637_v35 = vsel %vm1381_vm13, %v5636_v17, %v5635_v44  ;;  %v5613_v17 = vsel %vm17045_vm8, %v5612_v61, %v5611_v18 }
 0x801   : > { %v5590_v40 = vrot.slane %v5394_v33, 5  ;;  %v5302_v6 = vpop.permute.xlu0 %5301  ;;  %v5625_v9 = vsel %vm1384_vm14, %v5624_v37, %v5623_v10  ;;  %v5639_v15 = vsel %vm1384_vm14, %v5638_v23, %v5637_v35  ;;  %v5661_v50 = vsel %vm1375_vm11, %v5660_v5, %v5659_v45 }
 0x802   : > { %v5267_v30 = vpop.permute.xlu1 %5266  ;;  %5702 = vmatpush1.bf16.msra.mxu1 %v5675_v55  ;;  %v5598_v19 = vrot.slane %v5398_v34, 1  ;;  %v5409_v41 = vunpack.c.l.b16 %v5302_v6  ;;  %v5627_v60 = vsel %vm17046_vm15, %v5626_v51, %v5625_v9  ;;  %v5644_v38 = vrot.slane %v5411_v29, 6 }
 0x803   : > { %v5591_v0 = vsel %vm1375_vm11, %v5590_v40, %v5589_v42  ;;  %v5396_v16 = vunpack.c.l.b16 %v5267_v30  ;;  %5703 = vmatprep.subr.bf16.mxu1 %v16994_v25  ;;  %v5662_v55 = vrot.slane %v14147_v31, 4  ;;  %v5641_v23 = vsel %vm17047_vm7, %v5640_v46, %v5639_v15 }
 0x804   : > { %v5593_v8 = vsel %vm1378_vm12, %v5592_v22, %v5591_v0  ;;  %v5677_v28 = vpack.c.b16 %v5641_v23, %v5627_v60  ;;  %vm8203_vm15 = vcmask 97280   ;;  %vm8287_vm7 = vcmask 39936  }
 0x805   : > { %v5594_v21 = vrot.slane %v5396_v16, 3  ;;  %v5310_v53 = vpop.permute.xlu0 %5309  ;;  %v5663_v40 = vsel %vm1378_vm12, %v5662_v55, %v5661_v50  ;;  %v5666_v16 = vrot.slane %v14147_v31, 2  ;;  %v17050_v31 = vmov 0 }
 0x806   : > { %v5304_v43 = vpop.permute.xlu1 %5303  ;;  %v5413_v62 = vunpack.c.l.b16 %v5310_v53  ;;  %v5665_v47 = vsel %vm1381_vm13, %v5664_v39, %v5663_v40 }
 0x807   : > { %v5595_v24 = vsel %vm1381_vm13, %v5594_v21, %v5593_v8  ;;  %v5410_v13 = vunpack.c.l.b16 %v5304_v43  ;;  %v5667_v5 = vsel %vm1384_vm14, %v5666_v16, %v5665_v47  ;;  %v8365_v8 = vadd.s32 4294967295, %v8357_v7 }
 0x808   : > { %v5597_v27 = vsel %vm1384_vm14, %v5596_v58, %v5595_v24  ;;  %v5648_v4 = vrot.slane %v5413_v62, 4  ;;  %v5669_v2 = vsel %vm17049_vm2, %v5668_v63, %v5667_v5  ;;  %v10398_v58 = vld [vmem:[%s16714_s4] ss:$8 sps:$4 sm:$0xff]  }
 0x809   : > { %v5642_v56 = vrot.slane %v5410_v13, 7  ;;  %v5599_v36 = vsel %vm17039_vm0, %v5598_v19, %v5597_v27  ;;  %v5314_v44 = vpop.permute.xlu0 %5313  ;;  %vm8366_vm3 = vcmp.ge.s32.totalorder %v8365_v8, 0  ;;  %vm8170_vm0 = vcmask 31744  }
 0x80a   : > { %v5308_v20 = vpop.permute.xlu1 %5307  ;;  %v5676_v52 = vpack.c.b16 %v5613_v17, %v5599_v36  ;;  %v5415_v42 = vunpack.c.l.b16 %v5314_v44  ;;  %vm14258_vm8 = vmpackc.low %vm8366_vm3, %vm8366_vm3 }
 0x80b   : > { %v5643_v61 = vsel %vm1369_vm9, %v5642_v56, %v5409_v41  ;;  %v5412_v33 = vunpack.c.l.b16 %v5308_v20  ;;  %v17051_v31 = vsel %vm14258_vm8, 4294967295, %v17050_v31  ;;  %v8419_v43 = vsel %vm14258_vm8, 65537, %v16994_v25  ;;  %vm17098_vm3 = vmmov %vm17049_vm2 }
 0x80c   : > { %5704 = vmatpush1.bf16.msra.mxu1 %v5676_v52  ;;  %v5645_v26 = vsel %vm1372_vm10, %v5644_v38, %v5643_v61  ;;  %v5652_v54 = vrot.slane %v5415_v42, 2  ;;  %17052 = vst [vmem:[#allocation30_spill] sm:$0xff] %v17051_v31  ;;  %v8423_v51 = vrot.slane %v8419_v43, %v17035_v12 }
 0x80d   : > { %v5646_v49 = vrot.slane %v5412_v33, 5  ;;  %5705 = vmatprep.subr.bf16.mxu1 %v16994_v25 }
 0x80e   : > { %v5312_v14 = vpop.permute.xlu1 %5311  ;;  %8424 = vrot.lane.b32.xlu1 %v8423_v51, %s10505_s29 }
 0x80f   : > { %v5647_v6 = vsel %vm1375_vm11, %v5646_v49, %v5645_v26  ;;  %v5414_v3 = vunpack.c.l.b16 %v5312_v14 }
 0x810   : > { %5706 = vmatpush1.bf16.msra.mxu1 %v5677_v28  ;;  %v5649_v34 = vsel %vm1378_vm12, %v5648_v4, %v5647_v6 }
 0x811   : > { %v5650_v30 = vrot.slane %v5414_v3, 3  ;;  %5707 = vmatprep.subr.bf16.mxu1 %v16994_v25 }
 0x812   : > { %v5316_v0 = vpop.permute.xlu1 %5315  ;;  %8462 = vrot.lane.b32.xlu1 %v8423_v51, %s16985_s1 }
 0x813   : > { %v5651_v22 = vsel %vm1381_vm13, %v5650_v30, %v5649_v34  ;;  %v5416_v18 = vunpack.c.l.b16 %v5316_v0 }
 0x814   : > { %v5653_v21 = vsel %vm1384_vm14, %v5652_v54, %v5651_v22 }
 0x815   : > { %v5654_v59 = vrot.slane %v5416_v18, 1 }
 0x817   : > { %v5655_v35 = vsel %vm17048_vm1, %v5654_v59, %v5653_v21  ;;  %vm8320_vm1 = vcmask 171008  }
 0x818   : > { %v5678_v37 = vpack.c.b16 %v5669_v2, %v5655_v35 }
 0x81a   : > { %5708 = vmatpush1.bf16.msra.mxu1 %v5678_v37  ;;  %v5735_v19 = vpop.permute.xlu0 %5734 }
 0x81b   : > { %9999 = vmatprep.subr.bf16.mxu1 %v16858_v32 }
 0x81d   : > { %5724 = vmatmul.mubr.bf16.vlgmr.msra.gmra.mrb[0].mxu1 %v10398_v58 }
 0x81e   : > { %v5747_v29 = vpop.permute.xlu0 %5746 }
 0x822   : > { %v14272_v12 = vpop.permute.xlu0 %8400 }
 0x823   : > { %v5740_v24 = vpop.permute.xlu1 %5739  ;;  %17054 = vst [vmem:[#allocation15_spill] sm:$0xff] %v14272_v12 }
 0x826   : > { %v14274_v20 = vpop.permute.xlu0 %8443 }
 0x827   : > { %v5752_v41 = vpop.permute.xlu1 %5751  ;;  %17055 = vst [vmem:[#allocation16_spill] sm:$0xff] %v14274_v20 }
 0x82a   : > { %v14278_v15 = vpop.permute.xlu0 %8481 }
 0x82b   : > { %17057 = vst [vmem:[#allocation20_spill] sm:$0xff] %v14278_v15 }
 0x880   : > { %v14276_v52 = vpop.permute.xlu1 %8424 }
 0x881   : > { %17056 = vst [vmem:[#allocation19_spill] sm:$0xff] %v14276_v52 }
 0x884   : > { %v14280_v46 = vpop.permute.xlu1 %8462 }
 0x885   : > { %17058 = vst [vmem:[#allocation18_spill] sm:$0xff] %v14280_v46 }
 0x8f0   : > { %v5725_v53 = vpop.f32.mrb[0].mxu1 }
 0x8f1   : > { %v5742_v7 = vmul.f32 %v5735_v19, %v5725_v53  ;;  %v5727_v13 = vpop.f32.mrb[1].mxu1 }
 0x8f2   : > { %v5728_v27 = vpop.f32.mrb[2].mxu1 }
 0x8f3   : > { %v5754_v17 = vadd.f32 %v5747_v29, %v5742_v7  ;;  %v5743_v45 = vmul.f32 %v5740_v24, %v5728_v27  ;;  %v5730_v10 = vpop.f32.mrb[3].mxu1 }
 0x8f5   : > { %v5756_v56 = vmax.f32 %v5754_v17, 0.0  ;;  %v5755_v36 = vadd.f32 %v5752_v41, %v5743_v45 }
 0x8f7   : > { %v5757_v9 = vmax.f32 %v5755_v36, 0.0  ;;  %5760 = vrot.lane.b32.xlu0 %v5756_v56, %s16897_s26 }
 0x8f9   : > { %5762 = vrot.lane.b32.xlu1 %v5757_v9, %s16897_s26  ;;  %s17059_s26 = smov 122  }
 0x8fb   : > { %5766 = vrot.lane.b32.xlu0 %v5756_v56, %s17053_s27 }
 0x8fd   : > { %5768 = vrot.lane.b32.xlu1 %v5757_v9, %s17053_s27 }
 0x8ff   : > { %5772 = vrot.lane.b32.xlu0 %v5756_v56, %s10506_s3 }
 0x901   : > { %5774 = vrot.lane.b32.xlu1 %v5757_v9, %s10506_s3  ;;  %s510_s3 = sand.u32 1, %s10461_s22  }
 0x969   : > { %v5761_v61 = vpop.permute.xlu0 %5760 }
 0x96b   : > { %v5763_v33 = vpop.permute.xlu1 %5762 }
 0x96d   : > { %v5767_v60 = vpop.permute.xlu0 %5766 }
 0x96e   : > { %v5778_v38 = vcombine.low %v5756_v56, %v5767_v60  ;;  %v5779_v40 = vcombine.high %v5756_v56, %v5767_v60 }
 0x96f   : > { %v5769_v50 = vpop.permute.xlu1 %5768 }
 0x970   : > { %v5846_v44 = vcombine.low %v5757_v9, %v5769_v50  ;;  %v5786_v23 = vrot.slane %v5778_v38, %v11902_v57  ;;  %v5847_v34 = vcombine.high %v5757_v9, %v5769_v50  ;;  %v5793_v16 = vrot.slane %v5779_v40, %v11902_v57 }
 0x971   : > { %v5773_v62 = vpop.permute.xlu0 %5772 }
 0x972   : > { %v5794_v55 = vcombine.low %v5761_v61, %v5773_v62  ;;  %v5795_v26 = vcombine.high %v5761_v61, %v5773_v62  ;;  %v5854_v3 = vrot.slane %v5846_v44, %v11902_v57  ;;  %v5861_v59 = vrot.slane %v5847_v34, %v11902_v57 }
 0x973   : > { %v5775_v49 = vpop.permute.xlu1 %5774 }
 0x974   : > { %v5802_v14 = vrot.slane %v5794_v55, %v11902_v57  ;;  %v5862_v28 = vcombine.low %v5763_v33, %v5775_v49  ;;  %v5863_v39 = vcombine.high %v5763_v33, %v5775_v49  ;;  %v5809_v42 = vrot.slane %v5795_v26, %v11902_v57 }
 0x976   : > { %v5811_v6 = vcombine.high %v5786_v23, %v5802_v14  ;;  %v5870_v4 = vrot.slane %v5862_v28, %v11902_v57  ;;  %v5810_v30 = vcombine.low %v5786_v23, %v5802_v14  ;;  %v5877_v22 = vrot.slane %v5863_v39, %v11902_v57 }
 0x977   : > { %v5826_v54 = vcombine.low %v5793_v16, %v5809_v42  ;;  %v5827_v35 = vcombine.high %v5793_v16, %v5809_v42 }
 0x978   : > { %v5825_v47 = vrot.slane %v5811_v6, %v11907_v48  ;;  %v5879_v0 = vcombine.high %v5854_v3, %v5870_v4  ;;  %v5818_v5 = vrot.slane %v5810_v30, %v11907_v48  ;;  %v5894_v63 = vcombine.low %v5861_v59, %v5877_v22 }
 0x979   : > { %v5834_v2 = vrot.slane %v5826_v54, %v11907_v48  ;;  %v5878_v37 = vcombine.low %v5854_v3, %v5870_v4  ;;  %v5895_v58 = vcombine.high %v5861_v59, %v5877_v22  ;;  %v5841_v43 = vrot.slane %v5827_v35, %v11907_v48 }
 0x97a   : > { %5934 = vrot.lane.b32.xlu0 %v5825_v47, %s16900_s28  ;;  %v5893_v18 = vrot.slane %v5879_v0, %v11907_v48  ;;  %v5843_v21 = vcombine.high %v5825_v47, %v16858_v32  ;;  %v5902_v8 = vrot.slane %v5894_v63, %v11907_v48  ;;  %v5842_v24 = vcombine.high %v5818_v5, %v16858_v32 }
 0x97b   : > { %v14305_v51 = vrot.slane %v5878_v37, %v11907_v48  ;;  %v5909_v19 = vrot.slane %v5895_v58, %v11907_v48  ;;  %v14320_v13 = vcombine.high %v5834_v2, %v16858_v32  ;;  %v14330_v27 = vcombine.high %v5841_v43, %v16858_v32 }
 0x97c   : > { %5950 = vrot.lane.b32.xlu1 %v5893_v18, %s16900_s28  ;;  %v14317_v7 = vcombine.high %v5893_v18, %v16858_v32  ;;  %v14327_v29 = vcombine.high %v5902_v8, %v16858_v32 }
 0x97d   : > { %v5910_v53 = vcombine.high %v14305_v51, %v16858_v32  ;;  %v14337_v17 = vcombine.high %v5909_v19, %v16858_v32 }
 0x97e   : > { %5930 = vrot.lane.b32.xlu0 %v5818_v5, %s16900_s28 }
 0x980   : > { %5936 = vrot.lane.b32.xlu1 %v5843_v21, %s16900_s28 }
 0x982   : > { %5938 = vrot.lane.b32.xlu0 %v5834_v2, %s16900_s28 }
 0x984   : > { %5954 = vrot.lane.b32.xlu1 %v5902_v8, %s16900_s28 }
 0x986   : > { %5942 = vrot.lane.b32.xlu0 %v5841_v43, %s16900_s28 }
 0x988   : > { %5958 = vrot.lane.b32.xlu1 %v5909_v19, %s16900_s28 }
 0x98a   : > { %5932 = vrot.lane.b32.xlu0 %v5842_v24, %s16900_s28 }
 0x98c   : > { %5948 = vrot.lane.b32.xlu1 %v5910_v53, %s16900_s28 }
 0x98e   : > { %5946 = vrot.lane.b32.xlu0 %v14305_v51, %s16900_s28 }
 0x990   : > { %5952 = vrot.lane.b32.xlu1 %v14317_v7, %s16900_s28 }
 0x992   : > { %5940 = vrot.lane.b32.xlu0 %v14320_v13, %s16900_s28 }
 0x994   : > { %5956 = vrot.lane.b32.xlu1 %v14327_v29, %s16900_s28 }
 0x996   : > { %5944 = vrot.lane.b32.xlu0 %v14330_v27, %s16900_s28 }
 0x998   : > { %5960 = vrot.lane.b32.xlu1 %v14337_v17, %s16900_s28 }
 0x9ec   : > { %v5935_v45 = vpop.permute.xlu0 %5934 }
 0x9ed   : > { %v14341_v10 = vmax.f32 %v5825_v47, %v5935_v45 }
 0x9ee   : > { %v5951_v41 = vpop.permute.xlu1 %5950 }
 0x9ef   : > { %6014 = vrot.lane.b32.xlu0 %v14341_v10, %s16898_s20  ;;  %v14345_v56 = vmax.f32 %v5893_v18, %v5951_v41 }
 0x9f0   : > { %v5931_v36 = vpop.permute.xlu0 %5930 }
 0x9f1   : > { %6030 = vrot.lane.b32.xlu1 %v14345_v56, %s16898_s20  ;;  %v14355_v9 = vmax.f32 %v5818_v5, %v5931_v36 }
 0x9f2   : > { %v5937_v61 = vpop.permute.xlu1 %5936 }
 0x9f3   : > { %6062 = vrot.lane.b32.xlu0 %v14341_v10, %s16899_s18  ;;  %v14361_v33 = vmax.f32 %v5843_v21, %v5937_v61 }
 0x9f4   : > { %v5939_v60 = vpop.permute.xlu0 %5938 }
 0x9f5   : > { %6078 = vrot.lane.b32.xlu1 %v14345_v56, %s16899_s18  ;;  %v14371_v50 = vmax.f32 %v5834_v2, %v5939_v60 }
 0x9f6   : > { %v5955_v38 = vpop.permute.xlu1 %5954 }
 0x9f7   : > { %6110 = vrot.lane.b32.xlu0 %v14341_v10, %s17059_s26  ;;  %v14377_v62 = vmax.f32 %v5902_v8, %v5955_v38 }
 0x9f8   : > { %v5943_v55 = vpop.permute.xlu0 %5942 }
 0x9f9   : > { %6126 = vrot.lane.b32.xlu1 %v14345_v56, %s17059_s26  ;;  %v14387_v44 = vmax.f32 %v5841_v43, %v5943_v55 }
 0x9fa   : > { %v5959_v49 = vpop.permute.xlu1 %5958 }
 0x9fb   : > { %6010 = vrot.lane.b32.xlu0 %v14355_v9, %s16898_s20  ;;  %v14393_v23 = vmax.f32 %v5909_v19, %v5959_v49 }
 0x9fc   : > { %v5933_v26 = vpop.permute.xlu0 %5932 }
 0x9fd   : > { %6016 = vrot.lane.b32.xlu1 %v14361_v33, %s16898_s20  ;;  %v14403_v14 = vmax.f32 %v5842_v24, %v5933_v26 }
 0x9fe   : > { %v5949_v28 = vpop.permute.xlu1 %5948 }
 0x9ff   : > { %6058 = vrot.lane.b32.xlu0 %v14355_v9, %s16899_s18  ;;  %v14409_v40 = vmax.f32 %v5910_v53, %v5949_v28 }
 0xa00   : > { %v5947_v6 = vpop.permute.xlu0 %5946 }
 0xa01   : > { %6064 = vrot.lane.b32.xlu1 %v14361_v33, %s16899_s18  ;;  %v14420_v3 = vmax.f32 %v14305_v51, %v5947_v6 }
 0xa02   : > { %v5953_v39 = vpop.permute.xlu1 %5952 }
 0xa03   : > { %6106 = vrot.lane.b32.xlu0 %v14355_v9, %s17059_s26  ;;  %v14427_v4 = vmax.f32 %v14317_v7, %v5953_v39 }
 0xa04   : > { %v5941_v42 = vpop.permute.xlu0 %5940 }
 0xa05   : > { %6112 = vrot.lane.b32.xlu1 %v14361_v33, %s17059_s26  ;;  %v14438_v30 = vmax.f32 %v14320_v13, %v5941_v42 }
 0xa06   : > { %v5957_v47 = vpop.permute.xlu1 %5956 }
 0xa07   : > { %6018 = vrot.lane.b32.xlu0 %v14371_v50, %s16898_s20  ;;  %v14445_v34 = vmax.f32 %v14327_v29, %v5957_v47 }
 0xa08   : > { %v5945_v0 = vpop.permute.xlu0 %5944 }
 0xa09   : > { %6034 = vrot.lane.b32.xlu1 %v14377_v62, %s16898_s20  ;;  %v14456_v16 = vmax.f32 %v14330_v27, %v5945_v0 }
 0xa0a   : > { %v5961_v22 = vpop.permute.xlu1 %5960 }
 0xa0b   : > { %6066 = vrot.lane.b32.xlu0 %v14371_v50, %s16899_s18  ;;  %v14463_v18 = vmax.f32 %v14337_v17, %v5961_v22 }
 0xa0d   : > { %6082 = vrot.lane.b32.xlu1 %v14377_v62, %s16899_s18 }
 0xa0f   : > { %6114 = vrot.lane.b32.xlu0 %v14371_v50, %s17059_s26 }
 0xa11   : > { %6130 = vrot.lane.b32.xlu1 %v14377_v62, %s17059_s26 }
 0xa13   : > { %6022 = vrot.lane.b32.xlu0 %v14387_v44, %s16898_s20 }
 0xa15   : > { %6038 = vrot.lane.b32.xlu1 %v14393_v23, %s16898_s20 }
 0xa17   : > { %6070 = vrot.lane.b32.xlu0 %v14387_v44, %s16899_s18 }
 0xa19   : > { %6086 = vrot.lane.b32.xlu1 %v14393_v23, %s16899_s18 }
 0xa1b   : > { %6118 = vrot.lane.b32.xlu0 %v14387_v44, %s17059_s26 }
 0xa1d   : > { %6134 = vrot.lane.b32.xlu1 %v14393_v23, %s17059_s26 }
 0xa1f   : > { %6012 = vrot.lane.b32.xlu0 %v14403_v14, %s16898_s20 }
 0xa21   : > { %6028 = vrot.lane.b32.xlu1 %v14409_v40, %s16898_s20 }
 0xa23   : > { %6060 = vrot.lane.b32.xlu0 %v14403_v14, %s16899_s18 }
 0xa25   : > { %6076 = vrot.lane.b32.xlu1 %v14409_v40, %s16899_s18 }
 0xa27   : > { %6108 = vrot.lane.b32.xlu0 %v14403_v14, %s17059_s26 }
 0xa29   : > { %6124 = vrot.lane.b32.xlu1 %v14409_v40, %s17059_s26 }
 0xa2b   : > { %6026 = vrot.lane.b32.xlu0 %v14420_v3, %s16898_s20 }
 0xa2d   : > { %6032 = vrot.lane.b32.xlu1 %v14427_v4, %s16898_s20 }
 0xa2f   : > { %6074 = vrot.lane.b32.xlu0 %v14420_v3, %s16899_s18 }
 0xa31   : > { %6080 = vrot.lane.b32.xlu1 %v14427_v4, %s16899_s18 }
 0xa33   : > { %6122 = vrot.lane.b32.xlu0 %v14420_v3, %s17059_s26 }
 0xa35   : > { %6128 = vrot.lane.b32.xlu1 %v14427_v4, %s17059_s26 }
 0xa37   : > { %6020 = vrot.lane.b32.xlu0 %v14438_v30, %s16898_s20 }
 0xa39   : > { %6036 = vrot.lane.b32.xlu1 %v14445_v34, %s16898_s20 }
 0xa3b   : > { %6068 = vrot.lane.b32.xlu0 %v14438_v30, %s16899_s18 }
 0xa3d   : > { %6084 = vrot.lane.b32.xlu1 %v14445_v34, %s16899_s18 }
 0xa3f   : > { %6116 = vrot.lane.b32.xlu0 %v14438_v30, %s17059_s26 }
 0xa41   : > { %6132 = vrot.lane.b32.xlu1 %v14445_v34, %s17059_s26 }
 0xa43   : > { %6024 = vrot.lane.b32.xlu0 %v14456_v16, %s16898_s20 }
 0xa45   : > { %6040 = vrot.lane.b32.xlu1 %v14463_v18, %s16898_s20 }
 0xa47   : > { %6072 = vrot.lane.b32.xlu0 %v14456_v16, %s16899_s18 }
 0xa49   : > { %6088 = vrot.lane.b32.xlu1 %v14463_v18, %s16899_s18 }
 0xa4b   : > { %6120 = vrot.lane.b32.xlu0 %v14456_v16, %s17059_s26 }
 0xa4d   : > { %6136 = vrot.lane.b32.xlu1 %v14463_v18, %s17059_s26 }
 0xa61   : > { %v6015_v54 = vpop.permute.xlu0 %6014 }
 0xa63   : > { %v6031_v5 = vpop.permute.xlu1 %6030 }
 0xa65   : > { %v6063_v59 = vpop.permute.xlu0 %6062 }
 0xa66   : > { %v6222_v63 = vcombine.low %v14341_v10, %v6063_v59 }
 0xa67   : > { %v6079_v21 = vpop.permute.xlu1 %6078 }
 0xa68   : > { %v6229_v37 = vrot.slane %v6222_v63, %v11902_v57 }
 0xa69   : > { %v6111_v35 = vpop.permute.xlu0 %6110 }
 0xa6a   : > { %v6230_v2 = vcombine.low %v6015_v54, %v6111_v35 }
 0xa6b   : > { %v6127_v8 = vpop.permute.xlu1 %6126 }
 0xa6c   : > { %v6237_v58 = vrot.slane %v6230_v2, %v11902_v57 }
 0xa6d   : > { %v6011_v43 = vpop.permute.xlu0 %6010 }
 0xa6e   : > { %v6238_v51 = vcombine.low %v6229_v37, %v6237_v58  ;;  %v6239_v19 = vcombine.high %v6229_v37, %v6237_v58 }
 0xa6f   : > { %v14481_v53 = vpop.permute.xlu1 %6016 }
 0xa70   : > { %v14479_v24 = vrot.slane %v6238_v51, %v11907_v48  ;;  %v14487_v29 = vrot.slane %v6239_v19, %v11907_v48  ;;  %v6502_v51 = vcombine.low %v6031_v5, %v6127_v8 }
 0xa71   : > { %v6059_v7 = vpop.permute.xlu0 %6058 }
 0xa72   : > { %6778 = vrot.lane.b32.xlu1 %v14479_v24, %s16907_s2  ;;  %v6154_v13 = vcombine.low %v14355_v9, %v6059_v7 }
 0xa73   : > { %v14491_v45 = vpop.permute.xlu1 %6064 }
 0xa74   : > { %v6161_v10 = vrot.slane %v6154_v13, %v11902_v57 }
 0xa75   : > { %v6107_v27 = vpop.permute.xlu0 %6106 }
 0xa76   : > { %v6162_v17 = vcombine.low %v6011_v43, %v6107_v27  ;;  %6782 = vrot.lane.b32.xlu1 %v14487_v29, %s16907_s2  ;;  %v6494_v27 = vcombine.low %v14345_v56, %v6079_v21 }
 0xa77   : > { %v14498_v9 = vpop.permute.xlu1 %6112 }
 0xa78   : > { %v6169_v41 = vrot.slane %v6162_v17, %v11902_v57  ;;  %v6501_v8 = vrot.slane %v6494_v27, %v11902_v57 }
 0xa79   : > { %v6019_v36 = vpop.permute.xlu0 %6018 }
 0xa7a   : > { %v6170_v61 = vcombine.low %v6161_v10, %v6169_v41  ;;  %v6171_v60 = vcombine.high %v6161_v10, %v6169_v41  ;;  %v6509_v41 = vrot.slane %v6502_v51, %v11902_v57 }
 0xa7b   : > { %v14508_v39 = vpop.permute.xlu1 %6034 }
 0xa7c   : > { %v14496_v38 = vrot.slane %v6170_v61, %v11907_v48  ;;  %v14504_v26 = vrot.slane %v6171_v60, %v11907_v48  ;;  %v6511_v56 = vcombine.high %v6501_v8, %v6509_v41 }
 0xa7d   : > { %v6067_v55 = vpop.permute.xlu0 %6066 }
 0xa7e   : > { %6762 = vrot.lane.b32.xlu0 %v14496_v38, %s16907_s2  ;;  %v6290_v49 = vcombine.low %v14371_v50, %v6067_v55  ;;  %v14547_v60 = vcombine.high %v14496_v38, %v16858_v32 }
 0xa7f   : > { %v14518_v63 = vpop.permute.xlu1 %6082 }
 0xa80   : > { %v6297_v42 = vrot.slane %v6290_v49, %v11902_v57 }
 0xa81   : > { %v6115_v28 = vpop.permute.xlu0 %6114 }
 0xa82   : > { %v6298_v6 = vcombine.low %v6019_v36, %v6115_v28  ;;  %6766 = vrot.lane.b32.xlu0 %v14504_v26, %s16907_s2 }
 0xa83   : > { %v14525_v43 = vpop.permute.xlu1 %6130 }
 0xa84   : > { %v6305_v47 = vrot.slane %v6298_v6, %v11902_v57 }
 0xa85   : > { %v6023_v0 = vpop.permute.xlu0 %6022 }
 0xa86   : > { %v6306_v22 = vcombine.low %v6297_v42, %v6305_v47  ;;  %v6307_v54 = vcombine.high %v6297_v42, %v6305_v47  ;;  %v14556_v47 = vrot.slane %v6511_v56, %v11907_v48 }
 0xa87   : > { %v14537_v61 = vpop.permute.xlu1 %6038 }
 0xa88   : > { %v14513_v59 = vrot.slane %v6307_v54, %v11907_v48  ;;  %v14516_v50 = vrot.slane %v6306_v22, %v11907_v48  ;;  %v14562_v54 = vcombine.high %v14487_v29, %v16858_v32 }
 0xa89   : > { %v6071_v35 = vpop.permute.xlu0 %6070 }
 0xa8a   : > { %6798 = vrot.lane.b32.xlu0 %v14513_v59, %s16907_s2  ;;  %6794 = vrot.lane.b32.xlu1 %v14516_v50, %s16907_s2  ;;  %v6358_v2 = vcombine.low %v14387_v44, %v6071_v35 }
 0xa8b   : > { %v14551_v28 = vpop.permute.xlu1 %6086 }
 0xa8c   : > { %v6365_v19 = vrot.slane %v6358_v2, %v11902_v57 }
 0xa8d   : > { %v6119_v37 = vpop.permute.xlu0 %6118 }
 0xa8e   : > { %v6366_v58 = vcombine.low %v6023_v0, %v6119_v37 }
 0xa8f   : > { %v14567_v2 = vpop.permute.xlu1 %6134 }
 0xa90   : > { %v6373_v7 = vrot.slane %v6366_v58, %v11902_v57  ;;  %v6264_v58 = vcombine.low %v14481_v53, %v14498_v9  ;;  %v14590_v9 = vcombine.high %v14479_v24, %v16858_v32 }
 0xa91   : > { %v6013_v13 = vpop.permute.xlu0 %6012 }
 0xa92   : > { %v6374_v17 = vcombine.low %v6365_v19, %v6373_v7  ;;  %v6375_v10 = vcombine.high %v6365_v19, %v6373_v7 }
 0xa94   : > { %v14532_v36 = vrot.slane %v6375_v10, %v11907_v48  ;;  %v14535_v44 = vrot.slane %v6374_v17, %v11907_v48  ;;  %v6510_v17 = vcombine.low %v6501_v8, %v6509_v41  ;;  %v14583_v10 = vpop.permute.xlu1 %6028 }
 0xa95   : > { %v6061_v5 = vpop.permute.xlu0 %6060 }
 0xa96   : > { %6814 = vrot.lane.b32.xlu1 %v14532_v36, %s16907_s2  ;;  %6810 = vrot.lane.b32.xlu0 %v14535_v44, %s16907_s2  ;;  %v6188_v21 = vcombine.low %v14403_v14, %v6061_v5  ;;  %v6271_v5 = vrot.slane %v6264_v58, %v11902_v57  ;;  %v14596_v8 = vrot.slane %v6510_v17, %v11907_v48 }
 0xa98   : > { %v6195_v6 = vrot.slane %v6188_v21, %v11902_v57 }
 0xa99   : > { %v6109_v55 = vpop.permute.xlu0 %6108 }
 0xa9a   : > { %v6196_v49 = vcombine.low %v6013_v13, %v6109_v55  ;;  %6764 = vrot.lane.b32.xlu1 %v14547_v60, %s16907_s2  ;;  %v6256_v13 = vcombine.low %v14361_v33, %v14491_v45  ;;  %v14601_v55 = vpop.permute.xlu1 %6076 }
 0xa9c   : > { %v6203_v42 = vrot.slane %v6196_v49, %v11902_v57  ;;  %v6263_v33 = vrot.slane %v6256_v13, %v11902_v57 }
 0xa9d   : > { %v6027_v0 = vpop.permute.xlu0 %6026 }
 0xa9e   : > { %v6204_v14 = vcombine.low %v6195_v6, %v6203_v42  ;;  %6846 = vrot.lane.b32.xlu1 %v14556_v47, %s16907_s2  ;;  %v6205_v22 = vcombine.high %v6195_v6, %v6203_v42  ;;  %v6272_v41 = vcombine.low %v6263_v33, %v6271_v5  ;;  %v6570_v6 = vcombine.low %v14508_v39, %v14525_v43 }
 0xaa0   : > { %v14565_v35 = vrot.slane %v6204_v14, %v11907_v48  ;;  %v14577_v19 = vrot.slane %v6205_v22, %v11907_v48  ;;  %v14611_v14 = vrot.slane %v6272_v41, %v11907_v48  ;;  %v6577_v13 = vrot.slane %v6570_v6, %v11902_v57 }
 0xaa1   : > { %v6075_v37 = vpop.permute.xlu0 %6074 }
 0xaa2   : > { %6784 = vrot.lane.b32.xlu1 %v14562_v54, %s16907_s2  ;;  %6770 = vrot.lane.b32.xlu0 %v14565_v35, %s16907_s2  ;;  %v6426_v51 = vcombine.low %v14420_v3, %v6075_v37  ;;  %v6562_v37 = vcombine.low %v14377_v62, %v14518_v63 }
 0xaa4   : > { %v6433_v53 = vrot.slane %v6426_v51, %v11902_v57  ;;  %v6273_v51 = vcombine.high %v6263_v33, %v6271_v5  ;;  %v6569_v17 = vrot.slane %v6562_v37, %v11902_v57 }
 0xaa5   : > { %v6123_v7 = vpop.permute.xlu0 %6122 }
 0xaa6   : > { %v6434_v27 = vcombine.low %v6027_v0, %v6123_v7  ;;  %6774 = vrot.lane.b32.xlu0 %v14577_v19, %s16907_s2  ;;  %v6125_v7 = vpop.permute.xlu1 %6124  ;;  %v6579_v62 = vcombine.high %v6569_v17, %v6577_v13  ;;  %v14627_v63 = vrot.slane %v6273_v51, %v11907_v48  ;;  %v6578_v33 = vcombine.low %v6569_v17, %v6577_v13 }
 0xaa7   : > { %v14680_v17 = vcombine.high %v14513_v59, %v16858_v32 }
 0xaa8   : > { %v6441_v3 = vrot.slane %v6434_v27, %v11902_v57  ;;  %v14643_v6 = vrot.slane %v6579_v62, %v11907_v48  ;;  %v14653_v37 = vrot.slane %v6578_v33, %v11907_v48  ;;  %v6468_v62 = vcombine.low %v14583_v10, %v6125_v7 }
 0xaa9   : > { %v6021_v56 = vpop.permute.xlu0 %6020 }
 0xaaa   : > { %v6443_v45 = vcombine.high %v6433_v53, %v6441_v3  ;;  %6780 = vrot.lane.b32.xlu0 %v14590_v9, %s16907_s2  ;;  %v6442_v42 = vcombine.low %v6433_v53, %v6441_v3  ;;  %v6033_v3 = vpop.permute.xlu1 %6032 }
 0xaac   : > { %v14599_v21 = vrot.slane %v6443_v45, %v11907_v48  ;;  %v6638_v45 = vcombine.low %v14537_v61, %v14567_v2 }
 0xaad   : > { %v6069_v49 = vpop.permute.xlu0 %6068 }
 0xaae   : > { %6842 = vrot.lane.b32.xlu0 %v14596_v8, %s16907_s2  ;;  %6830 = vrot.lane.b32.xlu1 %v14599_v21, %s16907_s2  ;;  %v6324_v0 = vcombine.low %v14438_v30, %v6069_v49  ;;  %v14621_v30 = vrot.slane %v6442_v42, %v11907_v48  ;;  %v14640_v49 = vcombine.high %v14516_v50, %v16858_v32 }
 0xaaf   : > { %v6645_v61 = vrot.slane %v6638_v45, %v11902_v57  ;;  %v6460_v45 = vcombine.low %v14409_v40, %v14601_v55  ;;  %v14706_v55 = vcombine.high %v14565_v35, %v16858_v32 }
 0xab0   : > { %v6331_v39 = vrot.slane %v6324_v0, %v11902_v57  ;;  %v6630_v0 = vcombine.low %v14393_v23, %v14551_v28 }
 0xab1   : > { %v6117_v22 = vpop.permute.xlu0 %6116  ;;  %v6467_v7 = vrot.slane %v6460_v45, %v11902_v57 }
 0xab2   : > { %v6332_v58 = vcombine.low %v6021_v56, %v6117_v22  ;;  %6786 = vrot.lane.b32.xlu0 %v14611_v14, %s16907_s2  ;;  %v6081_v22 = vpop.permute.xlu1 %6080  ;;  %v6637_v51 = vrot.slane %v6630_v0, %v11902_v57 }
 0xab4   : > { %v6339_v43 = vrot.slane %v6332_v58, %v11902_v57  ;;  %v6647_v28 = vcombine.high %v6637_v51, %v6645_v61 }
 0xab5   : > { %v6025_v27 = vpop.permute.xlu0 %6024 }
 0xab6   : > { %v6340_v53 = vcombine.low %v6331_v39, %v6339_v43  ;;  %6826 = vrot.lane.b32.xlu0 %v14621_v30, %s16907_s2  ;;  %v6341_v41 = vcombine.high %v6331_v39, %v6339_v43  ;;  %v14667_v39 = vcombine.high %v14504_v26, %v16858_v32  ;;  %v14671_v43 = vcombine.high %v14535_v44, %v16858_v32 }
 0xab7   : > { %v14684_v33 = vrot.slane %v6647_v28, %v11907_v48 }
 0xab8   : > { %v14630_v5 = vrot.slane %v6340_v53, %v11907_v48  ;;  %v14656_v58 = vrot.slane %v6341_v41, %v11907_v48  ;;  %v6646_v53 = vcombine.low %v6637_v51, %v6645_v61 }
 0xab9   : > { %v6073_v56 = vpop.permute.xlu0 %6072 }
 0xaba   : > { %6790 = vrot.lane.b32.xlu0 %v14627_v63, %s16907_s2  ;;  %6802 = vrot.lane.b32.xlu1 %v14630_v5, %s16907_s2  ;;  %v6392_v23 = vcombine.low %v14456_v16, %v6073_v56  ;;  %v14694_v61 = vrot.slane %v6646_v53, %v11907_v48  ;;  %v6528_v53 = vcombine.low %v14427_v4, %v6081_v22 }
 0xabb   : > { %v14742_v22 = vcombine.high %v14611_v14, %v16858_v32 }
 0xabc   : > { %v6399_v16 = vrot.slane %v6392_v23, %v11902_v57  ;;  %v6535_v45 = vrot.slane %v6528_v53, %v11902_v57 }
 0xabd   : > { %v6121_v42 = vpop.permute.xlu0 %6120 }
 0xabe   : > { %6796 = vrot.lane.b32.xlu0 %v14640_v49, %s16907_s2  ;;  %6862 = vrot.lane.b32.xlu1 %v14643_v6, %s16907_s2  ;;  %v6400_v2 = vcombine.low %v6025_v27, %v6121_v42  ;;  %v6129_v27 = vpop.permute.xlu1 %6128  ;;  %v6475_v42 = vrot.slane %v6468_v62, %v11902_v57 }
 0xabf   : > { %v6536_v28 = vcombine.low %v6033_v3, %v6129_v27  ;;  %v14730_v3 = vcombine.high %v14596_v8, %v16858_v32 }
 0xac0   : > { %v6407_v13 = vrot.slane %v6400_v2, %v11902_v57  ;;  %v6477_v40 = vcombine.high %v6467_v7, %v6475_v42  ;;  %v6476_v23 = vcombine.low %v6467_v7, %v6475_v42  ;;  %v14746_v42 = vcombine.high %v14577_v19, %v16858_v32 }
 0xac2   : > { %6858 = vrot.lane.b32.xlu0 %v14653_v37, %s16907_s2  ;;  %6806 = vrot.lane.b32.xlu1 %v14656_v58, %s16907_s2  ;;  %v6409_v56 = vcombine.high %v6399_v16, %v6407_v13  ;;  %v6037_v41 = vpop.permute.xlu1 %6036  ;;  %v6408_v0 = vcombine.low %v6399_v16, %v6407_v13  ;;  %v14716_v13 = vrot.slane %v6477_v40, %v11907_v48 }
 0xac3   : > { %v14720_v16 = vcombine.high %v14532_v36, %v16858_v32  ;;  %v14733_v27 = vrot.slane %v6476_v23, %v11907_v48  ;;  %v14754_v23 = vcombine.high %v14621_v30, %v16858_v32 }
 0xac4   : > { %v14697_v10 = vrot.slane %v6409_v56, %v11907_v48  ;;  %v14709_v2 = vrot.slane %v6408_v0, %v11907_v48  ;;  %v6543_v56 = vrot.slane %v6536_v28, %v11902_v57  ;;  %v14862_v31 = vcombine.high %v14716_v13, %v16858_v32 }
 0xac6   : > { %6768 = vrot.lane.b32.xlu0 %v14667_v39, %s16907_s2  ;;  %6812 = vrot.lane.b32.xlu1 %v14671_v43, %s16907_s2  ;;  %v6085_v51 = vpop.permute.xlu1 %6084  ;;  %v6544_v4 = vcombine.low %v6535_v45, %v6543_v56  ;;  %v6545_v7 = vcombine.high %v6535_v45, %v6543_v56  ;;  %v14783_v45 = vcombine.high %v14630_v5, %v16858_v32 }
 0xac7   : > { %v6596_v53 = vcombine.low %v14445_v34, %v6085_v51  ;;  %v14779_v51 = vcombine.high %v14653_v37, %v16858_v32  ;;  %v14843_v25 = vcombine.high %v14709_v2, %v16858_v32  ;;  %17068 = vst [vmem:[#allocation31_spill] sm:$0xff] %v14862_v31 }
 0xac8   : > { %v14757_v28 = vrot.slane %v6544_v4, %v11907_v48 }
 0xac9   : > { %v6603_v56 = vrot.slane %v6596_v53, %v11902_v57  ;;  %17066 = vst [vmem:[#allocation28_spill] sm:$0xff] %v14843_v25 }
 0xaca   : > { %6800 = vrot.lane.b32.xlu0 %v14680_v17, %s16907_s2  ;;  %6878 = vrot.lane.b32.xlu1 %v14684_v33, %s16907_s2  ;;  %v6133_v62 = vpop.permute.xlu1 %6132  ;;  %v14878_v11 = vcombine.high %v14757_v28, %v16858_v32 }
 0xacb   : > { %v6604_v40 = vcombine.low %v6037_v41, %v6133_v62  ;;  %v14766_v41 = vrot.slane %v6545_v7, %v11907_v48  ;;  %v14770_v62 = vcombine.high %v14556_v47, %v16858_v32 }
 0xacc   : > { %17071 = vst [vmem:[#allocation34_spill] sm:$0xff] %v14878_v11 }
 0xacd   : > { %v6611_v15 = vrot.slane %v6604_v40, %v11902_v57  ;;  %v14791_v40 = vcombine.high %v14627_v63, %v16858_v32 }
 0xace   : > { %6874 = vrot.lane.b32.xlu0 %v14694_v61, %s16907_s2  ;;  %6822 = vrot.lane.b32.xlu1 %v14697_v10, %s16907_s2  ;;  %v6041_v0 = vpop.permute.xlu1 %6040 }
 0xacf   : > { %v6612_v34 = vcombine.low %v6603_v56, %v6611_v15  ;;  %v6613_v20 = vcombine.high %v6603_v56, %v6611_v15 }
 0xad1   : > { %v14794_v53 = vrot.slane %v6612_v34, %v11907_v48  ;;  %v14816_v15 = vrot.slane %v6613_v20, %v11907_v48 }
 0xad2   : > { %6772 = vrot.lane.b32.xlu1 %v14706_v55, %s16907_s2  ;;  %6818 = vrot.lane.b32.xlu0 %v14709_v2, %s16907_s2  ;;  %v6089_v1 = vpop.permute.xlu1 %6088 }
 0xad3   : > { %v6664_v46 = vcombine.low %v14463_v18, %v6089_v1  ;;  %17061 = vst [vmem:[#allocation22_spill] sm:$0xff] %v14816_v15  ;;  %v14820_v18 = vcombine.high %v14656_v58, %v16858_v32 }
 0xad5   : > { %v6671_v34 = vrot.slane %v6664_v46, %v11902_v57  ;;  %17062 = vst [vmem:[#allocation24_spill] sm:$0xff] %v14820_v18  ;;  %v14828_v46 = vcombine.high %v14694_v61, %v16858_v32 }
 0xad6   : > { %6838 = vrot.lane.b32.xlu1 %v14716_v13, %s16907_s2  ;;  %6816 = vrot.lane.b32.xlu0 %v14720_v16, %s16907_s2  ;;  %v6137_v4 = vpop.permute.xlu1 %6136 }
 0xad7   : > { %v6672_v7 = vcombine.low %v6041_v0, %v6137_v4  ;;  %v14804_v0 = vcombine.high %v14599_v21, %v16858_v32  ;;  %v14808_v4 = vcombine.high %v14643_v6, %v16858_v32  ;;  %17063 = vst [vmem:[#allocation25_spill] sm:$0xff] %v14828_v46 }
 0xad9   : > { %v6679_v52 = vrot.slane %v6672_v7, %v11902_v57  ;;  %17060 = vst [vmem:[#allocation21_spill] sm:$0xff] %v14808_v4  ;;  %v14839_v7 = vcombine.high %v14684_v33, %v16858_v32  ;;  %v14866_v57 = vcombine.high %v14733_v27, %v16858_v32 }
 0xada   : > { %6844 = vrot.lane.b32.xlu1 %v14730_v3, %s16907_s2  ;;  %6834 = vrot.lane.b32.xlu0 %v14733_v27, %s16907_s2 }
 0xadb   : > { %v6680_v1 = vcombine.low %v6671_v34, %v6679_v52  ;;  %v6681_v20 = vcombine.high %v6671_v34, %v6679_v52  ;;  %17065 = vst [vmem:[#allocation27_spill] sm:$0xff] %v14839_v7  ;;  %17069 = vst [vmem:[#allocation32_spill] sm:$0xff] %v14866_v57 }
 0xadd   : > { %v14831_v56 = vrot.slane %v6680_v1, %v11907_v48  ;;  %v14851_v1 = vcombine.high %v14697_v10, %v16858_v32  ;;  %v14854_v52 = vrot.slane %v6681_v20, %v11907_v48  ;;  %v14874_v48 = vcombine.high %v14766_v41, %v16858_v32 }
 0xade   : > { %6788 = vrot.lane.b32.xlu1 %v14742_v22, %s16907_s2  ;;  %6776 = vrot.lane.b32.xlu0 %v14746_v42, %s16907_s2 }
 0xadf   : > { %17064 = vst [vmem:[#allocation26_spill] sm:$0xff] %v14831_v56  ;;  %17067 = vst [vmem:[#allocation29_spill] sm:$0xff] %v14851_v1 }
 0xae0   : > { %17070 = vst [vmem:[#allocation33_spill] sm:$0xff] %v14874_v48 }
 0xae2   : > { %6828 = vrot.lane.b32.xlu1 %v14754_v23, %s16907_s2  ;;  %6850 = vrot.lane.b32.xlu0 %v14757_v28, %s16907_s2 }
 0xae4   : > { %v6779_v12 = vpop.permute.xlu1 %6778 }
 0xae6   : > { %6854 = vrot.lane.b32.xlu1 %v14766_v41, %s16907_s2  ;;  %6848 = vrot.lane.b32.xlu0 %v14770_v62, %s16907_s2 }
 0xaea   : > { %6860 = vrot.lane.b32.xlu1 %v14779_v51, %s16907_s2  ;;  %6804 = vrot.lane.b32.xlu0 %v14783_v45, %s16907_s2 }
 0xaee   : > { %6792 = vrot.lane.b32.xlu1 %v14791_v40, %s16907_s2  ;;  %6866 = vrot.lane.b32.xlu0 %v14794_v53, %s16907_s2 }
 0xaf0   : > { %v6763_v34 = vpop.permute.xlu0 %6762 }
 0xaf2   : > { %6832 = vrot.lane.b32.xlu1 %v14804_v0, %s16907_s2  ;;  %6864 = vrot.lane.b32.xlu0 %v14808_v4, %s16907_s2 }
 0xaf4   : > { %v6767_v20 = vpop.permute.xlu0 %6766 }
 0xaf6   : > { %6870 = vrot.lane.b32.xlu1 %v14816_v15, %s16907_s2  ;;  %6808 = vrot.lane.b32.xlu0 %v14820_v18, %s16907_s2 }
 0xafa   : > { %6876 = vrot.lane.b32.xlu1 %v14828_v46, %s16907_s2  ;;  %6882 = vrot.lane.b32.xlu0 %v14831_v56, %s16907_s2 }
 0xafe   : > { %6880 = vrot.lane.b32.xlu0 %v14839_v7, %s16907_s2  ;;  %6820 = vrot.lane.b32.xlu1 %v14843_v25, %s16907_s2  ;;  %v14890_v7 = vcombine.high %v14794_v53, %v16858_v32 }
 0xb00   : > { %17073 = vst [vmem:[#allocation36_spill] sm:$0xff] %v14890_v7 }
 0xb02   : > { %6824 = vrot.lane.b32.xlu0 %v14851_v1, %s16907_s2  ;;  %6886 = vrot.lane.b32.xlu1 %v14854_v52, %s16907_s2  ;;  %v6783_v1 = vpop.permute.xlu1 %6782 }
 0xb06   : > { %6840 = vrot.lane.b32.xlu0 %v14862_v31, %s16907_s2  ;;  %6836 = vrot.lane.b32.xlu1 %v14866_v57, %s16907_s2  ;;  %v6799_v31 = vpop.permute.xlu0 %6798  ;;  %v14886_v57 = vcombine.high %v14816_v15, %v16858_v32  ;;  %v6795_v25 = vpop.permute.xlu1 %6794  ;;  %v6956_v15 = vmax.f32 %v14504_v26, %v6767_v20 }
 0xb08   : > { %17072 = vst [vmem:[#allocation35_spill] sm:$0xff] %v14886_v57 }
 0xb0a   : > { %6856 = vrot.lane.b32.xlu0 %v14874_v48, %s16907_s2  ;;  %6852 = vrot.lane.b32.xlu1 %v14878_v11, %s16907_s2  ;;  %v6954_v48 = vmax.f32 %v14496_v38, %v6763_v34  ;;  %v6811_v46 = vpop.permute.xlu0 %6810  ;;  %v14899_v11 = vcombine.high %v14831_v56, %v16858_v32  ;;  %v6815_v18 = vpop.permute.xlu1 %6814  ;;  %v6962_v38 = vmax.f32 %v14479_v24, %v6779_v12 }
 0xb0b   : > { %v6972_v34 = vmax.f32 %v14513_v59, %v6799_v31  ;;  %v6978_v26 = vmax.f32 %v14535_v44, %v6811_v46  ;;  %v6980_v31 = vmax.f32 %v14532_v36, %v6815_v18 }
 0xb0c   : > { %17074 = vst [vmem:[#allocation37_spill] sm:$0xff] %v14899_v11 }
 0xb0e   : > { %6872 = vrot.lane.b32.xlu0 %v14886_v57, %s16907_s2  ;;  %6868 = vrot.lane.b32.xlu1 %v14890_v7, %s16907_s2  ;;  %v14906_v57 = vcombine.high %v14854_v52, %v16858_v32  ;;  %v6765_v7 = vpop.permute.xlu1 %6764  ;;  %v6970_v32 = vmax.f32 %v14516_v50, %v6795_v25 }
 0xb10   : > { %17075 = vst [vmem:[#allocation38_spill] sm:$0xff] %v14906_v57 }
 0xb12   : > { %6884 = vrot.lane.b32.xlu1 %v14899_v11, %s16907_s2  ;;  %7083 = vperm.xlu0 %10135, %v6954_v48   ;;  %v6964_v48 = vmax.f32 %v14487_v29, %v6783_v1  ;;  %v6847_v11 = vpop.permute.xlu1 %6846  ;;  %v6955_v29 = vmax.f32 %v14547_v60, %v6765_v7 }
 0xb13   : > { %v6996_v25 = vmax.f32 %v14556_v47, %v6847_v11 }
 0xb14   : > { %v6771_v4 = vpop.permute.xlu0 %6770 }
 0xb16   : > { %6888 = vrot.lane.b32.xlu1 %v14906_v57, %s16907_s2  ;;  %7089 = vperm.xlu0 %10135, %v6956_v15   ;;  %v6958_v15 = vmax.f32 %v14565_v35, %v6771_v4  ;;  %v6785_v12 = vpop.permute.xlu1 %6784 }
 0xb17   : > { %v6965_v35 = vmax.f32 %v14562_v54, %v6785_v12 }
 0xb18   : > { %v6775_v56 = vpop.permute.xlu0 %6774 }
 0xb19   : > { %v6960_v24 = vmax.f32 %v14577_v19, %v6775_v56 }
 0xb1a   : > { %7107 = vperm.xlu1 %10134, %v6962_v38   ;;  %7137 = vperm.xlu0 %10135, %v6972_v34  }
 0xb1c   : > { %v6781_v20 = vpop.permute.xlu0 %6780 }
 0xb1d   : > { %v6963_v44 = vmax.f32 %v14590_v9, %v6781_v20 }
 0xb1e   : > { %7113 = vperm.xlu1 %10134, %v6964_v48   ;;  %7155 = vperm.xlu0 %10135, %v6978_v26  }
 0xb20   : > { %v6843_v57 = vpop.permute.xlu0 %6842  ;;  %v6831_v46 = vpop.permute.xlu1 %6830 }
 0xb21   : > { %v6988_v9 = vmax.f32 %v14599_v21, %v6831_v46 }
 0xb22   : > { %7131 = vperm.xlu1 %10134, %v6970_v32   ;;  %7095 = vperm.xlu0 %10135, %v6958_v15   ;;  %v6994_v32 = vmax.f32 %v14596_v8, %v6843_v57 }
 0xb24   : > { %v6787_v59 = vpop.permute.xlu0 %6786 }
 0xb25   : > { %v6966_v19 = vmax.f32 %v14611_v14, %v6787_v59 }
 0xb26   : > { %7161 = vperm.xlu1 %10134, %v6980_v31   ;;  %7101 = vperm.xlu0 %10135, %v6960_v24  }
 0xb28   : > { %v6827_v1 = vpop.permute.xlu0 %6826 }
 0xb29   : > { %v6986_v18 = vmax.f32 %v14621_v30, %v6827_v1 }
 0xb2a   : > { %7086 = vperm.xlu1 %10134, %v6955_v29   ;;  %7110 = vperm.xlu0 %10135, %v6963_v44  }
 0xb2c   : > { %v6803_v50 = vpop.permute.xlu1 %6802  ;;  %v6791_v36 = vpop.permute.xlu0 %6790 }
 0xb2d   : > { %v6974_v57 = vmax.f32 %v14630_v5, %v6803_v50  ;;  %v6968_v47 = vmax.f32 %v14627_v63, %v6791_v36 }
 0xb2e   : > { %7209 = vperm.xlu1 %10134, %v6996_v25   ;;  %7203 = vperm.xlu0 %10135, %v6994_v32  }
 0xb30   : > { %v6863_v4 = vpop.permute.xlu1 %6862  ;;  %v6797_v60 = vpop.permute.xlu0 %6796 }
 0xb31   : > { %v7004_v14 = vmax.f32 %v14643_v6, %v6863_v4  ;;  %v6971_v7 = vmax.f32 %v14640_v49, %v6797_v60 }
 0xb32   : > { %7116 = vperm.xlu1 %10134, %v6965_v35   ;;  %7119 = vperm.xlu0 %10135, %v6966_v19  }
 0xb34   : > { %v6807_v56 = vpop.permute.xlu1 %6806  ;;  %v6859_v11 = vpop.permute.xlu0 %6858 }
 0xb35   : > { %v6976_v30 = vmax.f32 %v14656_v58, %v6807_v56  ;;  %v7002_v34 = vmax.f32 %v14653_v37, %v6859_v11  ;;  %v17076_v11 = vld [vmem:[#allocation21_spill] sm:$0xff] }
 0xb36   : > { %7185 = vperm.xlu1 %10134, %v6988_v9   ;;  %7179 = vperm.xlu0 %10135, %v6986_v18  }
 0xb38   : > { %v6813_v8 = vpop.permute.xlu1 %6812  ;;  %v6769_v54 = vpop.permute.xlu0 %6768 }
 0xb39   : > { %v6979_v63 = vmax.f32 %v14671_v43, %v6813_v8  ;;  %v6957_v26 = vmax.f32 %v14667_v39, %v6769_v54  ;;  %v17078_v54 = vld [vmem:[#allocation24_spill] sm:$0xff] }
 0xb3a   : > { %7143 = vperm.xlu1 %10134, %v6974_v57   ;;  %7125 = vperm.xlu0 %10135, %v6968_v47  }
 0xb3c   : > { %v6879_v38 = vpop.permute.xlu1 %6878  ;;  %v6801_v21 = vpop.permute.xlu0 %6800 }
 0xb3d   : > { %v7012_v49 = vmax.f32 %v14684_v33, %v6879_v38  ;;  %v6973_v15 = vmax.f32 %v14680_v17, %v6801_v21  ;;  %v17080_v21 = vld [vmem:[#allocation26_spill] sm:$0xff] }
 0xb3e   : > { %7233 = vperm.xlu1 %10134, %v7004_v14   ;;  %7134 = vperm.xlu0 %10135, %v6971_v7  }
 0xb40   : > { %v6823_v48 = vpop.permute.xlu1 %6822  ;;  %v6875_v5 = vpop.permute.xlu0 %6874 }
 0xb41   : > { %v6984_v37 = vmax.f32 %v14697_v10, %v6823_v48  ;;  %v7010_v12 = vmax.f32 %v14694_v61, %v6875_v5  ;;  %v17082_v5 = vld [vmem:[#allocation27_spill] sm:$0xff] }
 0xb42   : > { %7149 = vperm.xlu1 %10134, %v6976_v30   ;;  %7227 = vperm.xlu0 %10135, %v7002_v34  }
 0xb44   : > { %v6773_v20 = vpop.permute.xlu1 %6772  ;;  %v6819_v6 = vpop.permute.xlu0 %6818 }
 0xb45   : > { %v6959_v39 = vmax.f32 %v14706_v55, %v6773_v20  ;;  %v6982_v59 = vmax.f32 %v14709_v2, %v6819_v6 }
 0xb46   : > { %7158 = vperm.xlu1 %10134, %v6979_v63   ;;  %7092 = vperm.xlu0 %10135, %v6957_v26  }
 0xb48   : > { %v6839_v31 = vpop.permute.xlu1 %6838  ;;  %v6817_v58 = vpop.permute.xlu0 %6816 }
 0xb49   : > { %v6992_v17 = vmax.f32 %v14716_v13, %v6839_v31  ;;  %v6981_v44 = vmax.f32 %v14720_v16, %v6817_v58  ;;  %v17084_v58 = vld [vmem:[#allocation32_spill] sm:$0xff] }
 0xb4a   : > { %7257 = vperm.xlu1 %10134, %v7012_v49   ;;  %7140 = vperm.xlu0 %10135, %v6973_v15   ;;  %v17083_v49 = vld [vmem:[#allocation29_spill] sm:$0xff] }
 0xb4c   : > { %v6845_v24 = vpop.permute.xlu1 %6844  ;;  %v6835_v43 = vpop.permute.xlu0 %6834 }
 0xb4d   : > { %v6995_v61 = vmax.f32 %v14730_v3, %v6845_v24  ;;  %v6990_v1 = vmax.f32 %v14733_v27, %v6835_v43 }
 0xb4e   : > { %7173 = vperm.xlu1 %10134, %v6984_v37   ;;  %7251 = vperm.xlu0 %10135, %v7010_v12   ;;  %v17085_v12 = vld [vmem:[#allocation31_spill] sm:$0xff] }
 0xb50   : > { %v6789_v29 = vpop.permute.xlu1 %6788  ;;  %v6777_v33 = vpop.permute.xlu0 %6776 }
 0xb51   : > { %v6967_v2 = vmax.f32 %v14742_v22, %v6789_v29  ;;  %v6961_v32 = vmax.f32 %v14746_v42, %v6777_v33  ;;  %v17087_v29 = vld [vmem:[#allocation33_spill] sm:$0xff] }
 0xb52   : > { %7098 = vperm.xlu1 %10134, %v6959_v39   ;;  %7167 = vperm.xlu0 %10135, %v6982_v59   ;;  %v17086_v39 = vld [vmem:[#allocation34_spill] sm:$0xff] }
 0xb54   : > { %v6829_v46 = vpop.permute.xlu1 %6828  ;;  %v6851_v10 = vpop.permute.xlu0 %6850 }
 0xb55   : > { %v6987_v16 = vmax.f32 %v14754_v23, %v6829_v46  ;;  %v6998_v36 = vmax.f32 %v14757_v28, %v6851_v10  ;;  %v17089_v10 = vld [vmem:[#allocation35_spill] sm:$0xff] }
 0xb56   : > { %7197 = vperm.xlu1 %10134, %v6992_v17   ;;  %7164 = vperm.xlu0 %10135, %v6981_v44   ;;  %v17088_v44 = vld [vmem:[#allocation36_spill] sm:$0xff] }
 0xb58   : > { %v6855_v25 = vpop.permute.xlu1 %6854  ;;  %v6849_v55 = vpop.permute.xlu0 %6848 }
 0xb59   : > { %v7000_v27 = vmax.f32 %v14766_v41, %v6855_v25  ;;  %v6997_v19 = vmax.f32 %v14770_v62, %v6849_v55 }
 0xb5a   : > { %7206 = vperm.xlu1 %10134, %v6995_v61   ;;  %7191 = vperm.xlu0 %10135, %v6990_v1   ;;  %v17090_v1 = vld [vmem:[#allocation37_spill] sm:$0xff] }
 0xb5c   : > { %v6861_v50 = vpop.permute.xlu1 %6860  ;;  %v6805_v13 = vpop.permute.xlu0 %6804 }
 0xb5d   : > { %v7003_v42 = vmax.f32 %v14779_v51, %v6861_v50  ;;  %v6975_v60 = vmax.f32 %v14783_v45, %v6805_v13  ;;  %v17077_v45 = vld [vmem:[#allocation22_spill] sm:$0xff] }
 0xb5e   : > { %7122 = vperm.xlu1 %10134, %v6967_v2   ;;  %7104 = vperm.xlu0 %10135, %v6961_v32   ;;  %v17091_v32 = vld [vmem:[#allocation38_spill] sm:$0xff] }
 0xb60   : > { %v6793_v35 = vpop.permute.xlu1 %6792  ;;  %v6867_v3 = vpop.permute.xlu0 %6866 }
 0xb61   : > { %v6969_v28 = vmax.f32 %v14791_v40, %v6793_v35  ;;  %v7006_v18 = vmax.f32 %v14794_v53, %v6867_v3  ;;  %v17079_v53 = vld [vmem:[#allocation25_spill] sm:$0xff] }
 0xb62   : > { %7182 = vperm.xlu1 %10134, %v6987_v16   ;;  %7215 = vperm.xlu0 %10135, %v6998_v36  }
 0xb64   : > { %v6833_v4 = vpop.permute.xlu1 %6832  ;;  %v6865_v22 = vpop.permute.xlu0 %6864 }
 0xb65   : > { %v6989_v62 = vmax.f32 %v14804_v0, %v6833_v4  ;;  %v7005_v57 = vmax.f32 %v17076_v11, %v6865_v22  ;;  %v17081_v0 = vld [vmem:[#allocation28_spill] sm:$0xff] }
 0xb66   : > { %7221 = vperm.xlu1 %10134, %v7000_v27   ;;  %7212 = vperm.xlu0 %10135, %v6997_v19  }
 0xb68   : > { %v6871_v9 = vpop.permute.xlu1 %6870  ;;  %v6809_v23 = vpop.permute.xlu0 %6808 }
 0xb69   : > { %v7008_v8 = vmax.f32 %v17077_v45, %v6871_v9  ;;  %v6977_v14 = vmax.f32 %v17078_v54, %v6809_v23 }
 0xb6a   : > { %7230 = vperm.xlu1 %10134, %v7003_v42   ;;  %7146 = vperm.xlu0 %10135, %v6975_v60  }
 0xb6c   : > { %v6877_v56 = vpop.permute.xlu1 %6876  ;;  %v6883_v41 = vpop.permute.xlu0 %6882 }
 0xb6d   : > { %v7011_v38 = vmax.f32 %v17079_v53, %v6877_v56  ;;  %v7014_v30 = vmax.f32 %v17080_v21, %v6883_v41 }
 0xb6e   : > { %7128 = vperm.xlu1 %10134, %v6969_v28   ;;  %7239 = vperm.xlu0 %10135, %v7006_v18  }
 0xb70   : > { %v6821_v47 = vpop.permute.xlu1 %6820  ;;  %v6881_v51 = vpop.permute.xlu0 %6880 }
 0xb71   : > { %v6983_v48 = vmax.f32 %v17081_v0, %v6821_v47  ;;  %v7013_v63 = vmax.f32 %v17082_v5, %v6881_v51  ;;  %v17092_v5 = vld [vmem:[#allocation17_spill] sm:$0xff] }
 0xb72   : > { %7188 = vperm.xlu1 %10134, %v6989_v62   ;;  %7236 = vperm.xlu0 %10135, %v7005_v57  }
 0xb74   : > { %v6887_v7 = vpop.permute.xlu1 %6886  ;;  %v6825_v40 = vpop.permute.xlu0 %6824 }
 0xb75   : > { %v7016_v6 = vmax.f32 %v14854_v52, %v6887_v7  ;;  %v6985_v15 = vmax.f32 %v17083_v49, %v6825_v40 }
 0xb76   : > { %7245 = vperm.xlu1 %10134, %v7008_v8   ;;  %7152 = vperm.xlu0 %10135, %v6977_v14  }
 0xb78   : > { %v6837_v34 = vpop.permute.xlu1 %6836  ;;  %v6841_v26 = vpop.permute.xlu0 %6840 }
 0xb79   : > { %v6991_v37 = vmax.f32 %v17084_v58, %v6837_v34  ;;  %v6993_v24 = vmax.f32 %v17085_v12, %v6841_v26 }
 0xb7a   : > { %7254 = vperm.xlu1 %10134, %v7011_v38   ;;  %7263 = vperm.xlu0 %10135, %v7014_v30  }
 0xb7c   : > { %v6853_v20 = vpop.permute.xlu1 %6852  ;;  %v6857_v31 = vpop.permute.xlu0 %6856 }
 0xb7d   : > { %v6999_v59 = vmax.f32 %v17086_v39, %v6853_v20  ;;  %v7001_v33 = vmax.f32 %v17087_v29, %v6857_v31 }
 0xb7e   : > { %7170 = vperm.xlu1 %10134, %v6983_v48   ;;  %7260 = vperm.xlu0 %10135, %v7013_v63  }
 0xb80   : > { %v6869_v43 = vpop.permute.xlu1 %6868  ;;  %v6873_v17 = vpop.permute.xlu0 %6872 }
 0xb81   : > { %v7007_v46 = vmax.f32 %v17088_v44, %v6869_v43  ;;  %v7009_v61 = vmax.f32 %v17089_v10, %v6873_v17 }
 0xb82   : > { %7269 = vperm.xlu1 %10134, %v7016_v6   ;;  %7176 = vperm.xlu0 %10135, %v6985_v15  }
 0xb84   : > { %v6885_v52 = vpop.permute.xlu1 %6884 }
 0xb85   : > { %v7015_v25 = vmax.f32 %v17090_v1, %v6885_v52  ;;  %v17093_v52 = vld [vmem:[#allocation13_spill] sm:$0xff] }
 0xb86   : > { %7194 = vperm.xlu1 %10134, %v6991_v37   ;;  %7200 = vperm.xlu0 %10135, %v6993_v24  }
 0xb88   : > { %v6889_v55 = vpop.permute.xlu1 %6888 }
 0xb89   : > { %v7017_v50 = vmax.f32 %v17091_v32, %v6889_v55 }
 0xb8a   : > { %7218 = vperm.xlu1 %10134, %v6999_v59   ;;  %7224 = vperm.xlu0 %10135, %v7001_v33  }
 0xb8e   : > { %7242 = vperm.xlu1 %10134, %v7007_v46   ;;  %7248 = vperm.xlu0 %10135, %v7009_v61  }
 0xb91   : > { %v14971_v2 = vpop.permute.xlu0 %7083 }
 0xb92   : > { %7266 = vperm.xlu1 %10134, %v7015_v25   ;;  %v7277_v33 = vrot.slane %v14971_v2, %v17092_v5 }
 0xb95   : > { %v14974_v13 = vpop.permute.xlu0 %7089 }
 0xb96   : > { %7272 = vperm.xlu1 %10134, %v7017_v50   ;;  %v7285_v2 = vrot.slane %v14974_v13, %v17092_v5 }
 0xb99   : > { %v7108_v16 = vpop.permute.xlu1 %7107  ;;  %v14976_v36 = vpop.permute.xlu0 %7137 }
 0xb9a   : > { %v7309_v26 = vrot.slane %v7108_v16, %v17092_v5 }
 0xb9d   : > { %v7114_v35 = vpop.permute.xlu1 %7113  ;;  %v14978_v3 = vpop.permute.xlu0 %7155 }
 0xb9e   : > { %v7317_v31 = vrot.slane %v7114_v35, %v17092_v5 }
 0xba1   : > { %v14980_v27 = vpop.permute.xlu1 %7131  ;;  %v14982_v19 = vpop.permute.xlu0 %7095 }
 0xba2   : > { %v7341_v50 = vrot.slane %v14980_v27, %v17092_v5 }
 0xba5   : > { %v14984_v4 = vpop.permute.xlu1 %7161  ;;  %v14986_v22 = vpop.permute.xlu0 %7101 }
 0xba9   : > { %v7087_v42 = vpop.permute.xlu1 %7086  ;;  %v7111_v60 = vpop.permute.xlu0 %7110 }
 0xbaa   : > { %v7313_v63 = vrot.slane %v7111_v60, %v17092_v5  ;;  %v7281_v59 = vrot.slane %v7087_v42, %v17092_v5  ;;  %v17094_v42 = vld [vmem:[#allocation14_spill] sm:$0xff] }
 0xbac   : > { %v7536_v49 = vsel %vm1369_vm9, %v7313_v63, %v7309_v26  ;;  %v7530_v25 = vsel %vm1369_vm9, %v7281_v59, %v7277_v33 }
 0xbad   : > { %v7210_v9 = vpop.permute.xlu1 %7209  ;;  %v7204_v23 = vpop.permute.xlu0 %7203  ;;  %v7537_v37 = vsel %vm1372_vm10, %v7317_v31, %v7536_v49 }
 0xbae   : > { %v7437_v43 = vrot.slane %v7204_v23, %v17092_v5  ;;  %v7445_v17 = vrot.slane %v7210_v9, %v17092_v5 }
 0xbb1   : > { %v7117_v28 = vpop.permute.xlu1 %7116  ;;  %v14988_v18 = vpop.permute.xlu0 %7119 }
 0xbb2   : > { %v7321_v15 = vrot.slane %v7117_v28, %v17092_v5 }
 0xbb4   : > { %v7538_v39 = vsel %vm1375_vm11, %v7321_v15, %v7537_v37 }
 0xbb5   : > { %v14990_v56 = vpop.permute.xlu1 %7185  ;;  %v14992_v41 = vpop.permute.xlu0 %7179  ;;  %v7635_v44 = vrot.slane %v7538_v39, %v17093_v52 }
 0xbb7   : > { %v15057_v60 = vrot.slane %v7635_v44, %v17094_v42 }
 0xbb9   : > { %v14994_v62 = vpop.permute.xlu1 %7143  ;;  %v14996_v11 = vpop.permute.xlu0 %7125 }
 0xbbd   : > { %v14998_v57 = vpop.permute.xlu1 %7233  ;;  %v7135_v47 = vpop.permute.xlu0 %7134 }
 0xbbe   : > { %v7345_v61 = vrot.slane %v7135_v47, %v17092_v5  ;;  %v7325_v47 = vrot.slane %v14988_v18, %v17092_v5  ;;  %v7333_v18 = vrot.slane %v14996_v11, %v17092_v5 }
 0xbc0   : > { %v7542_v13 = vsel %vm1369_vm9, %v7345_v61, %v7341_v50 }
 0xbc1   : > { %v15000_v51 = vpop.permute.xlu1 %7149  ;;  %v15002_v45 = vpop.permute.xlu0 %7227 }
 0xbc5   : > { %v15004_v8 = vpop.permute.xlu1 %7158  ;;  %v7093_v54 = vpop.permute.xlu0 %7092 }
 0xbc6   : > { %v7289_v55 = vrot.slane %v7093_v54, %v17092_v5  ;;  %v7531_v54 = vsel %vm1372_vm10, %v7285_v2, %v7530_v25  ;;  %v7373_v2 = vrot.slane %v14978_v3, %v17092_v5 }
 0xbc8   : > { %v7532_v63 = vsel %vm1375_vm11, %v7289_v55, %v7531_v54 }
 0xbc9   : > { %v15006_v14 = vpop.permute.xlu1 %7257  ;;  %v7141_v7 = vpop.permute.xlu0 %7140  ;;  %v7585_v39 = vrot.slane %v7532_v63, %v17093_v52 }
 0xbca   : > { %v7353_v27 = vrot.slane %v7141_v7, %v17092_v5  ;;  %v17095_v7 = vmov 0.0  }
 0xbcb   : > { %v15105_v50 = vrot.slane %v7585_v39, %v17094_v42 }
 0xbcd   : > { %v15008_v40 = vpop.permute.xlu1 %7173  ;;  %v15010_v53 = vpop.permute.xlu0 %7251 }
 0xbd1   : > { %v15012_v38 = vpop.permute.xlu1 %7098  ;;  %v15014_v21 = vpop.permute.xlu0 %7167 }
 0xbd5   : > { %v15016_v30 = vpop.permute.xlu1 %7197  ;;  %v15018_v34 = vpop.permute.xlu0 %7164 }
 0xbd9   : > { %v7207_v0 = vpop.permute.xlu1 %7206  ;;  %v15020_v48 = vpop.permute.xlu0 %7191 }
 0xbda   : > { %v7441_v58 = vrot.slane %v7207_v0, %v17092_v5  ;;  %v7349_v0 = vrot.slane %v14976_v36, %v17092_v5  ;;  %v7651_v36 = vcombine.high %v15057_v60, %v17095_v7 }
 0xbdc   : > { %v7560_v29 = vsel %vm1369_vm9, %v7441_v58, %v7437_v43  ;;  %v7543_v15 = vsel %vm1372_vm10, %v7349_v0, %v7542_v13  ;;  %v7469_v43 = vrot.slane %v15002_v45, %v17092_v5  ;;  %v7381_v13 = vrot.slane %v14984_v4, %v17092_v5 }
 0xbdd   : > { %v7123_v20 = vpop.permute.xlu1 %7122  ;;  %v15024_v6 = vpop.permute.xlu0 %7104  ;;  %v7561_v32 = vsel %vm1372_vm10, %v7445_v17, %v7560_v29  ;;  %v7544_v59 = vsel %vm1375_vm11, %v7353_v27, %v7543_v15  ;;  %v7377_v17 = vrot.slane %v15004_v8, %v17092_v5  ;;  %v7586_v8 = vcombine.high %v7585_v39, %v17095_v7 }
 0xbde   : > { %v7329_v16 = vrot.slane %v7123_v20, %v17092_v5  ;;  %v7685_v45 = vrot.slane %v7544_v59, %v17093_v52  ;;  %v7601_v15 = vcombine.high %v15105_v50, %v17095_v7 }
 0xbdf   : > { %v7548_v3 = vsel %vm1369_vm9, %v7377_v17, %v7373_v2 }
 0xbe0   : > { %v7539_v20 = vsel %vm1369_vm9, %v7329_v16, %v7325_v47  ;;  %v7686_v0 = vcombine.high %v7685_v45, %v17095_v7 }
 0xbe1   : > { %v15031_v12 = vpop.permute.xlu1 %7182  ;;  %v15033_v24 = vpop.permute.xlu0 %7215  ;;  %v7540_v29 = vsel %vm1372_vm10, %v7333_v18, %v7539_v20  ;;  %v7385_v18 = vrot.slane %v15018_v34, %v17092_v5 }
 0xbe5   : > { %v15043_v46 = vpop.permute.xlu1 %7221  ;;  %v7213_v10 = vpop.permute.xlu0 %7212 }
 0xbe6   : > { %v7449_v1 = vrot.slane %v7213_v10, %v17092_v5 }
 0xbe8   : > { %v7562_v35 = vsel %vm1375_vm11, %v7449_v1, %v7561_v32  ;;  %v7477_v1 = vrot.slane %v14998_v57, %v17092_v5  ;;  %v7636_v57 = vcombine.high %v7635_v44, %v17095_v7 }
 0xbe9   : > { %v7835_v9 = vrot.slane %v7562_v35, %v17093_v52  ;;  %v7231_v23 = vpop.permute.xlu1 %7230  ;;  %v15060_v28 = vpop.permute.xlu0 %7146 }
 0xbea   : > { %v7473_v49 = vrot.slane %v7231_v23, %v17092_v5 }
 0xbeb   : > { %v15071_v26 = vrot.slane %v7835_v9, %v17094_v42  ;;  %v7836_v54 = vcombine.high %v7835_v9, %v17095_v7  ;;  %v15133_v9 = vrot.slane %v7586_v8, %v17094_v42 }
 0xbec   : > { %v7566_v10 = vsel %vm1369_vm9, %v7473_v49, %v7469_v43 }
 0xbed   : > { %v7129_v31 = vpop.permute.xlu1 %7128  ;;  %v15078_v58 = vpop.permute.xlu0 %7239  ;;  %v7851_v37 = vcombine.high %v15071_v26, %v17095_v7  ;;  %v7567_v47 = vsel %vm1372_vm10, %v7477_v1, %v7566_v10  ;;  %v15148_v59 = vrot.slane %v7836_v54, %v17094_v42  ;;  %v15157_v10 = vrot.slane %v7686_v0, %v17094_v42 }
 0xbee   : > { %v7337_v11 = vrot.slane %v7129_v31, %v17092_v5  ;;  %v7549_v31 = vsel %vm1372_vm10, %v7381_v13, %v7548_v3  ;;  %v15163_v1 = vrot.slane %v7685_v45, %v17094_v42  ;;  %v7301_v3 = vrot.slane %v14986_v22, %v17092_v5 }
 0xbef   : > { %v10276_v33 = vpack.i.bf16 %v7851_v37, %v7651_v36  ;;  %v15140_v37 = vrot.slane %v7636_v57, %v17094_v42  ;;  %v7405_v22 = vrot.slane %v14992_v41, %v17092_v5  ;;  %v7361_v41 = vrot.slane %v15060_v28, %v17092_v5 }
 0xbf0   : > { %v7541_v61 = vsel %vm1375_vm11, %v7337_v11, %v7540_v29  ;;  %v7501_v11 = vrot.slane %v15010_v53, %v17092_v5  ;;  %v7297_v29 = vrot.slane %v15012_v38, %v17092_v5  ;;  %v7293_v53 = vrot.slane %v14982_v19, %v17092_v5 }
 0xbf1   : > { %v7660_v25 = vrot.slane %v7541_v61, %v17093_v52  ;;  %v15098_v55 = vpop.permute.xlu1 %7188  ;;  %10277 = vrot.lane.b32.xlu1 %v10276_v33, %s10505_s29  ;;  %v7237_v32 = vpop.permute.xlu0 %7236  ;;  %v10286_v45 = vpack.i.bf16 %v15148_v59, %v15140_v37  ;;  %v7305_v19 = vrot.slane %v15024_v6, %v17092_v5 }
 0xbf2   : > { %v7481_v16 = vrot.slane %v7237_v32, %v17092_v5  ;;  %v7533_v57 = vsel %vm1369_vm9, %v7297_v29, %v7293_v53  ;;  %v7397_v53 = vrot.slane %v15008_v40, %v17092_v5 }
 0xbf3   : > { %v7661_v35 = vcombine.high %v7660_v25, %v17095_v7  ;;  %v15111_v23 = vrot.slane %v7660_v25, %v17094_v42  ;;  %v7550_v25 = vsel %vm1375_vm11, %v7385_v18, %v7549_v31  ;;  %v7534_v0 = vsel %vm1372_vm10, %v7301_v3, %v7533_v57 }
 0xbf4   : > { %v7568_v27 = vsel %vm1375_vm11, %v7481_v16, %v7567_v47  ;;  %v7509_v16 = vrot.slane %v15006_v14, %v17092_v5  ;;  %v7701_v14 = vcombine.high %v15163_v1, %v17095_v7 }
 0xbf5   : > { %v7885_v44 = vrot.slane %v7568_v27, %v17093_v52  ;;  %v15121_v63 = vpop.permute.xlu1 %7245  ;;  %v15123_v20 = vpop.permute.xlu0 %7152  ;;  %v15126_v49 = vrot.slane %v7661_v35, %v17094_v42  ;;  %v7676_v4 = vcombine.high %v15111_v23, %v17095_v7  ;;  %v7735_v35 = vrot.slane %v7550_v25, %v17093_v52 }
 0xbf6   : > { %v7409_v27 = vrot.slane %v15031_v12, %v17092_v5  ;;  %v7365_v25 = vrot.slane %v15000_v51, %v17092_v5  ;;  %v7429_v51 = vrot.slane %v15016_v30, %v17092_v5 }
 0xbf7   : > { %v7886_v36 = vcombine.high %v7885_v44, %v17095_v7  ;;  %v15143_v43 = vrot.slane %v7885_v44, %v17094_v42  ;;  %v10296_v39 = vpack.i.bf16 %v15126_v49, %v15133_v9  ;;  %v10281_v34 = vpack.i.bf16 %v7676_v4, %v7601_v15 }
 0xbf8   : > { %v15201_v18 = vrot.slane %v7735_v35, %v17094_v42  ;;  %v7535_v15 = vsel %vm1375_vm11, %v7305_v19, %v7534_v0  ;;  %v7736_v28 = vcombine.high %v7735_v35, %v17095_v7  ;;  %v7369_v35 = vrot.slane %v15123_v20, %v17092_v5 }
 0xbf9   : > { %v7255_v33 = vpop.permute.xlu1 %7254  ;;  %v15154_v17 = vpop.permute.xlu0 %7263  ;;  %v15160_v61 = vrot.slane %v7886_v36, %v17094_v42  ;;  %10297 = vrot.lane.b32.xlu0 %v10296_v39, %s16985_s1  ;;  %10282 = vrot.lane.b32.xlu1 %v10281_v34, %s10505_s29  ;;  %v7901_v8 = vcombine.high %v15143_v43, %v17095_v7  ;;  %v7413_v39 = vrot.slane %v14990_v56, %v17092_v5 }
 0xbfa   : > { %v7505_v32 = vrot.slane %v7255_v33, %v17092_v5  ;;  %v7554_v34 = vsel %vm1369_vm9, %v7409_v27, %v7405_v22  ;;  %v7357_v33 = vrot.slane %v14994_v62, %v17092_v5  ;;  %v7610_v56 = vrot.slane %v7535_v15, %v17093_v52 }
 0xbfb   : > { %v10301_v38 = vpack.i.bf16 %v15160_v61, %v15157_v10  ;;  %v10291_v4 = vpack.i.bf16 %v7901_v8, %v7701_v14  ;;  %v7421_v8 = vrot.slane %v15020_v48, %v17092_v5  ;;  %v7389_v14 = vrot.slane %v15014_v21, %v17092_v5 }
 0xbfc   : > { %v7572_v2 = vsel %vm1369_vm9, %v7505_v32, %v7501_v11  ;;  %v7417_v32 = vrot.slane %v15098_v55, %v17092_v5  ;;  %v7555_v55 = vsel %vm1372_vm10, %v7413_v39, %v7554_v34  ;;  %v7545_v57 = vsel %vm1369_vm9, %v7361_v41, %v7357_v33 }
 0xbfd   : > { %v15184_v47 = vpop.permute.xlu1 %7170  ;;  %v7261_v13 = vpop.permute.xlu0 %7260  ;;  %10287 = vrot.lane.b32.xlu1 %v10286_v45, %s16985_s1  ;;  %10302 = vrot.lane.b32.xlu0 %v10301_v38, %s16985_s1  ;;  %v7573_v6 = vsel %vm1372_vm10, %v7509_v16, %v7572_v2  ;;  %v7751_v45 = vcombine.high %v15201_v18, %v17095_v7  ;;  %v15246_v3 = vrot.slane %v7610_v56, %v17094_v42 }
 0xbfe   : > { %v7513_v54 = vrot.slane %v7261_v13, %v17092_v5  ;;  %v7556_v30 = vsel %vm1375_vm11, %v7417_v32, %v7555_v55  ;;  %v7453_v27 = vrot.slane %v15033_v24, %v17092_v5  ;;  %v7546_v22 = vsel %vm1372_vm10, %v7365_v25, %v7545_v57 }
 0xbff   : > { %v7785_v24 = vrot.slane %v7556_v30, %v17093_v52  ;;  %v7611_v41 = vcombine.high %v7610_v56, %v17095_v7  ;;  %v7626_v33 = vcombine.high %v15246_v3, %v17095_v7  ;;  %v7485_v25 = vrot.slane %v15078_v58, %v17092_v5 }
 0xc00   : > { %v7574_v44 = vsel %vm1375_vm11, %v7513_v54, %v7573_v6  ;;  %v7677_v40 = vcombine.high %v15126_v49, %v17095_v7 }
 0xc01   : > { %v7935_v31 = vrot.slane %v7574_v44, %v17093_v52  ;;  %v15205_v36 = vpop.permute.xlu1 %7269  ;;  %v15207_v12 = vpop.permute.xlu0 %7176  ;;  %10292 = vrot.lane.b32.xlu1 %v10291_v4, %s10505_s29  ;;  %v15258_v44 = vrot.slane %v7736_v28, %v17094_v42  ;;  %v7461_v4 = vrot.slane %v15043_v46, %v17092_v5  ;;  %v15290_v55 = vrot.slane %v7785_v24, %v17094_v42 }
 0xc03   : > { %v7936_v11 = vcombine.high %v7935_v31, %v17095_v7  ;;  %v15217_v29 = vrot.slane %v7935_v31, %v17094_v42  ;;  %v7547_v31 = vsel %vm1375_vm11, %v7369_v35, %v7546_v22  ;;  %v7393_v35 = vrot.slane %v15184_v47, %v17092_v5 }
 0xc04   : > { %v7517_v47 = vrot.slane %v15154_v17, %v17092_v5  ;;  %v7525_v17 = vrot.slane %v15205_v36, %v17092_v5 }
 0xc05   : > { %v7195_v38 = vpop.permute.xlu1 %7194  ;;  %v7201_v2 = vpop.permute.xlu0 %7200  ;;  %v7951_v62 = vcombine.high %v15217_v29, %v17095_v7  ;;  %v15243_v13 = vrot.slane %v7936_v11, %v17094_v42 }
 0xc06   : > { %v7425_v16 = vrot.slane %v7195_v38, %v17092_v5  ;;  %v7433_v54 = vrot.slane %v7201_v2, %v17092_v5 }
 0xc07   : > { %v10306_v19 = vpack.i.bf16 %v7951_v62, %v7751_v45  ;;  %v10311_v34 = vpack.i.bf16 %v15243_v13, %v15258_v44  ;;  %v7493_v45 = vrot.slane %v15121_v63, %v17092_v5  ;;  %v7710_v62 = vrot.slane %v7547_v31, %v17093_v52 }
 0xc08   : > { %v7557_v48 = vsel %vm1369_vm9, %v7425_v16, %v7421_v8  ;;  %v7786_v8 = vcombine.high %v7785_v24, %v17095_v7 }
 0xc09   : > { %v7558_v20 = vsel %vm1372_vm10, %v7429_v51, %v7557_v48  ;;  %v7219_v6 = vpop.permute.xlu1 %7218  ;;  %10307 = vrot.lane.b32.xlu1 %v10306_v19, %s10505_s29  ;;  %v7225_v0 = vpop.permute.xlu0 %7224 }
 0xc0a   : > { %v7559_v15 = vsel %vm1375_vm11, %v7433_v54, %v7558_v20  ;;  %v7457_v21 = vrot.slane %v7219_v6, %v17092_v5  ;;  %v7465_v46 = vrot.slane %v7225_v0, %v17092_v5  ;;  %v15308_v0 = vrot.slane %v7710_v62, %v17094_v42 }
 0xc0b   : > { %v7810_v39 = vrot.slane %v7559_v15, %v17093_v52  ;;  %v15320_v24 = vrot.slane %v7786_v8, %v17094_v42 }
 0xc0c   : > { %v7563_v11 = vsel %vm1369_vm9, %v7457_v21, %v7453_v27  ;;  %v15317_v21 = vrot.slane %v7611_v41, %v17094_v42 }
 0xc0d   : > { %v7811_v32 = vcombine.high %v7810_v39, %v17095_v7  ;;  %v15279_v28 = vrot.slane %v7810_v39, %v17094_v42  ;;  %v7564_v38 = vsel %vm1372_vm10, %v7461_v4, %v7563_v11  ;;  %v7243_v2 = vpop.permute.xlu1 %7242  ;;  %10312 = vrot.lane.b32.xlu1 %v10311_v34, %s16985_s1  ;;  %v7249_v56 = vpop.permute.xlu0 %7248  ;;  %v7551_v39 = vsel %vm1369_vm9, %v7393_v35, %v7389_v14 }
 0xc0e   : > { %v7565_v51 = vsel %vm1375_vm11, %v7465_v46, %v7564_v38  ;;  %v7489_v58 = vrot.slane %v7243_v2, %v17092_v5  ;;  %v7497_v19 = vrot.slane %v7249_v56, %v17092_v5  ;;  %v7401_v34 = vrot.slane %v15207_v12, %v17092_v5 }
 0xc0f   : > { %v7860_v16 = vrot.slane %v7565_v51, %v17093_v52  ;;  %v7826_v57 = vcombine.high %v15279_v28, %v17095_v7  ;;  %v15300_v30 = vrot.slane %v7811_v32, %v17094_v42  ;;  %v7801_v12 = vcombine.high %v15290_v55, %v17095_v7 }
 0xc10   : > { %v7569_v63 = vsel %vm1369_vm9, %v7489_v58, %v7485_v25  ;;  %v7726_v32 = vcombine.high %v15308_v0, %v17095_v7  ;;  %v7552_v38 = vsel %vm1372_vm10, %v7397_v53, %v7551_v39  ;;  %v7852_v58 = vcombine.high %v15148_v59, %v17095_v7 }
 0xc11   : > { %v7861_v48 = vcombine.high %v7860_v16, %v17095_v7  ;;  %v15304_v54 = vrot.slane %v7860_v16, %v17094_v42  ;;  %v7570_v27 = vsel %vm1372_vm10, %v7493_v45, %v7569_v63  ;;  %v7267_v20 = vpop.permute.xlu1 %7266  ;;  %v10316_v6 = vpack.i.bf16 %v7826_v57, %v7626_v33 }
 0xc12   : > { %v7571_v4 = vsel %vm1375_vm11, %v7497_v19, %v7570_v27  ;;  %v7521_v22 = vrot.slane %v7267_v20, %v17092_v5  ;;  %v10321_v33 = vpack.i.bf16 %v15300_v30, %v15317_v21  ;;  %v7553_v45 = vsel %vm1375_vm11, %v7401_v34, %v7552_v38 }
 0xc13   : > { %v7910_v15 = vrot.slane %v7571_v4, %v17093_v52  ;;  %10317 = vrot.lane.b32.xlu0 %v10316_v6, %s10505_s29  ;;  %v15323_v31 = vrot.slane %v7861_v48, %v17094_v42  ;;  %v7876_v14 = vcombine.high %v15304_v54, %v17095_v7  ;;  %v7652_v35 = vcombine.high %v15140_v37, %v17095_v7 }
 0xc14   : > { %v7575_v11 = vsel %vm1369_vm9, %v7521_v22, %v7517_v47  ;;  %v7602_v63 = vcombine.high %v15133_v9, %v17095_v7  ;;  %v7711_v19 = vcombine.high %v7710_v62, %v17095_v7  ;;  %v7760_v48 = vrot.slane %v7553_v45, %v17093_v52 }
 0xc15   : > { %v15332_v46 = vrot.slane %v7910_v15, %v17094_v42  ;;  %v7273_v41 = vpop.permute.xlu1 %7272  ;;  %v10331_v25 = vpack.i.bf16 %v15323_v31, %v15320_v24  ;;  %v7576_v2 = vsel %vm1372_vm10, %v7525_v17, %v7575_v11  ;;  %v7911_v53 = vcombine.high %v7910_v15, %v17095_v7 }
 0xc16   : > { %v7529_v36 = vrot.slane %v7273_v41, %v17092_v5  ;;  %v10326_v16 = vpack.i.bf16 %v7876_v14, %v7801_v12  ;;  %v10336_v49 = vpack.i.bf16 %v7852_v58, %v7652_v35  ;;  %v10346_v59 = vpack.i.bf16 %v7677_v40, %v7602_v63 }
 0xc17   : > { %10322 = vrot.lane.b32.xlu0 %v10321_v33, %s16985_s1  ;;  %10332 = vrot.lane.b32.xlu1 %v10331_v25, %s16985_s1  ;;  %v7926_v56 = vcombine.high %v15332_v46, %v17095_v7  ;;  %v7902_v37 = vcombine.high %v15160_v61, %v17095_v7  ;;  %v7925_v9 = vrot.slane %v7911_v53, %v17094_v42 }
 0xc18   : > { %v7577_v51 = vsel %vm1375_vm11, %v7529_v36, %v7576_v2  ;;  %v7702_v62 = vcombine.high %v15157_v10, %v17095_v7  ;;  %v7761_v6 = vcombine.high %v7760_v48, %v17095_v7  ;;  %v15381_v47 = vrot.slane %v7760_v48, %v17094_v42 }
 0xc19   : > { %v7960_v8 = vrot.slane %v7577_v51, %v17093_v52  ;;  %v10341_v57 = vpack.i.bf16 %v7926_v56, %v7726_v32  ;;  %v7725_v4 = vrot.slane %v7711_v19, %v17094_v42  ;;  %v7952_v33 = vcombine.high %v15243_v13, %v17095_v7 }
 0xc1a   : > { %v10356_v22 = vpack.i.bf16 %v7902_v37, %v7702_v62  ;;  %v7775_v10 = vrot.slane %v7761_v6, %v17094_v42  ;;  %v7776_v17 = vcombine.high %v15381_v47, %v17095_v7  ;;  %v7752_v14 = vcombine.high %v15258_v44, %v17095_v7 }
 0xc1b   : > { %10327 = vrot.lane.b32.xlu0 %v10326_v16, %s10505_s29  ;;  %10342 = vrot.lane.b32.xlu1 %v10341_v57, %s10505_s29  ;;  %v7961_v27 = vcombine.high %v7960_v8, %v17095_v7  ;;  %v15372_v20 = vrot.slane %v7960_v8, %v17094_v42  ;;  %v10351_v15 = vpack.i.bf16 %v7925_v9, %v7725_v4 }
 0xc1c   : > { %v7777_v25 = vcombine.high %v7775_v10, %v17095_v7  ;;  %v10371_v12 = vpack.i.bf16 %v7952_v33, %v7752_v14  ;;  %v7827_v32 = vcombine.high %v15300_v30, %v17095_v7  ;;  %v7627_v13 = vcombine.high %v15317_v21, %v17095_v7 }
 0xc1d   : > { %v7975_v61 = vrot.slane %v7961_v27, %v17094_v42  ;;  %v7976_v39 = vcombine.high %v15372_v20, %v17095_v7  ;;  %v7877_v2 = vcombine.high %v15323_v31, %v17095_v7  ;;  %v7802_v44 = vcombine.high %v15320_v24, %v17095_v7 }
 0xc1e   : > { %v10376_v38 = vpack.i.bf16 %v7827_v32, %v7627_v13  ;;  %v7927_v45 = vcombine.high %v7925_v9, %v17095_v7  ;;  %v7727_v30 = vcombine.high %v7725_v4, %v17095_v7 }
 0xc1f   : > { %10337 = vrot.lane.b32.xlu0 %v10336_v49, %s10507_s21  ;;  %10347 = vrot.lane.b32.xlu1 %v10346_v59, %s10507_s21  ;;  %v10366_v34 = vpack.i.bf16 %v7975_v61, %v7775_v10  ;;  %v10361_v11 = vpack.i.bf16 %v7976_v39, %v7776_v17  ;;  %v7977_v41 = vcombine.high %v7975_v61, %v17095_v7 }
 0xc20   : > { %v10381_v56 = vpack.i.bf16 %v7877_v2, %v7802_v44  ;;  %v10386_v51 = vpack.i.bf16 %v7927_v45, %v7727_v30 }
 0xc21   : > { %v10391_v36 = vpack.i.bf16 %v7977_v41, %v7777_v25 }
 0xc23   : > { %10357 = vrot.lane.b32.xlu1 %v10356_v22, %s10507_s21  ;;  %10352 = vrot.lane.b32.xlu0 %v10351_v15, %s16985_s1 }
 0xc27   : > { %10367 = vrot.lane.b32.xlu1 %v10366_v34, %s16985_s1  ;;  %10362 = vrot.lane.b32.xlu0 %v10361_v11, %s10505_s29  ;;  %s10508_s1 = smov 5   ;;  %s10511_s29 = smov [#allocation2]  }
 0xc28   : > { %s10411_s27 = sshll.u32 %s10511_s29, 4  ;;  %s10412_s27 = int_to_ptr.vmem [resolvable:$false] %s10411_s27 }
 0xc2b   : > { %10392 = vrot.lane.b32.xlu1 %v10391_v36, %s10507_s21  ;;  %10372 = vrot.lane.b32.xlu0 %v10371_v12, %s10507_s21 }
 0xc2f   : > { %10377 = vrot.lane.b32.xlu0 %v10376_v38, %s10507_s21 }
 0xc33   : > { %10382 = vrot.lane.b32.xlu0 %v10381_v56, %s10507_s21 }
 0xc37   : > { %10387 = vrot.lane.b32.xlu0 %v10386_v51, %s10507_s21 }
 0xc63   : > { %v10278_v21 = vpop.permute.xlu1 %10277 }
 0xc64   : > { %v10279_v19 = vunpack.i.l.bf16 %v10278_v21  ;;  %v10280_v2 = vunpack.i.h.bf16 %v10278_v21 }
 0xc66   : > { %v8173_v37 = vsel %vm8170_vm0, %v15057_v60, %v10279_v19 }
 0xc6b   : > { %v10283_v58 = vpop.permute.xlu1 %10282  ;;  %v15419_v31 = vpop.permute.xlu0 %10297 }
 0xc6c   : > { %v10284_v59 = vunpack.i.l.bf16 %v10283_v58  ;;  %v10299_v9 = vunpack.i.l.bf16 %v15419_v31  ;;  %v10285_v38 = vunpack.i.h.bf16 %v10283_v58  ;;  %v10300_v44 = vunpack.i.h.bf16 %v15419_v31 }
 0xc6e   : > { %v8171_v4 = vsel %vm8170_vm0, %v15105_v50, %v10284_v59 }
 0xc6f   : > { %v15417_v40 = vpop.permute.xlu1 %10287  ;;  %v15425_v24 = vpop.permute.xlu0 %10302  ;;  %v8187_v60 = vsel %vm4876_vm5, %v8171_v4, %v10299_v9 }
 0xc70   : > { %v10289_v27 = vunpack.i.l.bf16 %v15417_v40  ;;  %v10304_v25 = vunpack.i.l.bf16 %v15425_v24  ;;  %v10290_v56 = vunpack.i.h.bf16 %v15417_v40 }
 0xc72   : > { %v8189_v39 = vsel %vm4876_vm5, %v8173_v37, %v10289_v27  ;;  %v8174_v27 = vsel %vm8170_vm0, %v15111_v23, %v10285_v38  ;;  %v8181_v37 = vsel %vm8170_vm0, %v15071_v26, %v10280_v2 }
 0xc73   : > { %v15421_v53 = vpop.permute.xlu1 %10292 }
 0xc74   : > { %v10294_v22 = vunpack.i.l.bf16 %v15421_v53  ;;  %v10295_v21 = vunpack.i.h.bf16 %v15421_v53 }
 0xc76   : > { %v8175_v41 = vsel %vm8170_vm0, %v15163_v1, %v10294_v22 }
 0xc77   : > { %v8191_v12 = vsel %vm4876_vm5, %v8175_v41, %v10304_v25 }
 0xc7b   : > { %v15423_v8 = vpop.permute.xlu1 %10307 }
 0xc7c   : > { %v10309_v32 = vunpack.i.l.bf16 %v15423_v8 }
 0xc7e   : > { %v8177_v51 = vsel %vm8170_vm0, %v15201_v18, %v10309_v32 }
 0xc7f   : > { %v15427_v16 = vpop.permute.xlu1 %10312 }
 0xc80   : > { %v10314_v1 = vunpack.i.l.bf16 %v15427_v16 }
 0xc82   : > { %v8193_v31 = vsel %vm4876_vm5, %v8177_v51, %v10314_v1 }
 0xc85   : > { %v15429_v57 = vpop.permute.xlu0 %10317 }
 0xc86   : > { %v10319_v19 = vunpack.i.l.bf16 %v15429_v57 }
 0xc89   : > { %v15431_v35 = vpop.permute.xlu1 %10332  ;;  %v15433_v63 = vpop.permute.xlu0 %10322 }
 0xc8a   : > { %v10324_v40 = vunpack.i.l.bf16 %v15433_v63  ;;  %v10334_v41 = vunpack.i.l.bf16 %v15431_v35 }
 0xc8d   : > { %v15435_v48 = vpop.permute.xlu1 %10342  ;;  %v15437_v49 = vpop.permute.xlu0 %10327 }
 0xc8e   : > { %v10329_v18 = vunpack.i.l.bf16 %v15437_v49 }
 0xc91   : > { %v15443_v62 = vpop.permute.xlu1 %10347  ;;  %v10338_v6 = vpop.permute.xlu0 %10337 }
 0xc92   : > { %v10349_v15 = vunpack.i.l.bf16 %v15443_v62  ;;  %v10339_v61 = vunpack.i.l.bf16 %v10338_v6  ;;  %v10340_v59 = vunpack.i.h.bf16 %v10338_v6  ;;  %v8197_v6 = vsel %vm4876_vm5, %v8181_v37, %v10290_v56 }
 0xc93   : > { %v10350_v4 = vunpack.i.h.bf16 %v15443_v62  ;;  %v10310_v62 = vunpack.i.h.bf16 %v15423_v8 }
 0xc94   : > { %v8206_v10 = vsel %vm8203_vm15, %v8189_v39, %v10339_v61  ;;  %v8204_v33 = vsel %vm8203_vm15, %v8187_v60, %v10349_v15  ;;  %v8190_v15 = vsel %vm4876_vm5, %v8174_v27, %v10300_v44  ;;  %v8172_v61 = vsel %vm8170_vm0, %v15246_v3, %v10319_v19 }
 0xc95   : > { %v15452_v17 = vpop.permute.xlu1 %10357  ;;  %v15454_v34 = vpop.permute.xlu0 %10352  ;;  %v8222_v11 = vpack.c.bf16 %v8206_v10, %v8206_v10  ;;  %v8220_v36 = vpack.c.bf16 %v8204_v33, %v8204_v33  ;;  %v8214_v39 = vsel %vm8203_vm15, %v8197_v6, %v10340_v59  ;;  %v10305_v10 = vunpack.i.h.bf16 %v15425_v24 }
 0xc96   : > { %v10359_v50 = vunpack.i.l.bf16 %v15452_v17  ;;  %v8183_v60 = vsel %vm8170_vm0, %v15143_v43, %v10295_v21  ;;  %v8179_v3 = vsel %vm8170_vm0, %v15290_v55, %v10329_v18  ;;  %v10360_v24 = vunpack.i.h.bf16 %v15452_v17 }
 0xc97   : > { %8259 = vrot.lane.b32.xlu0 %v8222_v11, %s10508_s1  ;;  %v8188_v11 = vsel %vm4876_vm5, %v8172_v61, %v10324_v40  ;;  %v8230_v43 = vpack.c.bf16 %v8214_v39, %v8214_v39  ;;  %v8207_v8 = vsel %vm8203_vm15, %v8190_v15, %v10350_v4  ;;  %v10354_v38 = vunpack.i.l.bf16 %v15454_v34 }
 0xc98   : > { %v8208_v13 = vsel %vm8203_vm15, %v8191_v12, %v10359_v50  ;;  %v10344_v50 = vunpack.i.l.bf16 %v15435_v48  ;;  %v8195_v55 = vsel %vm4876_vm5, %v8179_v3, %v10334_v41  ;;  %v8199_v17 = vsel %vm4876_vm5, %v8183_v60, %v10305_v10 }
 0xc99   : > { %v15462_v14 = vpop.permute.xlu0 %10362  ;;  %v8224_v30 = vpack.c.bf16 %v8208_v13, %v8208_v13  ;;  %v15489_v23 = vpop.permute.xlu1 %10367  ;;  %v10315_v13 = vunpack.i.h.bf16 %v15427_v16  ;;  %v8185_v2 = vsel %vm8170_vm0, %v15217_v29, %v10310_v62  ;;  %v8223_v56 = vpack.c.bf16 %v8207_v8, %v8207_v8 }
 0xc9a   : > { %v10364_v12 = vunpack.i.l.bf16 %v15462_v14  ;;  %v8176_v44 = vsel %vm8170_vm0, %v15308_v0, %v10344_v50  ;;  %v10365_v51 = vunpack.i.h.bf16 %v15462_v14  ;;  %v10320_v40 = vunpack.i.h.bf16 %v15429_v57 }
 0xc9b   : > { %8255 = vrot.lane.b32.xlu0 %v8220_v36, %s10508_s1  ;;  %v8201_v0 = vsel %vm4876_vm5, %v8185_v2, %v10315_v13  ;;  %v8192_v37 = vsel %vm4876_vm5, %v8176_v44, %v10354_v38  ;;  %v10325_v14 = vunpack.i.h.bf16 %v15433_v63  ;;  %v10330_v18 = vunpack.i.h.bf16 %v15437_v49 }
 0xc9c   : > { %v8178_v27 = vsel %vm8170_vm0, %v15381_v47, %v10364_v12  ;;  %v8186_v6 = vsel %vm8170_vm0, %v15372_v20, %v10365_v51  ;;  %v8180_v49 = vsel %vm8170_vm0, %v15279_v28, %v10320_v40  ;;  %v10345_v28 = vunpack.i.h.bf16 %v15435_v48 }
 0xc9d   : > { %v15471_v45 = vpop.permute.xlu0 %10372  ;;  %v10393_v1 = vpop.permute.xlu1 %10392  ;;  %v10355_v41 = vunpack.i.h.bf16 %v15454_v34 }
 0xc9e   : > { %v10374_v58 = vunpack.i.l.bf16 %v15471_v45  ;;  %v10394_v21 = vunpack.i.l.bf16 %v10393_v1  ;;  %v10375_v29 = vunpack.i.h.bf16 %v15471_v45  ;;  %v10370_v45 = vunpack.i.h.bf16 %v15489_v23 }
 0xc9f   : > { %8263 = vrot.lane.b32.xlu0 %v8224_v30, %s10508_s1  ;;  %v10369_v30 = vunpack.i.l.bf16 %v15489_v23  ;;  %v8196_v23 = vsel %vm4876_vm5, %v8180_v49, %v10325_v14 }
 0xca0   : > { %v8210_v9 = vsel %vm8203_vm15, %v8193_v31, %v10374_v58  ;;  %v8216_v58 = vsel %vm8203_vm15, %v8199_v17, %v10360_v24  ;;  %v8218_v63 = vsel %vm8203_vm15, %v8201_v0, %v10375_v29  ;;  %v8202_v39 = vsel %vm4876_vm5, %v8186_v6, %v10370_v45 }
 0xca1   : > { %v15491_v53 = vpop.permute.xlu0 %10377  ;;  %v8226_v22 = vpack.c.bf16 %v8210_v9, %v8210_v9  ;;  %v8232_v9 = vpack.c.bf16 %v8216_v58, %v8216_v58  ;;  %v8194_v57 = vsel %vm4876_vm5, %v8178_v27, %v10369_v30 }
 0xca2   : > { %v10379_v26 = vunpack.i.l.bf16 %v15491_v53  ;;  %v10380_v15 = vunpack.i.h.bf16 %v15491_v53  ;;  %v8211_v61 = vsel %vm8203_vm15, %v8194_v57, %v10394_v21  ;;  %v8182_v53 = vsel %vm8170_vm0, %v15304_v54, %v10330_v18 }
 0xca3   : > { %8267 = vrot.lane.b32.xlu1 %v8226_v22, %s10508_s1  ;;  %v10395_v22 = vunpack.i.h.bf16 %v10393_v1  ;;  %v8227_v20 = vpack.c.bf16 %v8211_v61, %v8211_v61 }
 0xca4   : > { %v8205_v33 = vsel %vm8203_vm15, %v8188_v11, %v10379_v26  ;;  %v8234_v26 = vpack.c.bf16 %v8218_v63, %v8218_v63  ;;  %v8213_v60 = vsel %vm8203_vm15, %v8196_v23, %v10380_v15  ;;  %v10335_v11 = vunpack.i.h.bf16 %v15431_v35 }
 0xca5   : > { %v15510_v25 = vpop.permute.xlu0 %10382  ;;  %v8221_v36 = vpack.c.bf16 %v8205_v33, %v8205_v33  ;;  %v8219_v62 = vsel %vm8203_vm15, %v8202_v39, %v10395_v22  ;;  %v8229_v50 = vpack.c.bf16 %v8213_v60, %v8213_v60  ;;  %v8184_v35 = vsel %vm8170_vm0, %v15332_v46, %v10345_v28 }
 0xca6   : > { %v10384_v32 = vunpack.i.l.bf16 %v15510_v25  ;;  %v10385_v10 = vunpack.i.h.bf16 %v15510_v25  ;;  %v8235_v3 = vpack.c.bf16 %v8219_v62, %v8219_v62  ;;  %v8198_v54 = vsel %vm4876_vm5, %v8182_v53, %v10335_v11 }
 0xca7   : > { %8275 = vrot.lane.b32.xlu1 %v8230_v43, %s10508_s1  ;;  %8257 = vrot.lane.b32.xlu0 %v8221_v36, %s10508_s1  ;;  %v8200_v25 = vsel %vm4876_vm5, %v8184_v35, %v10355_v41 }
 0xca8   : > { %v8212_v16 = vsel %vm8203_vm15, %v8195_v55, %v10384_v32  ;;  %v8215_v24 = vsel %vm8203_vm15, %v8198_v54, %v10385_v10 }
 0xca9   : > { %v10388_v19 = vpop.permute.xlu0 %10387  ;;  %v8228_v59 = vpack.c.bf16 %v8212_v16, %v8212_v16  ;;  %v8231_v43 = vpack.c.bf16 %v8215_v24, %v8215_v24 }
 0xcaa   : > { %v10389_v31 = vunpack.i.l.bf16 %v10388_v19  ;;  %v10390_v33 = vunpack.i.h.bf16 %v10388_v19 }
 0xcab   : > { %8261 = vrot.lane.b32.xlu1 %v8223_v56, %s10508_s1  ;;  %8271 = vrot.lane.b32.xlu0 %v8228_v59, %s10508_s1 }
 0xcac   : > { %v8209_v47 = vsel %vm8203_vm15, %v8192_v37, %v10389_v31  ;;  %v8217_v48 = vsel %vm8203_vm15, %v8200_v25, %v10390_v33 }
 0xcad   : > { %v8225_v4 = vpack.c.bf16 %v8209_v47, %v8209_v47  ;;  %v8233_v34 = vpack.c.bf16 %v8217_v48, %v8217_v48 }
 0xcaf   : > { %8279 = vrot.lane.b32.xlu1 %v8232_v9, %s10508_s1  ;;  %8265 = vrot.lane.b32.xlu0 %v8225_v4, %s10508_s1 }
 0xcb3   : > { %8269 = vrot.lane.b32.xlu1 %v8227_v20, %s10508_s1  ;;  %8283 = vrot.lane.b32.xlu0 %v8234_v26, %s10508_s1 }
 0xcb7   : > { %8273 = vrot.lane.b32.xlu1 %v8229_v50, %s10508_s1  ;;  %8285 = vrot.lane.b32.xlu0 %v8235_v3, %s10508_s1 }
 0xcbb   : > { %8277 = vrot.lane.b32.xlu1 %v8231_v43, %s10508_s1 }
 0xcbf   : > { %8281 = vrot.lane.b32.xlu1 %v8233_v34, %s10508_s1 }
 0xd09   : > { %v8260_v36 = vpop.permute.xlu0 %8259 }
 0xd0a   : > { %v8293_v8 = vsel %vm8287_vm7, 0, %v8260_v36 }
 0xd0b   : > { %v15575_v12 = vsel %vm8320_vm1, %v8293_v8, 0 }
 0xd0c   : > { %8520 = vrot.lane.b32.xlu1 %v15575_v12, %s16907_s2  ;;  %v8378_v9 = vsel %vm14258_vm8, %v15575_v12, 0 }
 0xd0d   : > { %v8256_v46 = vpop.permute.xlu0 %8255  ;;  %v8876_v61 = vunpack.c.l.b16 %v8378_v9 }
 0xd0e   : > { %v8289_v32 = vsel %vm8287_vm7, 0, %v8256_v46 }
 0xd0f   : > { %v15581_v13 = vsel %vm8320_vm1, %v8289_v32, 0  ;;  %v9020_v3 = vrot.slane %v8876_v61, 6 }
 0xd10   : > { %8516 = vrot.lane.b32.xlu1 %v15581_v13, %s16907_s2  ;;  %v8376_v20 = vsel %vm14258_vm8, %v15581_v13, 0 }
 0xd11   : > { %v8264_v38 = vpop.permute.xlu0 %8263  ;;  %v8874_v54 = vunpack.c.l.b16 %v8376_v20 }
 0xd12   : > { %v8297_v1 = vsel %vm8287_vm7, 0, %v8264_v38 }
 0xd13   : > { %v15587_v55 = vsel %vm8320_vm1, %v8297_v1, 0 }
 0xd14   : > { %8524 = vrot.lane.b32.xlu1 %v15587_v55, %s16907_s2  ;;  %v8380_v15 = vsel %vm14258_vm8, %v15587_v55, 0 }
 0xd15   : > { %v8268_v17 = vpop.permute.xlu1 %8267  ;;  %v8878_v62 = vunpack.c.l.b16 %v8380_v15 }
 0xd16   : > { %v8301_v2 = vsel %vm8287_vm7, 0, %v8268_v17 }
 0xd17   : > { %v15593_v44 = vsel %vm8320_vm1, %v8301_v2, 0  ;;  %v9024_v46 = vrot.slane %v8878_v62, 4 }
 0xd18   : > { %8528 = vrot.lane.b32.xlu1 %v15593_v44, %s16907_s2 }
 0xd19   : > { %v8276_v56 = vpop.permute.xlu1 %8275  ;;  %v8258_v16 = vpop.permute.xlu0 %8257 }
 0xd1a   : > { %v8309_v30 = vsel %vm8287_vm7, 0, %v8276_v56  ;;  %v8291_v19 = vsel %vm8287_vm7, 0, %v8258_v16 }
 0xd1b   : > { %v15599_v51 = vsel %vm8320_vm1, %v8309_v30, 0  ;;  %v15608_v21 = vsel %vm8320_vm1, %v8291_v19, 0 }
 0xd1c   : > { %8536 = vrot.lane.b32.xlu0 %v15599_v51, %s16907_s2  ;;  %8648 = vrot.lane.b32.xlu1 %v15575_v12, %s10509_s19  ;;  %v8377_v37 = vsel %vm14258_vm8, %v15608_v21, 0  ;;  %v8386_v26 = vsel %vm14258_vm8, %v15599_v51, 0 }
 0xd1d   : > { %v8262_v59 = vpop.permute.xlu1 %8261  ;;  %v8272_v58 = vpop.permute.xlu0 %8271  ;;  %v8875_v45 = vunpack.c.l.b16 %v8377_v37  ;;  %v8884_v24 = vunpack.c.l.b16 %v8386_v26 }
 0xd1e   : > { %v8295_v27 = vsel %vm8287_vm7, 0, %v8262_v59  ;;  %v8305_v47 = vsel %vm8287_vm7, 0, %v8272_v58  ;;  %v8382_v59 = vsel %vm14258_vm8, %v15593_v44, 0 }
 0xd1f   : > { %v15611_v29 = vsel %vm8320_vm1, %v8295_v27, 0  ;;  %v15638_v63 = vsel %vm8320_vm1, %v8305_v47, 0  ;;  %v9018_v39 = vrot.slane %v8875_v45, 7  ;;  %v9034_v19 = vrot.slane %v8884_v24, 6 }
 0xd20   : > { %8522 = vrot.lane.b32.xlu0 %v15611_v29, %s16907_s2  ;;  %8644 = vrot.lane.b32.xlu1 %v15581_v13, %s10509_s19  ;;  %v8379_v23 = vsel %vm14258_vm8, %v15611_v29, 0  ;;  %v8384_v11 = vsel %vm14258_vm8, %v15638_v63, 0  ;;  %v8880_v20 = vunpack.c.l.b16 %v8382_v59 }
 0xd21   : > { %v8280_v31 = vpop.permute.xlu1 %8279  ;;  %v8266_v0 = vpop.permute.xlu0 %8265  ;;  %v8877_v50 = vunpack.c.l.b16 %v8379_v23  ;;  %v8882_v48 = vunpack.c.l.b16 %v8384_v11  ;;  %v9019_v1 = vsel %vm1369_vm9, %v9018_v39, %v8874_v54 }
 0xd22   : > { %v8313_v14 = vsel %vm8287_vm7, 0, %v8280_v31  ;;  %v8299_v57 = vsel %vm8287_vm7, 0, %v8266_v0  ;;  %v9028_v40 = vrot.slane %v8880_v20, 2 }
 0xd23   : > { %v15622_v18 = vsel %vm8320_vm1, %v8313_v14, 0  ;;  %v15657_v53 = vsel %vm8320_vm1, %v8299_v57, 0  ;;  %v9022_v17 = vrot.slane %v8877_v50, 5  ;;  %v9021_v14 = vsel %vm1372_vm10, %v9020_v3, %v9019_v1 }
 0xd24   : > { %8540 = vrot.lane.b32.xlu0 %v15622_v18, %s16907_s2  ;;  %8652 = vrot.lane.b32.xlu1 %v15587_v55, %s10509_s19  ;;  %v8381_v43 = vsel %vm14258_vm8, %v15657_v53, 0  ;;  %v8388_v38 = vsel %vm14258_vm8, %v15622_v18, 0 }
 0xd25   : > { %v8270_v6 = vpop.permute.xlu1 %8269  ;;  %v8284_v4 = vpop.permute.xlu0 %8283  ;;  %v8879_v30 = vunpack.c.l.b16 %v8381_v43  ;;  %v17097_v43 = vld [vmem:[#allocation15_spill] sm:$0xff] }
 0xd26   : > { %v8317_v22 = vsel %vm8287_vm7, 0, %v8284_v4  ;;  %v8303_v28 = vsel %vm8287_vm7, 0, %v8270_v6  ;;  %v8886_v6 = vunpack.c.l.b16 %v8388_v38  ;;  %v9023_v4 = vsel %vm1375_vm11, %v9022_v17, %v9021_v14 }
 0xd27   : > { %v15641_v49 = vsel %vm8320_vm1, %v8317_v22, 0  ;;  %v15679_v34 = vsel %vm8320_vm1, %v8303_v28, 0  ;;  %v9026_v15 = vrot.slane %v8879_v30, 3  ;;  %v9025_v11 = vsel %vm1378_vm12, %v9024_v46, %v9023_v4 }
 0xd28   : > { %8656 = vrot.lane.b32.xlu1 %v15593_v44, %s10509_s19  ;;  %8544 = vrot.lane.b32.xlu0 %v15641_v49, %s16907_s2  ;;  %v8383_v58 = vsel %vm14258_vm8, %v15679_v34, 0  ;;  %v8390_v0 = vsel %vm14258_vm8, %v15641_v49, 0  ;;  %v9038_v28 = vrot.slane %v8886_v6, 4  ;;  %vm8402_vm5 = vcmp.ne.s16.totalorder %v17097_v43, 0 }
 0xd29   : > { %v8274_v10 = vpop.permute.xlu1 %8273  ;;  %v8286_v60 = vpop.permute.xlu0 %8285  ;;  %v8881_v22 = vunpack.c.l.b16 %v8383_v58  ;;  %v8888_v26 = vunpack.c.l.b16 %v8390_v0  ;;  %v8403_v1 = vsel %vm8402_vm5, %v15581_v13, 0  ;;  %v17099_v17 = vmov 0  }
 0xd2a   : > { %v8307_v41 = vsel %vm8287_vm7, 0, %v8274_v10  ;;  %v8319_v25 = vsel %vm8287_vm7, 0, %v8286_v60  ;;  %v8409_v30 = vsel %vm8402_vm5, %v15593_v44, 0  ;;  %v8413_v58 = vsel %vm8402_vm5, %v15599_v51, 0 }
 0xd2b   : > { %v15665_v33 = vsel %vm8320_vm1, %v8307_v41, 0  ;;  %v15687_v56 = vsel %vm8320_vm1, %v8319_v25, 0  ;;  %v9027_v41 = vsel %vm1381_vm13, %v9026_v15, %v9025_v11  ;;  %v9030_v50 = vrot.slane %v8881_v22, 1 }
 0xd2c   : > { %v8385_v35 = vsel %vm14258_vm8, %v15665_v33, 0  ;;  %8776 = vrot.lane.b32.xlu1 %v15575_v12, %s16991_s23  ;;  %8664 = vrot.lane.b32.xlu0 %v15599_v51, %s10509_s19  ;;  %v8391_v45 = vsel %vm14258_vm8, %v15687_v56, 0  ;;  %v9042_v24 = vrot.slane %v8888_v26, 2  ;;  %v17102_v26 = vld [vmem:[#allocation18_spill] sm:$0xff]  ;;  %v8418_v42 = vsel %vm8402_vm5, %v15687_v56, 0 }
 0xd2d   : > { %v8883_v36 = vunpack.c.l.b16 %v8385_v35  ;;  %v8278_v8 = vpop.permute.xlu1 %8277  ;;  %v8889_v60 = vunpack.c.l.b16 %v8391_v45  ;;  %vm8464_vm15 = vcmp.ne.s16.totalorder %v17102_v26, 0 }
 0xd2e   : > { %v8311_v32 = vsel %vm8287_vm7, 0, %v8278_v8  ;;  %v8405_v8 = vsel %vm8402_vm5, %v15575_v12, 0  ;;  %v8469_v11 = vsel %vm8464_vm15, %v15587_v55, 0 }
 0xd2f   : > { %v9032_v2 = vrot.slane %v8883_v36, 7  ;;  %v15690_v16 = vsel %vm8320_vm1, %v8311_v32, 0  ;;  %v9044_v25 = vrot.slane %v8889_v60, 1  ;;  %v8465_v60 = vsel %vm8464_vm15, %v15581_v13, 0 }
 0xd30   : > { %8772 = vrot.lane.b32.xlu1 %v15581_v13, %s16991_s23  ;;  %8650 = vrot.lane.b32.xlu0 %v15611_v29, %s10509_s19  ;;  %v8387_v27 = vsel %vm14258_vm8, %v15690_v16, 0 }
 0xd31   : > { %v8282_v31 = vpop.permute.xlu1 %8281  ;;  %v8885_v37 = vunpack.c.l.b16 %v8387_v27  ;;  %v9033_v9 = vsel %vm1369_vm9, %v9032_v2, %v8882_v48  ;;  %v9029_v48 = vsel %vm1384_vm14, %v9028_v40, %v9027_v41  ;;  %v8407_v2 = vsel %vm8402_vm5, %v15587_v55, 0 }
 0xd32   : > { %v8315_v47 = vsel %vm8287_vm7, 0, %v8282_v31  ;;  %v9035_v39 = vsel %vm1372_vm10, %v9034_v19, %v9033_v9  ;;  %v9031_v46 = vsel %vm17049_vm2, %v9030_v50, %v9029_v48  ;;  %v17100_v19 = vld [vmem:[#allocation19_spill] sm:$0xff]  ;;  %v8406_v31 = vsel %vm8402_vm5, %v15611_v29, 0 }
 0xd33   : > { %v15716_v57 = vsel %vm8320_vm1, %v8315_v47, 0  ;;  %v9036_v61 = vrot.slane %v8885_v37, 5  ;;  %v8415_v37 = vsel %vm8402_vm5, %v15622_v18, 0  ;;  %v8417_v9 = vsel %vm8402_vm5, %v15641_v49, 0  ;;  %v17101_v47 = vld [vmem:[#allocation16_spill] sm:$0xff]  ;;  %vm17129_vm1 = vmmov %vm17049_vm2 }
 0xd34   : > { %8780 = vrot.lane.b32.xlu1 %v15587_v55, %s16991_s23  ;;  %8668 = vrot.lane.b32.xlu0 %v15622_v18, %s10509_s19  ;;  %v8389_v23 = vsel %vm14258_vm8, %v15716_v57, 0  ;;  %vm8426_vm8 = vcmp.ne.s16.totalorder %v17100_v19, 0  ;;  %vm8445_vm0 = vcmp.ne.s16.totalorder %v17101_v47, 0  ;;  %v8471_v41 = vsel %vm8464_vm15, %v15593_v44, 0 }
 0xd35   : > { %v8887_v10 = vunpack.c.l.b16 %v8389_v23  ;;  %v9037_v62 = vsel %vm1375_vm11, %v9036_v61, %v9035_v39  ;;  %v8429_v59 = vsel %vm8426_vm8, %v15575_v12, 0  ;;  %v8427_v27 = vsel %vm8426_vm8, %v15581_v13, 0 }
 0xd36   : > { %v9039_v54 = vsel %vm1378_vm12, %v9038_v28, %v9037_v62  ;;  %v8431_v0 = vsel %vm8426_vm8, %v15587_v55, 0  ;;  %v8433_v14 = vsel %vm8426_vm8, %v15593_v44, 0  ;;  %v8448_v45 = vsel %vm8445_vm0, %v15575_v12, 0 }
 0xd37   : > { %v9040_v3 = vrot.slane %v8887_v10, 3  ;;  %v8437_v6 = vsel %vm8426_vm8, %v15599_v51, 0  ;;  %v8446_v4 = vsel %vm8445_vm0, %v15581_v13, 0  ;;  %v8430_v22 = vsel %vm8426_vm8, %v15611_v29, 0 }
 0xd38   : > { %8784 = vrot.lane.b32.xlu1 %v15593_v44, %s16991_s23  ;;  %8672 = vrot.lane.b32.xlu0 %v15641_v49, %s10509_s19  ;;  %v8450_v15 = vsel %vm8445_vm0, %v15587_v55, 0  ;;  %v8439_v61 = vsel %vm8426_vm8, %v15622_v18, 0  ;;  %v8452_v23 = vsel %vm8445_vm0, %v15593_v44, 0  ;;  %v8441_v20 = vsel %vm8426_vm8, %v15641_v49, 0 }
 0xd39   : > { %v9041_v35 = vsel %vm1381_vm13, %v9040_v3, %v9039_v54  ;;  %v8467_v39 = vsel %vm8464_vm15, %v15575_v12, 0  ;;  %v8456_v10 = vsel %vm8445_vm0, %v15599_v51, 0  ;;  %v8449_v62 = vsel %vm8445_vm0, %v15611_v29, 0  ;;  %v17103_v3 = vld [vmem:[#allocation20_spill] sm:$0xff] }
 0xd3a   : > { %v9043_v36 = vsel %vm1384_vm14, %v9042_v24, %v9041_v35  ;;  %v8458_v28 = vsel %vm8445_vm0, %v15622_v18, 0  ;;  %v8460_v50 = vsel %vm8445_vm0, %v15641_v49, 0  ;;  %vm8483_vm7 = vcmp.ne.s16.totalorder %v17103_v3, 0 }
 0xd3b   : > { %v9045_v32 = vsel %vm17098_vm3, %v9044_v25, %v9043_v36  ;;  %v8486_v40 = vsel %vm8483_vm7, %v15575_v12, 0  ;;  %v8475_v54 = vsel %vm8464_vm15, %v15599_v51, 0  ;;  %v8484_v35 = vsel %vm8483_vm7, %v15581_v13, 0  ;;  %vm17132_vm3 = vmmov %vm17129_vm1 }
 0xd3c   : > { %8568 = vrot.lane.b32.xlu1 %v8405_v8, %s16898_s20  ;;  %8792 = vrot.lane.b32.xlu0 %v15599_v51, %s16991_s23  ;;  %v9270_v38 = vpack.c.b16 %v9045_v32, %v9031_v46  ;;  %v8468_v25 = vsel %vm8464_vm15, %v15611_v29, 0  ;;  %v8488_v48 = vsel %vm8483_vm7, %v15587_v55, 0  ;;  %v8477_v36 = vsel %vm8464_vm15, %v15622_v18, 0 }
 0xd3d   : > { %v8490_v8 = vsel %vm8483_vm7, %v15593_v44, 0  ;;  %v8479_v46 = vsel %vm8464_vm15, %v15641_v49, 0  ;;  %v8494_v32 = vsel %vm8483_vm7, %v15599_v51, 0  ;;  %v8438_v7 = vsel %vm8426_vm8, %v15690_v16, 0 }
 0xd3e   : > { %9292 = vmatpush1.bf16.msra.mxu0 %v9270_v38 }
 0xd3f   : > { %9293 = vmatprep.subr.bf16.mxu0 %v17099_v17 }
 0xd40   : > { %8564 = vrot.lane.b32.xlu1 %v8403_v1, %s16898_s20  ;;  %8778 = vrot.lane.b32.xlu0 %v15611_v29, %s16991_s23  ;;  %v8487_v1 = vsel %vm8483_vm7, %v15611_v29, 0 }
 0xd44   : > { %8572 = vrot.lane.b32.xlu1 %v8407_v2, %s16898_s20  ;;  %8796 = vrot.lane.b32.xlu0 %v15622_v18, %s16991_s23 }
 0xd48   : > { %8576 = vrot.lane.b32.xlu1 %v8409_v30, %s16898_s20  ;;  %8800 = vrot.lane.b32.xlu0 %v15641_v49, %s16991_s23  ;;  %v8496_v30 = vsel %vm8483_vm7, %v15622_v18, 0 }
 0xd4c   : > { %8616 = vrot.lane.b32.xlu1 %v8429_v59, %s16899_s18  ;;  %8584 = vrot.lane.b32.xlu0 %v8413_v58, %s16898_s20  ;;  %v8498_v58 = vsel %vm8483_vm7, %v15641_v49, 0 }
 0xd50   : > { %8612 = vrot.lane.b32.xlu1 %v8427_v27, %s16899_s18  ;;  %8570 = vrot.lane.b32.xlu0 %v8406_v31, %s16898_s20 }
 0xd54   : > { %8620 = vrot.lane.b32.xlu1 %v8431_v0, %s16899_s18  ;;  %8588 = vrot.lane.b32.xlu0 %v8415_v37, %s16898_s20 }
 0xd58   : > { %8624 = vrot.lane.b32.xlu1 %v8433_v14, %s16899_s18  ;;  %8592 = vrot.lane.b32.xlu0 %v8417_v9, %s16898_s20 }
 0xd5c   : > { %8696 = vrot.lane.b32.xlu1 %v8448_v45, %s17059_s26  ;;  %8632 = vrot.lane.b32.xlu0 %v8437_v6, %s16899_s18 }
 0xd60   : > { %8692 = vrot.lane.b32.xlu1 %v8446_v4, %s17059_s26  ;;  %8618 = vrot.lane.b32.xlu0 %v8430_v22, %s16899_s18 }
 0xd64   : > { %8700 = vrot.lane.b32.xlu1 %v8450_v15, %s17059_s26  ;;  %8636 = vrot.lane.b32.xlu0 %v8439_v61, %s16899_s18 }
 0xd68   : > { %8704 = vrot.lane.b32.xlu1 %v8452_v23, %s17059_s26  ;;  %8640 = vrot.lane.b32.xlu0 %v8441_v20, %s16899_s18 }
 0xd6c   : > { %8744 = vrot.lane.b32.xlu1 %v8467_v39, %s16900_s28  ;;  %8712 = vrot.lane.b32.xlu0 %v8456_v10, %s17059_s26 }
 0xd70   : > { %8740 = vrot.lane.b32.xlu1 %v8465_v60, %s16900_s28  ;;  %8698 = vrot.lane.b32.xlu0 %v8449_v62, %s17059_s26  ;;  %v8404_v60 = vsel %vm8402_vm5, %v15608_v21, 0 }
 0xd74   : > { %8748 = vrot.lane.b32.xlu1 %v8469_v11, %s16900_s28  ;;  %8716 = vrot.lane.b32.xlu0 %v8458_v28, %s17059_s26  ;;  %v8411_v28 = vsel %vm8402_vm5, %v15638_v63, 0 }
 0xd78   : > { %8752 = vrot.lane.b32.xlu1 %v8471_v41, %s16900_s28  ;;  %8720 = vrot.lane.b32.xlu0 %v8460_v50, %s17059_s26 }
 0xd7c   : > { %8824 = vrot.lane.b32.xlu1 %v8486_v40, %s16987_s30  ;;  %8760 = vrot.lane.b32.xlu0 %v8475_v54, %s16900_s28  ;;  %v8408_v40 = vsel %vm8402_vm5, %v15657_v53, 0 }
 0xd7e   : > { %v15873_v24 = vpop.permute.xlu1 %8520 }
 0xd7f   : > { %v8892_v26 = vunpack.c.l.b16 %v15873_v24 }
 0xd80   : > { %8820 = vrot.lane.b32.xlu1 %v8484_v35, %s16987_s30  ;;  %8746 = vrot.lane.b32.xlu0 %v8468_v25, %s16900_s28  ;;  %v8428_v25 = vsel %vm8426_vm8, %v15608_v21, 0 }
 0xd82   : > { %v15883_v12 = vpop.permute.xlu1 %8516 }
 0xd84   : > { %8828 = vrot.lane.b32.xlu1 %v8488_v48, %s16987_s30  ;;  %8764 = vrot.lane.b32.xlu0 %v8477_v36, %s16900_s28 }
 0xd86   : > { %v15893_v13 = vpop.permute.xlu1 %8524 }
 0xd88   : > { %8832 = vrot.lane.b32.xlu1 %v8490_v8, %s16987_s30  ;;  %8768 = vrot.lane.b32.xlu0 %v8479_v46, %s16900_s28  ;;  %v8410_v8 = vsel %vm8402_vm5, %v15679_v34, 0  ;;  %v8412_v46 = vsel %vm8402_vm5, %v15665_v33, 0 }
 0xd8a   : > { %v15903_v55 = vpop.permute.xlu1 %8528 }
 0xd8c   : > { %8518 = vrot.lane.b32.xlu1 %v15608_v21, %s16907_s2  ;;  %8840 = vrot.lane.b32.xlu0 %v8494_v32, %s16987_s30 }
 0xd8e   : > { %v15911_v44 = vpop.permute.xlu1 %8648  ;;  %v15913_v38 = vpop.permute.xlu0 %8536 }
 0xd90   : > { %8532 = vrot.lane.b32.xlu1 %v15638_v63, %s16907_s2  ;;  %8826 = vrot.lane.b32.xlu0 %v8487_v1, %s16987_s30 }
 0xd92   : > { %v15921_v2 = vpop.permute.xlu1 %8644  ;;  %v15923_v51 = vpop.permute.xlu0 %8522 }
 0xd94   : > { %8526 = vrot.lane.b32.xlu1 %v15657_v53, %s16907_s2  ;;  %8844 = vrot.lane.b32.xlu0 %v8496_v30, %s16987_s30  ;;  %v8435_v30 = vsel %vm8426_vm8, %v15638_v63, 0 }
 0xd96   : > { %v15931_v59 = vpop.permute.xlu1 %8652  ;;  %v15933_v29 = vpop.permute.xlu0 %8540 }
 0xd98   : > { %8530 = vrot.lane.b32.xlu1 %v15679_v34, %s16907_s2  ;;  %8848 = vrot.lane.b32.xlu0 %v8498_v58, %s16987_s30  ;;  %v8414_v58 = vsel %vm8402_vm5, %v15690_v16, 0 }
 0xd9a   : > { %v15941_v27 = vpop.permute.xlu1 %8656  ;;  %v15943_v18 = vpop.permute.xlu0 %8544 }
 0xd9c   : > { %8646 = vrot.lane.b32.xlu1 %v15608_v21, %s10509_s19  ;;  %8534 = vrot.lane.b32.xlu0 %v15665_v33, %s16907_s2 }
 0xd9e   : > { %v15949_v31 = vpop.permute.xlu1 %8776  ;;  %v15951_v0 = vpop.permute.xlu0 %8664 }
 0xda0   : > { %8660 = vrot.lane.b32.xlu1 %v15638_v63, %s10509_s19  ;;  %8538 = vrot.lane.b32.xlu0 %v15690_v16, %s16907_s2 }
 0xda2   : > { %v15957_v49 = vpop.permute.xlu1 %8772  ;;  %v15959_v37 = vpop.permute.xlu0 %8650 }
 0xda4   : > { %8654 = vrot.lane.b32.xlu1 %v15657_v53, %s10509_s19  ;;  %8542 = vrot.lane.b32.xlu0 %v15716_v57, %s16907_s2 }
 0xda6   : > { %v15965_v14 = vpop.permute.xlu1 %8780  ;;  %v15967_v9 = vpop.permute.xlu0 %8668 }
 0xda8   : > { %8658 = vrot.lane.b32.xlu1 %v15679_v34, %s10509_s19  ;;  %8546 = vrot.lane.b32.xlu0 %v15687_v56, %s16907_s2 }
 0xdaa   : > { %v15973_v45 = vpop.permute.xlu1 %8784  ;;  %v15975_v6 = vpop.permute.xlu0 %8672 }
 0xdac   : > { %8774 = vrot.lane.b32.xlu1 %v15608_v21, %s16991_s23  ;;  %8662 = vrot.lane.b32.xlu0 %v15665_v33, %s10509_s19 }
 0xdae   : > { %v15981_v4 = vpop.permute.xlu1 %8568  ;;  %v15983_v22 = vpop.permute.xlu0 %8792 }
 0xdb0   : > { %8788 = vrot.lane.b32.xlu1 %v15638_v63, %s16991_s23  ;;  %8666 = vrot.lane.b32.xlu0 %v15690_v16, %s10509_s19 }
 0xdb2   : > { %v15989_v15 = vpop.permute.xlu1 %8564  ;;  %v15991_v61 = vpop.permute.xlu0 %8778 }
 0xdb4   : > { %8782 = vrot.lane.b32.xlu1 %v15657_v53, %s16991_s23  ;;  %8670 = vrot.lane.b32.xlu0 %v15716_v57, %s10509_s19 }
 0xdb6   : > { %v15997_v23 = vpop.permute.xlu1 %8572  ;;  %v15999_v20 = vpop.permute.xlu0 %8796 }
 0xdb8   : > { %8786 = vrot.lane.b32.xlu1 %v15679_v34, %s16991_s23  ;;  %8674 = vrot.lane.b32.xlu0 %v15687_v56, %s10509_s19 }
 0xdba   : > { %v16005_v39 = vpop.permute.xlu1 %8576  ;;  %v16007_v10 = vpop.permute.xlu0 %8800 }
 0xdbc   : > { %8566 = vrot.lane.b32.xlu1 %v8404_v60, %s16898_s20  ;;  %8790 = vrot.lane.b32.xlu0 %v15665_v33, %s16991_s23 }
 0xdbe   : > { %v16015_v62 = vpop.permute.xlu1 %8616  ;;  %v16017_v11 = vpop.permute.xlu0 %8584 }
 0xdc0   : > { %8580 = vrot.lane.b32.xlu1 %v8411_v28, %s16898_s20  ;;  %8794 = vrot.lane.b32.xlu0 %v15690_v16, %s16991_s23 }
 0xdc2   : > { %v16025_v41 = vpop.permute.xlu1 %8612  ;;  %v16027_v50 = vpop.permute.xlu0 %8570 }
 0xdc4   : > { %8574 = vrot.lane.b32.xlu1 %v8408_v40, %s16898_s20  ;;  %8798 = vrot.lane.b32.xlu0 %v15716_v57, %s16991_s23  ;;  %v8432_v40 = vsel %vm8426_vm8, %v15657_v53, 0 }
 0xdc6   : > { %v16035_v54 = vpop.permute.xlu1 %8620  ;;  %v16037_v35 = vpop.permute.xlu0 %8588 }
 0xdc8   : > { %8614 = vrot.lane.b32.xlu1 %v8428_v25, %s16899_s18  ;;  %8802 = vrot.lane.b32.xlu0 %v15687_v56, %s16991_s23  ;;  %v8416_v25 = vsel %vm8402_vm5, %v15716_v57, 0  ;;  %vm17130_vm5 = vmmov %vm17129_vm1 }
 0xdca   : > { %v16045_v48 = vpop.permute.xlu1 %8624  ;;  %v16047_v36 = vpop.permute.xlu0 %8592 }
 0xdcc   : > { %8578 = vrot.lane.b32.xlu1 %v8410_v8, %s16898_s20  ;;  %8582 = vrot.lane.b32.xlu0 %v8412_v46, %s16898_s20 }
 0xdce   : > { %v16057_v32 = vpop.permute.xlu1 %8696  ;;  %v16059_v1 = vpop.permute.xlu0 %8632 }
 0xdcf   : > { %17104 = vst [vmem:[#allocation39_spill] sm:$0xff] %v16057_v32 }
 0xdd0   : > { %8628 = vrot.lane.b32.xlu1 %v8435_v30, %s16899_s18  ;;  %8586 = vrot.lane.b32.xlu0 %v8414_v58, %s16898_s20  ;;  %v8434_v30 = vsel %vm8426_vm8, %v15679_v34, 0  ;;  %v8436_v58 = vsel %vm8426_vm8, %v15665_v33, 0 }
 0xdd2   : > { %v16069_v60 = vpop.permute.xlu1 %8692  ;;  %v16071_v28 = vpop.permute.xlu0 %8618 }
 0xdd3   : > { %17105 = vst [vmem:[#allocation40_spill] sm:$0xff] %v16069_v60 }
 0xdd4   : > { %8622 = vrot.lane.b32.xlu1 %v8432_v40, %s16899_s18  ;;  %8590 = vrot.lane.b32.xlu0 %v8416_v25, %s16898_s20  ;;  %v8447_v25 = vsel %vm8445_vm0, %v15608_v21, 0 }
 0xdd6   : > { %v16081_v8 = vpop.permute.xlu1 %8700  ;;  %v16083_v46 = vpop.permute.xlu0 %8636 }
 0xdd7   : > { %17106 = vst [vmem:[#allocation41_spill] sm:$0xff] %v16081_v8 }
 0xdd8   : > { %8626 = vrot.lane.b32.xlu1 %v8434_v30, %s16899_s18  ;;  %8630 = vrot.lane.b32.xlu0 %v8436_v58, %s16899_s18  ;;  %v8454_v58 = vsel %vm8445_vm0, %v15638_v63, 0 }
 0xdda   : > { %v16093_v5 = vpop.permute.xlu1 %8704  ;;  %v16095_v40 = vpop.permute.xlu0 %8640 }
 0xddb   : > { %17107 = vst [vmem:[#allocation42_spill] sm:$0xff] %v16093_v5 }
 0xddc   : > { %8694 = vrot.lane.b32.xlu1 %v8447_v25, %s17059_s26  ;;  %8594 = vrot.lane.b32.xlu0 %v8418_v42, %s16898_s20  ;;  %v8451_v42 = vsel %vm8445_vm0, %v15657_v53, 0 }
 0xdde   : > { %v16105_v52 = vpop.permute.xlu1 %8744  ;;  %v16107_v30 = vpop.permute.xlu0 %8712 }
 0xddf   : > { %17108 = vst [vmem:[#allocation43_spill] sm:$0xff] %v16105_v52  ;;  %17109 = vst [vmem:[#allocation44_spill] sm:$0xff] %v16107_v30  ;;  %v8440_v52 = vsel %vm8426_vm8, %v15716_v57, 0 }
 0xde0   : > { %8708 = vrot.lane.b32.xlu1 %v8454_v58, %s17059_s26  ;;  %8634 = vrot.lane.b32.xlu0 %v8438_v7, %s16899_s18  ;;  %v8466_v7 = vsel %vm8464_vm15, %v15608_v21, 0 }
 0xde2   : > { %v16117_v43 = vpop.permute.xlu1 %8740  ;;  %v16119_v25 = vpop.permute.xlu0 %8698 }
 0xde3   : > { %17110 = vst [vmem:[#allocation45_spill] sm:$0xff] %v16117_v43  ;;  %17111 = vst [vmem:[#allocation46_spill] sm:$0xff] %v16119_v25  ;;  %v8442_v43 = vsel %vm8426_vm8, %v15687_v56, 0 }
 0xde4   : > { %8702 = vrot.lane.b32.xlu1 %v8451_v42, %s17059_s26  ;;  %8638 = vrot.lane.b32.xlu0 %v8440_v52, %s16899_s18  ;;  %v8453_v52 = vsel %vm8445_vm0, %v15679_v34, 0  ;;  %vm17133_vm8 = vmmov %vm17129_vm1 }
 0xde6   : > { %v16129_v5 = vpop.permute.xlu1 %8748  ;;  %v16131_v58 = vpop.permute.xlu0 %8716 }
 0xde7   : > { %17112 = vst [vmem:[#allocation23_spill] sm:$0xff] %v16129_v5  ;;  %17113 = vst [vmem:[#allocation47_spill] sm:$0xff] %v16131_v58  ;;  %v8455_v5 = vsel %vm8445_vm0, %v15665_v33, 0  ;;  %v8900_v58 = vunpack.c.l.b16 %v15913_v38  ;;  %v16260_v38 = vld [vmem:[%s16717_s7] sm:$0xff] }
 0xde8   : > { %8742 = vrot.lane.b32.xlu1 %v8466_v7, %s16900_s28  ;;  %8642 = vrot.lane.b32.xlu0 %v8442_v43, %s16899_s18  ;;  %v8473_v43 = vsel %vm8464_vm15, %v15638_v63, 0 }
 0xdea   : > { %v16141_v8 = vpop.permute.xlu1 %8752  ;;  %v16143_v42 = vpop.permute.xlu0 %8720 }
 0xdeb   : > { %17114 = vst [vmem:[#allocation48_spill] sm:$0xff] %v16141_v8  ;;  %17115 = vst [vmem:[#allocation49_spill] sm:$0xff] %v16143_v42  ;;  %v8457_v8 = vsel %vm8445_vm0, %v15690_v16, 0 }
 0xdec   : > { %8706 = vrot.lane.b32.xlu1 %v8453_v52, %s17059_s26  ;;  %8710 = vrot.lane.b32.xlu0 %v8455_v5, %s17059_s26  ;;  %v8470_v5 = vsel %vm8464_vm15, %v15657_v53, 0 }
 0xdee   : > { %v16153_v19 = vpop.permute.xlu1 %8824  ;;  %v16155_v7 = vpop.permute.xlu0 %8760 }
 0xdef   : > { %17116 = vst [vmem:[#allocation12_spill] sm:$0xff] %v16153_v19  ;;  %17117 = vst [vmem:[#allocation21_spill] sm:$0xff] %v16155_v7  ;;  %v8459_v19 = vsel %vm8445_vm0, %v15716_v57, 0 }
 0xdf0   : > { %8756 = vrot.lane.b32.xlu1 %v8473_v43, %s16900_s28  ;;  %8714 = vrot.lane.b32.xlu0 %v8457_v8, %s17059_s26  ;;  %v8472_v8 = vsel %vm8464_vm15, %v15679_v34, 0 }
 0xdf2   : > { %v16165_v42 = vpop.permute.xlu1 %8820  ;;  %v16167_v52 = vpop.permute.xlu0 %8746 }
 0xdf3   : > { %17118 = vst [vmem:[#allocation22_spill] sm:$0xff] %v16165_v42  ;;  %17119 = vst [vmem:[#allocation24_spill] sm:$0xff] %v16167_v52  ;;  %v8474_v42 = vsel %vm8464_vm15, %v15665_v33, 0 }
 0xdf4   : > { %8750 = vrot.lane.b32.xlu1 %v8470_v5, %s16900_s28  ;;  %8718 = vrot.lane.b32.xlu0 %v8459_v19, %s17059_s26  ;;  %v8485_v19 = vsel %vm8483_vm7, %v15608_v21, 0 }
 0xdf6   : > { %v16177_v7 = vpop.permute.xlu1 %8828  ;;  %v16179_v43 = vpop.permute.xlu0 %8764 }
 0xdf7   : > { %17120 = vst [vmem:[#allocation25_spill] sm:$0xff] %v16177_v7  ;;  %17121 = vst [vmem:[#allocation26_spill] sm:$0xff] %v16179_v43  ;;  %v8461_v7 = vsel %vm8445_vm0, %v15687_v56, 0 }
 0xdf8   : > { %8754 = vrot.lane.b32.xlu1 %v8472_v8, %s16900_s28  ;;  %8758 = vrot.lane.b32.xlu0 %v8474_v42, %s16900_s28  ;;  %v8492_v42 = vsel %vm8483_vm7, %v15638_v63, 0  ;;  %vm17134_vm0 = vmmov %vm17129_vm1 }
 0xdfa   : > { %v16189_v52 = vpop.permute.xlu1 %8832  ;;  %v16191_v5 = vpop.permute.xlu0 %8768 }
 0xdfb   : > { %17122 = vst [vmem:[#allocation28_spill] sm:$0xff] %v16189_v52  ;;  %17123 = vst [vmem:[#allocation27_spill] sm:$0xff] %v16191_v5  ;;  %v8476_v52 = vsel %vm8464_vm15, %v15690_v16, 0 }
 0xdfc   : > { %8822 = vrot.lane.b32.xlu1 %v8485_v19, %s16987_s30  ;;  %8722 = vrot.lane.b32.xlu0 %v8461_v7, %s17059_s26  ;;  %v8489_v7 = vsel %vm8483_vm7, %v15657_v53, 0  ;;  %v8478_v19 = vsel %vm8464_vm15, %v15716_v57, 0  ;;  %s10413_s26 = scalar_lea.vmem %s10412_s27, 32 }
 0xdfe   : > { %v8519_v43 = vpop.permute.xlu1 %8518  ;;  %v16201_v8 = vpop.permute.xlu0 %8840 }
 0xdff   : > { %17124 = vst [vmem:[#allocation29_spill] sm:$0xff] %v16201_v8  ;;  %v8891_v53 = vunpack.c.l.b16 %v8519_v43  ;;  %v8890_v43 = vunpack.c.l.b16 %v15883_v12  ;;  %v8894_v12 = vunpack.c.l.b16 %v15893_v13 }
 0xe00   : > { %8836 = vrot.lane.b32.xlu1 %v8492_v42, %s16987_s30  ;;  %8762 = vrot.lane.b32.xlu0 %v8476_v52, %s16900_s28  ;;  %v8491_v52 = vsel %vm8483_vm7, %v15679_v34, 0  ;;  %v8480_v42 = vsel %vm8464_vm15, %v15687_v56, 0  ;;  %v8493_v34 = vsel %vm8483_vm7, %v15665_v33, 0  ;;  %v8893_v33 = vunpack.c.l.b16 %v15923_v51  ;;  %vm17135_vm15 = vmmov %vm17134_vm0 }
 0xe02   : > { %v8533_v21 = vpop.permute.xlu1 %8532  ;;  %v16211_v47 = vpop.permute.xlu0 %8826  ;;  %v9050_v13 = vrot.slane %v8893_v33, 5 }
 0xe03   : > { %17125 = vst [vmem:[#allocation32_spill] sm:$0xff] %v16211_v47  ;;  %v8898_v24 = vunpack.c.l.b16 %v8533_v21 }
 0xe04   : > { %8830 = vrot.lane.b32.xlu1 %v8489_v7, %s16987_s30  ;;  %8766 = vrot.lane.b32.xlu0 %v8478_v19, %s16900_s28  ;;  %v8237_v7 = vld [vmem:[%s16718_s8] sm:$0xff] }
 0xe06   : > { %v8527_v63 = vpop.permute.xlu1 %8526  ;;  %v16221_v8 = vpop.permute.xlu0 %8844 }
 0xe07   : > { %17126 = vst [vmem:[#allocation31_spill] sm:$0xff] %v16221_v8  ;;  %v9046_v8 = vrot.slane %v8891_v53, 7 }
 0xe08   : > { %8834 = vrot.lane.b32.xlu1 %v8491_v52, %s16987_s30  ;;  %8770 = vrot.lane.b32.xlu0 %v8480_v42, %s16900_s28 }
 0xe09   : > { %v9047_v53 = vsel %vm1369_vm9, %v9046_v8, %v8890_v43  ;;  %v8895_v8 = vunpack.c.l.b16 %v8527_v63 }
 0xe0a   : > { %v8531_v19 = vpop.permute.xlu1 %8530  ;;  %v16234_v47 = vpop.permute.xlu0 %8848 }
 0xe0b   : > { %17127 = vst [vmem:[#allocation34_spill] sm:$0xff] %v16234_v47  ;;  %v8495_v47 = vsel %vm8483_vm7, %v15690_v16, 0  ;;  %v8497_v16 = vsel %vm8483_vm7, %v15716_v57, 0  ;;  %v9982_v57 = vcombine.high %v16260_v38, %v16260_v38  ;;  %v8897_v33 = vunpack.c.l.b16 %v8531_v19 }
 0xe0c   : > { %9333 = vperm.xlu1 %10134, %v8237_v7   ;;  %8838 = vrot.lane.b32.xlu0 %v8493_v34, %s16987_s30  ;;  %v9048_v7 = vrot.slane %v8892_v26, 6  ;;  %v8902_v26 = vunpack.c.l.b16 %v15933_v29  ;;  %v9054_v29 = vrot.slane %v8895_v8, 3 }
 0xe0d   : > { %9983 = vmatprep.mubr.msk.bf16.mxu0 %vm757_vm6, %v9982_v57  ;;  %vm17128_vm6 = vmmov %vm17049_vm2 }
 0xe0e   : > { %v16242_v52 = vpop.permute.xlu1 %8646  ;;  %v8535_v42 = vpop.permute.xlu0 %8534  ;;  %v9049_v51 = vsel %vm1372_vm10, %v9048_v7, %v9047_v53  ;;  %vm17131_vm2 = vmmov %vm17129_vm1 }
 0xe0f   : > { %v8899_v5 = vunpack.c.l.b16 %v8535_v42  ;;  %v9051_v30 = vsel %vm1375_vm11, %v9050_v13, %v9049_v51 }
 0xe10   : > { %8842 = vrot.lane.b32.xlu0 %v8495_v47, %s16987_s30  ;;  %v9062_v47 = vrot.slane %v8900_v58, 6  ;;  %v8499_v58 = vsel %vm8483_vm7, %v15687_v56, 0  ;;  %v8238_v56 = vld [vmem:[%s16719_s9] sm:$0xff]  ;;  %vm17138_vm7 = vmmov %vm17134_vm0 }
 0xe11   : > { %v9060_v34 = vrot.slane %v8899_v5, 7 }
 0xe12   : > { %v16252_v25 = vpop.permute.xlu1 %8660  ;;  %v8539_v42 = vpop.permute.xlu0 %8538 }
 0xe13   : > { %v9061_v21 = vsel %vm1369_vm9, %v9060_v34, %v8898_v24  ;;  %v8901_v5 = vunpack.c.l.b16 %v8539_v42  ;;  %v9052_v24 = vrot.slane %v8894_v12, 4  ;;  %v8896_v34 = vunpack.c.l.b16 %v15903_v55 }
 0xe14   : > { %8846 = vrot.lane.b32.xlu0 %v8497_v16, %s16987_s30  ;;  %v9063_v60 = vsel %vm1372_vm10, %v9062_v47, %v9061_v21  ;;  %v9066_v42 = vrot.slane %v8902_v26, 4  ;;  %v8904_v16 = vunpack.c.l.b16 %v15943_v18  ;;  %v9058_v55 = vrot.slane %v8897_v33, 1 }
 0xe15   : > { %v9064_v43 = vrot.slane %v8901_v5, 5  ;;  %v9053_v3 = vsel %vm1378_vm12, %v9052_v24, %v9051_v30  ;;  %v9056_v5 = vrot.slane %v8896_v34, 2  ;;  %v8988_v26 = vunpack.c.l.b16 %v15949_v31 }
 0xe16   : > { %v16270_v32 = vpop.permute.xlu1 %8654  ;;  %v8543_v63 = vpop.permute.xlu0 %8542  ;;  %v9055_v12 = vsel %vm1381_vm13, %v9054_v29, %v9053_v3  ;;  %v9070_v47 = vrot.slane %v8904_v16, 2  ;;  %v8989_v24 = vunpack.c.l.b16 %v15991_v61 }
 0xe17   : > { %v9065_v53 = vsel %vm1375_vm11, %v9064_v43, %v9063_v60  ;;  %v8903_v7 = vunpack.c.l.b16 %v8543_v63  ;;  %v9057_v57 = vsel %vm1384_vm14, %v9056_v5, %v9055_v12 }
 0xe18   : > { %8850 = vrot.lane.b32.xlu0 %v8499_v58, %s16987_s30  ;;  %v9067_v19 = vsel %vm1378_vm12, %v9066_v42, %v9065_v53  ;;  %v9059_v58 = vsel %vm17128_vm6, %v9058_v55, %v9057_v57  ;;  %v9216_v42 = vrot.slane %v8988_v26, 6  ;;  %vm17139_vm6 = vmmov %vm17134_vm0  ;;  %s511_s30 = scalar_lea.vmem [#allocation2], %s510_s3 }
 0xe19   : > { %v9068_v51 = vrot.slane %v8903_v7, 3  ;;  %v8986_v7 = vunpack.c.l.b16 %v15957_v49  ;;  %s9915_s21 = sshll.u32 %s511_s30, 4  ;;  %s16670_s21 = int_to_ptr.vmem [resolvable:$true] %s9915_s21 }
 0xe1a   : > { %v16285_v8 = vpop.permute.xlu1 %8658  ;;  %v8547_v60 = vpop.permute.xlu0 %8546  ;;  %s10407_s17 = scalar_lea.vmem %s16670_s21, 16  ;;  %p10414_p0 = scmp.lt.s32.totalorder %s16670_s21, %s10412_s27 }
 0xe1b   : > { %v9069_v21 = vsel %vm1381_vm13, %v9068_v51, %v9067_v19  ;;  %v8905_v18 = vunpack.c.l.b16 %v8547_v60  ;;  %v9218_v19 = vrot.slane %v8989_v24, 5  ;;  %p10408_p11 = scmp.ne.s32.totalorder %s16670_s21, %s10407_s17  ;;  %p10415_p1 = scmp.lt.s32.totalorder %s10413_s26, %s10407_s17 }
 0xe1c   : > { %9339 = vperm.xlu0 %10135, %v8238_v56   ;;  %v9071_v30 = vsel %vm1384_vm14, %v9070_v47, %v9069_v21  ;;  %v8990_v56 = vunpack.c.l.b16 %v15965_v14  ;;  %v8992_v21 = vunpack.c.l.b16 %v15973_v45  ;;  %v8996_v45 = vunpack.c.l.b16 %v15983_v22 }
 0xe1d   : > { %v9072_v13 = vrot.slane %v8905_v18, 1  ;;  %p10409_p12 = pnand %p10408_p11, %p10635_p5  ;;  %p10416_p2 = por %p10415_p1, %p10414_p0 }
 0xe1e   : > { %v8775_v43 = vpop.permute.xlu1 %8774  ;;  %v16292_v63 = vpop.permute.xlu0 %8662  ;;  %v9220_v55 = vrot.slane %v8990_v56, 4  ;;  %v9224_v57 = vrot.slane %v8992_v21, 2 }
 0xe1f   : > { %v9073_v29 = vsel %vm17129_vm1, %v9072_v13, %v9071_v30  ;;  %v8987_v33 = vunpack.c.l.b16 %v8775_v43  ;;  %vm17151_vm1 = vmmov %vm17134_vm0  ;;  %p10410_p13 = pneg %p10409_p12 }
 0xe20   : > { %v9271_v53 = vpack.c.b16 %v9073_v29, %v9059_v58 }
 0xe21   : > { %v9214_v34 = vrot.slane %v8987_v33, 7  ;;  %p10417_p3 = pnand %p10416_p2, %p10410_p13 }
 0xe22   : > { %v8789_v31 = vpop.permute.xlu1 %8788  ;;  %9294 = vmatpush1.bf16.msra.mxu0 %v9271_v53  ;;  %v16298_v16 = vpop.permute.xlu0 %8666 }
 0xe23   : > { %v9215_v51 = vsel %vm1369_vm9, %v9214_v34, %v8986_v7  ;;  %9295 = vmatprep.subr.bf16.mxu0 %v17099_v17  ;;  %v8994_v7 = vunpack.c.l.b16 %v8789_v31 }
 0xe24   : > { %v9217_v3 = vsel %vm1372_vm10, %v9216_v42, %v9215_v51 }
 0xe25   : > { %v9219_v61 = vsel %vm1375_vm11, %v9218_v19, %v9217_v3  ;;  %v9230_v3 = vrot.slane %v8996_v45, 6  ;;  %v8998_v19 = vunpack.c.l.b16 %v15999_v20  ;;  %v8942_v45 = vunpack.c.l.b16 %v15931_v59 }
 0xe26   : > { %v8783_v60 = vpop.permute.xlu1 %8782  ;;  %v16304_v12 = vpop.permute.xlu0 %8670  ;;  %v9221_v5 = vsel %vm1378_vm12, %v9220_v55, %v9219_v61  ;;  %v8938_v59 = vunpack.c.l.b16 %v15921_v2 }
 0xe27   : > { %v8991_v49 = vunpack.c.l.b16 %v8783_v60  ;;  %v9234_v31 = vrot.slane %v8998_v19, 4 }
 0xe29   : > { %v9222_v18 = vrot.slane %v8991_v49, 3 }
 0xe2a   : > { %v8787_v47 = vpop.permute.xlu1 %8786  ;;  %v16309_v13 = vpop.permute.xlu0 %8674 }
 0xe2b   : > { %v9223_v14 = vsel %vm1381_vm13, %v9222_v18, %v9221_v5  ;;  %v8993_v26 = vunpack.c.l.b16 %v8787_v47  ;;  %v9000_v18 = vunpack.c.l.b16 %v16007_v10 }
 0xe2c   : > { %v9225_v43 = vsel %vm1384_vm14, %v9224_v57, %v9223_v14 }
 0xe2d   : > { %v9226_v30 = vrot.slane %v8993_v26, 1 }
 0xe2e   : > { %v8567_v58 = vpop.permute.xlu1 %8566  ;;  %v8791_v29 = vpop.permute.xlu0 %8790 }
 0xe2f   : > { %v16314_v33 = vsel %vm17130_vm5, %v9226_v30, %v9225_v43  ;;  %v8995_v53 = vunpack.c.l.b16 %v8791_v29  ;;  %v9238_v30 = vrot.slane %v9000_v18, 2  ;;  %v8907_v43 = vunpack.c.l.b16 %v8567_v58  ;;  %vm17152_vm5 = vmmov %vm17134_vm0 }
 0xe30   : > { %v8940_v29 = vunpack.c.l.b16 %v15911_v44  ;;  %v8944_v18 = vunpack.c.l.b16 %v15941_v27 }
 0xe31   : > { %v9228_v24 = vrot.slane %v8995_v53, 7  ;;  %v9074_v19 = vrot.slane %v8907_v43, 7 }
 0xe32   : > { %v16317_v34 = vpop.permute.xlu1 %8580  ;;  %v8795_v42 = vpop.permute.xlu0 %8794  ;;  %v16340_v58 = vrot.slane %v8940_v29, 6 }
 0xe33   : > { %v9229_v51 = vsel %vm1369_vm9, %v9228_v24, %v8994_v7  ;;  %v8997_v56 = vunpack.c.l.b16 %v8795_v42  ;;  %v8948_v42 = vunpack.c.l.b16 %v15951_v0  ;;  %v8906_v0 = vunpack.c.l.b16 %v15989_v15 }
 0xe34   : > { %v9231_v49 = vsel %vm1372_vm10, %v9230_v3, %v9229_v51  ;;  %v8941_v3 = vunpack.c.l.b16 %v15959_v37  ;;  %v8912_v37 = vunpack.c.l.b16 %v16005_v39  ;;  %v8952_v39 = vunpack.c.l.b16 %v15975_v6 }
 0xe35   : > { %v9232_v60 = vrot.slane %v8997_v56, 5  ;;  %v9075_v15 = vsel %vm1369_vm9, %v9074_v19, %v8906_v0  ;;  %v8939_v0 = vunpack.c.l.b16 %v16242_v52  ;;  %v8925_v52 = vunpack.c.l.b16 %v16071_v28 }
 0xe36   : > { %v16322_v61 = vpop.permute.xlu1 %8574  ;;  %v8799_v55 = vpop.permute.xlu0 %8798  ;;  %v9084_v29 = vrot.slane %v8912_v37, 2 }
 0xe37   : > { %v9233_v21 = vsel %vm1375_vm11, %v9232_v60, %v9231_v49  ;;  %v8999_v22 = vunpack.c.l.b16 %v8799_v55  ;;  %v8950_v60 = vunpack.c.l.b16 %v15967_v9  ;;  %v8908_v49 = vunpack.c.l.b16 %v15981_v4 }
 0xe38   : > { %v9235_v47 = vsel %vm1378_vm12, %v9234_v31, %v9233_v21  ;;  %v16345_v55 = vrot.slane %v8942_v45, 4  ;;  %v8910_v21 = vunpack.c.l.b16 %v15997_v23  ;;  %v16355_v9 = vrot.slane %v8941_v3, 5 }
 0xe39   : > { %v9236_v5 = vrot.slane %v8999_v22, 3  ;;  %v8916_v4 = vunpack.c.l.b16 %v16017_v11  ;;  %v16360_v23 = vrot.slane %v8950_v60, 4  ;;  %v8924_v3 = vunpack.c.l.b16 %v16015_v62 }
 0xe3a   : > { %v8615_v14 = vpop.permute.xlu1 %8614  ;;  %v8803_v26 = vpop.permute.xlu0 %8802  ;;  %v9080_v43 = vrot.slane %v8910_v21, 4 }
 0xe3b   : > { %v9237_v57 = vsel %vm1381_vm13, %v9236_v5, %v9235_v47  ;;  %v9001_v20 = vunpack.c.l.b16 %v8803_v26  ;;  %v16353_v5 = vrot.slane %v8948_v42, 6  ;;  %v8923_v45 = vunpack.c.l.b16 %v8615_v14 }
 0xe3c   : > { %v9239_v7 = vsel %vm1384_vm14, %v9238_v30, %v9237_v57  ;;  %v8909_v57 = vunpack.c.l.b16 %v16027_v50  ;;  %v8914_v30 = vunpack.c.l.b16 %v16317_v34  ;;  %v9090_v19 = vrot.slane %v8916_v4, 6 }
 0xe3d   : > { %v9240_v53 = vrot.slane %v9001_v20, 1  ;;  %v9076_v20 = vrot.slane %v8908_v49, 6  ;;  %v8918_v34 = vunpack.c.l.b16 %v16037_v35  ;;  %v8922_v49 = vunpack.c.l.b16 %v16025_v41 }
 0xe3e   : > { %v16331_v24 = vpop.permute.xlu1 %8578  ;;  %v8583_v10 = vpop.permute.xlu0 %8582  ;;  %v9078_v60 = vrot.slane %v8909_v57, 5  ;;  %v8920_v14 = vunpack.c.l.b16 %v16047_v36  ;;  %v8932_v36 = vunpack.c.l.b16 %v16059_v1 }
 0xe3f   : > { %v16335_v51 = vsel %vm17131_vm2, %v9240_v53, %v9239_v7  ;;  %v8915_v56 = vunpack.c.l.b16 %v8583_v10  ;;  %v8911_v53 = vunpack.c.l.b16 %v16322_v61  ;;  %v9077_v11 = vsel %vm1372_vm10, %v9076_v20, %v9075_v15  ;;  %vm17158_vm2 = vmmov %vm17134_vm0 }
 0xe40   : > { %v9277_v44 = vpack.c.b16 %v16335_v51, %v16314_v33  ;;  %v8926_v61 = vunpack.c.l.b16 %v16035_v54  ;;  %v9079_v21 = vsel %vm1375_vm11, %v9078_v60, %v9077_v11  ;;  %v8913_v4 = vunpack.c.l.b16 %v16331_v24 }
 0xe41   : > { %v9088_v47 = vrot.slane %v8915_v56, 7  ;;  %v9082_v37 = vrot.slane %v8911_v53, 3  ;;  %v9094_v54 = vrot.slane %v8918_v34, 4  ;;  %v8947_v15 = vunpack.c.l.b16 %v16292_v63 }
 0xe42   : > { %v16350_v22 = vpop.permute.xlu1 %8628  ;;  %v8587_v31 = vpop.permute.xlu0 %8586  ;;  %v9104_v20 = vrot.slane %v8924_v3, 6  ;;  %v9130_v53 = vrot.slane %v8939_v0, 7  ;;  %v9086_v1 = vrot.slane %v8913_v4, 1  ;;  %v9118_v3 = vrot.slane %v8932_v36, 6 }
 0xe43   : > { %v8917_v26 = vunpack.c.l.b16 %v8587_v31  ;;  %v9089_v50 = vsel %vm1369_vm9, %v9088_v47, %v8914_v30  ;;  %v9102_v31 = vrot.slane %v8923_v45, 7  ;;  %v9108_v30 = vrot.slane %v8926_v61, 4 }
 0xe44   : > { %v9091_v47 = vsel %vm1372_vm10, %v9090_v19, %v9089_v50  ;;  %v9081_v45 = vsel %vm1378_vm12, %v9080_v43, %v9079_v21  ;;  %v9106_v60 = vrot.slane %v8925_v52, 5  ;;  %v9144_v34 = vrot.slane %v8947_v15, 7 }
 0xe45   : > { %v9092_v42 = vrot.slane %v8917_v26, 5  ;;  %v9083_v11 = vsel %vm1381_vm13, %v9082_v37, %v9081_v45  ;;  %v9103_v24 = vsel %vm1369_vm9, %v9102_v31, %v8922_v49  ;;  %v8949_v43 = vunpack.c.l.b16 %v16298_v16 }
 0xe46   : > { %v16365_v7 = vpop.permute.xlu1 %8622  ;;  %v8591_v10 = vpop.permute.xlu0 %8590  ;;  %v9131_v61 = vsel %vm1369_vm9, %v9130_v53, %v8938_v59  ;;  %v8946_v49 = vunpack.c.l.b16 %v16252_v25  ;;  %v9105_v21 = vsel %vm1372_vm10, %v9104_v20, %v9103_v24  ;;  %v9085_v37 = vsel %vm1384_vm14, %v9084_v29, %v9083_v11 }
 0xe47   : > { %v8919_v56 = vunpack.c.l.b16 %v8591_v10  ;;  %v9093_v35 = vsel %vm1375_vm11, %v9092_v42, %v9091_v47  ;;  %v9098_v10 = vrot.slane %v8920_v14, 2  ;;  %v8930_v14 = vunpack.c.l.b16 %v16350_v22 }
 0xe48   : > { %v9095_v50 = vsel %vm1378_vm12, %v9094_v54, %v9093_v35  ;;  %v8927_v31 = vunpack.c.l.b16 %v16365_v7  ;;  %v9087_v2 = vsel %vm17132_vm3, %v9086_v1, %v9085_v37  ;;  %v8934_v22 = vunpack.c.l.b16 %v16083_v46  ;;  %vm17159_vm3 = vmmov %vm17134_vm0 }
 0xe49   : > { %v9096_v41 = vrot.slane %v8919_v56, 3  ;;  %v9145_v35 = vsel %vm1369_vm9, %v9144_v34, %v8946_v49  ;;  %v8928_v7 = vunpack.c.l.b16 %v16045_v48  ;;  %v8951_v54 = vunpack.c.l.b16 %v16304_v12 }
 0xe4a   : > { %v16377_v26 = vpop.permute.xlu1 %8626  ;;  %v8631_v62 = vpop.permute.xlu0 %8630  ;;  %v8943_v52 = vunpack.c.l.b16 %v16270_v32  ;;  %v9107_v15 = vsel %vm1375_vm11, %v9106_v60, %v9105_v21  ;;  %v9110_v20 = vrot.slane %v8927_v31, 3  ;;  %v9147_v48 = vsel %vm1372_vm10, %v16353_v5, %v9145_v35 }
 0xe4b   : > { %v8931_v57 = vunpack.c.l.b16 %v8631_v62  ;;  %v9097_v28 = vsel %vm1381_vm13, %v9096_v41, %v9095_v50  ;;  %v9148_v41 = vrot.slane %v8949_v43, 5  ;;  %v9122_v32 = vrot.slane %v8934_v22, 4 }
 0xe4c   : > { %v9099_v47 = vsel %vm1384_vm14, %v9098_v10, %v9097_v28  ;;  %v8929_v10 = vunpack.c.l.b16 %v16377_v26  ;;  %v8936_v11 = vunpack.c.l.b16 %v16095_v40  ;;  %v8953_v1 = vunpack.c.l.b16 %v16309_v13 }
 0xe4d   : > { %v9116_v19 = vrot.slane %v8931_v57, 7  ;;  %v9133_v57 = vsel %vm1372_vm10, %v16340_v58, %v9131_v61  ;;  %v9149_v50 = vsel %vm1375_vm11, %v9148_v41, %v9147_v48  ;;  %v9109_v5 = vsel %vm1378_vm12, %v9108_v30, %v9107_v15 }
 0xe4e   : > { %v16388_v42 = vpop.permute.xlu1 %8694  ;;  %v8595_v56 = vpop.permute.xlu0 %8594  ;;  %v9135_v24 = vsel %vm1375_vm11, %v16355_v9, %v9133_v57  ;;  %v9138_v26 = vrot.slane %v8943_v52, 3  ;;  %v9114_v34 = vrot.slane %v8929_v10, 1  ;;  %v9154_v13 = vrot.slane %v8952_v39, 2  ;;  %v17141_v10 = vld [vmem:[#allocation46_spill] sm:$0xff] }
 0xe4f   : > { %v8921_v63 = vunpack.c.l.b16 %v8595_v56  ;;  %v9117_v59 = vsel %vm1369_vm9, %v9116_v19, %v8930_v14  ;;  %v9152_v56 = vrot.slane %v8951_v54, 3  ;;  %v8945_v19 = vunpack.c.l.b16 %v16285_v8 }
 0xe50   : > { %v9119_v53 = vsel %vm1372_vm10, %v9118_v3, %v9117_v59  ;;  %v8955_v9 = vunpack.c.l.b16 %v16388_v42  ;;  %v9112_v30 = vrot.slane %v8928_v7, 2  ;;  %v9126_v49 = vrot.slane %v8936_v11, 2 }
 0xe51   : > { %v9100_v0 = vrot.slane %v8921_v63, 1  ;;  %v9111_v63 = vsel %vm1381_vm13, %v9110_v20, %v9109_v5  ;;  %v9151_v8 = vsel %vm1378_vm12, %v16360_v23, %v9149_v50  ;;  %v9137_v14 = vsel %vm1378_vm12, %v16345_v55, %v9135_v24 }
 0xe52   : > { %v16401_v62 = vpop.permute.xlu1 %8708  ;;  %v8635_v16 = vpop.permute.xlu0 %8634  ;;  %v9156_v21 = vrot.slane %v8953_v1, 1  ;;  %v9139_v42 = vsel %vm1381_vm13, %v9138_v26, %v9137_v14  ;;  %v9142_v31 = vrot.slane %v8945_v19, 1  ;;  %v9158_v59 = vrot.slane %v8955_v9, 7 }
 0xe53   : > { %v9101_v25 = vsel %vm17133_vm8, %v9100_v0, %v9099_v47  ;;  %v8933_v4 = vunpack.c.l.b16 %v8635_v16  ;;  %v9153_v0 = vsel %vm1381_vm13, %v9152_v56, %v9151_v8  ;;  %v9113_v47 = vsel %vm1384_vm14, %v9112_v30, %v9111_v63 }
 0xe54   : > { %v9272_v29 = vpack.c.b16 %v9101_v25, %v9087_v2  ;;  %v9115_v2 = vsel %vm17134_vm0, %v9114_v34, %v9113_v47  ;;  %v9140_v55 = vrot.slane %v8944_v18, 2  ;;  %v9155_v35 = vsel %vm1384_vm14, %v9154_v13, %v9153_v0  ;;  %v17143_v34 = vld [vmem:[#allocation47_spill] sm:$0xff]  ;;  %v17146_v47 = vld [vmem:[#allocation49_spill] sm:$0xff] }
 0xe55   : > { %v9120_v36 = vrot.slane %v8933_v4, 5  ;;  %v17136_v4 = vld [vmem:[#allocation39_spill] sm:$0xff]  ;;  %v9157_v57 = vsel %vm17138_vm7, %v9156_v21, %v9155_v35  ;;  %v8962_v24 = vunpack.c.l.b16 %v16401_v62  ;;  %v8966_v62 = vunpack.c.l.b16 %v17143_v34 }
 0xe56   : > { %v16415_v46 = vpop.permute.xlu1 %8702  ;;  %9296 = vmatpush1.bf16.msra.mxu0 %v9272_v29  ;;  %v8639_v45 = vpop.permute.xlu0 %8638  ;;  %v8956_v22 = vunpack.c.l.b16 %v17136_v4  ;;  %v17137_v29 = vld [vmem:[#allocation40_spill] sm:$0xff]  ;;  %v9141_v54 = vsel %vm1384_vm14, %v9140_v55, %v9139_v42  ;;  %vm9900_vm8 = vcmask 73728  }
 0xe57   : > { %v9121_v58 = vsel %vm1375_vm11, %v9120_v36, %v9119_v53  ;;  %v8935_v12 = vunpack.c.l.b16 %v8639_v45  ;;  %9297 = vmatprep.subr.bf16.mxu0 %v17099_v17  ;;  %v8954_v7 = vunpack.c.l.b16 %v17137_v29  ;;  %v9143_v15 = vsel %vm17139_vm6, %v9142_v31, %v9141_v54  ;;  %v17140_v45 = vld [vmem:[#allocation44_spill] sm:$0xff] }
 0xe58   : > { %v9123_v3 = vsel %vm1378_vm12, %v9122_v32, %v9121_v58  ;;  %v9160_v53 = vrot.slane %v8956_v22, 6  ;;  %v8964_v48 = vunpack.c.l.b16 %v17140_v45  ;;  %v8957_v58 = vunpack.c.l.b16 %v17141_v10  ;;  %v17142_v32 = vld [vmem:[#allocation41_spill] sm:$0xff] }
 0xe59   : > { %v9124_v28 = vrot.slane %v8935_v12, 3  ;;  %v9159_v27 = vsel %vm1369_vm9, %v9158_v59, %v8954_v7  ;;  %v9274_v12 = vpack.c.b16 %v9157_v57, %v9143_v15  ;;  %v8958_v11 = vunpack.c.l.b16 %v17142_v32 }
 0xe5a   : > { %v16431_v60 = vpop.permute.xlu1 %8742  ;;  %v8643_v40 = vpop.permute.xlu0 %8642  ;;  %v9161_v50 = vsel %vm1372_vm10, %v9160_v53, %v9159_v27  ;;  %v8959_v56 = vunpack.c.l.b16 %v16415_v46  ;;  %v9178_v31 = vrot.slane %v8966_v62, 4  ;;  %v17149_v27 = vld [vmem:[#allocation24_spill] sm:$0xff] }
 0xe5b   : > { %v9125_v43 = vsel %vm1381_vm13, %v9124_v28, %v9123_v3  ;;  %v8937_v61 = vunpack.c.l.b16 %v8643_v40  ;;  %v8971_v28 = vunpack.c.l.b16 %v16431_v60  ;;  %v9174_v3 = vrot.slane %v8964_v48, 6  ;;  %v17150_v48 = vld [vmem:[#allocation23_spill] sm:$0xff] }
 0xe5c   : > { %v9127_v6 = vsel %vm1384_vm14, %v9126_v49, %v9125_v43  ;;  %v9162_v40 = vrot.slane %v8957_v58, 5  ;;  %v9164_v9 = vrot.slane %v8958_v11, 4  ;;  %v17144_v43 = vld [vmem:[#allocation42_spill] sm:$0xff]  ;;  %v9166_v13 = vrot.slane %v8959_v56, 3 }
 0xe5d   : > { %v9128_v37 = vrot.slane %v8937_v61, 1  ;;  %v8960_v61 = vunpack.c.l.b16 %v17144_v43  ;;  %v9186_v8 = vrot.slane %v8971_v28, 7  ;;  %v8974_v10 = vunpack.c.l.b16 %v17150_v48 }
 0xe5e   : > { %v8707_v39 = vpop.permute.xlu1 %8706  ;;  %v8711_v16 = vpop.permute.xlu0 %8710  ;;  %v9163_v46 = vsel %vm1375_vm11, %v9162_v40, %v9161_v50 }
 0xe5f   : > { %v9129_v23 = vsel %vm17135_vm15, %v9128_v37, %v9127_v6  ;;  %v8963_v25 = vunpack.c.l.b16 %v8711_v16  ;;  %v8961_v30 = vunpack.c.l.b16 %v8707_v39  ;;  %v17145_v37 = vld [vmem:[#allocation43_spill] sm:$0xff]  ;;  %v8968_v6 = vunpack.c.l.b16 %v17146_v47 }
 0xe60   : > { %v9273_v41 = vpack.c.b16 %v9129_v23, %v9115_v2  ;;  %v8972_v42 = vunpack.c.l.b16 %v17145_v37  ;;  %v17147_v2 = vld [vmem:[#allocation45_spill] sm:$0xff]  ;;  %v9165_v23 = vsel %vm1378_vm12, %v9164_v9, %v9163_v46  ;;  %v9192_v34 = vrot.slane %v8974_v10, 4 }
 0xe61   : > { %v9172_v18 = vrot.slane %v8963_v25, 7  ;;  %v8970_v59 = vunpack.c.l.b16 %v17147_v2  ;;  %v9168_v25 = vrot.slane %v8960_v61, 2  ;;  %v9167_v39 = vsel %vm1381_vm13, %v9166_v13, %v9165_v23 }
 0xe62   : > { %v16454_v36 = vpop.permute.xlu1 %8756  ;;  %9298 = vmatpush1.bf16.msra.mxu0 %v9273_v41  ;;  %v8715_v52 = vpop.permute.xlu0 %8714  ;;  %v9170_v55 = vrot.slane %v8961_v30, 1  ;;  %v9188_v57 = vrot.slane %v8972_v42, 6  ;;  %v9182_v54 = vrot.slane %v8968_v6, 2  ;;  %v17154_v30 = vld [vmem:[#allocation48_spill] sm:$0xff] }
 0xe63   : > { %v8965_v20 = vunpack.c.l.b16 %v8715_v52  ;;  %9299 = vmatprep.subr.bf16.mxu0 %v17099_v17  ;;  %v9173_v26 = vsel %vm1369_vm9, %v9172_v18, %v8962_v24  ;;  %v9187_v35 = vsel %vm1369_vm9, %v9186_v8, %v8970_v59  ;;  %v17148_v52 = vld [vmem:[#allocation21_spill] sm:$0xff]  ;;  %v8973_v18 = vunpack.c.l.b16 %v17149_v27  ;;  %v17155_v8 = vld [vmem:[#allocation27_spill] sm:$0xff] }
 0xe64   : > { %v9175_v49 = vsel %vm1372_vm10, %v9174_v3, %v9173_v26  ;;  %v8980_v15 = vunpack.c.l.b16 %v17148_v52  ;;  %v8978_v53 = vunpack.c.l.b16 %v16454_v36  ;;  %v9189_v58 = vsel %vm1372_vm10, %v9188_v57, %v9187_v35  ;;  %v17157_v35 = vld [vmem:[#allocation22_spill] sm:$0xff] }
 0xe65   : > { %v9176_v19 = vrot.slane %v8965_v20, 5  ;;  %v9169_v20 = vsel %vm1384_vm14, %v9168_v25, %v9167_v39  ;;  %v9190_v36 = vrot.slane %v8973_v18, 5  ;;  %v17160_v18 = vld [vmem:[#allocation29_spill] sm:$0xff] }
 0xe66   : > { %v16465_v1 = vpop.permute.xlu1 %8750  ;;  %9300 = vmatpush1.bf16.msra.mxu0 %v9274_v12  ;;  %v8719_v5 = vpop.permute.xlu0 %8718  ;;  %v9171_v12 = vsel %vm17151_vm1, %v9170_v55, %v9169_v20  ;;  %v9202_v26 = vrot.slane %v8980_v15, 6  ;;  %v17156_v55 = vld [vmem:[#allocation12_spill] sm:$0xff]  ;;  %v9012_v20 = vunpack.c.l.b16 %v17160_v18 }
 0xe67   : > { %v8967_v63 = vunpack.c.l.b16 %v8719_v5  ;;  %9301 = vmatprep.subr.bf16.mxu0 %v17099_v17  ;;  %v9177_v14 = vsel %vm1375_vm11, %v9176_v19, %v9175_v49  ;;  %v8975_v50 = vunpack.c.l.b16 %v16465_v1  ;;  %v17153_v19 = vld [vmem:[#allocation26_spill] sm:$0xff]  ;;  %v9191_v62 = vsel %vm1375_vm11, %v9190_v36, %v9189_v58 }
 0xe68   : > { %v9179_v4 = vsel %vm1378_vm12, %v9178_v31, %v9177_v14  ;;  %v8976_v49 = vunpack.c.l.b16 %v17154_v30  ;;  %v8984_v14 = vunpack.c.l.b16 %v17155_v8  ;;  %v9193_v42 = vsel %vm1378_vm12, %v9192_v34, %v9191_v62 }
 0xe69   : > { %v9180_v0 = vrot.slane %v8967_v63, 3  ;;  %v8982_v63 = vunpack.c.l.b16 %v17153_v19  ;;  %v9194_v61 = vrot.slane %v8975_v50, 3  ;;  %v9258_v36 = vrot.slane %v9012_v20, 6  ;;  %v17169_v20 = vld [vmem:[#allocation13_spill] sm:$0xff] }
 0xe6a   : > { %v8759_v60 = vpop.permute.xlu0 %8758  ;;  %v8755_v16 = vpop.permute.xlu1 %8754  ;;  %v9196_v23 = vrot.slane %v8976_v49, 2  ;;  %v9210_v25 = vrot.slane %v8984_v14, 2  ;;  %v17164_v49 = vld [vmem:[#allocation28_spill] sm:$0xff]  ;;  %v17165_v14 = vld [vmem:[#allocation34_spill] sm:$0xff] }
 0xe6b   : > { %v8979_v21 = vunpack.c.l.b16 %v8759_v60  ;;  %v9181_v41 = vsel %vm1381_vm13, %v9180_v0, %v9179_v4  ;;  %v8977_v1 = vunpack.c.l.b16 %v8755_v16  ;;  %v9206_v60 = vrot.slane %v8982_v63, 4  ;;  %v17163_v63 = vld [vmem:[#allocation31_spill] sm:$0xff] }
 0xe6c   : > { %v9183_v11 = vsel %vm1384_vm14, %v9182_v54, %v9181_v41  ;;  %v9195_v6 = vsel %vm1381_vm13, %v9194_v61, %v9193_v42  ;;  %v9004_v4 = vunpack.c.l.b16 %v17156_v55  ;;  %v9002_v41 = vunpack.c.l.b16 %v17157_v35 }
 0xe6d   : > { %v9200_v29 = vrot.slane %v8979_v21, 7  ;;  %v9198_v16 = vrot.slane %v8977_v1, 1  ;;  %v9981_v55 = vcombine.low %v16260_v38, %v16260_v38 }
 0xe6e   : > { %v8723_v22 = vpop.permute.xlu0 %8722  ;;  %v8823_v32 = vpop.permute.xlu1 %8822  ;;  %v9244_v58 = vrot.slane %v9004_v4, 6 }
 0xe6f   : > { %v8969_v7 = vunpack.c.l.b16 %v8723_v22  ;;  %v9201_v56 = vsel %vm1369_vm9, %v9200_v29, %v8978_v53  ;;  %v9003_v0 = vunpack.c.l.b16 %v8823_v32  ;;  %v9197_v29 = vsel %vm1384_vm14, %v9196_v23, %v9195_v6  ;;  %v17161_v53 = vld [vmem:[#allocation32_spill] sm:$0xff] }
 0xe70   : > { %v9203_v9 = vsel %vm1372_vm10, %v9202_v26, %v9201_v56  ;;  %v9199_v52 = vsel %vm17158_vm2, %v9198_v16, %v9197_v29 }
 0xe71   : > { %v9184_v45 = vrot.slane %v8969_v7, 1  ;;  %v9242_v39 = vrot.slane %v9003_v0, 7  ;;  %v9016_v0 = vunpack.c.l.b16 %v17165_v14 }
 0xe72   : > { %v8763_v24 = vpop.permute.xlu0 %8762  ;;  %v8837_v21 = vpop.permute.xlu1 %8836 }
 0xe73   : > { %v9185_v5 = vsel %vm17152_vm5, %v9184_v45, %v9183_v11  ;;  %v8981_v28 = vunpack.c.l.b16 %v8763_v24  ;;  %v9005_v45 = vunpack.c.l.b16 %v17161_v53  ;;  %v9243_v48 = vsel %vm1369_vm9, %v9242_v39, %v9002_v41 }
 0xe74   : > { %v9275_v3 = vpack.c.b16 %v9185_v5, %v9171_v12  ;;  %v9010_v12 = vunpack.c.l.b16 %v8837_v21  ;;  %v9245_v24 = vsel %vm1372_vm10, %v9244_v58, %v9243_v48 }
 0xe75   : > { %v9204_v40 = vrot.slane %v8981_v28, 5  ;;  %v17162_v28 = vld [vmem:[#allocation25_spill] sm:$0xff]  ;;  %v9246_v19 = vrot.slane %v9005_v45, 5 }
 0xe76   : > { %9302 = vmatpush1.bf16.msra.mxu0 %v9275_v3  ;;  %v8767_v43 = vpop.permute.xlu0 %8766  ;;  %v8831_v7 = vpop.permute.xlu1 %8830  ;;  %v9006_v26 = vunpack.c.l.b16 %v17162_v28  ;;  %v9014_v3 = vunpack.c.l.b16 %v17163_v63 }
 0xe77   : > { %v9205_v46 = vsel %vm1375_vm11, %v9204_v40, %v9203_v9  ;;  %v8983_v13 = vunpack.c.l.b16 %v8767_v43  ;;  %9303 = vmatprep.subr.bf16.mxu0 %v17099_v17  ;;  %v9007_v50 = vunpack.c.l.b16 %v8831_v7  ;;  %v9247_v62 = vsel %vm1375_vm11, %v9246_v19, %v9245_v24 }
 0xe78   : > { %v9207_v31 = vsel %vm1378_vm12, %v9206_v60, %v9205_v46  ;;  %v9248_v30 = vrot.slane %v9006_v26, 4  ;;  %v9008_v60 = vunpack.c.l.b16 %v17164_v49  ;;  %v9262_v8 = vrot.slane %v9014_v3, 4 }
 0xe79   : > { %v9208_v37 = vrot.slane %v8983_v13, 3  ;;  %v9250_v61 = vrot.slane %v9007_v50, 3 }
 0xe7a   : > { %v8771_v47 = vpop.permute.xlu0 %8770  ;;  %v8835_v40 = vpop.permute.xlu1 %8834  ;;  %v9252_v6 = vrot.slane %v9008_v60, 2 }
 0xe7b   : > { %v9209_v2 = vsel %vm1381_vm13, %v9208_v37, %v9207_v31  ;;  %v8985_v59 = vunpack.c.l.b16 %v8771_v47  ;;  %v9009_v1 = vunpack.c.l.b16 %v8835_v40  ;;  %v9249_v37 = vsel %vm1378_vm12, %v9248_v30, %v9247_v62 }
 0xe7c   : > { %v9211_v57 = vsel %vm1384_vm14, %v9210_v25, %v9209_v2 }
 0xe7d   : > { %v9212_v22 = vrot.slane %v8985_v59, 1  ;;  %v9254_v42 = vrot.slane %v9009_v1, 1 }
 0xe7e   : > { %v8839_v54 = vpop.permute.xlu0 %8838 }
 0xe7f   : > { %v9213_v15 = vsel %vm17159_vm3, %v9212_v22, %v9211_v57  ;;  %v9011_v27 = vunpack.c.l.b16 %v8839_v54 }
 0xe80   : > { %v9276_v10 = vpack.c.b16 %v9213_v15, %v9199_v52 }
 0xe81   : > { %v9256_v32 = vrot.slane %v9011_v27, 7  ;;  %v17168_v27 = vmov 0.0  }
 0xe82   : > { %9304 = vmatpush1.bf16.msra.mxu0 %v9276_v10  ;;  %v8843_v11 = vpop.permute.xlu0 %8842 }
 0xe83   : > { %v9257_v56 = vsel %vm1369_vm9, %v9256_v32, %v9010_v12  ;;  %v9013_v5 = vunpack.c.l.b16 %v8843_v11  ;;  %9305 = vmatprep.subr.bf16.mxu0 %v17099_v17  ;;  %vm17166_vm9 = vmmov %vm17134_vm0  ;;  %v17170_v32 = vld [vmem:[#allocation14_spill] sm:$0xff] }
 0xe84   : > { %v9259_v9 = vsel %vm1372_vm10, %v9258_v36, %v9257_v56  ;;  %vm17167_vm10 = vmmov %vm17134_vm0 }
 0xe85   : > { %v9260_v34 = vrot.slane %v9013_v5, 5 }
 0xe86   : > { %9306 = vmatpush1.bf16.msra.mxu0 %v9277_v44  ;;  %v8847_v43 = vpop.permute.xlu0 %8846  ;;  %v9251_v44 = vsel %vm1381_vm13, %v9250_v61, %v9249_v37 }
 0xe87   : > { %v9261_v46 = vsel %vm1375_vm11, %v9260_v34, %v9259_v9  ;;  %v9015_v13 = vunpack.c.l.b16 %v8847_v43  ;;  %9307 = vmatprep.subr.bf16.mxu0 %v17099_v17  ;;  %v9266_v17 = vrot.slane %v9016_v0, 2  ;;  %v9253_v2 = vsel %vm1384_vm14, %v9252_v6, %v9251_v44 }
 0xe88   : > { %v9263_v33 = vsel %vm1378_vm12, %v9262_v8, %v9261_v46  ;;  %v9255_v23 = vsel %vm17166_vm9, %v9254_v42, %v9253_v2  ;;  %vm10510_vm11 = vmmov 0   ;;  %vm9761_vm12 = vcmask 130112  }
 0xe89   : > { %v9264_v21 = vrot.slane %v9015_v13, 3  ;;  %10003 = vmatprep.mubr.msk.bf16.mxu1 %vm10510_vm11, %v17168_v27 }
 0xe8a   : > { %v8851_v51 = vpop.permute.xlu0 %8850 }
 0xe8b   : > { %v9265_v31 = vsel %vm1381_vm13, %v9264_v21, %v9263_v33  ;;  %v9017_v47 = vunpack.c.l.b16 %v8851_v51  ;;  %v9334_v4 = vpop.permute.xlu1 %9333  ;;  %vm9768_vm13 = vcmask 195712  }
 0xe8c   : > { %v9267_v59 = vsel %vm1384_vm14, %v9266_v17, %v9265_v31  ;;  %vm9775_vm14 = vcmask 261312  }
 0xe8d   : > { %v9268_v16 = vrot.slane %v9017_v47, 1 }
 0xe8f   : > { %v9269_v25 = vsel %vm17167_vm10, %v9268_v16, %v9267_v59 }
 0xe90   : > { %v9278_v39 = vpack.c.b16 %v9269_v25, %v9255_v23 }
 0xe92   : > { %9308 = vmatpush1.bf16.msra.mxu0 %v9278_v39 }
 0xe95   : > { %9324 = vmatmul.mubr.bf16.vlgmr.msra.gmra.mrb[4].mxu0 %v9981_v55 }
 0xe9b   : > { %v9340_v29 = vpop.permute.xlu0 %9339 }
 0xf68   : > { %v9325_v22 = vpop.f32.mrb[4].mxu0 }
 0xf69   : > { %v9336_v35 = vmul.f32 %v9334_v4, %v9325_v22  ;;  %v9327_v41 = vpop.f32.mrb[5].mxu0 }
 0xf6a   : > { %v9328_v7 = vpop.f32.mrb[6].mxu0 }
 0xf6b   : > { %v9342_v57 = vadd.f32 %v9340_v29, %v9336_v35  ;;  %v9329_v54 = vpop.f32.mrb[7].mxu0 }
 0xf6d   : > { %v9343_v52 = vmax.f32 %v9342_v57, 0.0 }
 0xf6f   : > { %9345 = vrot.lane.b32.xlu1 %v9343_v52, %s16900_s28  ;;  %v9348_v18 = vcombine.high %v9343_v52, %v17168_v27  ;;  %v9355_v53 = vrot.slane %v9343_v52, %v17169_v20 }
 0xf71   : > { %v9362_v12 = vrot.slane %v9348_v18, %v17169_v20 }
 0xfe1   : > { %v9346_v15 = vpop.permute.xlu1 %9345 }
 0xfe2   : > { %v9363_v38 = vcombine.high %v9346_v15, %v17168_v27  ;;  %v9370_v45 = vrot.slane %v9346_v15, %v17169_v20 }
 0xfe4   : > { %v9377_v48 = vrot.slane %v9363_v38, %v17169_v20  ;;  %v9378_v10 = vcombine.low %v9355_v53, %v9370_v45  ;;  %v9379_v58 = vcombine.high %v9355_v53, %v9370_v45 }
 0xfe6   : > { %v9386_v11 = vrot.slane %v9378_v10, %v17170_v32  ;;  %v9393_v24 = vrot.slane %v9379_v58, %v17170_v32  ;;  %v9394_v50 = vcombine.low %v9362_v12, %v9377_v48  ;;  %v9395_v5 = vcombine.high %v9362_v12, %v9377_v48 }
 0xfe8   : > { %9422 = vrot.lane.b32.xlu0 %v9386_v11, %s16899_s18  ;;  %v9410_v56 = vcombine.high %v9386_v11, %v17168_v27  ;;  %v9411_v28 = vcombine.high %v9393_v24, %v17168_v27  ;;  %v9402_v26 = vrot.slane %v9394_v50, %v17170_v32  ;;  %v9409_v19 = vrot.slane %v9395_v5, %v17170_v32 }
 0xfea   : > { %9424 = vrot.lane.b32.xlu1 %v9410_v56, %s16899_s18  ;;  %v9412_v36 = vcombine.high %v9402_v26, %v17168_v27  ;;  %v9413_v63 = vcombine.high %v9409_v19, %v17168_v27 }
 0xfec   : > { %9426 = vrot.lane.b32.xlu0 %v9393_v24, %s16899_s18 }
 0xfee   : > { %9428 = vrot.lane.b32.xlu1 %v9411_v28, %s16899_s18 }
 0xff0   : > { %9430 = vrot.lane.b32.xlu0 %v9402_v26, %s16899_s18 }
 0xff2   : > { %9432 = vrot.lane.b32.xlu1 %v9412_v36, %s16899_s18 }
 0xff4   : > { %9434 = vrot.lane.b32.xlu0 %v9409_v19, %s16899_s18 }
 0xff6   : > { %9436 = vrot.lane.b32.xlu1 %v9413_v63, %s16899_s18 }
0x105a   : > { %v9423_v3 = vpop.permute.xlu0 %9422 }
0x105b   : > { %v9446_v40 = vmax.f32 %v9386_v11, %v9423_v3 }
0x105c   : > { %v9425_v34 = vpop.permute.xlu1 %9424 }
0x105d   : > { %v9447_v62 = vmax.f32 %v9410_v56, %v9425_v34  ;;  %9462 = vrot.lane.b32.xlu0 %v9446_v40, %s16898_s20 }
0x105e   : > { %v9427_v9 = vpop.permute.xlu0 %9426 }
0x105f   : > { %v9448_v43 = vmax.f32 %v9393_v24, %v9427_v9  ;;  %9464 = vrot.lane.b32.xlu1 %v9447_v62, %s16898_s20 }
0x1060   : > { %v9429_v61 = vpop.permute.xlu1 %9428 }
0x1061   : > { %v9449_v1 = vmax.f32 %v9411_v28, %v9429_v61  ;;  %9466 = vrot.lane.b32.xlu0 %v9448_v43, %s16898_s20 }
0x1062   : > { %v9431_v46 = vpop.permute.xlu0 %9430 }
0x1063   : > { %v9450_v13 = vmax.f32 %v9402_v26, %v9431_v46  ;;  %9468 = vrot.lane.b32.xlu1 %v9449_v1, %s16898_s20 }
0x1064   : > { %v9433_v30 = vpop.permute.xlu1 %9432 }
0x1065   : > { %v9451_v49 = vmax.f32 %v9412_v36, %v9433_v30  ;;  %9470 = vrot.lane.b32.xlu0 %v9450_v13, %s16898_s20 }
0x1066   : > { %v9435_v60 = vpop.permute.xlu0 %9434 }
0x1067   : > { %v9452_v8 = vmax.f32 %v9409_v19, %v9435_v60  ;;  %9472 = vrot.lane.b32.xlu1 %v9451_v49, %s16898_s20 }
0x1068   : > { %v9437_v14 = vpop.permute.xlu1 %9436 }
0x1069   : > { %v9453_v0 = vmax.f32 %v9413_v63, %v9437_v14  ;;  %9474 = vrot.lane.b32.xlu0 %v9452_v8, %s16898_s20 }
0x106b   : > { %9476 = vrot.lane.b32.xlu1 %v9453_v0, %s16898_s20 }
0x10cf   : > { %v9463_v21 = vpop.permute.xlu0 %9462 }
0x10d0   : > { %v9479_v37 = vcombine.low %v9446_v40, %v9463_v21 }
0x10d1   : > { %v9465_v33 = vpop.permute.xlu1 %9464 }
0x10d2   : > { %v9486_v51 = vrot.slane %v9479_v37, %v17170_v32  ;;  %v9489_v31 = vcombine.low %v9447_v62, %v9465_v33 }
0x10d3   : > { %v9467_v44 = vpop.permute.xlu0 %9466 }
0x10d4   : > { %v9487_v42 = vcombine.high %v9486_v51, %v17168_v27  ;;  %v9499_v47 = vcombine.low %v9448_v43, %v9467_v44  ;;  %9574 = vrot.lane.b32.xlu0 %v9486_v51, %s16907_s2  ;;  %v9496_v2 = vrot.slane %v9489_v31, %v17170_v32 }
0x10d5   : > { %v9469_v6 = vpop.permute.xlu1 %9468 }
0x10d6   : > { %v9506_v17 = vrot.slane %v9499_v47, %v17170_v32  ;;  %9576 = vrot.lane.b32.xlu1 %v9487_v42, %s16907_s2  ;;  %v9509_v23 = vcombine.low %v9449_v1, %v9469_v6  ;;  %v9497_v25 = vcombine.high %v9496_v2, %v17168_v27 }
0x10d7   : > { %v9471_v16 = vpop.permute.xlu0 %9470 }
0x10d8   : > { %v9507_v59 = vcombine.high %v9506_v17, %v17168_v27  ;;  %9582 = vrot.lane.b32.xlu0 %v9506_v17, %s16907_s2  ;;  %v9516_v39 = vrot.slane %v9509_v23, %v17170_v32  ;;  %v9519_v55 = vcombine.low %v9450_v13, %v9471_v16  ;;  %v10403_v23 = vld [vmem:[%s16720_s10] sm:$0xff]  }
0x10d9   : > { %v9473_v22 = vpop.permute.xlu1 %9472  ;;  %10000 = vmatpush3.bf16.msra.mxu1 %v10403_v23 }
0x10da   : > { %9584 = vrot.lane.b32.xlu1 %v9507_v59, %s16907_s2  ;;  %v9517_v35 = vcombine.high %v9516_v39, %v17168_v27  ;;  %v16584_v41 = vrot.slane %v9519_v55, %v17170_v32  ;;  %v9529_v57 = vcombine.low %v9451_v49, %v9473_v22  ;;  %10001 = vmatprep.subr.bf16.mxu1 %v17168_v27 }
0x10db   : > { %v9475_v4 = vpop.permute.xlu0 %9474 }
0x10dc   : > { %9578 = vrot.lane.b32.xlu0 %v9496_v2, %s16907_s2  ;;  %v9539_v29 = vcombine.low %v9452_v8, %v9475_v4  ;;  %v16590_v7 = vcombine.high %v16584_v41, %v17168_v27  ;;  %v9536_v15 = vrot.slane %v9529_v57, %v17170_v32 }
0x10dd   : > { %v9477_v52 = vpop.permute.xlu1 %9476 }
0x10de   : > { %9580 = vrot.lane.b32.xlu1 %v9497_v25, %s16907_s2  ;;  %v16593_v54 = vrot.slane %v9539_v29, %v17170_v32  ;;  %v9549_v53 = vcombine.low %v9453_v0, %v9477_v52  ;;  %v9537_v38 = vcombine.high %v9536_v15, %v17168_v27 }
0x10e0   : > { %9586 = vrot.lane.b32.xlu0 %v9516_v39, %s16907_s2  ;;  %v9547_v18 = vcombine.high %v16593_v54, %v17168_v27  ;;  %v9556_v45 = vrot.slane %v9549_v53, %v17170_v32 }
0x10e2   : > { %9588 = vrot.lane.b32.xlu1 %v9517_v35, %s16907_s2  ;;  %v9557_v48 = vcombine.high %v9556_v45, %v17168_v27 }
0x10e4   : > { %9590 = vrot.lane.b32.xlu0 %v16584_v41, %s16907_s2 }
0x10e6   : > { %9592 = vrot.lane.b32.xlu1 %v16590_v7, %s16907_s2 }
0x10e8   : > { %9598 = vrot.lane.b32.xlu0 %v16593_v54, %s16907_s2 }
0x10ea   : > { %9600 = vrot.lane.b32.xlu1 %v9547_v18, %s16907_s2 }
0x10ec   : > { %9594 = vrot.lane.b32.xlu0 %v9536_v15, %s16907_s2 }
0x10ee   : > { %9596 = vrot.lane.b32.xlu1 %v9537_v38, %s16907_s2 }
0x10f0   : > { %9602 = vrot.lane.b32.xlu0 %v9556_v45, %s16907_s2 }
0x10f2   : > { %9604 = vrot.lane.b32.xlu1 %v9557_v48, %s16907_s2  ;;  %s9990_s2 = sshll.u32 %s10618_s25, 4  ;;  %s9903_s25 = scalar_lea.sflag [#allocation3], %s510_s3 }
0x10f3   : > { %s16668_s23 = scalar_lea.hbm %s16726_s16, %s9990_s2 }
0x1146   : > { %v9575_v10 = vpop.permute.xlu0 %9574 }
0x1147   : > { %v9622_v36 = vmax.f32 %v9486_v51, %v9575_v10 }
0x1148   : > { %v9577_v58 = vpop.permute.xlu1 %9576 }
0x1149   : > { %v9623_v56 = vmax.f32 %v9487_v42, %v9577_v58  ;;  %v17172_v58 = vld [vmem:[#allocation10_spill] sm:$0xff] }
0x114a   : > { %v9583_v12 = vpop.permute.xlu0 %9582 }
0x114b   : > { %v9626_v19 = vmax.f32 %v9506_v17, %v9583_v12  ;;  %v9660_v40 = vcombine.low %v9622_v36, %v9623_v56 }
0x114c   : > { %v9585_v11 = vpop.permute.xlu1 %9584 }
0x114d   : > { %v9627_v5 = vmax.f32 %v9507_v59, %v9585_v11  ;;  %v9668_v13 = vrot.slane %v9660_v40, %v17169_v20 }
0x114e   : > { %v9579_v24 = vpop.permute.xlu0 %9578 }
0x114f   : > { %v9624_v28 = vmax.f32 %v9496_v2, %v9579_v24  ;;  %v9677_v34 = vcombine.low %v9626_v19, %v9627_v5  ;;  %v17173_v5 = vld [vmem:[#allocation17_spill] sm:$0xff] }
0x1150   : > { %v9581_v50 = vpop.permute.xlu1 %9580 }
0x1151   : > { %v9625_v32 = vmax.f32 %v9497_v25, %v9581_v50  ;;  %v9685_v30 = vrot.slane %v9677_v34, %v17169_v20 }
0x1152   : > { %v9587_v26 = vpop.permute.xlu0 %9586 }
0x1153   : > { %v9661_v63 = vcombine.low %v9624_v28, %v9625_v32  ;;  %v9628_v62 = vmax.f32 %v9516_v39, %v9587_v26 }
0x1154   : > { %v9589_v3 = vpop.permute.xlu1 %9588 }
0x1155   : > { %v9629_v9 = vmax.f32 %v9517_v35, %v9589_v3  ;;  %v9675_v61 = vrot.slane %v9661_v63, %v17169_v20 }
0x1156   : > { %v9591_v43 = vpop.permute.xlu0 %9590 }
0x1157   : > { %v9678_v1 = vcombine.low %v9628_v62, %v9629_v9  ;;  %v9676_v8 = vcombine.low %v9668_v13, %v9675_v61  ;;  %v9630_v16 = vmax.f32 %v16584_v41, %v9591_v43  ;;  %v10405_v9 = vld [vmem:[%s16723_s13] sm:$0xff]   ;;  %v10406_v43 = vld [vmem:[%s16723_s13 + $0x8] sm:$0xff]  }
0x1158   : > { %v9593_v46 = vpop.permute.xlu1 %9592  ;;  %v9642_v61 = vld [vmem:[%s16721_s11] sm:$0x1] }
0x1159   : > { %v9692_v49 = vrot.slane %v9678_v1, %v17169_v20  ;;  %v9631_v44 = vmax.f32 %v16590_v7, %v9593_v46  ;;  %v9643_v1 = vld [vmem:[%s16722_s12] sm:$0x1] }
0x115a   : > { %v9599_v60 = vpop.permute.xlu0 %9598 }
0x115b   : > { %v9693_v14 = vcombine.low %v9685_v30, %v9692_v49  ;;  %v9634_v2 = vmax.f32 %v16593_v54, %v9599_v60  ;;  %v9694_v39 = vcombine.low %v9630_v16, %v9631_v44 }
0x115c   : > { %v9601_v0 = vpop.permute.xlu1 %9600 }
0x115d   : > { %v9732_v21 = vpack.c.bf16 %v9693_v14, %v9676_v8  ;;  %v9635_v31 = vmax.f32 %v9547_v18, %v9601_v0  ;;  %v9702_v41 = vrot.slane %v9694_v39, %v17169_v20 }
0x115e   : > { %v9595_v37 = vpop.permute.xlu0 %9594 }
0x115f   : > { %v9737_v33 = vunpack.c.h.b16 %v9732_v21  ;;  %v9736_v51 = vunpack.c.l.b16 %v9732_v21  ;;  %v9632_v47 = vmax.f32 %v9536_v15, %v9595_v37  ;;  %v9711_v55 = vcombine.low %v9634_v2, %v9635_v31  ;;  %v9841_v21 = vld [vmem:[%s16725_s15] sm:$0x1] }
0x1160   : > { %v9597_v42 = vpop.permute.xlu1 %9596 }
0x1161   : > { %v9633_v6 = vmax.f32 %v9537_v38, %v9597_v42  ;;  %9744 = vperm.xlu1 %10134, %v9737_v33   ;;  %9741 = vperm.xlu0 %10135, %v9736_v51   ;;  %v9719_v7 = vrot.slane %v9711_v55, %v17169_v20  ;;  %v10404_v38 = vld [vmem:[%s16720_s10 + $0x8] sm:$0xff]  }
0x1162   : > { %v9603_v17 = vpop.permute.xlu0 %9602  ;;  %10002 = vmatpush3.bf16.msra.mxu1 %v10404_v38 }
0x1163   : > { %v9695_v59 = vcombine.low %v9632_v47, %v9633_v6  ;;  %v9636_v4 = vmax.f32 %v9556_v45, %v9603_v17  ;;  %10007 = vmatprep.subr.bf16.mxu1 %v17168_v27  ;;  %v17171_v45 = vld [vmem:[#allocation11_spill] sm:$0xff] }
0x1164   : > { %v9605_v25 = vpop.permute.xlu1 %9604  ;;  %v9770_v10 = vadd.s32 4294967272, %v17171_v45 }
0x1165   : > { %v9637_v22 = vmax.f32 %v9557_v48, %v9605_v25  ;;  %v9709_v35 = vrot.slane %v9695_v59, %v17169_v20  ;;  %v9763_v48 = vadd.s32 4294967280, %v17171_v45 }
0x1166   : > { %v9773_v56 = vsub.s32 %v9770_v10, %v17172_v58 }
0x1167   : > { %v9712_v29 = vcombine.low %v9636_v4, %v9637_v22  ;;  %v9710_v54 = vcombine.low %v9702_v41, %v9709_v35  ;;  %v9766_v50 = vsub.s32 %v9763_v48, %v17172_v58 }
0x1169   : > { %v9726_v57 = vrot.slane %v9712_v29, %v17169_v20  ;;  %v9756_v20 = vadd.s32 4294967288, %v17171_v45 }
0x116b   : > { %v9727_v52 = vcombine.low %v9719_v7, %v9726_v57  ;;  %v9759_v12 = vsub.s32 %v9756_v20, %v17172_v58 }
0x116d   : > { %v9733_v15 = vpack.c.bf16 %v9727_v52, %v9710_v54 }
0x116f   : > { %v9739_v18 = vunpack.c.h.b16 %v9733_v15  ;;  %v9738_v53 = vunpack.c.l.b16 %v9733_v15 }
0x1171   : > { %9750 = vperm.xlu1 %10134, %v9739_v18   ;;  %9747 = vperm.xlu0 %10135, %v9738_v53  }
0x11e0   : > { %v9742_v11 = vpop.permute.xlu0 %9741  ;;  %v9745_v24 = vpop.permute.xlu1 %9744 }
0x11e1   : > { %v9755_v28 = vrot.slane %v9742_v11, %v17173_v5  ;;  %v9760_v32 = vrot.slane %v9745_v24, %v9759_v12 }
0x11e3   : > { %v9762_v3 = vsel %vm9761_vm12, %v9760_v32, %v9755_v28 }
0x11f0   : > { %v9748_v26 = vpop.permute.xlu0 %9747  ;;  %v9751_v36 = vpop.permute.xlu1 %9750 }
0x11f1   : > { %v9767_v19 = vrot.slane %v9748_v26, %v9766_v50  ;;  %v9774_v63 = vrot.slane %v9751_v36, %v9773_v56 }
0x11f3   : > { %v9769_v40 = vsel %vm9768_vm13, %v9767_v19, %v9762_v3 }
0x11f4   : > { %v9776_v34 = vsel %vm9775_vm14, %v9774_v63, %v9769_v40 }
0x11f5   : > { %v9777_v62 = vpack.c.b16 %v9776_v34, %v9776_v34 }
0x11f7   : > { %10004 = vmatmul.mubr.msk.bf16.vlgmr.msra.gmra.mrb[4].mxu1 %vm805_vm4, %v9777_v62 }
0x11f8   : > { %10011 = vmatprep.mubr.msk.bf16.mxu1 %vm10510_vm11, %v17168_v27  ;;  %10008 = vmatpush3.bf16.msra.mxu1 %v10405_v9 }
0x11f9   : > { %10009 = vmatprep.subr.bf16.mxu1 %v17168_v27  ;;  %v9840_v27 = vld [vmem:[%s16724_s14] sm:$0x1] }
0x11fc   : > { %10010 = vmatpush3.bf16.msra.mxu1 %v10406_v43 }
0x12ca   : > { %v9827_v46 = vpop.f32.mrb[4].mxu1 }
0x12cb   : > { %v9833_v13 = vmul.f32 %v9827_v46, %v9642_v61  ;;  %v10005_v30 = vpop.f32.mrb[5].mxu1 }
0x12cc   : > { %v9830_v49 = vpop.f32.mrb[6].mxu1 }
0x12cd   : > { %v9834_v60 = vadd.f32 %v9833_v13, %v9643_v1  ;;  %v10006_v8 = vpop.f32.mrb[7].mxu1 }
0x12cf   : > { %v9835_v14 = vmax.f32 %v9834_v60, 0.0 }
0x12d1   : > { %v9842_v0 = vpack.c.bf16 %v9835_v14, %v9835_v14 }
0x12d3   : > { %10012 = vmatmul.mubr.msk.bf16.vlgmr.msra.gmra.mrb[8].mxu1 %vm805_vm4, %v9842_v0 }
0x13a6   : > { %v9892_v37 = vpop.f32.mrb[8].mxu1 }
0x13a7   : > { %v9898_v33 = vmul.f32 %v9892_v37, %v9840_v27  ;;  %v10013_v51 = vpop.f32.mrb[9].mxu1 }
0x13a8   : > { %v9895_v44 = vpop.f32.mrb[10].mxu1 }
0x13a9   : > { %v9899_v42 = vadd.f32 %v9898_v33, %v9841_v21  ;;  %v10014_v31 = vpop.f32.mrb[11].mxu1 }
0x13ab   : > { %9901 = vst.msk [vmem:[%s511_s30] sm:$0x1] %vm9900_vm8, %v9899_v42 }
0x13ac   : > { %10420 = shalt.err (!%p10417_p3)
}
0x13ad   : > { %s10421_s3 = scalar_lea.hbm %s16668_s23, 16  ;;  %s10425_s18 = scalar_lea.hbm %s16726_s16, 32 }
0x13ae   : > { %p10422_p4 = scmp.ne.s32.totalorder %s16668_s23, %s10421_s3  ;;  %p10426_p9 = scmp.lt.u32.totalorder %s16668_s23, %s16726_s16 }
0x13af   : > { %p10427_p10 = scmp.lt.u32.totalorder %s10425_s18, %s10421_s3  ;;  %p10429_p12 = scmp.lt.u32.totalorder %s10421_s3, %s16668_s23 }
0x13b0   : > { %p10423_p7 = pnand %p10422_p4, %p10635_p5 }
0x13b1   : > { %p10428_p11 = por %p10427_p10, %p10426_p9 }
0x13b2   : > { %p10424_p8 = pneg %p10423_p7 }
0x13b3   : > { %p10430_p13 = por %p10429_p12, %p10428_p11 }
0x13b5   : > { %p10431_p0 = pnand %p10430_p13, %p10424_p8 }
0x13b7   : > { %10434 = shalt.err (!%p10431_p0)
}
0x13b8   : > { %10015 = dma.vmem_to_hbm [thread:$0]  (%p10635_p5), %s16670_s21, 16, %s16668_s23, %s9903_s25  }
0x13b9 PF: > { %s17174_s1 = sld [smem:[#allocation5_spill]]  ;;  %p10021_p1 = scmp.ge.s32.totalorder %s10469_s24, 2 }
0x13bb   : > { %p10018_p2 = pnand %p10021_p1, %p10639_p6 }
0x13bf   : > { %s9927_s17 = sand.u32 1, %s17174_s1  }
0x13c0   : > { %s9928_s29 = scalar_lea.sflag [#allocation3], %s9927_s17 }
0x13c1   : > { %10452 = dma.done.wait (!%p10018_p2), %s9928_s29, 16  }
0x13c2   : > { %10454 = vsyncadd (!%p10018_p2), %s9928_s29, 4294967280  ;;  %s17176_s24 = sld [smem:[#allocation7_spill]]  ;;  %s17177_s27 = sld [smem:[#allocation6_spill]] }
0x13c3   : > { %s17178_s23 = sld [smem:[#allocation8_spill]]  ;;  %s17179_s21 = smov %s10461_s22 }
0x13c8   : > { %p26_p3 = scmp.ge.s32.totalorder %s17176_s24, 4   ;;  %s17180_s22 = smov %s17177_s27 }
0x13ca   :  { %28 = sbr.rel (!%p26_p3) target bundleno = 8 (0x8), region = 119 }
0x13d1   :  { %9932 = vsyncpa [#allocation3], 1 }
0x13d2   :  { %9934 = vsyncpa [#allocation3 + $0x1], 1 }

</bundles_post_ra>
